<compile_context>
chip_gen: v7x
topology: tpu7x:2x2x1
jax: 0.10.0
libtpu: 0.0.40
codegen_flags: <defaults>
</compile_context>

<pallas_src>
import jax
import jax.numpy as jnp
from jax.experimental import pallas as pl
from jax.experimental.pallas import tpu as pltpu

IN_DIM = 512 * 2      # 1024
HID_DIM = 2048
OUT_DIM = 512
HID_CHUNK = 512       # hidden-dim slice processed per inner step

COMPUTE_DTYPE = jnp.bfloat16   # bf16 weights/activations, f32 MXU accumulation


def _round_up(n, m):
    return ((n + m - 1) // m) * m


def decoder_mlp_kernel(x_ref, w1_ref, b1_ref, w2_ref, b2_ref, o_ref):
    # f32 -> bf16 cast of the x tile happens here on the VPU (VALU has slack
    # vs. the MXU), so x only crosses HBM once at 4 B/elem.
    x = x_ref[...].astype(COMPUTE_DTYPE)
    acc = jnp.zeros((x.shape[0], OUT_DIM), jnp.float32)
    # Chunk the hidden dimension: keeps the live intermediate at
    # [tile, HID_CHUNK] instead of [tile, 2048] f32 + a bf16 copy.
    for c in range(HID_DIM // HID_CHUNK):
        lo = c * HID_CHUNK
        h = jnp.dot(x, w1_ref[:, lo:lo + HID_CHUNK],
                    preferred_element_type=jnp.float32)
        h = jnp.maximum(h + b1_ref[:, lo:lo + HID_CHUNK], 0.0)
        acc = acc + jnp.dot(h.astype(COMPUTE_DTYPE),
                            w2_ref[lo:lo + HID_CHUNK, :],
                            preferred_element_type=jnp.float32)
    o_ref[...] = (acc + b2_ref[...]).astype(o_ref.dtype)


def prepare_params(w1, b1, w2, b2):
    """One-time param prep (do NOT call per forward): bf16 weights, f32 biases
    reshaped to (1, dim) for lane-dense broadcast inside the kernel."""
    return (w1.astype(COMPUTE_DTYPE),
            b1.astype(jnp.float32).reshape(1, HID_DIM),
            w2.astype(COMPUTE_DTYPE),
            b2.astype(jnp.float32).reshape(1, OUT_DIM))


def decoder_forward(x, w1, b1, w2, b2, *, tile_b=None):
    """x: [B, 1024] f32 -> [B, 512] f32.

    Weights (already bf16 via prepare_params) stay resident in VMEM,
    single-buffered; only the batch dimension is tiled.
    """
    B = x.shape[0]
    b_align = 8                                # f32 sublane alignment
    b_pad = _round_up(max(B, b_align), b_align)

    if tile_b is None:
        tile_b = 512 if B >= 1024 else 256
    # Prefer >= 2 grid steps when the batch allows it (v7x: 2 TensorCores),
    # then pick the largest tile up to tile_b.
    tile = min(tile_b, _round_up(pl.cdiv(b_pad, 2), b_align))
    tile = max(tile, b_align)
    if tile >= b_pad:
        tile = b_pad
    b_pad = _round_up(b_pad, tile)

    # No dtype cast in the wrapper: only pad ragged batches (f32, no-op here
    # when B is already aligned).
    if b_pad != B:
        x = jnp.pad(x, ((0, b_pad - B), (0, 0)))

    # prepare_params should already have done these; astype on a matching
    # dtype is a no-op.
    w1c = w1.astype(COMPUTE_DTYPE)
    w2c = w2.astype(COMPUTE_DTYPE)
    b1c = b1.astype(jnp.float32).reshape(1, HID_DIM)
    b2c = b2.astype(jnp.float32).reshape(1, OUT_DIM)

    grid = (b_pad // tile,)

    weight_bytes = (w1c.size + w2c.size) * 2 + (b1c.size + b2c.size) * 4
    cost = pl.CostEstimate(
        flops=2 * b_pad * (IN_DIM * HID_DIM + HID_DIM * OUT_DIM),
        transcendentals=0,
        bytes_accessed=b_pad * IN_DIM * 4 + weight_bytes + b_pad * OUT_DIM * 4,
    )

    out = pl.pallas_call(
        decoder_mlp_kernel,
        out_shape=jax.ShapeDtypeStruct((b_pad, OUT_DIM), jnp.float32),
        grid_spec=pltpu.PrefetchScalarGridSpec(
            num_scalar_prefetch=0,
            grid=grid,
            in_specs=[
                # x tile: streamed over the batch (double-buffered by default).
                pl.BlockSpec((tile, IN_DIM), lambda i: (i, 0)),
                # Grid-invariant weights/biases: single-buffered (fetched once).
                pl.BlockSpec((IN_DIM, HID_DIM), lambda i: (0, 0),
                             pipeline_mode=pl.Buffered(buffer_count=1)),
                pl.BlockSpec((1, HID_DIM), lambda i: (0, 0),
                             pipeline_mode=pl.Buffered(buffer_count=1)),
                pl.BlockSpec((HID_DIM, OUT_DIM), lambda i: (0, 0),
                             pipeline_mode=pl.Buffered(buffer_count=1)),
                pl.BlockSpec((1, OUT_DIM), lambda i: (0, 0),
                             pipeline_mode=pl.Buffered(buffer_count=1)),
            ],
            out_specs=pl.BlockSpec((tile, OUT_DIM), lambda i: (i, 0)),
        ),
        compiler_params=pltpu.CompilerParams(
            dimension_semantics=("parallel",),
            # ~12 MiB actual footprint; 32 MiB fits all generations incl. v7x
            # (64 MiB physical) without crowding out neighbouring fusions.
            vmem_limit_bytes=32 << 20,
        ),
        cost_estimate=cost,
    )(x, w1c, b1c, w2c, b2c)

    return out[:B]


def init_params(key):
    """Mirrors weights_init: Linear weights ~ N(0, 0.02), biases = 0.
    Stored transposed as (in, out)."""
    k1, k2 = jax.random.split(key)
    w1 = jax.random.normal(k1, (IN_DIM, HID_DIM), dtype=jnp.float32) * 0.02
    b1 = jnp.zeros((HID_DIM,), dtype=jnp.float32)
    w2 = jax.random.normal(k2, (HID_DIM, OUT_DIM), dtype=jnp.float32) * 0.02
    b2 = jnp.zeros((OUT_DIM,), dtype=jnp.float32)
    return w1, b1, w2, b2


if __name__ == "__main__":
    key = jax.random.PRNGKey(0)
    kx, kp = jax.random.split(key)

    B = 32  # small demo batch
    x = jax.random.normal(kx, (B, IN_DIM), dtype=jnp.float32)

    # One-time param prep (f32 -> bf16 weight cast hoisted out of the call path).
    w1f, b1f, w2f, b2f = init_params(kp)
    w1, b1, w2, b2 = prepare_params(w1f, b1f, w2f, b2f)

    out = decoder_forward(x, w1, b1, w2, b2)
    out = jax.block_until_ready(out)
    assert out.shape == (B, OUT_DIM)

    # Reference with the same bf16-in / f32-accumulate math as the kernel.
    xb = x.astype(jnp.bfloat16)
    h_ref = jnp.dot(xb, w1, preferred_element_type=jnp.float32) + b1
    h_ref = jnp.maximum(h_ref, 0.0).astype(jnp.bfloat16)
    ref = jnp.dot(h_ref, w2, preferred_element_type=jnp.float32) + b2
    assert jnp.allclose(out, ref, atol=1e-2, rtol=1e-2)

    print("KERNEL_OK")
</pallas_src>

<mosaic_0001>
module attributes {stable_mosaic.version = 11 : i64} {
  func.func @decoder_mlp_kernel(%arg0: i32, %arg1: memref<16x1024xf32, #tpu.memory_space<vmem>>, %arg2: memref<1024x2048xbf16, #tpu.memory_space<vmem>>, %arg3: memref<1x2048xf32, #tpu.memory_space<vmem>>, %arg4: memref<2048x512xbf16, #tpu.memory_space<vmem>>, %arg5: memref<1x512xf32, #tpu.memory_space<vmem>>, %arg6: memref<16x512xf32, #tpu.memory_space<vmem>>) attributes {dimension_semantics = [#tpu.dimension_semantics<parallel>], iteration_bounds = array<i64: 2>, scalar_prefetch = 0 : i64, scratch_operands = 0 : i64, tpu.core_type = #tpu.core_type<tc>, window_params = [{transform_indices = @transform_0, window_bounds = array<i64: 16, 1024>}, {pipeline_mode = #tpu.pipeline_mode<synchronous>, transform_indices = @transform_1, window_bounds = array<i64: 1024, 2048>}, {pipeline_mode = #tpu.pipeline_mode<synchronous>, transform_indices = @transform_2, window_bounds = array<i64: 1, 2048>}, {pipeline_mode = #tpu.pipeline_mode<synchronous>, transform_indices = @transform_3, window_bounds = array<i64: 2048, 512>}, {pipeline_mode = #tpu.pipeline_mode<synchronous>, transform_indices = @transform_4, window_bounds = array<i64: 1, 512>}, {transform_indices = @transform_5, window_bounds = array<i64: 16, 512>}]} {
    %c0 = arith.constant 0 : index
    %c0_0 = arith.constant 0 : index
    %0 = vector.load %arg1[%c0, %c0_0] : memref<16x1024xf32, #tpu.memory_space<vmem>>, vector<16x1024xf32>
    %1 = arith.truncf %0 : vector<16x1024xf32> to vector<16x1024xbf16>
    %cst = arith.constant 0.000000e+00 : f32
    %2 = vector.broadcast %cst : f32 to vector<16x512xf32>
    %c0_1 = arith.constant 0 : index
    %c0_2 = arith.constant 0 : index
    %3 = vector.load %arg2[%c0_1, %c0_2] : memref<1024x2048xbf16, #tpu.memory_space<vmem>>, vector<1024x512xbf16>
    %cst_3 = arith.constant dense<0.000000e+00> : vector<16x512xf32>
    %4 = tpu.matmul %1, %3, %cst_3 {dimension_numbers = #tpu.dot_dimension_numbers<[1], [0], [0], [1], [0, 0, 1, 1], [], []>} : vector<16x1024xbf16>, vector<1024x512xbf16>, vector<16x512xf32> -> vector<16x512xf32>
    %c0_4 = arith.constant 0 : index
    %c0_5 = arith.constant 0 : index
    %5 = vector.load %arg3[%c0_4, %c0_5] : memref<1x2048xf32, #tpu.memory_space<vmem>>, vector<1x512xf32>
    %6 = vector.broadcast %5 : vector<1x512xf32> to vector<16x512xf32>
    %7 = arith.addf %4, %6 : vector<16x512xf32>
    %cst_6 = arith.constant 0.000000e+00 : f32
    %8 = vector.broadcast %cst_6 : f32 to vector<16x512xf32>
    %9 = arith.maximumf %7, %8 : vector<16x512xf32>
    %10 = arith.truncf %9 : vector<16x512xf32> to vector<16x512xbf16>
    %c0_7 = arith.constant 0 : index
    %c0_8 = arith.constant 0 : index
    %11 = vector.load %arg4[%c0_7, %c0_8] : memref<2048x512xbf16, #tpu.memory_space<vmem>>, vector<512x512xbf16>
    %cst_9 = arith.constant dense<0.000000e+00> : vector<16x512xf32>
    %12 = tpu.matmul %10, %11, %cst_9 {dimension_numbers = #tpu.dot_dimension_numbers<[1], [0], [0], [1], [0, 0, 1, 1], [], []>} : vector<16x512xbf16>, vector<512x512xbf16>, vector<16x512xf32> -> vector<16x512xf32>
    %13 = arith.addf %2, %12 : vector<16x512xf32>
    %c0_10 = arith.constant 0 : index
    %c512 = arith.constant 512 : index
    %14 = vector.load %arg2[%c0_10, %c512] : memref<1024x2048xbf16, #tpu.memory_space<vmem>>, vector<1024x512xbf16>
    %cst_11 = arith.constant dense<0.000000e+00> : vector<16x512xf32>
    %15 = tpu.matmul %1, %14, %cst_11 {dimension_numbers = #tpu.dot_dimension_numbers<[1], [0], [0], [1], [0, 0, 1, 1], [], []>} : vector<16x1024xbf16>, vector<1024x512xbf16>, vector<16x512xf32> -> vector<16x512xf32>
    %c0_12 = arith.constant 0 : index
    %c512_13 = arith.constant 512 : index
    %16 = vector.load %arg3[%c0_12, %c512_13] : memref<1x2048xf32, #tpu.memory_space<vmem>>, vector<1x512xf32>
    %17 = vector.broadcast %16 : vector<1x512xf32> to vector<16x512xf32>
    %18 = arith.addf %15, %17 : vector<16x512xf32>
    %cst_14 = arith.constant 0.000000e+00 : f32
    %19 = vector.broadcast %cst_14 : f32 to vector<16x512xf32>
    %20 = arith.maximumf %18, %19 : vector<16x512xf32>
    %21 = arith.truncf %20 : vector<16x512xf32> to vector<16x512xbf16>
    %c512_15 = arith.constant 512 : index
    %c0_16 = arith.constant 0 : index
    %22 = vector.load %arg4[%c512_15, %c0_16] : memref<2048x512xbf16, #tpu.memory_space<vmem>>, vector<512x512xbf16>
    %cst_17 = arith.constant dense<0.000000e+00> : vector<16x512xf32>
    %23 = tpu.matmul %21, %22, %cst_17 {dimension_numbers = #tpu.dot_dimension_numbers<[1], [0], [0], [1], [0, 0, 1, 1], [], []>} : vector<16x512xbf16>, vector<512x512xbf16>, vector<16x512xf32> -> vector<16x512xf32>
    %24 = arith.addf %13, %23 : vector<16x512xf32>
    %c0_18 = arith.constant 0 : index
    %c1024 = arith.constant 1024 : index
    %25 = vector.load %arg2[%c0_18, %c1024] : memref<1024x2048xbf16, #tpu.memory_space<vmem>>, vector<1024x512xbf16>
    %cst_19 = arith.constant dense<0.000000e+00> : vector<16x512xf32>
    %26 = tpu.matmul %1, %25, %cst_19 {dimension_numbers = #tpu.dot_dimension_numbers<[1], [0], [0], [1], [0, 0, 1, 1], [], []>} : vector<16x1024xbf16>, vector<1024x512xbf16>, vector<16x512xf32> -> vector<16x512xf32>
    %c0_20 = arith.constant 0 : index
    %c1024_21 = arith.constant 1024 : index
    %27 = vector.load %arg3[%c0_20, %c1024_21] : memref<1x2048xf32, #tpu.memory_space<vmem>>, vector<1x512xf32>
    %28 = vector.broadcast %27 : vector<1x512xf32> to vector<16x512xf32>
    %29 = arith.addf %26, %28 : vector<16x512xf32>
    %cst_22 = arith.constant 0.000000e+00 : f32
    %30 = vector.broadcast %cst_22 : f32 to vector<16x512xf32>
    %31 = arith.maximumf %29, %30 : vector<16x512xf32>
    %32 = arith.truncf %31 : vector<16x512xf32> to vector<16x512xbf16>
    %c1024_23 = arith.constant 1024 : index
    %c0_24 = arith.constant 0 : index
    %33 = vector.load %arg4[%c1024_23, %c0_24] : memref<2048x512xbf16, #tpu.memory_space<vmem>>, vector<512x512xbf16>
    %cst_25 = arith.constant dense<0.000000e+00> : vector<16x512xf32>
    %34 = tpu.matmul %32, %33, %cst_25 {dimension_numbers = #tpu.dot_dimension_numbers<[1], [0], [0], [1], [0, 0, 1, 1], [], []>} : vector<16x512xbf16>, vector<512x512xbf16>, vector<16x512xf32> -> vector<16x512xf32>
    %35 = arith.addf %24, %34 : vector<16x512xf32>
    %c0_26 = arith.constant 0 : index
    %c1536 = arith.constant 1536 : index
    %36 = vector.load %arg2[%c0_26, %c1536] : memref<1024x2048xbf16, #tpu.memory_space<vmem>>, vector<1024x512xbf16>
    %cst_27 = arith.constant dense<0.000000e+00> : vector<16x512xf32>
    %37 = tpu.matmul %1, %36, %cst_27 {dimension_numbers = #tpu.dot_dimension_numbers<[1], [0], [0], [1], [0, 0, 1, 1], [], []>} : vector<16x1024xbf16>, vector<1024x512xbf16>, vector<16x512xf32> -> vector<16x512xf32>
    %c0_28 = arith.constant 0 : index
    %c1536_29 = arith.constant 1536 : index
    %38 = vector.load %arg3[%c0_28, %c1536_29] : memref<1x2048xf32, #tpu.memory_space<vmem>>, vector<1x512xf32>
    %39 = vector.broadcast %38 : vector<1x512xf32> to vector<16x512xf32>
    %40 = arith.addf %37, %39 : vector<16x512xf32>
    %cst_30 = arith.constant 0.000000e+00 : f32
    %41 = vector.broadcast %cst_30 : f32 to vector<16x512xf32>
    %42 = arith.maximumf %40, %41 : vector<16x512xf32>
    %43 = arith.truncf %42 : vector<16x512xf32> to vector<16x512xbf16>
    %c1536_31 = arith.constant 1536 : index
    %c0_32 = arith.constant 0 : index
    %44 = vector.load %arg4[%c1536_31, %c0_32] : memref<2048x512xbf16, #tpu.memory_space<vmem>>, vector<512x512xbf16>
    %cst_33 = arith.constant dense<0.000000e+00> : vector<16x512xf32>
    %45 = tpu.matmul %43, %44, %cst_33 {dimension_numbers = #tpu.dot_dimension_numbers<[1], [0], [0], [1], [0, 0, 1, 1], [], []>} : vector<16x512xbf16>, vector<512x512xbf16>, vector<16x512xf32> -> vector<16x512xf32>
    %46 = arith.addf %35, %45 : vector<16x512xf32>
    %c0_34 = arith.constant 0 : index
    %c0_35 = arith.constant 0 : index
    %47 = vector.load %arg5[%c0_34, %c0_35] : memref<1x512xf32, #tpu.memory_space<vmem>>, vector<1x512xf32>
    %48 = vector.broadcast %47 : vector<1x512xf32> to vector<16x512xf32>
    %49 = arith.addf %46, %48 : vector<16x512xf32>
    %c0_36 = arith.constant 0 : index
    %c0_37 = arith.constant 0 : index
    %50 = vector.load %arg6[%c0_36, %c0_37] : memref<16x512xf32, #tpu.memory_space<vmem>>, vector<16x512xf32>
    tpu.vector_store %arg6[%c0_36, %c0_37], %49 {strides = array<i32>} : memref<16x512xf32, #tpu.memory_space<vmem>>, vector<16x512xf32>,
    return
  }
  func.func @transform_0(%arg0: i32) -> (i32, i32) {
    %c0_i32 = arith.constant 0 : i32
    %c0_i32_0 = arith.constant 0 : i32
    return %arg0, %c0_i32 : i32, i32
  }
  func.func @transform_1(%arg0: i32) -> (i32, i32) {
    %c0_i32 = arith.constant 0 : i32
    %c0_i32_0 = arith.constant 0 : i32
    %c0_i32_1 = arith.constant 0 : i32
    return %c0_i32, %c0_i32_0 : i32, i32
  }
  func.func @transform_2(%arg0: i32) -> (i32, i32) {
    %c0_i32 = arith.constant 0 : i32
    %c0_i32_0 = arith.constant 0 : i32
    %c0_i32_1 = arith.constant 0 : i32
    return %c0_i32, %c0_i32_0 : i32, i32
  }
  func.func @transform_3(%arg0: i32) -> (i32, i32) {
    %c0_i32 = arith.constant 0 : i32
    %c0_i32_0 = arith.constant 0 : i32
    %c0_i32_1 = arith.constant 0 : i32
    return %c0_i32, %c0_i32_0 : i32, i32
  }
  func.func @transform_4(%arg0: i32) -> (i32, i32) {
    %c0_i32 = arith.constant 0 : i32
    %c0_i32_0 = arith.constant 0 : i32
    %c0_i32_1 = arith.constant 0 : i32
    return %c0_i32, %c0_i32_0 : i32, i32
  }
  func.func @transform_5(%arg0: i32) -> (i32, i32) {
    %c0_i32 = arith.constant 0 : i32
    %c0_i32_0 = arith.constant 0 : i32
    return %arg0, %c0_i32 : i32, i32
  }
}

</mosaic_0001>

<bundles_post_ra>
// kernel: tpu_custom_call.1
= control target key start
LH: loop header
LB: loop body
LE: loop exit
PB: predicated region body
PF: predicated region fallthrough
CT: control target
= control target key end

     0   :  { %10 = vsyncpa [#allocation3], 0  ;;  %s15231_s0 = inlined_call_operand.hbm [shape: f32[32,1024], index: 0, kind: input, shape index: {}]   ;;  %s15232_s1 = inlined_call_operand.hbm [shape: bf16[1024,2048], index: 1, kind: input, shape index: {}]   ;;  %s15233_s2 = inlined_call_operand.hbm [shape: f32[1,2048], index: 2, kind: input, shape index: {}]   ;;  %s15234_s3 = inlined_call_operand.hbm [shape: bf16[2048,512], index: 3, kind: input, shape index: {}]   ;;  %s15235_s4 = inlined_call_operand.hbm [shape: f32[1,512], index: 4, kind: input, shape index: {}]   ;;  %s15236_s5 = inlined_call_operand.hbm [shape: f32[32,512], index: 5, kind: output, shape index: {}]  }
   0x1   :  { %12 = vsyncpa [#allocation3 + $0x1], 0 }
   0x2   :  { %13 = vsyncpa [#allocation6], 0 }
   0x3   :  { %14 = vsyncpa [#allocation9], 0 }
   0x4   :  { %15 = vsyncpa [#allocation4], 0 }
   0x5   :  { %17 = vsyncpa [#allocation4 + $0x1], 0  ;;  %s14789_s18 = smov 0   ;;  %s14791_s19 = smov 0  }
   0x6   :  { %s14793_s20 = smov 0   ;;  %s14795_s21 = smov 0  }
   0x7 LB: > { %s14810_s22 = sadd.s32 4294967295, %s14745_s21   ;;  %s11920_s23 = sadd.s32 4294967294, %s14745_s21   ;;  %s14745_s21 = sphi %s14795_s21, %s15261_s21   ;;  %s14741_s20 = sphi %s14793_s20, %s15260_s20   ;;  %s14737_s19 = sphi %s14791_s19, %s15259_s19   ;;  %s14733_s18 = sphi %s14789_s18, %s15258_s18  }
   0x8   : > { %p43_p0 = scmp.ne.s32.totalorder %s14737_s19, %s14733_s18  ;;  %p15237_p1 = scmp.eq.s32.totalorder %s14810_s22, 0 }
   0x9   : > { %p157_p3 = scmp.eq.s32.totalorder %s11920_s23, 1  ;;  %p11921_p5 = scmp.ge.s32.totalorder %s14745_s21, 1 }
   0xa   : > { %p14819_p4 = por %p15237_p1, %p43_p0  ;;  %p164_p7 = scmp.lt.s32.totalorder %s14745_s21, 3 }
   0xb   : > { %p14824_p6 = por %p157_p3, %p43_p0  ;;  %s14747_s27 = smov [#allocation5]  }
   0xc   : > { %s15241_s24 = scalar_select %p14819_p4, 1, 0 }
   0xd   : > { %s15242_s25 = scalar_select %p14824_p6, 1, 0 }
   0xe   : > { %p14829_p8 = pnand %p11921_p5, %p164_p7  ;;  %s176_s28 = sshll.u32 %s14747_s27, 4  ;;  %s14833_s28 = int_to_ptr.vmem [resolvable:$true] %s176_s28 }
   0xf   : > { %s14748_s30 = smov [#allocation8]   ;;  %s14529_s9 = scalar_lea.hbm %s15232_s1, 131072 }
  0x10   : > { %s15243_s26 = scalar_select %p14829_p8, 1, 0 }
  0x11   : > { %p13688_p9 = pneg %p14829_p8  ;;  %s200_s6 = sshll.u32 %s14748_s30, 4  ;;  %s14844_s6 = int_to_ptr.vmem [resolvable:$true] %s200_s6 }
  0x12   : > { %p14530_p12 = scmp.ne.s32.totalorder %s15232_s1, %s14529_s9  ;;  %p14536_p5 = scmp.lt.u32.totalorder %s14529_s9, %s15232_s1 }
  0x13   : > { %p14840_p11 = pnand %p13688_p9, %p15237_p1 }
  0x15   : > { %p14854_p13 = pneg %p14840_p11 }
  0x17   : > { %p14532_p0 = pnand %p14854_p13, %p14530_p12 }
  0x19   : > { %p14533_p3 = pneg %p14532_p0 }
  0x1b   : > { %p14538_p7 = pnand %p14536_p5, %p14533_p3 }
  0x1d   : > { %14541 = shalt.err (!%p14538_p7)
}
  0x1e   : > { %s14542_s15 = scalar_lea.vmem %s14833_s28, 131072  ;;  %p14550_p2 = scmp.lt.s32.totalorder %s14833_s28, %s14833_s28 }
  0x1f   : > { %p14543_p9 = scmp.ne.s32.totalorder %s14833_s28, %s14542_s15  ;;  %p14551_p6 = scmp.lt.s32.totalorder %s14542_s15, %s14542_s15 }
  0x21   : > { %p14545_p10 = pnand %p14543_p9, %p14854_p13  ;;  %p14552_p12 = por %p14551_p6, %p14550_p2 }
  0x23   : > { %p14546_p1 = pneg %p14545_p10 }
  0x25   : > { %p14553_p0 = pnand %p14552_p12, %p14546_p1 }
  0x27   : > { %14556 = shalt.err (!%p14553_p0)
}
  0x28   : > { %s15238_s16 = smov 1024   ;;  %s14750_s17 = smov 64  }
  0x29   : > { %13691 = dma.hbm_to_vmem [thread:$0]  (!%p14840_p11), %s15232_s1, 131072, %s14833_s28, [#allocation6], %s15238_s16, %s15238_s16, %s14750_s17  }
  0x2a   : > { %s14557_s8 = scalar_lea.hbm %s15234_s3, 65536 }
  0x2b   : > { %p14558_p1 = scmp.ne.s32.totalorder %s15234_s3, %s14557_s8  ;;  %p14564_p10 = scmp.lt.u32.totalorder %s14557_s8, %s15234_s3 }
  0x2d   : > { %p14560_p2 = pnand %p14558_p1, %p14854_p13 }
  0x2f   : > { %p14561_p6 = pneg %p14560_p2 }
  0x31   : > { %p14566_p3 = pnand %p14564_p10, %p14561_p6 }
  0x33   : > { %14569 = shalt.err (!%p14566_p3)
}
  0x34   : > { %s14570_s28 = scalar_lea.vmem %s14844_s6, 65536  ;;  %p14578_p12 = scmp.lt.s32.totalorder %s14844_s6, %s14844_s6 }
  0x35   : > { %p14571_p5 = scmp.ne.s32.totalorder %s14844_s6, %s14570_s28  ;;  %p14579_p0 = scmp.lt.s32.totalorder %s14570_s28, %s14570_s28 }
  0x37   : > { %p14573_p7 = pnand %p14571_p5, %p14854_p13  ;;  %p14580_p1 = por %p14579_p0, %p14578_p12 }
  0x39   : > { %p14574_p9 = pneg %p14573_p7 }
  0x3b   : > { %p14581_p2 = pnand %p14580_p1, %p14574_p9 }
  0x3d   : > { %14584 = shalt.err (!%p14581_p2)
}
  0x3e   : > { %s14751_s14 = smov 256   ;;  %s14752_s15 = smov 16  }
  0x3f   : > { %13697 = dma.hbm_to_vmem [thread:$0]  (!%p14840_p11), %s15234_s3, 65536, %s14844_s6, [#allocation9], %s14751_s14, %s14751_s14, %s14752_s15  }
  0x40   : > { %s14753_s30 = smov [#allocation7]   ;;  %s14754_s8 = smov [#allocation10]  }
  0x41   : > { %s190_s7 = sshll.u32 %s14753_s30, 4  ;;  %s214_s9 = sshll.u32 %s14754_s8, 4  ;;  %s191_s7 = int_to_ptr.vmem [resolvable:$true] %s190_s7  ;;  %s14901_s9 = int_to_ptr.vmem [resolvable:$true] %s214_s9 }
  0x42   : > { %s14585_s13 = scalar_lea.hbm %s15233_s2, 256 }
  0x43   : > { %p14586_p6 = scmp.ne.s32.totalorder %s15233_s2, %s14585_s13  ;;  %p14592_p5 = scmp.lt.u32.totalorder %s14585_s13, %s15233_s2 }
  0x45   : > { %p14588_p10 = pnand %p14586_p6, %p14854_p13 }
  0x47   : > { %p14589_p3 = pneg %p14588_p10 }
  0x49   : > { %p14594_p7 = pnand %p14592_p5, %p14589_p3 }
  0x4b   : > { %14597 = shalt.err (!%p14594_p7)
}
  0x4c   : > { %s14598_s14 = scalar_lea.vmem %s191_s7, 256  ;;  %p14606_p1 = scmp.lt.s32.totalorder %s191_s7, %s191_s7 }
  0x4d   : > { %p14599_p9 = scmp.ne.s32.totalorder %s191_s7, %s14598_s14  ;;  %p14607_p2 = scmp.lt.s32.totalorder %s14598_s14, %s14598_s14 }
  0x4f   : > { %p14601_p12 = pnand %p14599_p9, %p14854_p13  ;;  %p14608_p4 = por %p14607_p2, %p14606_p1 }
  0x51   : > { %p14602_p0 = pneg %p14601_p12 }
  0x53   : > { %p14609_p8 = pnand %p14608_p4, %p14602_p0 }
  0x55   : > { %14612 = shalt.err (!%p14609_p8)
}
  0x56   : > { %13694 = dma.hbm_to_vmem [thread:$0]  (!%p14840_p11), %s15233_s2, 256, %s191_s7, [#allocation6]  }
  0x57   : > { %s14613_s8 = scalar_lea.hbm %s15235_s4, 64 }
  0x58   : > { %p14614_p6 = scmp.ne.s32.totalorder %s15235_s4, %s14613_s8  ;;  %p14620_p4 = scmp.lt.u32.totalorder %s14613_s8, %s15235_s4 }
  0x5a   : > { %p14616_p10 = pnand %p14614_p6, %p14854_p13 }
  0x5c   : > { %p14617_p3 = pneg %p14616_p10 }
  0x5e   : > { %p14622_p8 = pnand %p14620_p4, %p14617_p3 }
  0x60   : > { %14625 = shalt.err (!%p14622_p8)
}
  0x61   : > { %s14626_s7 = scalar_lea.vmem %s14901_s9, 64  ;;  %p14634_p12 = scmp.lt.s32.totalorder %s14901_s9, %s14901_s9 }
  0x62   : > { %p14627_p5 = scmp.ne.s32.totalorder %s14901_s9, %s14626_s7  ;;  %p14635_p0 = scmp.lt.s32.totalorder %s14626_s7, %s14626_s7 }
  0x64   : > { %p14629_p7 = pnand %p14627_p5, %p14854_p13  ;;  %p14636_p1 = por %p14635_p0, %p14634_p12 }
  0x66   : > { %p14630_p9 = pneg %p14629_p7 }
  0x68   : > { %p14637_p2 = pnand %p14636_p1, %p14630_p9 }
  0x6a   : > { %14640 = shalt.err (!%p14637_p2)
}
  0x6b   : > { %13700 = dma.hbm_to_vmem [thread:$0]  (!%p14840_p11), %s15235_s4, 64, %s14901_s9, [#allocation9]  }
  0x6c   : > { %s14945_s12 = sadd.s32 1, %s14745_s21   ;;  %s30_s14 = sadd.s32 1, %s14741_s20 }
  0x6d   : > { %s27_s29 = ssub.s32 %s14745_s21, %s14945_s12  ;;  %p37_p6 = scmp.ne.s32.totalorder %s14741_s20, %s14737_s19 }
  0x6e   : > { %p28_p13 = scmp.eq.s32.totalorder %s27_s29, 0  ;;  %p38_p10 = scmp.eq.s32.totalorder %s14745_s21, 0 }
  0x6f   : > { %p15246_p4 = scmp.eq.s32.totalorder %s14810_s22, 1  ;;  %p13713_p5 = scmp.lt.s32.totalorder %s14745_s21, 2 }
  0x70   : > { %s14954_s16 = scalar_select %p28_p13, %s14741_s20, %s30_s14  }
  0x71   : > { %p39_p3 = por %p38_p10, %p37_p6  ;;  %p14958_p8 = por %p15246_p4, %p37_p6 }
  0x72   : > { %s225_s27 = sand.u32 1, %s14741_s20   ;;  %s13481_s9 = sshll.u32 %s14745_s21, 11 }
  0x73   : > { %s11927_s30 = sshll.u32 %s225_s27, 7  ;;  %s14968_s11 = scalar_lea.hbm %s15231_s0, %s13481_s9 }
  0x74   : > { %s229_s13 = scalar_lea.vmem [#allocation2], %s11927_s30  ;;  %p14972_p11 = pnand %p13713_p5, %p39_p3 }
  0x75   : > { %s237_s28 = sshll.u32 %s229_s13, 4  ;;  %s14976_s23 = scalar_lea.sflag [#allocation3], %s225_s27  ;;  %s14970_s28 = int_to_ptr.vmem [resolvable:$true] %s237_s28 }
  0x76   : > { %s14641_s6 = scalar_lea.hbm %s14968_s11, 2048  ;;  %p14643_p9 = pneg %p14972_p11 }
  0x77   : > { %p14642_p7 = scmp.ne.s32.totalorder %s14968_s11, %s14641_s6  ;;  %s14646_s30 = scalar_lea.hbm %s15231_s0, 4096 }
  0x78   : > { %p14647_p1 = scmp.lt.u32.totalorder %s14968_s11, %s15231_s0  ;;  %p14648_p2 = scmp.lt.u32.totalorder %s14646_s30, %s14641_s6 }
  0x79   : > { %p14644_p12 = pnand %p14643_p9, %p14642_p7  ;;  %p14650_p6 = scmp.lt.u32.totalorder %s14641_s6, %s14968_s11 }
  0x7a   : > { %p14649_p13 = por %p14648_p2, %p14647_p1 }
  0x7b   : > { %p14645_p0 = pneg %p14644_p12 }
  0x7c   : > { %p14651_p10 = por %p14650_p6, %p14649_p13 }
  0x7e   : > { %p14652_p3 = pnand %p14651_p10, %p14645_p0 }
  0x80   : > { %14655 = shalt.err (!%p14652_p3)
}
  0x81   : > { %s14656_s27 = scalar_lea.vmem %s14970_s28, 2048  ;;  %s14755_s10 = smov [#allocation2]  }
  0x82   : > { %p14657_p4 = scmp.ne.s32.totalorder %s14970_s28, %s14656_s27  ;;  %s14661_s13 = sshll.u32 %s14755_s10, 4  ;;  %s14662_s13 = int_to_ptr.vmem [resolvable:$false] %s14661_s13 }
  0x83   : > { %s14663_s29 = scalar_lea.vmem %s14662_s13, 4096  ;;  %p14664_p12 = scmp.lt.s32.totalorder %s14970_s28, %s14662_s13 }
  0x84   : > { %p14659_p5 = pnand %p14657_p4, %p14643_p9  ;;  %p14665_p1 = scmp.lt.s32.totalorder %s14663_s29, %s14656_s27 }
  0x86   : > { %p14660_p7 = pneg %p14659_p5  ;;  %p14666_p2 = por %p14665_p1, %p14664_p12 }
  0x88   : > { %p14667_p13 = pnand %p14666_p2, %p14660_p7 }
  0x8a   : > { %14670 = shalt.err (!%p14667_p13)
}
  0x8b   : > { %s15249_s6 = smov 1024   ;;  %p15250_p9 = scmp.ne.s32.totalorder %s15243_s26, 0 }
  0x8c   : > { %13704 = dma.hbm_to_vmem [thread:$0]  (!%p14972_p11), %s14968_s11, 2048, %s14970_s28, %s14976_s23, %s15249_s6, %s15249_s6, %s14750_s17  }
  0x8d   : > { %249 = sbr.rel (%p15250_p9) target bundleno = 2402 (0x962), region = 40  ;;  %s15010_s14 = sand.u32 (!%p15250_p9), 1, %s14737_s19  }
  0x8e   : > { %s11932_s30 = sshll.u32 (!%p15250_p9), %s15010_s14, 7  ;;  %s252_s9 = scalar_lea.sflag (!%p15250_p9), [#allocation3], %s15010_s14 }
  0x8f   : > { %s15014_s8 = scalar_lea.vmem (!%p15250_p9), [#allocation2], %s11932_s30  ;;  %p15251_p0 = scmp.ne.s32.totalorder (!%p15250_p9), %s15241_s24, 0 }
  0x94   : > { %14716 = dma.done.wait (%p15251_p0), %s252_s9, 2048  }
  0x95   : > { %14718 = vsyncadd (%p15251_p0), %s252_s9, 4294965248  ;;  %p15252_p11 = scmp.eq.s32.totalorder %s14810_s22, 0 }
  0x97   : > { %14720 = dma.done.wait (%p15252_p11), [#allocation6], 131328   ;;  %p15253_p6 = pmov %p15252_p11 }
  0x99   : > { %14722 = vsyncadd (%p15253_p6), [#allocation6], 4294835968  ;;  %p15254_p10 = pmov %p15253_p6 }
  0x9a   : > { %p15255_p3 = pmov %p15253_p6 }
  0x9b   : > { %14724 = dma.done.wait (%p15254_p10), [#allocation9], 65600  }
  0x9c   : > { %14726 = vsyncadd (%p15255_p3), [#allocation9], 4294901696  ;;  %v324_v0 = vld [vmem:[#allocation5] sm:$0xff]  ;;  %v325_v2 = vld [vmem:[#allocation5 + $0x8] sm:$0xff]  ;;  %s11937_s24 = sshll.u32 %s15010_s14, 6  ;;  %s13483_s11 = sshll.u32 %s14810_s22, 10 }
  0x9d   : > { %v326_v1 = vld [vmem:[#allocation5 + $0x40] sm:$0xff]  ;;  %v327_v4 = vld [vmem:[#allocation5 + $0x48] sm:$0xff]  ;;  %s297_s26 = scalar_lea.vmem [#allocation11], %s11937_s24  ;;  %s15187_s7 = scalar_lea.hbm %s15236_s5, %s13483_s11 }
  0x9e   : > { %v11939_v3 = vcombine.high %v324_v0, %v326_v1  ;;  %v11938_v5 = vcombine.low %v324_v0, %v326_v1  ;;  %v328_v6 = vld [vmem:[#allocation5 + $0x80] sm:$0xff]  ;;  %v11941_v8 = vcombine.high %v325_v2, %v327_v4  ;;  %v11940_v9 = vcombine.low %v325_v2, %v327_v4  ;;  %v329_v11 = vld [vmem:[#allocation5 + $0x88] sm:$0xff]  ;;  %s11809_s17 = sshll.u32 %s297_s26, 4  ;;  %s11795_s23 = scalar_lea.sflag [#allocation4], %s15010_s14  ;;  %s15182_s17 = int_to_ptr.vmem [resolvable:$true] %s11809_s17 }
  0x9f   : > { %v330_v7 = vld [vmem:[#allocation5 + $0xc0] sm:$0xff]  ;;  %v331_v12 = vld [vmem:[#allocation5 + $0xc8] sm:$0xff]  ;;  %s14671_s27 = scalar_lea.vmem %s15182_s17, 1024  ;;  %s14756_s10 = smov [#allocation11]  }
  0xa0   : > { %v11943_v10 = vcombine.high %v328_v6, %v330_v7  ;;  %v332_v13 = vld [vmem:[#allocation5 + $0x100] sm:$0xff]  ;;  %1882 = vmatprep.subr.bf16.mxu0 %v11939_v3  ;;  %v11945_v14 = vcombine.high %v329_v11, %v331_v12  ;;  %v333_v16 = vld [vmem:[#allocation5 + $0x108] sm:$0xff]  ;;  %2054 = vmatprep.subr.bf16.mxu1 %v11941_v8  ;;  %v11942_v18 = vcombine.low %v328_v6, %v330_v7  ;;  %p14672_p4 = scmp.ne.s32.totalorder %s15182_s17, %s14671_s27  ;;  %s14675_s13 = sshll.u32 %s14756_s10, 4  ;;  %s14676_s13 = int_to_ptr.vmem [resolvable:$false] %s14675_s13 }
  0xa1   : > { %v334_v15 = vld [vmem:[#allocation5 + $0x140] sm:$0xff]  ;;  %v335_v17 = vld [vmem:[#allocation5 + $0x148] sm:$0xff]  ;;  %1883 = vmatpush1.bf16.msra.mxu0 %v11938_v5  ;;  %2055 = vmatpush1.bf16.msra.mxu1 %v11940_v9  ;;  %v11944_v19 = vcombine.low %v329_v11, %v331_v12  ;;  %s14677_s29 = scalar_lea.vmem %s14676_s13, 2048  ;;  %p14678_p12 = scmp.lt.s32.totalorder %s15182_s17, %s14676_s13 }
  0xa2   : > { %1884 = vmatprep.subr.bf16.mxu0 %v11943_v10  ;;  %v11947_v20 = vcombine.high %v332_v13, %v334_v15  ;;  %2056 = vmatprep.subr.bf16.mxu1 %v11945_v14  ;;  %v11949_v21 = vcombine.high %v333_v16, %v335_v17  ;;  %v336_v22 = vld [vmem:[#allocation5 + $0x180] sm:$0xff]  ;;  %v337_v24 = vld [vmem:[#allocation5 + $0x188] sm:$0xff]  ;;  %v11946_v26 = vcombine.low %v332_v13, %v334_v15  ;;  %p14673_p5 = pnand %p14672_p4, %p14958_p8  ;;  %p14679_p1 = scmp.lt.s32.totalorder %s14677_s29, %s14671_s27 }
  0xa3   : > { %v338_v23 = vld [vmem:[#allocation5 + $0x1c0] sm:$0xff]  ;;  %v339_v25 = vld [vmem:[#allocation5 + $0x1c8] sm:$0xff]  ;;  %v11948_v27 = vcombine.low %v333_v16, %v335_v17 }
  0xa4   : > { %v11951_v28 = vcombine.high %v336_v22, %v338_v23  ;;  %v11953_v29 = vcombine.high %v337_v24, %v339_v25  ;;  %v340_v30 = vld [vmem:[#allocation5 + $0x200] sm:$0xff]  ;;  %v341_v32 = vld [vmem:[#allocation5 + $0x208] sm:$0xff]  ;;  %v11950_v34 = vcombine.low %v336_v22, %v338_v23  ;;  %v11952_v35 = vcombine.low %v337_v24, %v339_v25  ;;  %p14674_p7 = pneg %p14673_p5  ;;  %p14680_p2 = por %p14679_p1, %p14678_p12 }
  0xa5   : > { %1885 = vmatpush1.bf16.msra.mxu0 %v11942_v18  ;;  %2057 = vmatpush1.bf16.msra.mxu1 %v11944_v19  ;;  %v342_v31 = vld [vmem:[#allocation5 + $0x240] sm:$0xff]  ;;  %v343_v33 = vld [vmem:[#allocation5 + $0x248] sm:$0xff] }
  0xa6   : > { %1886 = vmatprep.subr.bf16.mxu0 %v11947_v20  ;;  %2058 = vmatprep.subr.bf16.mxu1 %v11949_v21  ;;  %v11955_v36 = vcombine.high %v340_v30, %v342_v31  ;;  %v11957_v37 = vcombine.high %v341_v32, %v343_v33  ;;  %v344_v38 = vld [vmem:[#allocation5 + $0x280] sm:$0xff]  ;;  %v345_v40 = vld [vmem:[#allocation5 + $0x288] sm:$0xff]  ;;  %v11954_v42 = vcombine.low %v340_v30, %v342_v31  ;;  %p14681_p13 = pnand %p14680_p2, %p14674_p7 }
  0xa7   : > { %v346_v39 = vld [vmem:[#allocation5 + $0x2c0] sm:$0xff]  ;;  %v347_v41 = vld [vmem:[#allocation5 + $0x2c8] sm:$0xff]  ;;  %v11956_v43 = vcombine.low %v341_v32, %v343_v33 }
  0xa8   : > { %v11959_v44 = vcombine.high %v344_v38, %v346_v39  ;;  %v11961_v45 = vcombine.high %v345_v40, %v347_v41  ;;  %v348_v46 = vld [vmem:[#allocation5 + $0x300] sm:$0xff]  ;;  %v349_v48 = vld [vmem:[#allocation5 + $0x308] sm:$0xff]  ;;  %v11958_v50 = vcombine.low %v344_v38, %v346_v39  ;;  %v11960_v51 = vcombine.low %v345_v40, %v347_v41 }
  0xa9   : > { %1887 = vmatpush1.bf16.msra.mxu0 %v11946_v26  ;;  %2059 = vmatpush1.bf16.msra.mxu1 %v11948_v27  ;;  %v350_v47 = vld [vmem:[#allocation5 + $0x340] sm:$0xff]  ;;  %v351_v49 = vld [vmem:[#allocation5 + $0x348] sm:$0xff] }
  0xaa   : > { %1888 = vmatprep.subr.bf16.mxu0 %v11951_v28  ;;  %2060 = vmatprep.subr.bf16.mxu1 %v11953_v29  ;;  %v11963_v52 = vcombine.high %v348_v46, %v350_v47  ;;  %v301_v53 = vld [vmem:[%s15014_s8 + $0x8] sm:$0xff]  ;;  %v11965_v55 = vcombine.high %v349_v48, %v351_v49  ;;  %v352_v56 = vld [vmem:[#allocation5 + $0x380] sm:$0xff]  ;;  %v11962_v61 = vcombine.low %v348_v46, %v350_v47 }
  0xab   : > { %v309_v54 = vld [vmem:[%s15014_s8 + $0x48] sm:$0xff]  ;;  %v354_v57 = vld [vmem:[#allocation5 + $0x3c0] sm:$0xff]  ;;  %v11964_v62 = vcombine.low %v349_v48, %v351_v49 }
  0xac   : > { %v15030_v58 = vpack.c.bf16 %v309_v54, %v301_v53  ;;  %v353_v59 = vld [vmem:[#allocation5 + $0x388] sm:$0xff]  ;;  %v11967_v63 = vcombine.high %v352_v56, %v354_v57  ;;  %v356_v1 = vld [vmem:[#allocation5 + $0x400] sm:$0xff]  ;;  %v11966_v5 = vcombine.low %v352_v56, %v354_v57 }
  0xad   : > { %1889 = vmatpush1.bf16.msra.mxu0 %v11950_v34  ;;  %2061 = vmatpush1.bf16.msra.mxu1 %v11952_v35  ;;  %v355_v60 = vld [vmem:[#allocation5 + $0x3c8] sm:$0xff]  ;;  %v358_v2 = vld [vmem:[#allocation5 + $0x440] sm:$0xff] }
  0xae   : > { %1890 = vmatprep.subr.bf16.mxu0 %v11955_v36  ;;  %2062 = vmatprep.subr.bf16.mxu1 %v11957_v37  ;;  %v11969_v0 = vcombine.high %v353_v59, %v355_v60  ;;  %v357_v3 = vld [vmem:[#allocation5 + $0x408] sm:$0xff]  ;;  %v11968_v6 = vcombine.low %v353_v59, %v355_v60  ;;  %v11971_v7 = vcombine.high %v356_v1, %v358_v2  ;;  %v360_v9 = vld [vmem:[#allocation5 + $0x480] sm:$0xff] }
  0xaf   : > { %1914 = vmatprep.mubr.bf16.mxu0 %v15030_v58  ;;  %2086 = vmatprep.mubr.bf16.mxu1 %v15030_v58  ;;  %v359_v4 = vld [vmem:[#allocation5 + $0x448] sm:$0xff]  ;;  %v362_v10 = vld [vmem:[#allocation5 + $0x4c0] sm:$0xff]  ;;  %v11970_v13 = vcombine.low %v356_v1, %v358_v2 }
  0xb0   : > { %v11973_v8 = vcombine.high %v357_v3, %v359_v4  ;;  %v361_v11 = vld [vmem:[#allocation5 + $0x488] sm:$0xff]  ;;  %v11972_v14 = vcombine.low %v357_v3, %v359_v4  ;;  %v11975_v15 = vcombine.high %v360_v9, %v362_v10  ;;  %v364_v17 = vld [vmem:[#allocation5 + $0x500] sm:$0xff]  ;;  %v11974_v21 = vcombine.low %v360_v9, %v362_v10 }
  0xb1   : > { %1891 = vmatpush1.bf16.msra.mxu0 %v11954_v42  ;;  %2063 = vmatpush1.bf16.msra.mxu1 %v11956_v43  ;;  %v363_v12 = vld [vmem:[#allocation5 + $0x4c8] sm:$0xff]  ;;  %v366_v18 = vld [vmem:[#allocation5 + $0x540] sm:$0xff] }
  0xb2   : > { %1892 = vmatprep.subr.bf16.mxu0 %v11959_v44  ;;  %2064 = vmatprep.subr.bf16.mxu1 %v11961_v45  ;;  %v11977_v16 = vcombine.high %v361_v11, %v363_v12  ;;  %v365_v19 = vld [vmem:[#allocation5 + $0x508] sm:$0xff]  ;;  %v11976_v22 = vcombine.low %v361_v11, %v363_v12  ;;  %v11979_v23 = vcombine.high %v364_v17, %v366_v18  ;;  %v368_v25 = vld [vmem:[#allocation5 + $0x580] sm:$0xff] }
  0xb3   : > { %v367_v20 = vld [vmem:[#allocation5 + $0x548] sm:$0xff]  ;;  %v370_v26 = vld [vmem:[#allocation5 + $0x5c0] sm:$0xff]  ;;  %v11978_v29 = vcombine.low %v364_v17, %v366_v18  ;;  %v303_v17 = vld [vmem:[%s15014_s8 + $0x18] sm:$0xff] }
  0xb4   : > { %v11981_v24 = vcombine.high %v365_v19, %v367_v20  ;;  %v369_v27 = vld [vmem:[#allocation5 + $0x588] sm:$0xff]  ;;  %v11980_v30 = vcombine.low %v365_v19, %v367_v20  ;;  %v11983_v31 = vcombine.high %v368_v25, %v370_v26  ;;  %v372_v33 = vld [vmem:[#allocation5 + $0x600] sm:$0xff]  ;;  %v11982_v37 = vcombine.low %v368_v25, %v370_v26  ;;  %v311_v18 = vld [vmem:[%s15014_s8 + $0x58] sm:$0xff] }
  0xb5   : > { %1893 = vmatpush1.bf16.msra.mxu0 %v11958_v50  ;;  %2065 = vmatpush1.bf16.msra.mxu1 %v11960_v51  ;;  %v371_v28 = vld [vmem:[#allocation5 + $0x5c8] sm:$0xff]  ;;  %v374_v34 = vld [vmem:[#allocation5 + $0x640] sm:$0xff]  ;;  %v15040_v25 = vpack.c.bf16 %v311_v18, %v303_v17 }
  0xb6   : > { %1894 = vmatprep.subr.bf16.mxu0 %v11963_v52  ;;  %2066 = vmatprep.subr.bf16.mxu1 %v11965_v55  ;;  %v11985_v32 = vcombine.high %v369_v27, %v371_v28  ;;  %v373_v35 = vld [vmem:[#allocation5 + $0x608] sm:$0xff]  ;;  %v11984_v38 = vcombine.low %v369_v27, %v371_v28  ;;  %v11987_v39 = vcombine.high %v372_v33, %v374_v34  ;;  %v376_v41 = vld [vmem:[#allocation5 + $0x680] sm:$0xff] }
  0xb7   : > { %v375_v36 = vld [vmem:[#allocation5 + $0x648] sm:$0xff]  ;;  %v378_v42 = vld [vmem:[#allocation5 + $0x6c0] sm:$0xff]  ;;  %v11986_v45 = vcombine.low %v372_v33, %v374_v34 }
  0xb8   : > { %v11989_v40 = vcombine.high %v373_v35, %v375_v36  ;;  %v377_v43 = vld [vmem:[#allocation5 + $0x688] sm:$0xff]  ;;  %v11988_v46 = vcombine.low %v373_v35, %v375_v36  ;;  %v11991_v47 = vcombine.high %v376_v41, %v378_v42  ;;  %v380_v49 = vld [vmem:[#allocation5 + $0x700] sm:$0xff]  ;;  %v11990_v53 = vcombine.low %v376_v41, %v378_v42 }
  0xb9   : > { %1895 = vmatpush1.bf16.msra.mxu0 %v11962_v61  ;;  %2067 = vmatpush1.bf16.msra.mxu1 %v11964_v62  ;;  %v379_v44 = vld [vmem:[#allocation5 + $0x6c8] sm:$0xff]  ;;  %v382_v50 = vld [vmem:[#allocation5 + $0x740] sm:$0xff] }
  0xba   : > { %1896 = vmatprep.subr.bf16.mxu0 %v11967_v63  ;;  %2068 = vmatprep.subr.bf16.mxu1 %v11969_v0  ;;  %v11993_v48 = vcombine.high %v377_v43, %v379_v44  ;;  %v381_v51 = vld [vmem:[#allocation5 + $0x708] sm:$0xff]  ;;  %v11992_v54 = vcombine.low %v377_v43, %v379_v44  ;;  %v11995_v55 = vcombine.high %v380_v49, %v382_v50  ;;  %v384_v57 = vld [vmem:[#allocation5 + $0x780] sm:$0xff] }
  0xbb   : > { %v383_v52 = vld [vmem:[#allocation5 + $0x748] sm:$0xff]  ;;  %v386_v59 = vld [vmem:[#allocation5 + $0x7c0] sm:$0xff]  ;;  %v11994_v62 = vcombine.low %v380_v49, %v382_v50 }
  0xbc   : > { %v11997_v56 = vcombine.high %v381_v51, %v383_v52  ;;  %v385_v60 = vld [vmem:[#allocation5 + $0x788] sm:$0xff]  ;;  %v11996_v63 = vcombine.low %v381_v51, %v383_v52  ;;  %v11999_v0 = vcombine.high %v384_v57, %v386_v59  ;;  %v388_v2 = vld [vmem:[#allocation5 + $0x800] sm:$0xff] }
  0xbd   : > { %1897 = vmatpush1.bf16.msra.mxu0 %v11966_v5  ;;  %2069 = vmatpush1.bf16.msra.mxu1 %v11968_v6  ;;  %v387_v61 = vld [vmem:[#allocation5 + $0x7c8] sm:$0xff]  ;;  %v390_v3 = vld [vmem:[#allocation5 + $0x840] sm:$0xff]  ;;  %v11998_v6 = vcombine.low %v384_v57, %v386_v59 }
  0xbe   : > { %1898 = vmatprep.subr.bf16.mxu0 %v11971_v7  ;;  %2070 = vmatprep.subr.bf16.mxu1 %v11973_v8  ;;  %v12001_v1 = vcombine.high %v385_v60, %v387_v61  ;;  %v389_v4 = vld [vmem:[#allocation5 + $0x808] sm:$0xff]  ;;  %v300_v7 = vld [vmem:[%s15014_s8] sm:$0xff]  ;;  %v12000_v9 = vcombine.low %v385_v60, %v387_v61  ;;  %v12003_v10 = vcombine.high %v388_v2, %v390_v3 }
  0xbf   : > { %v391_v5 = vld [vmem:[#allocation5 + $0x848] sm:$0xff]  ;;  %v308_v8 = vld [vmem:[%s15014_s8 + $0x40] sm:$0xff]  ;;  %v12002_v19 = vcombine.low %v388_v2, %v390_v3 }
  0xc0   : > { %v12005_v11 = vcombine.high %v389_v4, %v391_v5  ;;  %v392_v12 = vld [vmem:[#allocation5 + $0x880] sm:$0xff]  ;;  %v12004_v20 = vcombine.low %v389_v4, %v391_v5  ;;  %v397_v26 = vld [vmem:[#allocation5 + $0x908] sm:$0xff] }
  0xc1   : > { %1899 = vmatpush1.bf16.msra.mxu0 %v11970_v13  ;;  %2071 = vmatpush1.bf16.msra.mxu1 %v11972_v14  ;;  %v394_v13 = vld [vmem:[#allocation5 + $0x8c0] sm:$0xff]  ;;  %v393_v14 = vld [vmem:[#allocation5 + $0x888] sm:$0xff] }
  0xc2   : > { %1900 = vmatprep.subr.bf16.mxu0 %v11975_v15  ;;  %2072 = vmatprep.subr.bf16.mxu1 %v11977_v16  ;;  %v15036_v15 = vpack.c.bf16 %v308_v8, %v300_v7  ;;  %v395_v16 = vld [vmem:[#allocation5 + $0x8c8] sm:$0xff]  ;;  %v12006_v28 = vcombine.low %v392_v12, %v394_v13  ;;  %v420_v8 = vld [vmem:[#allocation5 + $0xc00] sm:$0xff] }
  0xc3   : > { %v399_v27 = vld [vmem:[#allocation5 + $0x948] sm:$0xff]  ;;  %v424_v17 = vld [vmem:[#allocation5 + $0xc80] sm:$0xff] }
  0xc4   : > { %v12013_v33 = vcombine.high %v397_v26, %v399_v27  ;;  %v401_v34 = vld [vmem:[#allocation5 + $0x988] sm:$0xff]  ;;  %v426_v18 = vld [vmem:[#allocation5 + $0xcc0] sm:$0xff] }
  0xc5   : > { %1901 = vmatpush1.bf16.msra.mxu0 %v11974_v21  ;;  %2073 = vmatpush1.bf16.msra.mxu1 %v11976_v22  ;;  %v12007_v21 = vcombine.high %v392_v12, %v394_v13  ;;  %v12009_v22 = vcombine.high %v393_v14, %v395_v16  ;;  %v403_v35 = vld [vmem:[#allocation5 + $0x9c8] sm:$0xff] }
  0xc6   : > { %1902 = vmatprep.subr.bf16.mxu0 %v11979_v23  ;;  %2074 = vmatprep.subr.bf16.mxu1 %v11981_v24  ;;  %v396_v23 = vld [vmem:[#allocation5 + $0x900] sm:$0xff]  ;;  %v405_v41 = vld [vmem:[#allocation5 + $0xa08] sm:$0xff]  ;;  %v12017_v42 = vcombine.high %v401_v34, %v403_v35 }
  0xc7   : > { %v398_v24 = vld [vmem:[#allocation5 + $0x940] sm:$0xff]  ;;  %v407_v43 = vld [vmem:[#allocation5 + $0xa48] sm:$0xff] }
  0xc8   : > { %v12010_v36 = vcombine.low %v396_v23, %v398_v24  ;;  %v409_v49 = vld [vmem:[#allocation5 + $0xa88] sm:$0xff]  ;;  %v12021_v50 = vcombine.high %v405_v41, %v407_v43 }
  0xc9   : > { %1903 = vmatpush1.bf16.msra.mxu0 %v11978_v29  ;;  %2075 = vmatpush1.bf16.msra.mxu1 %v11980_v30  ;;  %v12008_v29 = vcombine.low %v393_v14, %v395_v16  ;;  %v12011_v30 = vcombine.high %v396_v23, %v398_v24  ;;  %v411_v51 = vld [vmem:[#allocation5 + $0xac8] sm:$0xff]  ;;  %v12039_v24 = vcombine.high %v424_v17, %v426_v18 }
  0xca   : > { %1904 = vmatprep.subr.bf16.mxu0 %v11983_v31  ;;  %2076 = vmatprep.subr.bf16.mxu1 %v11985_v32  ;;  %v400_v31 = vld [vmem:[#allocation5 + $0x980] sm:$0xff]  ;;  %v413_v57 = vld [vmem:[#allocation5 + $0xb08] sm:$0xff]  ;;  %v12025_v59 = vcombine.high %v409_v49, %v411_v51 }
  0xcb   : > { %v402_v32 = vld [vmem:[#allocation5 + $0x9c0] sm:$0xff]  ;;  %v415_v60 = vld [vmem:[#allocation5 + $0xb48] sm:$0xff] }
  0xcc   : > { %v12014_v44 = vcombine.low %v400_v31, %v402_v32  ;;  %v417_v2 = vld [vmem:[#allocation5 + $0xb88] sm:$0xff]  ;;  %v12029_v3 = vcombine.high %v413_v57, %v415_v60 }
  0xcd   : > { %1905 = vmatpush1.bf16.msra.mxu0 %v11982_v37  ;;  %2077 = vmatpush1.bf16.msra.mxu1 %v11984_v38  ;;  %v12012_v37 = vcombine.low %v397_v26, %v399_v27  ;;  %v12015_v38 = vcombine.high %v400_v31, %v402_v32  ;;  %v419_v4 = vld [vmem:[#allocation5 + $0xbc8] sm:$0xff]  ;;  %v428_v26 = vld [vmem:[#allocation5 + $0xd00] sm:$0xff]  ;;  %v12038_v31 = vcombine.low %v424_v17, %v426_v18  ;;  %v302_v17 = vld [vmem:[%s15014_s8 + $0x10] sm:$0xff] }
  0xce   : > { %1906 = vmatprep.subr.bf16.mxu0 %v11987_v39  ;;  %2078 = vmatprep.subr.bf16.mxu1 %v11989_v40  ;;  %v404_v39 = vld [vmem:[#allocation5 + $0xa00] sm:$0xff]  ;;  %v423_v12 = vld [vmem:[#allocation5 + $0xc48] sm:$0xff]  ;;  %v12032_v14 = vcombine.low %v417_v2, %v419_v4  ;;  %v310_v18 = vld [vmem:[%s15014_s8 + $0x50] sm:$0xff] }
  0xcf   : > { %v406_v40 = vld [vmem:[#allocation5 + $0xa40] sm:$0xff] }
  0xd0   : > { %v12018_v52 = vcombine.low %v404_v39, %v406_v40  ;;  %v430_v27 = vld [vmem:[#allocation5 + $0xd40] sm:$0xff] }
  0xd1   : > { %1907 = vmatpush1.bf16.msra.mxu0 %v11986_v45  ;;  %2079 = vmatpush1.bf16.msra.mxu1 %v11988_v46  ;;  %v12016_v45 = vcombine.low %v401_v34, %v403_v35  ;;  %v12019_v46 = vcombine.high %v404_v39, %v406_v40  ;;  %v432_v34 = vld [vmem:[#allocation5 + $0xd80] sm:$0xff]  ;;  %v12042_v39 = vcombine.low %v428_v26, %v430_v27 }
  0xd2   : > { %1908 = vmatprep.subr.bf16.mxu0 %v11991_v47  ;;  %2080 = vmatprep.subr.bf16.mxu1 %v11993_v48  ;;  %v408_v47 = vld [vmem:[#allocation5 + $0xa80] sm:$0xff] }
  0xd3   : > { %v410_v48 = vld [vmem:[#allocation5 + $0xac0] sm:$0xff] }
  0xd4   : > { %v12022_v61 = vcombine.low %v408_v47, %v410_v48  ;;  %v434_v35 = vld [vmem:[#allocation5 + $0xdc0] sm:$0xff] }
  0xd5   : > { %1909 = vmatpush1.bf16.msra.mxu0 %v11990_v53  ;;  %2081 = vmatpush1.bf16.msra.mxu1 %v11992_v54  ;;  %v12020_v53 = vcombine.low %v405_v41, %v407_v43  ;;  %v12023_v54 = vcombine.high %v408_v47, %v410_v48  ;;  %v12047_v41 = vcombine.high %v432_v34, %v434_v35  ;;  %v438_v43 = vld [vmem:[#allocation5 + $0xe40] sm:$0xff] }
  0xd6   : > { %1910 = vmatprep.subr.bf16.mxu0 %v11995_v55  ;;  %2082 = vmatprep.subr.bf16.mxu1 %v11997_v56  ;;  %v412_v55 = vld [vmem:[#allocation5 + $0xb00] sm:$0xff]  ;;  %v12046_v47 = vcombine.low %v432_v34, %v434_v35 }
  0xd7   : > { %v414_v56 = vld [vmem:[#allocation5 + $0xb40] sm:$0xff] }
  0xd8   : > { %v12026_v5 = vcombine.low %v412_v55, %v414_v56  ;;  %v460_v34 = vld [vmem:[#allocation5 + $0x1100] sm:$0xff] }
  0xd9   : > { %1911 = vmatpush1.bf16.msra.mxu0 %v11994_v62  ;;  %2083 = vmatpush1.bf16.msra.mxu1 %v11996_v63  ;;  %v12024_v62 = vcombine.low %v409_v49, %v411_v51  ;;  %v12027_v63 = vcombine.high %v412_v55, %v414_v56  ;;  %v442_v51 = vld [vmem:[#allocation5 + $0xec0] sm:$0xff] }
  0xda   : > { %1912 = vmatprep.subr.bf16.mxu0 %v11999_v0  ;;  %2084 = vmatprep.subr.bf16.mxu1 %v12001_v1  ;;  %v416_v0 = vld [vmem:[#allocation5 + $0xb80] sm:$0xff] }
  0xdb   : > { %v418_v1 = vld [vmem:[#allocation5 + $0xbc0] sm:$0xff] }
  0xdc   : > { %v12031_v7 = vcombine.high %v416_v0, %v418_v1  ;;  %v12030_v13 = vcombine.low %v416_v0, %v418_v1 }
  0xdd   : > { %1913 = vmatpush1.bf16.msra.mxu0 %v11998_v6  ;;  %2085 = vmatpush1.bf16.msra.mxu1 %v12000_v9  ;;  %v12028_v6 = vcombine.low %v413_v57, %v415_v60  ;;  %v422_v9 = vld [vmem:[#allocation5 + $0xc40] sm:$0xff] }
  0xde   : > { %1925 = vmatprep.subr.bf16.mxu0 %v12003_v10  ;;  %2097 = vmatprep.subr.bf16.mxu1 %v12005_v11  ;;  %v421_v10 = vld [vmem:[#allocation5 + $0xc08] sm:$0xff]  ;;  %v12033_v11 = vcombine.high %v417_v2, %v419_v4  ;;  %v12035_v16 = vcombine.high %v420_v8, %v422_v9  ;;  %v446_v60 = vld [vmem:[#allocation5 + $0xf40] sm:$0xff] }
  0xdf   : > { %v12036_v23 = vcombine.low %v421_v10, %v423_v12  ;;  %v450_v4 = vld [vmem:[#allocation5 + $0xfc0] sm:$0xff] }
  0xe0   : > { %1915 = vmatmul.mubr.bf16.vlgmr.msra.gmra.mrb[0].mxu0 %v15036_v15  ;;  %2087 = vmatmul.mubr.bf16.vlgmr.msra.gmra.mrb[0].mxu1 %v15036_v15 }
  0xe1   : > { %1926 = vmatpush1.bf16.msra.mxu0 %v12002_v19  ;;  %2098 = vmatpush1.bf16.msra.mxu1 %v12004_v20  ;;  %v425_v19 = vld [vmem:[#allocation5 + $0xc88] sm:$0xff]  ;;  %v12037_v20 = vcombine.high %v421_v10, %v423_v12  ;;  %v454_v12 = vld [vmem:[#allocation5 + $0x1040] sm:$0xff] }
  0xe2   : > { %1927 = vmatprep.subr.bf16.mxu0 %v12007_v21  ;;  %2099 = vmatprep.subr.bf16.mxu1 %v12009_v22  ;;  %v427_v21 = vld [vmem:[#allocation5 + $0xcc8] sm:$0xff]  ;;  %v12034_v22 = vcombine.low %v420_v8, %v422_v9  ;;  %v452_v9 = vld [vmem:[#allocation5 + $0x1000] sm:$0xff] }
  0xe3   : > { %1957 = vmatprep.mubr.bf16.mxu0 %v15040_v25  ;;  %2129 = vmatprep.mubr.bf16.mxu1 %v15040_v25  ;;  %v12040_v32 = vcombine.low %v425_v19, %v427_v21 }
  0xe5   : > { %1928 = vmatpush1.bf16.msra.mxu0 %v12006_v28  ;;  %2100 = vmatpush1.bf16.msra.mxu1 %v12008_v29  ;;  %v429_v28 = vld [vmem:[#allocation5 + $0xd08] sm:$0xff]  ;;  %v12041_v29 = vcombine.high %v425_v19, %v427_v21  ;;  %v458_v21 = vld [vmem:[#allocation5 + $0x10c0] sm:$0xff] }
  0xe6   : > { %1929 = vmatprep.subr.bf16.mxu0 %v12011_v30  ;;  %2101 = vmatprep.subr.bf16.mxu1 %v12013_v33  ;;  %v431_v30 = vld [vmem:[#allocation5 + $0xd48] sm:$0xff]  ;;  %v12043_v33 = vcombine.high %v428_v26, %v430_v27 }
  0xe7   : > { %v12044_v40 = vcombine.low %v429_v28, %v431_v30  ;;  %v459_v26 = vld [vmem:[#allocation5 + $0x10c8] sm:$0xff] }
  0xe8   : > { %v305_v27 = vld [vmem:[%s15014_s8 + $0x28] sm:$0xff] }
  0xe9   : > { %1930 = vmatpush1.bf16.msra.mxu0 %v12010_v36  ;;  %2102 = vmatpush1.bf16.msra.mxu1 %v12012_v37  ;;  %v433_v36 = vld [vmem:[#allocation5 + $0xd88] sm:$0xff]  ;;  %v12045_v37 = vcombine.high %v429_v28, %v431_v30  ;;  %v15050_v30 = vpack.c.bf16 %v310_v18, %v302_v17 }
  0xea   : > { %1931 = vmatprep.subr.bf16.mxu0 %v12015_v38  ;;  %2103 = vmatprep.subr.bf16.mxu1 %v12017_v42  ;;  %v435_v38 = vld [vmem:[#allocation5 + $0xdc8] sm:$0xff]  ;;  %v436_v42 = vld [vmem:[#allocation5 + $0xe00] sm:$0xff] }
  0xeb   : > { %v12048_v48 = vcombine.low %v433_v36, %v435_v38  ;;  %v12051_v49 = vcombine.high %v436_v42, %v438_v43  ;;  %v12050_v55 = vcombine.low %v436_v42, %v438_v43  ;;  %v464_v43 = vld [vmem:[#allocation5 + $0x1180] sm:$0xff]  ;;  %v483_v17 = vld [vmem:[#allocation5 + $0x13c8] sm:$0xff] }
  0xed   : > { %1932 = vmatpush1.bf16.msra.mxu0 %v12014_v44  ;;  %2104 = vmatpush1.bf16.msra.mxu1 %v12016_v45  ;;  %v437_v44 = vld [vmem:[#allocation5 + $0xe08] sm:$0xff]  ;;  %v12049_v45 = vcombine.high %v433_v36, %v435_v38  ;;  %v462_v36 = vld [vmem:[#allocation5 + $0x1140] sm:$0xff] }
  0xee   : > { %1933 = vmatprep.subr.bf16.mxu0 %v12019_v46  ;;  %2105 = vmatprep.subr.bf16.mxu1 %v12021_v50  ;;  %v439_v46 = vld [vmem:[#allocation5 + $0xe48] sm:$0xff]  ;;  %v440_v50 = vld [vmem:[#allocation5 + $0xe80] sm:$0xff]  ;;  %v12075_v42 = vcombine.high %v460_v34, %v462_v36 }
  0xef   : > { %v12052_v56 = vcombine.low %v437_v44, %v439_v46  ;;  %v12055_v57 = vcombine.high %v440_v50, %v442_v51  ;;  %v12054_v0 = vcombine.low %v440_v50, %v442_v51  ;;  %v463_v38 = vld [vmem:[#allocation5 + $0x1148] sm:$0xff]  ;;  %v468_v51 = vld [vmem:[#allocation5 + $0x1200] sm:$0xff] }
  0xf1   : > { %1934 = vmatpush1.bf16.msra.mxu0 %v12018_v52  ;;  %2106 = vmatpush1.bf16.msra.mxu1 %v12020_v53  ;;  %v441_v52 = vld [vmem:[#allocation5 + $0xe88] sm:$0xff]  ;;  %v12053_v53 = vcombine.high %v437_v44, %v439_v46  ;;  %v466_v44 = vld [vmem:[#allocation5 + $0x11c0] sm:$0xff] }
  0xf2   : > { %1935 = vmatprep.subr.bf16.mxu0 %v12023_v54  ;;  %2107 = vmatprep.subr.bf16.mxu1 %v12025_v59  ;;  %v443_v54 = vld [vmem:[#allocation5 + $0xec8] sm:$0xff]  ;;  %v444_v59 = vld [vmem:[#allocation5 + $0xf00] sm:$0xff]  ;;  %v12079_v50 = vcombine.high %v464_v43, %v466_v44 }
  0xf3   : > { %v12056_v1 = vcombine.low %v441_v52, %v443_v54  ;;  %v12059_v2 = vcombine.high %v444_v59, %v446_v60  ;;  %v12058_v8 = vcombine.low %v444_v59, %v446_v60  ;;  %v472_v60 = vld [vmem:[#allocation5 + $0x1280] sm:$0xff] }
  0xf5   : > { %1936 = vmatpush1.bf16.msra.mxu0 %v12022_v61  ;;  %2108 = vmatpush1.bf16.msra.mxu1 %v12024_v62  ;;  %v445_v61 = vld [vmem:[#allocation5 + $0xf08] sm:$0xff]  ;;  %v12057_v62 = vcombine.high %v441_v52, %v443_v54  ;;  %v470_v52 = vld [vmem:[#allocation5 + $0x1240] sm:$0xff] }
  0xf6   : > { %1937 = vmatprep.subr.bf16.mxu0 %v12027_v63  ;;  %2109 = vmatprep.subr.bf16.mxu1 %v12029_v3  ;;  %v447_v63 = vld [vmem:[#allocation5 + $0xf48] sm:$0xff]  ;;  %v448_v3 = vld [vmem:[#allocation5 + $0xf80] sm:$0xff]  ;;  %v12083_v59 = vcombine.high %v468_v51, %v470_v52 }
  0xf7   : > { %v12060_v10 = vcombine.low %v445_v61, %v447_v63  ;;  %v12062_v19 = vcombine.low %v448_v3, %v450_v4 }
  0xf9   : > { %1938 = vmatpush1.bf16.msra.mxu0 %v12026_v5  ;;  %2110 = vmatpush1.bf16.msra.mxu1 %v12028_v6  ;;  %v449_v5 = vld [vmem:[#allocation5 + $0xf88] sm:$0xff]  ;;  %v12061_v6 = vcombine.high %v445_v61, %v447_v63  ;;  %v474_v61 = vld [vmem:[#allocation5 + $0x12c0] sm:$0xff] }
  0xfa   : > { %1939 = vmatprep.subr.bf16.mxu0 %v12031_v7  ;;  %2111 = vmatprep.subr.bf16.mxu1 %v12033_v11  ;;  %v451_v7 = vld [vmem:[#allocation5 + $0xfc8] sm:$0xff]  ;;  %v12063_v11 = vcombine.high %v448_v3, %v450_v4  ;;  %v12087_v3 = vcombine.high %v472_v60, %v474_v61  ;;  %v476_v4 = vld [vmem:[#allocation5 + $0x1300] sm:$0xff] }
  0xfd   : > { %1940 = vmatpush1.bf16.msra.mxu0 %v12030_v13  ;;  %2112 = vmatpush1.bf16.msra.mxu1 %v12032_v14  ;;  %v453_v13 = vld [vmem:[#allocation5 + $0x1008] sm:$0xff] }
  0xfe   : > { %1941 = vmatprep.subr.bf16.mxu0 %v12035_v16  ;;  %2113 = vmatprep.subr.bf16.mxu1 %v12037_v20  ;;  %v455_v14 = vld [vmem:[#allocation5 + $0x1048] sm:$0xff]  ;;  %v12065_v16 = vcombine.high %v449_v5, %v451_v7  ;;  %v456_v20 = vld [vmem:[#allocation5 + $0x1080] sm:$0xff] }
  0xff   : > { %v12069_v28 = vcombine.high %v453_v13, %v455_v14 }
 0x101   : > { %1942 = vmatpush1.bf16.msra.mxu0 %v12034_v22  ;;  %2114 = vmatpush1.bf16.msra.mxu1 %v12036_v23  ;;  %v12064_v22 = vcombine.low %v449_v5, %v451_v7  ;;  %v12067_v23 = vcombine.high %v452_v9, %v454_v12  ;;  %v478_v5 = vld [vmem:[#allocation5 + $0x1340] sm:$0xff] }
 0x102   : > { %1943 = vmatprep.subr.bf16.mxu0 %v12039_v24  ;;  %2115 = vmatprep.subr.bf16.mxu1 %v12041_v29  ;;  %v457_v24 = vld [vmem:[#allocation5 + $0x1088] sm:$0xff]  ;;  %v12090_v18 = vcombine.low %v476_v4, %v478_v5 }
 0x103   : > { %v313_v29 = vld [vmem:[%s15014_s8 + $0x68] sm:$0xff]  ;;  %v12073_v35 = vcombine.high %v457_v24, %v459_v26 }
 0x105   : > { %1944 = vmatpush1.bf16.msra.mxu0 %v12038_v31  ;;  %2116 = vmatpush1.bf16.msra.mxu1 %v12040_v32  ;;  %v12066_v31 = vcombine.low %v452_v9, %v454_v12  ;;  %v12068_v32 = vcombine.low %v453_v13, %v455_v14  ;;  %v12086_v9 = vcombine.low %v472_v60, %v474_v61  ;;  %v480_v12 = vld [vmem:[#allocation5 + $0x1380] sm:$0xff]  ;;  %v481_v14 = vld [vmem:[#allocation5 + $0x1388] sm:$0xff] }
 0x106   : > { %1945 = vmatprep.subr.bf16.mxu0 %v12043_v33  ;;  %2117 = vmatprep.subr.bf16.mxu1 %v12045_v37  ;;  %v12071_v33 = vcombine.high %v456_v20, %v458_v21  ;;  %v461_v37 = vld [vmem:[#allocation5 + $0x1108] sm:$0xff]  ;;  %v482_v13 = vld [vmem:[#allocation5 + $0x13c0] sm:$0xff] }
 0x107   : > { %v12077_v46 = vcombine.high %v461_v37, %v463_v38  ;;  %v503_v61 = vld [vmem:[#allocation5 + $0x1648] sm:$0xff] }
 0x109   : > { %1946 = vmatpush1.bf16.msra.mxu0 %v12042_v39  ;;  %2118 = vmatpush1.bf16.msra.mxu1 %v12044_v40  ;;  %v15052_v39 = vpack.c.bf16 %v313_v29, %v305_v27  ;;  %v12070_v40 = vcombine.low %v456_v20, %v458_v21  ;;  %v12095_v20 = vcombine.high %v480_v12, %v482_v13  ;;  %v484_v21 = vld [vmem:[#allocation5 + $0x1400] sm:$0xff] }
 0x10a   : > { %1947 = vmatprep.subr.bf16.mxu0 %v12047_v41  ;;  %2119 = vmatprep.subr.bf16.mxu1 %v12049_v45  ;;  %v12072_v41 = vcombine.low %v457_v24, %v459_v26  ;;  %v465_v45 = vld [vmem:[#allocation5 + $0x1188] sm:$0xff]  ;;  %v12097_v24 = vcombine.high %v481_v14, %v483_v17  ;;  %v12094_v27 = vcombine.low %v480_v12, %v482_v13 }
 0x10b   : > { %v487_v26 = vld [vmem:[#allocation5 + $0x1448] sm:$0xff] }
 0x10c   : > { %v511_v13 = vld [vmem:[#allocation5 + $0x1748] sm:$0xff] }
 0x10d   : > { %1948 = vmatpush1.bf16.msra.mxu0 %v12046_v47  ;;  %2120 = vmatpush1.bf16.msra.mxu1 %v12048_v48  ;;  %v467_v47 = vld [vmem:[#allocation5 + $0x11c8] sm:$0xff]  ;;  %v12074_v48 = vcombine.low %v460_v34, %v462_v36 }
 0x10e   : > { %1949 = vmatprep.subr.bf16.mxu0 %v12051_v49  ;;  %2121 = vmatprep.subr.bf16.mxu1 %v12053_v53  ;;  %v12076_v49 = vcombine.low %v461_v37, %v463_v38  ;;  %v469_v53 = vld [vmem:[#allocation5 + $0x1208] sm:$0xff]  ;;  %v12081_v54 = vcombine.high %v465_v45, %v467_v47 }
 0x111   : > { %1950 = vmatpush1.bf16.msra.mxu0 %v12050_v55  ;;  %2122 = vmatpush1.bf16.msra.mxu1 %v12052_v56  ;;  %v471_v55 = vld [vmem:[#allocation5 + $0x1248] sm:$0xff]  ;;  %v12078_v56 = vcombine.low %v464_v43, %v466_v44 }
 0x112   : > { %1951 = vmatprep.subr.bf16.mxu0 %v12055_v57  ;;  %2123 = vmatprep.subr.bf16.mxu1 %v12057_v62  ;;  %v12080_v57 = vcombine.low %v465_v45, %v467_v47  ;;  %v473_v62 = vld [vmem:[#allocation5 + $0x1288] sm:$0xff]  ;;  %v12085_v63 = vcombine.high %v469_v53, %v471_v55 }
 0x113   : > { %v495_v44 = vld [vmem:[#allocation5 + $0x1548] sm:$0xff] }
 0x115   : > { %1952 = vmatpush1.bf16.msra.mxu0 %v12054_v0  ;;  %2124 = vmatpush1.bf16.msra.mxu1 %v12056_v1  ;;  %v475_v0 = vld [vmem:[#allocation5 + $0x12c8] sm:$0xff]  ;;  %v12082_v1 = vcombine.low %v468_v51, %v470_v52 }
 0x116   : > { %1953 = vmatprep.subr.bf16.mxu0 %v12059_v2  ;;  %2125 = vmatprep.subr.bf16.mxu1 %v12061_v6  ;;  %v12084_v2 = vcombine.low %v469_v53, %v471_v55  ;;  %v477_v6 = vld [vmem:[#allocation5 + $0x1308] sm:$0xff]  ;;  %v12089_v7 = vcombine.high %v473_v62, %v475_v0 }
 0x117   : > { %v499_v52 = vld [vmem:[#allocation5 + $0x15c8] sm:$0xff] }
 0x119   : > { %1954 = vmatpush1.bf16.msra.mxu0 %v12058_v8  ;;  %2126 = vmatpush1.bf16.msra.mxu1 %v12060_v10  ;;  %v479_v8 = vld [vmem:[#allocation5 + $0x1348] sm:$0xff]  ;;  %v12088_v10 = vcombine.low %v473_v62, %v475_v0 }
 0x11a   : > { %1955 = vmatprep.subr.bf16.mxu0 %v12063_v11  ;;  %2127 = vmatprep.subr.bf16.mxu1 %v12065_v16  ;;  %v12091_v11 = vcombine.high %v476_v4, %v478_v5  ;;  %v12093_v16 = vcombine.high %v477_v6, %v479_v8  ;;  %v507_v5 = vld [vmem:[#allocation5 + $0x16c8] sm:$0xff] }
 0x11d   : > { %1956 = vmatpush1.bf16.msra.mxu0 %v12062_v19  ;;  %2128 = vmatpush1.bf16.msra.mxu1 %v12064_v22  ;;  %v12092_v19 = vcombine.low %v477_v6, %v479_v8  ;;  %v486_v22 = vld [vmem:[#allocation5 + $0x1440] sm:$0xff] }
 0x11e   : > { %1968 = vmatprep.subr.bf16.mxu0 %v12067_v23  ;;  %2140 = vmatprep.subr.bf16.mxu1 %v12069_v28  ;;  %v485_v23 = vld [vmem:[#allocation5 + $0x1408] sm:$0xff]  ;;  %v12096_v28 = vcombine.low %v481_v14, %v483_v17  ;;  %v12099_v29 = vcombine.high %v484_v21, %v486_v22  ;;  %v12098_v36 = vcombine.low %v484_v21, %v486_v22 }
 0x11f   : > { %v12101_v34 = vcombine.high %v485_v23, %v487_v26  ;;  %v12100_v37 = vcombine.low %v485_v23, %v487_v26  ;;  %v515_v22 = vld [vmem:[#allocation5 + $0x17c8] sm:$0xff] }
 0x120   : > { %1958 = vmatmul.mubr.bf16.vlgmr.msra.gmra.mrb[0].mxu0 %v15050_v30  ;;  %2130 = vmatmul.mubr.bf16.vlgmr.msra.gmra.mrb[0].mxu1 %v15050_v30 }
 0x121   : > { %1969 = vmatpush1.bf16.msra.mxu0 %v12066_v31  ;;  %2141 = vmatpush1.bf16.msra.mxu1 %v12068_v32  ;;  %v488_v31 = vld [vmem:[#allocation5 + $0x1480] sm:$0xff] }
 0x122   : > { %1970 = vmatprep.subr.bf16.mxu0 %v12071_v33  ;;  %2142 = vmatprep.subr.bf16.mxu1 %v12073_v35  ;;  %v490_v32 = vld [vmem:[#allocation5 + $0x14c0] sm:$0xff]  ;;  %v489_v33 = vld [vmem:[#allocation5 + $0x1488] sm:$0xff] }
 0x123   : > { %2000 = vmatprep.mubr.bf16.mxu0 %v15052_v39  ;;  %2172 = vmatprep.mubr.bf16.mxu1 %v15052_v39  ;;  %v491_v35 = vld [vmem:[#allocation5 + $0x14c8] sm:$0xff]  ;;  %v12103_v38 = vcombine.high %v488_v31, %v490_v32  ;;  %v12102_v45 = vcombine.low %v488_v31, %v490_v32 }
 0x124   : > { %v12105_v43 = vcombine.high %v489_v33, %v491_v35  ;;  %v519_v31 = vld [vmem:[#allocation5 + $0x1848] sm:$0xff] }
 0x125   : > { %1971 = vmatpush1.bf16.msra.mxu0 %v12070_v40  ;;  %2143 = vmatpush1.bf16.msra.mxu1 %v12072_v41  ;;  %v492_v40 = vld [vmem:[#allocation5 + $0x1500] sm:$0xff] }
 0x126   : > { %1972 = vmatprep.subr.bf16.mxu0 %v12075_v42  ;;  %2144 = vmatprep.subr.bf16.mxu1 %v12077_v46  ;;  %v494_v41 = vld [vmem:[#allocation5 + $0x1540] sm:$0xff]  ;;  %v493_v42 = vld [vmem:[#allocation5 + $0x1508] sm:$0xff]  ;;  %v12104_v46 = vcombine.low %v489_v33, %v491_v35 }
 0x127   : > { %v12107_v47 = vcombine.high %v492_v40, %v494_v41  ;;  %v12109_v51 = vcombine.high %v493_v42, %v495_v44  ;;  %v12106_v53 = vcombine.low %v492_v40, %v494_v41  ;;  %v304_v33 = vld [vmem:[%s15014_s8 + $0x20] sm:$0xff]  ;;  %v521_v41 = vld [vmem:[#allocation5 + $0x1888] sm:$0xff] }
 0x129   : > { %1973 = vmatpush1.bf16.msra.mxu0 %v12074_v48  ;;  %2145 = vmatpush1.bf16.msra.mxu1 %v12076_v49  ;;  %v496_v48 = vld [vmem:[#allocation5 + $0x1580] sm:$0xff] }
 0x12a   : > { %1974 = vmatprep.subr.bf16.mxu0 %v12079_v50  ;;  %2146 = vmatprep.subr.bf16.mxu1 %v12081_v54  ;;  %v498_v49 = vld [vmem:[#allocation5 + $0x15c0] sm:$0xff]  ;;  %v497_v50 = vld [vmem:[#allocation5 + $0x1588] sm:$0xff]  ;;  %v12108_v54 = vcombine.low %v493_v42, %v495_v44 }
 0x12b   : > { %v12111_v55 = vcombine.high %v496_v48, %v498_v49  ;;  %v12113_v60 = vcombine.high %v497_v50, %v499_v52  ;;  %v12110_v62 = vcombine.low %v496_v48, %v498_v49  ;;  %v523_v42 = vld [vmem:[#allocation5 + $0x18c8] sm:$0xff] }
 0x12d   : > { %1975 = vmatpush1.bf16.msra.mxu0 %v12078_v56  ;;  %2147 = vmatpush1.bf16.msra.mxu1 %v12080_v57  ;;  %v500_v56 = vld [vmem:[#allocation5 + $0x1600] sm:$0xff] }
 0x12e   : > { %1976 = vmatprep.subr.bf16.mxu0 %v12083_v59  ;;  %2148 = vmatprep.subr.bf16.mxu1 %v12085_v63  ;;  %v502_v57 = vld [vmem:[#allocation5 + $0x1640] sm:$0xff]  ;;  %v501_v59 = vld [vmem:[#allocation5 + $0x1608] sm:$0xff]  ;;  %v12112_v63 = vcombine.low %v497_v50, %v499_v52 }
 0x12f   : > { %v12115_v0 = vcombine.high %v500_v56, %v502_v57  ;;  %v12117_v4 = vcombine.high %v501_v59, %v503_v61  ;;  %v12114_v6 = vcombine.low %v500_v56, %v502_v57  ;;  %v524_v50 = vld [vmem:[#allocation5 + $0x1900] sm:$0xff]  ;;  %v525_v52 = vld [vmem:[#allocation5 + $0x1908] sm:$0xff]  ;;  %v12136_v57 = vcombine.low %v521_v41, %v523_v42 }
 0x131   : > { %1977 = vmatpush1.bf16.msra.mxu0 %v12082_v1  ;;  %2149 = vmatpush1.bf16.msra.mxu1 %v12084_v2  ;;  %v504_v1 = vld [vmem:[#allocation5 + $0x1680] sm:$0xff] }
 0x132   : > { %1978 = vmatprep.subr.bf16.mxu0 %v12087_v3  ;;  %2150 = vmatprep.subr.bf16.mxu1 %v12089_v7  ;;  %v506_v2 = vld [vmem:[#allocation5 + $0x16c0] sm:$0xff]  ;;  %v505_v3 = vld [vmem:[#allocation5 + $0x1688] sm:$0xff]  ;;  %v12116_v7 = vcombine.low %v501_v59, %v503_v61 }
 0x133   : > { %v12119_v8 = vcombine.high %v504_v1, %v506_v2  ;;  %v12121_v12 = vcombine.high %v505_v3, %v507_v5  ;;  %v12118_v14 = vcombine.low %v504_v1, %v506_v2  ;;  %v530_v61 = vld [vmem:[#allocation5 + $0x19c0] sm:$0xff] }
 0x135   : > { %1979 = vmatpush1.bf16.msra.mxu0 %v12086_v9  ;;  %2151 = vmatpush1.bf16.msra.mxu1 %v12088_v10  ;;  %v508_v9 = vld [vmem:[#allocation5 + $0x1700] sm:$0xff] }
 0x136   : > { %1980 = vmatprep.subr.bf16.mxu0 %v12091_v11  ;;  %2152 = vmatprep.subr.bf16.mxu1 %v12093_v16  ;;  %v510_v10 = vld [vmem:[#allocation5 + $0x1740] sm:$0xff]  ;;  %v509_v11 = vld [vmem:[#allocation5 + $0x1708] sm:$0xff]  ;;  %v12120_v16 = vcombine.low %v505_v3, %v507_v5 }
 0x137   : > { %v12123_v17 = vcombine.high %v508_v9, %v510_v10  ;;  %v12125_v21 = vcombine.high %v509_v11, %v511_v13  ;;  %v12122_v23 = vcombine.low %v508_v9, %v510_v10  ;;  %v12124_v26 = vcombine.low %v509_v11, %v511_v13  ;;  %v534_v5 = vld [vmem:[#allocation5 + $0x1a40] sm:$0xff] }
 0x138   : > { %v538_v13 = vld [vmem:[#allocation5 + $0x1ac0] sm:$0xff] }
 0x139   : > { %1981 = vmatpush1.bf16.msra.mxu0 %v12090_v18  ;;  %2153 = vmatpush1.bf16.msra.mxu1 %v12092_v19  ;;  %v512_v18 = vld [vmem:[#allocation5 + $0x1780] sm:$0xff] }
 0x13a   : > { %1982 = vmatprep.subr.bf16.mxu0 %v12095_v20  ;;  %2154 = vmatprep.subr.bf16.mxu1 %v12097_v24  ;;  %v514_v19 = vld [vmem:[#allocation5 + $0x17c0] sm:$0xff]  ;;  %v513_v20 = vld [vmem:[#allocation5 + $0x1788] sm:$0xff] }
 0x13b   : > { %v516_v24 = vld [vmem:[#allocation5 + $0x1800] sm:$0xff]  ;;  %v12129_v32 = vcombine.high %v513_v20, %v515_v22  ;;  %v12126_v35 = vcombine.low %v512_v18, %v514_v19 }
 0x13d   : > { %1983 = vmatpush1.bf16.msra.mxu0 %v12094_v27  ;;  %2155 = vmatpush1.bf16.msra.mxu1 %v12096_v28  ;;  %v12127_v27 = vcombine.high %v512_v18, %v514_v19  ;;  %v518_v28 = vld [vmem:[#allocation5 + $0x1840] sm:$0xff] }
 0x13e   : > { %1984 = vmatprep.subr.bf16.mxu0 %v12099_v29  ;;  %2156 = vmatprep.subr.bf16.mxu1 %v12101_v34  ;;  %v517_v29 = vld [vmem:[#allocation5 + $0x1808] sm:$0xff]  ;;  %v312_v34 = vld [vmem:[%s15014_s8 + $0x60] sm:$0xff]  ;;  %v12131_v40 = vcombine.high %v516_v24, %v518_v28 }
 0x13f   : > { %v12133_v44 = vcombine.high %v517_v29, %v519_v31  ;;  %v12132_v48 = vcombine.low %v517_v29, %v519_v31  ;;  %v544_v31 = vld [vmem:[#allocation5 + $0x1b80] sm:$0xff] }
 0x141   : > { %1985 = vmatpush1.bf16.msra.mxu0 %v12098_v36  ;;  %2157 = vmatpush1.bf16.msra.mxu1 %v12100_v37  ;;  %v520_v36 = vld [vmem:[#allocation5 + $0x1880] sm:$0xff] }
 0x142   : > { %1986 = vmatprep.subr.bf16.mxu0 %v12103_v38  ;;  %2158 = vmatprep.subr.bf16.mxu1 %v12105_v43  ;;  %v522_v37 = vld [vmem:[#allocation5 + $0x18c0] sm:$0xff]  ;;  %v12128_v38 = vcombine.low %v513_v20, %v515_v22  ;;  %v307_v43 = vld [vmem:[%s15014_s8 + $0x38] sm:$0xff] }
 0x143   : > { %v12135_v49 = vcombine.high %v520_v36, %v522_v37  ;;  %v12134_v56 = vcombine.low %v520_v36, %v522_v37  ;;  %v542_v22 = vld [vmem:[#allocation5 + $0x1b40] sm:$0xff] }
 0x145   : > { %1987 = vmatpush1.bf16.msra.mxu0 %v12102_v45  ;;  %2159 = vmatpush1.bf16.msra.mxu1 %v12104_v46  ;;  %v315_v45 = vld [vmem:[%s15014_s8 + $0x78] sm:$0xff]  ;;  %v15062_v46 = vpack.c.bf16 %v312_v34, %v304_v33  ;;  %v545_v33 = vld [vmem:[#allocation5 + $0x1b88] sm:$0xff] }
 0x146   : > { %1988 = vmatprep.subr.bf16.mxu0 %v12107_v47  ;;  %2160 = vmatprep.subr.bf16.mxu1 %v12109_v51  ;;  %v12130_v47 = vcombine.low %v516_v24, %v518_v28  ;;  %v526_v51 = vld [vmem:[#allocation5 + $0x1940] sm:$0xff] }
 0x147   : > { %v12139_v59 = vcombine.high %v524_v50, %v526_v51  ;;  %v12138_v1 = vcombine.low %v524_v50, %v526_v51  ;;  %v554_v50 = vld [vmem:[#allocation5 + $0x1cc0] sm:$0xff]  ;;  %v553_v51 = vld [vmem:[#allocation5 + $0x1c88] sm:$0xff] }
 0x149   : > { %1989 = vmatpush1.bf16.msra.mxu0 %v12106_v53  ;;  %2161 = vmatpush1.bf16.msra.mxu1 %v12108_v54  ;;  %v12137_v53 = vcombine.high %v521_v41, %v523_v42  ;;  %v527_v54 = vld [vmem:[#allocation5 + $0x1948] sm:$0xff]  ;;  %v550_v41 = vld [vmem:[#allocation5 + $0x1c40] sm:$0xff] }
 0x14a   : > { %1990 = vmatprep.subr.bf16.mxu0 %v12111_v55  ;;  %2162 = vmatprep.subr.bf16.mxu1 %v12113_v60  ;;  %v15064_v55 = vpack.c.bf16 %v315_v45, %v307_v43  ;;  %v528_v60 = vld [vmem:[#allocation5 + $0x1980] sm:$0xff]  ;;  %v12140_v2 = vcombine.low %v525_v52, %v527_v54  ;;  %v549_v42 = vld [vmem:[#allocation5 + $0x1c08] sm:$0xff] }
 0x14b   : > { %v12143_v3 = vcombine.high %v528_v60, %v530_v61  ;;  %v12142_v9 = vcombine.low %v528_v60, %v530_v61  ;;  %v558_v60 = vld [vmem:[#allocation5 + $0x1d40] sm:$0xff]  ;;  %v557_v61 = vld [vmem:[#allocation5 + $0x1d08] sm:$0xff] }
 0x14d   : > { %1991 = vmatpush1.bf16.msra.mxu0 %v12110_v62  ;;  %2163 = vmatpush1.bf16.msra.mxu1 %v12112_v63  ;;  %v529_v62 = vld [vmem:[#allocation5 + $0x1988] sm:$0xff]  ;;  %v12141_v63 = vcombine.high %v525_v52, %v527_v54 }
 0x14e   : > { %1992 = vmatprep.subr.bf16.mxu0 %v12115_v0  ;;  %2164 = vmatprep.subr.bf16.mxu1 %v12117_v4  ;;  %v531_v0 = vld [vmem:[#allocation5 + $0x19c8] sm:$0xff]  ;;  %v532_v4 = vld [vmem:[#allocation5 + $0x1a00] sm:$0xff] }
 0x14f   : > { %v12144_v10 = vcombine.low %v529_v62, %v531_v0  ;;  %v12147_v11 = vcombine.high %v532_v4, %v534_v5  ;;  %v12146_v18 = vcombine.low %v532_v4, %v534_v5  ;;  %v562_v4 = vld [vmem:[#allocation5 + $0x1dc0] sm:$0xff]  ;;  %v561_v5 = vld [vmem:[#allocation5 + $0x1d88] sm:$0xff] }
 0x151   : > { %1993 = vmatpush1.bf16.msra.mxu0 %v12114_v6  ;;  %2165 = vmatpush1.bf16.msra.mxu1 %v12116_v7  ;;  %v533_v6 = vld [vmem:[#allocation5 + $0x1a08] sm:$0xff]  ;;  %v12145_v7 = vcombine.high %v529_v62, %v531_v0 }
 0x152   : > { %1994 = vmatprep.subr.bf16.mxu0 %v12119_v8  ;;  %2166 = vmatprep.subr.bf16.mxu1 %v12121_v12  ;;  %v535_v8 = vld [vmem:[#allocation5 + $0x1a48] sm:$0xff]  ;;  %v536_v12 = vld [vmem:[#allocation5 + $0x1a80] sm:$0xff] }
 0x153   : > { %v12148_v19 = vcombine.low %v533_v6, %v535_v8  ;;  %v12151_v20 = vcombine.high %v536_v12, %v538_v13 }
 0x155   : > { %1995 = vmatpush1.bf16.msra.mxu0 %v12118_v14  ;;  %2167 = vmatpush1.bf16.msra.mxu1 %v12120_v16  ;;  %v537_v14 = vld [vmem:[#allocation5 + $0x1a88] sm:$0xff]  ;;  %v12149_v16 = vcombine.high %v533_v6, %v535_v8 }
 0x156   : > { %1996 = vmatprep.subr.bf16.mxu0 %v12123_v17  ;;  %2168 = vmatprep.subr.bf16.mxu1 %v12125_v21  ;;  %v539_v17 = vld [vmem:[#allocation5 + $0x1ac8] sm:$0xff]  ;;  %v540_v21 = vld [vmem:[#allocation5 + $0x1b00] sm:$0xff] }
 0x157   : > { %v12153_v24 = vcombine.high %v537_v14, %v539_v17  ;;  %v12152_v28 = vcombine.low %v537_v14, %v539_v17  ;;  %v12155_v29 = vcombine.high %v540_v21, %v542_v22  ;;  %v12154_v36 = vcombine.low %v540_v21, %v542_v22  ;;  %v570_v21 = vld [vmem:[#allocation5 + $0x1ec0] sm:$0xff]  ;;  %v569_v22 = vld [vmem:[#allocation5 + $0x1e88] sm:$0xff] }
 0x159   : > { %1997 = vmatpush1.bf16.msra.mxu0 %v12122_v23  ;;  %2169 = vmatpush1.bf16.msra.mxu1 %v12124_v26  ;;  %v541_v23 = vld [vmem:[#allocation5 + $0x1b08] sm:$0xff] }
 0x15a   : > { %1998 = vmatprep.subr.bf16.mxu0 %v12127_v27  ;;  %2170 = vmatprep.subr.bf16.mxu1 %v12129_v32  ;;  %v543_v26 = vld [vmem:[#allocation5 + $0x1b48] sm:$0xff]  ;;  %v12150_v27 = vcombine.low %v536_v12, %v538_v13  ;;  %v546_v32 = vld [vmem:[#allocation5 + $0x1bc0] sm:$0xff] }
 0x15b   : > { %v12157_v34 = vcombine.high %v541_v23, %v543_v26  ;;  %v12156_v37 = vcombine.low %v541_v23, %v543_v26  ;;  %v12158_v45 = vcombine.low %v544_v31, %v546_v32  ;;  %v566_v12 = vld [vmem:[#allocation5 + $0x1e40] sm:$0xff]  ;;  %v565_v13 = vld [vmem:[#allocation5 + $0x1e08] sm:$0xff] }
 0x15d   : > { %1999 = vmatpush1.bf16.msra.mxu0 %v12126_v35  ;;  %2171 = vmatpush1.bf16.msra.mxu1 %v12128_v38  ;;  %v547_v35 = vld [vmem:[#allocation5 + $0x1bc8] sm:$0xff]  ;;  %v12159_v38 = vcombine.high %v544_v31, %v546_v32  ;;  %v574_v31 = vld [vmem:[#allocation5 + $0x1f40] sm:$0xff] }
 0x15e   : > { %2011 = vmatprep.subr.bf16.mxu0 %v12131_v40  ;;  %2183 = vmatprep.subr.bf16.mxu1 %v12133_v44  ;;  %v548_v40 = vld [vmem:[#allocation5 + $0x1c00] sm:$0xff]  ;;  %v12161_v43 = vcombine.high %v545_v33, %v547_v35  ;;  %v551_v44 = vld [vmem:[#allocation5 + $0x1c48] sm:$0xff] }
 0x15f   : > { %v12165_v52 = vcombine.high %v549_v42, %v551_v44  ;;  %v12162_v54 = vcombine.low %v548_v40, %v550_v41  ;;  %v573_v32 = vld [vmem:[#allocation5 + $0x1f08] sm:$0xff] }
 0x160   : > { %2001 = vmatmul.mubr.bf16.vlgmr.msra.gmra.mrb[0].mxu0 %v15062_v46  ;;  %2173 = vmatmul.mubr.bf16.vlgmr.msra.gmra.mrb[0].mxu1 %v15062_v46 }
 0x161   : > { %2012 = vmatpush1.bf16.msra.mxu0 %v12130_v47  ;;  %2184 = vmatpush1.bf16.msra.mxu1 %v12132_v48  ;;  %v12160_v47 = vcombine.low %v545_v33, %v547_v35  ;;  %v12163_v48 = vcombine.high %v548_v40, %v550_v41  ;;  %v578_v40 = vld [vmem:[#allocation5 + $0x1fc0] sm:$0xff]  ;;  %v577_v41 = vld [vmem:[#allocation5 + $0x1f88] sm:$0xff] }
 0x162   : > { %2013 = vmatprep.subr.bf16.mxu0 %v12135_v49  ;;  %2185 = vmatprep.subr.bf16.mxu1 %v12137_v53  ;;  %v552_v49 = vld [vmem:[#allocation5 + $0x1c80] sm:$0xff]  ;;  %v555_v53 = vld [vmem:[#allocation5 + $0x1cc8] sm:$0xff] }
 0x163   : > { %2043 = vmatprep.mubr.bf16.mxu0 %v15064_v55  ;;  %2215 = vmatprep.mubr.bf16.mxu1 %v15064_v55  ;;  %v12169_v62 = vcombine.high %v553_v51, %v555_v53  ;;  %v12166_v0 = vcombine.low %v552_v49, %v554_v50 }
 0x165   : > { %2014 = vmatpush1.bf16.msra.mxu0 %v12134_v56  ;;  %2186 = vmatpush1.bf16.msra.mxu1 %v12136_v57  ;;  %v12164_v56 = vcombine.low %v549_v42, %v551_v44  ;;  %v12167_v57 = vcombine.high %v552_v49, %v554_v50  ;;  %v2368_v49 = vld [vmem:[#allocation5 + $0x50] sm:$0xff]  ;;  %v2367_v50 = vld [vmem:[#allocation5 + $0x18] sm:$0xff] }
 0x166   : > { %2015 = vmatprep.subr.bf16.mxu0 %v12139_v59  ;;  %2187 = vmatprep.subr.bf16.mxu1 %v12141_v63  ;;  %v556_v59 = vld [vmem:[#allocation5 + $0x1d00] sm:$0xff]  ;;  %v559_v63 = vld [vmem:[#allocation5 + $0x1d48] sm:$0xff] }
 0x167   : > { %v12173_v6 = vcombine.high %v557_v61, %v559_v63  ;;  %v12170_v8 = vcombine.low %v556_v59, %v558_v60 }
 0x169   : > { %2016 = vmatpush1.bf16.msra.mxu0 %v12138_v1  ;;  %2188 = vmatpush1.bf16.msra.mxu1 %v12140_v2  ;;  %v12168_v1 = vcombine.low %v553_v51, %v555_v53  ;;  %v12171_v2 = vcombine.high %v556_v59, %v558_v60  ;;  %v314_v53 = vld [vmem:[%s15014_s8 + $0x70] sm:$0xff] }
 0x16a   : > { %2017 = vmatprep.subr.bf16.mxu0 %v12143_v3  ;;  %2189 = vmatprep.subr.bf16.mxu1 %v12145_v7  ;;  %v560_v3 = vld [vmem:[#allocation5 + $0x1d80] sm:$0xff]  ;;  %v563_v7 = vld [vmem:[#allocation5 + $0x1dc8] sm:$0xff]  ;;  %v2370_v60 = vld [vmem:[#allocation5 + $0x90] sm:$0xff] }
 0x16b   : > { %v12177_v14 = vcombine.high %v561_v5, %v563_v7  ;;  %v12174_v17 = vcombine.low %v560_v3, %v562_v4 }
 0x16d   : > { %2018 = vmatpush1.bf16.msra.mxu0 %v12142_v9  ;;  %2190 = vmatpush1.bf16.msra.mxu1 %v12144_v10  ;;  %v12172_v9 = vcombine.low %v557_v61, %v559_v63  ;;  %v12175_v10 = vcombine.high %v560_v3, %v562_v4  ;;  %v2372_v61 = vld [vmem:[#allocation5 + $0xd0] sm:$0xff] }
 0x16e   : > { %2019 = vmatprep.subr.bf16.mxu0 %v12147_v11  ;;  %2191 = vmatprep.subr.bf16.mxu1 %v12149_v16  ;;  %v564_v11 = vld [vmem:[#allocation5 + $0x1e00] sm:$0xff]  ;;  %v567_v16 = vld [vmem:[#allocation5 + $0x1e48] sm:$0xff]  ;;  %v12199_v4 = vcombine.high %v2370_v60, %v2372_v61 }
 0x16f   : > { %v12181_v23 = vcombine.high %v565_v13, %v567_v16  ;;  %v12178_v26 = vcombine.low %v564_v11, %v566_v12 }
 0x171   : > { %2020 = vmatpush1.bf16.msra.mxu0 %v12146_v18  ;;  %2192 = vmatpush1.bf16.msra.mxu1 %v12148_v19  ;;  %v12176_v18 = vcombine.low %v561_v5, %v563_v7  ;;  %v12179_v19 = vcombine.high %v564_v11, %v566_v12  ;;  %v2374_v5 = vld [vmem:[#allocation5 + $0x110] sm:$0xff]  ;;  %v2375_v7 = vld [vmem:[#allocation5 + $0x118] sm:$0xff] }
 0x172   : > { %2021 = vmatprep.subr.bf16.mxu0 %v12151_v20  ;;  %2193 = vmatprep.subr.bf16.mxu1 %v12153_v24  ;;  %v568_v20 = vld [vmem:[#allocation5 + $0x1e80] sm:$0xff]  ;;  %v571_v24 = vld [vmem:[#allocation5 + $0x1ec8] sm:$0xff] }
 0x173   : > { %v12185_v33 = vcombine.high %v569_v22, %v571_v24  ;;  %v12182_v35 = vcombine.low %v568_v20, %v570_v21 }
 0x175   : > { %2022 = vmatpush1.bf16.msra.mxu0 %v12150_v27  ;;  %2194 = vmatpush1.bf16.msra.mxu1 %v12152_v28  ;;  %v12180_v27 = vcombine.low %v565_v13, %v567_v16  ;;  %v12183_v28 = vcombine.high %v568_v20, %v570_v21  ;;  %v2378_v13 = vld [vmem:[#allocation5 + $0x190] sm:$0xff]  ;;  %v2379_v16 = vld [vmem:[#allocation5 + $0x198] sm:$0xff] }
 0x176   : > { %2023 = vmatprep.subr.bf16.mxu0 %v12155_v29  ;;  %2195 = vmatprep.subr.bf16.mxu1 %v12157_v34  ;;  %v572_v29 = vld [vmem:[#allocation5 + $0x1f00] sm:$0xff]  ;;  %v575_v34 = vld [vmem:[#allocation5 + $0x1f48] sm:$0xff] }
 0x177   : > { %v12189_v42 = vcombine.high %v573_v32, %v575_v34  ;;  %v12186_v44 = vcombine.low %v572_v29, %v574_v31 }
 0x179   : > { %2024 = vmatpush1.bf16.msra.mxu0 %v12154_v36  ;;  %2196 = vmatpush1.bf16.msra.mxu1 %v12156_v37  ;;  %v12184_v36 = vcombine.low %v569_v22, %v571_v24  ;;  %v12187_v37 = vcombine.high %v572_v29, %v574_v31  ;;  %v2382_v22 = vld [vmem:[#allocation5 + $0x210] sm:$0xff]  ;;  %v2383_v24 = vld [vmem:[#allocation5 + $0x218] sm:$0xff] }
 0x17a   : > { %2025 = vmatprep.subr.bf16.mxu0 %v12159_v38  ;;  %2197 = vmatprep.subr.bf16.mxu1 %v12161_v43  ;;  %v576_v38 = vld [vmem:[#allocation5 + $0x1f80] sm:$0xff]  ;;  %v579_v43 = vld [vmem:[#allocation5 + $0x1fc8] sm:$0xff] }
 0x17b   : > { %v12193_v51 = vcombine.high %v577_v41, %v579_v43 }
 0x17d   : > { %2026 = vmatpush1.bf16.msra.mxu0 %v12158_v45  ;;  %2198 = vmatpush1.bf16.msra.mxu1 %v12160_v47  ;;  %v12188_v45 = vcombine.low %v573_v32, %v575_v34  ;;  %v12191_v47 = vcombine.high %v576_v38, %v578_v40  ;;  %v2386_v32 = vld [vmem:[#allocation5 + $0x290] sm:$0xff]  ;;  %v2387_v34 = vld [vmem:[#allocation5 + $0x298] sm:$0xff] }
 0x17e   : > { %2027 = vmatprep.subr.bf16.mxu0 %v12163_v48  ;;  %2199 = vmatprep.subr.bf16.mxu1 %v12165_v52  ;;  %v2366_v48 = vld [vmem:[#allocation5 + $0x10] sm:$0xff] }
 0x17f   : > { %v306_v52 = vld [vmem:[%s15014_s8 + $0x30] sm:$0xff]  ;;  %v12195_v59 = vcombine.high %v2366_v48, %v2368_v49 }
 0x181   : > { %2028 = vmatpush1.bf16.msra.mxu0 %v12162_v54  ;;  %2200 = vmatpush1.bf16.msra.mxu1 %v12164_v56  ;;  %v2369_v54 = vld [vmem:[#allocation5 + $0x58] sm:$0xff]  ;;  %v12190_v56 = vcombine.low %v576_v38, %v578_v40 }
 0x182   : > { %2029 = vmatprep.subr.bf16.mxu0 %v12167_v57  ;;  %2201 = vmatprep.subr.bf16.mxu1 %v12169_v62  ;;  %v12192_v57 = vcombine.low %v577_v41, %v579_v43  ;;  %v2371_v62 = vld [vmem:[#allocation5 + $0x98] sm:$0xff]  ;;  %v12197_v63 = vcombine.high %v2367_v50, %v2369_v54  ;;  %v12196_v3 = vcombine.low %v2367_v50, %v2369_v54  ;;  %v2390_v41 = vld [vmem:[#allocation5 + $0x310] sm:$0xff] }
 0x183   : > { %v2391_v43 = vld [vmem:[#allocation5 + $0x318] sm:$0xff]  ;;  %v2394_v50 = vld [vmem:[#allocation5 + $0x390] sm:$0xff] }
 0x184   : > { %v2397_v54 = vld [vmem:[#allocation5 + $0x3d8] sm:$0xff] }
 0x185   : > { %2030 = vmatpush1.bf16.msra.mxu0 %v12166_v0  ;;  %2202 = vmatpush1.bf16.msra.mxu1 %v12168_v1  ;;  %v2373_v0 = vld [vmem:[#allocation5 + $0xd8] sm:$0xff]  ;;  %v15072_v1 = vpack.c.bf16 %v314_v53, %v306_v52 }
 0x186   : > { %2031 = vmatprep.subr.bf16.mxu0 %v12171_v2  ;;  %2203 = vmatprep.subr.bf16.mxu1 %v12173_v6  ;;  %v12194_v2 = vcombine.low %v2366_v48, %v2368_v49  ;;  %v2376_v6 = vld [vmem:[#allocation5 + $0x150] sm:$0xff]  ;;  %v12200_v11 = vcombine.low %v2371_v62, %v2373_v0  ;;  %v2395_v52 = vld [vmem:[#allocation5 + $0x398] sm:$0xff] }
 0x187   : > { %v12203_v12 = vcombine.high %v2374_v5, %v2376_v6 }
 0x189   : > { %2032 = vmatpush1.bf16.msra.mxu0 %v12170_v8  ;;  %2204 = vmatpush1.bf16.msra.mxu1 %v12172_v9  ;;  %v12201_v8 = vcombine.high %v2371_v62, %v2373_v0  ;;  %v2377_v9 = vld [vmem:[#allocation5 + $0x158] sm:$0xff] }
 0x18a   : > { %2033 = vmatprep.subr.bf16.mxu0 %v12175_v10  ;;  %2205 = vmatprep.subr.bf16.mxu1 %v12177_v14  ;;  %v12198_v10 = vcombine.low %v2370_v60, %v2372_v61  ;;  %v2380_v14 = vld [vmem:[#allocation5 + $0x1d0] sm:$0xff]  ;;  %v12204_v20 = vcombine.low %v2375_v7, %v2377_v9  ;;  %v2399_v62 = vld [vmem:[#allocation5 + $0x418] sm:$0xff] }
 0x18b   : > { %v12207_v21 = vcombine.high %v2378_v13, %v2380_v14  ;;  %v2398_v60 = vld [vmem:[#allocation5 + $0x410] sm:$0xff]  ;;  %v2401_v0 = vld [vmem:[#allocation5 + $0x458] sm:$0xff] }
 0x18c   : > { %v2400_v61 = vld [vmem:[#allocation5 + $0x450] sm:$0xff] }
 0x18d   : > { %2034 = vmatpush1.bf16.msra.mxu0 %v12174_v17  ;;  %2206 = vmatpush1.bf16.msra.mxu1 %v12176_v18  ;;  %v12205_v17 = vcombine.high %v2375_v7, %v2377_v9  ;;  %v2381_v18 = vld [vmem:[#allocation5 + $0x1d8] sm:$0xff] }
 0x18e   : > { %2035 = vmatprep.subr.bf16.mxu0 %v12179_v19  ;;  %2207 = vmatprep.subr.bf16.mxu1 %v12181_v23  ;;  %v12202_v19 = vcombine.low %v2374_v5, %v2376_v6  ;;  %v2384_v23 = vld [vmem:[#allocation5 + $0x250] sm:$0xff]  ;;  %v12208_v29 = vcombine.low %v2379_v16, %v2381_v18  ;;  %v2403_v7 = vld [vmem:[#allocation5 + $0x498] sm:$0xff] }
 0x18f   : > { %v12211_v31 = vcombine.high %v2382_v22, %v2384_v23  ;;  %v2402_v5 = vld [vmem:[#allocation5 + $0x490] sm:$0xff]  ;;  %v2405_v9 = vld [vmem:[#allocation5 + $0x4d8] sm:$0xff] }
 0x190   : > { %v2404_v6 = vld [vmem:[#allocation5 + $0x4d0] sm:$0xff] }
 0x191   : > { %2036 = vmatpush1.bf16.msra.mxu0 %v12178_v26  ;;  %2208 = vmatpush1.bf16.msra.mxu1 %v12180_v27  ;;  %v12209_v26 = vcombine.high %v2379_v16, %v2381_v18  ;;  %v2385_v27 = vld [vmem:[#allocation5 + $0x258] sm:$0xff] }
 0x192   : > { %2037 = vmatprep.subr.bf16.mxu0 %v12183_v28  ;;  %2209 = vmatprep.subr.bf16.mxu1 %v12185_v33  ;;  %v12206_v28 = vcombine.low %v2378_v13, %v2380_v14  ;;  %v2388_v33 = vld [vmem:[#allocation5 + $0x2d0] sm:$0xff]  ;;  %v12212_v38 = vcombine.low %v2383_v24, %v2385_v27  ;;  %v2407_v16 = vld [vmem:[#allocation5 + $0x518] sm:$0xff] }
 0x193   : > { %v12215_v40 = vcombine.high %v2386_v32, %v2388_v33  ;;  %v2406_v13 = vld [vmem:[#allocation5 + $0x510] sm:$0xff]  ;;  %v2409_v18 = vld [vmem:[#allocation5 + $0x558] sm:$0xff] }
 0x194   : > { %v2408_v14 = vld [vmem:[#allocation5 + $0x550] sm:$0xff] }
 0x195   : > { %2038 = vmatpush1.bf16.msra.mxu0 %v12182_v35  ;;  %2210 = vmatpush1.bf16.msra.mxu1 %v12184_v36  ;;  %v12213_v35 = vcombine.high %v2383_v24, %v2385_v27  ;;  %v2389_v36 = vld [vmem:[#allocation5 + $0x2d8] sm:$0xff] }
 0x196   : > { %2039 = vmatprep.subr.bf16.mxu0 %v12187_v37  ;;  %2211 = vmatprep.subr.bf16.mxu1 %v12189_v42  ;;  %v12210_v37 = vcombine.low %v2382_v22, %v2384_v23  ;;  %v2392_v42 = vld [vmem:[#allocation5 + $0x350] sm:$0xff]  ;;  %v12216_v48 = vcombine.low %v2387_v34, %v2389_v36  ;;  %v2411_v24 = vld [vmem:[#allocation5 + $0x598] sm:$0xff] }
 0x197   : > { %v12219_v49 = vcombine.high %v2390_v41, %v2392_v42  ;;  %v2410_v22 = vld [vmem:[#allocation5 + $0x590] sm:$0xff]  ;;  %v2413_v27 = vld [vmem:[#allocation5 + $0x5d8] sm:$0xff] }
 0x198   : > { %v2412_v23 = vld [vmem:[#allocation5 + $0x5d0] sm:$0xff] }
 0x199   : > { %2040 = vmatpush1.bf16.msra.mxu0 %v12186_v44  ;;  %2212 = vmatpush1.bf16.msra.mxu1 %v12188_v45  ;;  %v12217_v44 = vcombine.high %v2387_v34, %v2389_v36  ;;  %v2393_v45 = vld [vmem:[#allocation5 + $0x358] sm:$0xff] }
 0x19a   : > { %2041 = vmatprep.subr.bf16.mxu0 %v12191_v47  ;;  %2213 = vmatprep.subr.bf16.mxu1 %v12193_v51  ;;  %v12214_v47 = vcombine.low %v2386_v32, %v2388_v33  ;;  %v2396_v51 = vld [vmem:[#allocation5 + $0x3d0] sm:$0xff]  ;;  %v12221_v53 = vcombine.high %v2391_v43, %v2393_v45  ;;  %v2415_v34 = vld [vmem:[#allocation5 + $0x618] sm:$0xff] }
 0x19b   : > { %v2414_v32 = vld [vmem:[#allocation5 + $0x610] sm:$0xff]  ;;  %v2417_v36 = vld [vmem:[#allocation5 + $0x658] sm:$0xff] }
 0x19c   : > { %v2416_v33 = vld [vmem:[#allocation5 + $0x650] sm:$0xff] }
 0x19d   : > { %2042 = vmatpush1.bf16.msra.mxu0 %v12190_v56  ;;  %2214 = vmatpush1.bf16.msra.mxu1 %v12192_v57  ;;  %v12218_v56 = vcombine.low %v2390_v41, %v2392_v42  ;;  %v12220_v57 = vcombine.low %v2391_v43, %v2393_v45  ;;  %v2418_v41 = vld [vmem:[#allocation5 + $0x690] sm:$0xff]  ;;  %v2419_v43 = vld [vmem:[#allocation5 + $0x698] sm:$0xff] }
 0x19e   : > { %3924 = vmatprep.subr.bf16.mxu0 %v12195_v59  ;;  %4096 = vmatprep.subr.bf16.mxu1 %v12197_v63  ;;  %v12223_v59 = vcombine.high %v2394_v50, %v2396_v51  ;;  %v12225_v63 = vcombine.high %v2395_v52, %v2397_v54  ;;  %v2420_v42 = vld [vmem:[#allocation5 + $0x6d0] sm:$0xff]  ;;  %v2421_v45 = vld [vmem:[#allocation5 + $0x6d8] sm:$0xff] }
 0x1a0   : > { %2044 = vmatmul.mubr.bf16.vlgmr.msra.gmra.mrb[0].mxu0 %v15072_v1  ;;  %2216 = vmatmul.mubr.bf16.vlgmr.msra.gmra.mrb[0].mxu1 %v15072_v1 }
 0x1a1   : > { %3925 = vmatpush1.bf16.msra.mxu0 %v12194_v2  ;;  %4097 = vmatpush1.bf16.msra.mxu1 %v12196_v3  ;;  %v12222_v2 = vcombine.low %v2394_v50, %v2396_v51  ;;  %v12224_v3 = vcombine.low %v2395_v52, %v2397_v54  ;;  %v2422_v50 = vld [vmem:[#allocation5 + $0x710] sm:$0xff]  ;;  %v2423_v52 = vld [vmem:[#allocation5 + $0x718] sm:$0xff] }
 0x1a2   : > { %3926 = vmatprep.subr.bf16.mxu0 %v12199_v4  ;;  %4098 = vmatprep.subr.bf16.mxu1 %v12201_v8  ;;  %v12227_v4 = vcombine.high %v2398_v60, %v2400_v61  ;;  %v12229_v8 = vcombine.high %v2399_v62, %v2401_v0  ;;  %v2424_v51 = vld [vmem:[#allocation5 + $0x750] sm:$0xff]  ;;  %v2425_v54 = vld [vmem:[#allocation5 + $0x758] sm:$0xff] }
 0x1a3   : > { %3956 = vmatprep.mubr.bf16.mxu0 %v15030_v58  ;;  %4128 = vmatprep.mubr.bf16.mxu1 %v15030_v58 }
 0x1a5   : > { %3927 = vmatpush1.bf16.msra.mxu0 %v12198_v10  ;;  %4099 = vmatpush1.bf16.msra.mxu1 %v12200_v11  ;;  %v12226_v10 = vcombine.low %v2398_v60, %v2400_v61  ;;  %v12228_v11 = vcombine.low %v2399_v62, %v2401_v0  ;;  %v2426_v60 = vld [vmem:[#allocation5 + $0x790] sm:$0xff]  ;;  %v2427_v62 = vld [vmem:[#allocation5 + $0x798] sm:$0xff] }
 0x1a6   : > { %3928 = vmatprep.subr.bf16.mxu0 %v12203_v12  ;;  %4100 = vmatprep.subr.bf16.mxu1 %v12205_v17  ;;  %v12231_v12 = vcombine.high %v2402_v5, %v2404_v6  ;;  %v12233_v17 = vcombine.high %v2403_v7, %v2405_v9  ;;  %v2428_v61 = vld [vmem:[#allocation5 + $0x7d0] sm:$0xff]  ;;  %v2429_v0 = vld [vmem:[#allocation5 + $0x7d8] sm:$0xff] }
 0x1a9   : > { %3929 = vmatpush1.bf16.msra.mxu0 %v12202_v19  ;;  %4101 = vmatpush1.bf16.msra.mxu1 %v12204_v20  ;;  %v12230_v19 = vcombine.low %v2402_v5, %v2404_v6  ;;  %v12232_v20 = vcombine.low %v2403_v7, %v2405_v9  ;;  %v2430_v5 = vld [vmem:[#allocation5 + $0x810] sm:$0xff]  ;;  %v2431_v7 = vld [vmem:[#allocation5 + $0x818] sm:$0xff] }
 0x1aa   : > { %3930 = vmatprep.subr.bf16.mxu0 %v12207_v21  ;;  %4102 = vmatprep.subr.bf16.mxu1 %v12209_v26  ;;  %v12235_v21 = vcombine.high %v2406_v13, %v2408_v14  ;;  %v12237_v26 = vcombine.high %v2407_v16, %v2409_v18  ;;  %v2432_v6 = vld [vmem:[#allocation5 + $0x850] sm:$0xff]  ;;  %v2433_v9 = vld [vmem:[#allocation5 + $0x858] sm:$0xff] }
 0x1ad   : > { %3931 = vmatpush1.bf16.msra.mxu0 %v12206_v28  ;;  %4103 = vmatpush1.bf16.msra.mxu1 %v12208_v29  ;;  %v12234_v28 = vcombine.low %v2406_v13, %v2408_v14  ;;  %v12236_v29 = vcombine.low %v2407_v16, %v2409_v18  ;;  %v2434_v13 = vld [vmem:[#allocation5 + $0x890] sm:$0xff]  ;;  %v2435_v16 = vld [vmem:[#allocation5 + $0x898] sm:$0xff] }
 0x1ae   : > { %3932 = vmatprep.subr.bf16.mxu0 %v12211_v31  ;;  %4104 = vmatprep.subr.bf16.mxu1 %v12213_v35  ;;  %v12239_v31 = vcombine.high %v2410_v22, %v2412_v23  ;;  %v12241_v35 = vcombine.high %v2411_v24, %v2413_v27  ;;  %v2436_v14 = vld [vmem:[#allocation5 + $0x8d0] sm:$0xff]  ;;  %v2437_v18 = vld [vmem:[#allocation5 + $0x8d8] sm:$0xff] }
 0x1b1   : > { %3933 = vmatpush1.bf16.msra.mxu0 %v12210_v37  ;;  %4105 = vmatpush1.bf16.msra.mxu1 %v12212_v38  ;;  %v12238_v37 = vcombine.low %v2410_v22, %v2412_v23  ;;  %v12240_v38 = vcombine.low %v2411_v24, %v2413_v27  ;;  %v2438_v22 = vld [vmem:[#allocation5 + $0x910] sm:$0xff]  ;;  %v2439_v24 = vld [vmem:[#allocation5 + $0x918] sm:$0xff] }
 0x1b2   : > { %3934 = vmatprep.subr.bf16.mxu0 %v12215_v40  ;;  %4106 = vmatprep.subr.bf16.mxu1 %v12217_v44  ;;  %v12243_v40 = vcombine.high %v2414_v32, %v2416_v33  ;;  %v12245_v44 = vcombine.high %v2415_v34, %v2417_v36  ;;  %v2440_v23 = vld [vmem:[#allocation5 + $0x950] sm:$0xff]  ;;  %v2441_v27 = vld [vmem:[#allocation5 + $0x958] sm:$0xff] }
 0x1b5   : > { %3935 = vmatpush1.bf16.msra.mxu0 %v12214_v47  ;;  %4107 = vmatpush1.bf16.msra.mxu1 %v12216_v48  ;;  %v12242_v47 = vcombine.low %v2414_v32, %v2416_v33  ;;  %v12244_v48 = vcombine.low %v2415_v34, %v2417_v36  ;;  %v2442_v32 = vld [vmem:[#allocation5 + $0x990] sm:$0xff]  ;;  %v2443_v34 = vld [vmem:[#allocation5 + $0x998] sm:$0xff] }
 0x1b6   : > { %3936 = vmatprep.subr.bf16.mxu0 %v12219_v49  ;;  %4108 = vmatprep.subr.bf16.mxu1 %v12221_v53  ;;  %v12247_v49 = vcombine.high %v2418_v41, %v2420_v42  ;;  %v12249_v53 = vcombine.high %v2419_v43, %v2421_v45  ;;  %v2444_v33 = vld [vmem:[#allocation5 + $0x9d0] sm:$0xff]  ;;  %v2445_v36 = vld [vmem:[#allocation5 + $0x9d8] sm:$0xff] }
 0x1b9   : > { %3937 = vmatpush1.bf16.msra.mxu0 %v12218_v56  ;;  %4109 = vmatpush1.bf16.msra.mxu1 %v12220_v57  ;;  %v12246_v56 = vcombine.low %v2418_v41, %v2420_v42  ;;  %v12248_v57 = vcombine.low %v2419_v43, %v2421_v45  ;;  %v12273_v41 = vcombine.high %v2443_v34, %v2445_v36  ;;  %v2446_v42 = vld [vmem:[#allocation5 + $0xa10] sm:$0xff]  ;;  %v2449_v45 = vld [vmem:[#allocation5 + $0xa58] sm:$0xff] }
 0x1ba   : > { %3938 = vmatprep.subr.bf16.mxu0 %v12223_v59  ;;  %4110 = vmatprep.subr.bf16.mxu1 %v12225_v63  ;;  %v12251_v59 = vcombine.high %v2422_v50, %v2424_v51  ;;  %v12253_v63 = vcombine.high %v2423_v52, %v2425_v54  ;;  %v2448_v43 = vld [vmem:[#allocation5 + $0xa50] sm:$0xff] }
 0x1bd   : > { %3939 = vmatpush1.bf16.msra.mxu0 %v12222_v2  ;;  %4111 = vmatpush1.bf16.msra.mxu1 %v12224_v3  ;;  %v12250_v2 = vcombine.low %v2422_v50, %v2424_v51  ;;  %v12252_v3 = vcombine.low %v2423_v52, %v2425_v54  ;;  %v2450_v51 = vld [vmem:[#allocation5 + $0xa90] sm:$0xff]  ;;  %v2453_v54 = vld [vmem:[#allocation5 + $0xad8] sm:$0xff] }
 0x1be   : > { %3940 = vmatprep.subr.bf16.mxu0 %v12227_v4  ;;  %4112 = vmatprep.subr.bf16.mxu1 %v12229_v8  ;;  %v12255_v4 = vcombine.high %v2426_v60, %v2428_v61  ;;  %v12257_v8 = vcombine.high %v2427_v62, %v2429_v0  ;;  %v2452_v52 = vld [vmem:[#allocation5 + $0xad0] sm:$0xff] }
 0x1c1   : > { %3941 = vmatpush1.bf16.msra.mxu0 %v12226_v10  ;;  %4113 = vmatpush1.bf16.msra.mxu1 %v12228_v11  ;;  %v12254_v10 = vcombine.low %v2426_v60, %v2428_v61  ;;  %v12256_v11 = vcombine.low %v2427_v62, %v2429_v0  ;;  %v2454_v61 = vld [vmem:[#allocation5 + $0xb10] sm:$0xff]  ;;  %v2457_v0 = vld [vmem:[#allocation5 + $0xb58] sm:$0xff] }
 0x1c2   : > { %3942 = vmatprep.subr.bf16.mxu0 %v12231_v12  ;;  %4114 = vmatprep.subr.bf16.mxu1 %v12233_v17  ;;  %v12259_v12 = vcombine.high %v2430_v5, %v2432_v6  ;;  %v12261_v17 = vcombine.high %v2431_v7, %v2433_v9  ;;  %v2456_v62 = vld [vmem:[#allocation5 + $0xb50] sm:$0xff] }
 0x1c5   : > { %3943 = vmatpush1.bf16.msra.mxu0 %v12230_v19  ;;  %4115 = vmatpush1.bf16.msra.mxu1 %v12232_v20  ;;  %v12258_v19 = vcombine.low %v2430_v5, %v2432_v6  ;;  %v12260_v20 = vcombine.low %v2431_v7, %v2433_v9  ;;  %v2458_v6 = vld [vmem:[#allocation5 + $0xb90] sm:$0xff]  ;;  %v2461_v9 = vld [vmem:[#allocation5 + $0xbd8] sm:$0xff] }
 0x1c6   : > { %3944 = vmatprep.subr.bf16.mxu0 %v12235_v21  ;;  %4116 = vmatprep.subr.bf16.mxu1 %v12237_v26  ;;  %v12263_v21 = vcombine.high %v2434_v13, %v2436_v14  ;;  %v12265_v26 = vcombine.high %v2435_v16, %v2437_v18  ;;  %v2460_v7 = vld [vmem:[#allocation5 + $0xbd0] sm:$0xff] }
 0x1c9   : > { %3945 = vmatpush1.bf16.msra.mxu0 %v12234_v28  ;;  %4117 = vmatpush1.bf16.msra.mxu1 %v12236_v29  ;;  %v12262_v28 = vcombine.low %v2434_v13, %v2436_v14  ;;  %v12264_v29 = vcombine.low %v2435_v16, %v2437_v18  ;;  %v2462_v14 = vld [vmem:[#allocation5 + $0xc10] sm:$0xff]  ;;  %v2465_v18 = vld [vmem:[#allocation5 + $0xc58] sm:$0xff] }
 0x1ca   : > { %3946 = vmatprep.subr.bf16.mxu0 %v12239_v31  ;;  %4118 = vmatprep.subr.bf16.mxu1 %v12241_v35  ;;  %v12267_v31 = vcombine.high %v2438_v22, %v2440_v23  ;;  %v12269_v35 = vcombine.high %v2439_v24, %v2441_v27  ;;  %v2464_v16 = vld [vmem:[#allocation5 + $0xc50] sm:$0xff] }
 0x1cd   : > { %3947 = vmatpush1.bf16.msra.mxu0 %v12238_v37  ;;  %4119 = vmatpush1.bf16.msra.mxu1 %v12240_v38  ;;  %v12266_v37 = vcombine.low %v2438_v22, %v2440_v23  ;;  %v12268_v38 = vcombine.low %v2439_v24, %v2441_v27  ;;  %v2466_v23 = vld [vmem:[#allocation5 + $0xc90] sm:$0xff]  ;;  %v2469_v27 = vld [vmem:[#allocation5 + $0xcd8] sm:$0xff] }
 0x1ce   : > { %3948 = vmatprep.subr.bf16.mxu0 %v12243_v40  ;;  %4120 = vmatprep.subr.bf16.mxu1 %v12245_v44  ;;  %v12271_v40 = vcombine.high %v2442_v32, %v2444_v33  ;;  %v2447_v44 = vld [vmem:[#allocation5 + $0xa18] sm:$0xff]  ;;  %v2468_v24 = vld [vmem:[#allocation5 + $0xcd0] sm:$0xff] }
 0x1cf   : > { %v12277_v50 = vcombine.high %v2447_v44, %v2449_v45 }
 0x1d1   : > { %3949 = vmatpush1.bf16.msra.mxu0 %v12242_v47  ;;  %4121 = vmatpush1.bf16.msra.mxu1 %v12244_v48  ;;  %v12270_v47 = vcombine.low %v2442_v32, %v2444_v33  ;;  %v12272_v48 = vcombine.low %v2443_v34, %v2445_v36  ;;  %v2470_v33 = vld [vmem:[#allocation5 + $0xd10] sm:$0xff]  ;;  %v2473_v36 = vld [vmem:[#allocation5 + $0xd58] sm:$0xff] }
 0x1d2   : > { %3950 = vmatprep.subr.bf16.mxu0 %v12247_v49  ;;  %4122 = vmatprep.subr.bf16.mxu1 %v12249_v53  ;;  %v12275_v49 = vcombine.high %v2446_v42, %v2448_v43  ;;  %v2451_v53 = vld [vmem:[#allocation5 + $0xa98] sm:$0xff]  ;;  %v2472_v34 = vld [vmem:[#allocation5 + $0xd50] sm:$0xff] }
 0x1d3   : > { %v12281_v60 = vcombine.high %v2451_v53, %v2453_v54 }
 0x1d5   : > { %3951 = vmatpush1.bf16.msra.mxu0 %v12246_v56  ;;  %4123 = vmatpush1.bf16.msra.mxu1 %v12248_v57  ;;  %v12274_v56 = vcombine.low %v2446_v42, %v2448_v43  ;;  %v12276_v57 = vcombine.low %v2447_v44, %v2449_v45  ;;  %v2474_v42 = vld [vmem:[#allocation5 + $0xd90] sm:$0xff]  ;;  %v2475_v44 = vld [vmem:[#allocation5 + $0xd98] sm:$0xff] }
 0x1d6   : > { %3952 = vmatprep.subr.bf16.mxu0 %v12251_v59  ;;  %4124 = vmatprep.subr.bf16.mxu1 %v12253_v63  ;;  %v12279_v59 = vcombine.high %v2450_v51, %v2452_v52  ;;  %v2455_v63 = vld [vmem:[#allocation5 + $0xb18] sm:$0xff]  ;;  %v2476_v43 = vld [vmem:[#allocation5 + $0xdd0] sm:$0xff] }
 0x1d7   : > { %v12285_v5 = vcombine.high %v2455_v63, %v2457_v0  ;;  %v2477_v45 = vld [vmem:[#allocation5 + $0xdd8] sm:$0xff] }
 0x1d9   : > { %3953 = vmatpush1.bf16.msra.mxu0 %v12250_v2  ;;  %4125 = vmatpush1.bf16.msra.mxu1 %v12252_v3  ;;  %v12278_v2 = vcombine.low %v2450_v51, %v2452_v52  ;;  %v12280_v3 = vcombine.low %v2451_v53, %v2453_v54  ;;  %v2478_v51 = vld [vmem:[#allocation5 + $0xe10] sm:$0xff]  ;;  %v2479_v53 = vld [vmem:[#allocation5 + $0xe18] sm:$0xff] }
 0x1da   : > { %3954 = vmatprep.subr.bf16.mxu0 %v12255_v4  ;;  %4126 = vmatprep.subr.bf16.mxu1 %v12257_v8  ;;  %v12283_v4 = vcombine.high %v2454_v61, %v2456_v62  ;;  %v2459_v8 = vld [vmem:[#allocation5 + $0xb98] sm:$0xff]  ;;  %v2480_v52 = vld [vmem:[#allocation5 + $0xe50] sm:$0xff] }
 0x1db   : > { %v12289_v13 = vcombine.high %v2459_v8, %v2461_v9  ;;  %v2481_v54 = vld [vmem:[#allocation5 + $0xe58] sm:$0xff] }
 0x1dd   : > { %3955 = vmatpush1.bf16.msra.mxu0 %v12254_v10  ;;  %4127 = vmatpush1.bf16.msra.mxu1 %v12256_v11  ;;  %v12282_v10 = vcombine.low %v2454_v61, %v2456_v62  ;;  %v12284_v11 = vcombine.low %v2455_v63, %v2457_v0  ;;  %v2482_v61 = vld [vmem:[#allocation5 + $0xe90] sm:$0xff]  ;;  %v2483_v63 = vld [vmem:[#allocation5 + $0xe98] sm:$0xff] }
 0x1de   : > { %3967 = vmatprep.subr.bf16.mxu0 %v12259_v12  ;;  %4139 = vmatprep.subr.bf16.mxu1 %v12261_v17  ;;  %v12287_v12 = vcombine.high %v2458_v6, %v2460_v7  ;;  %v2463_v17 = vld [vmem:[#allocation5 + $0xc18] sm:$0xff]  ;;  %v2484_v62 = vld [vmem:[#allocation5 + $0xed0] sm:$0xff] }
 0x1df   : > { %v12293_v22 = vcombine.high %v2463_v17, %v2465_v18  ;;  %v2485_v0 = vld [vmem:[#allocation5 + $0xed8] sm:$0xff] }
 0x1e0   : > { %3957 = vmatmul.mubr.bf16.vlgmr.msra.gmra.mrb[4].mxu0 %v15036_v15  ;;  %4129 = vmatmul.mubr.bf16.vlgmr.msra.gmra.mrb[4].mxu1 %v15036_v15 }
 0x1e1   : > { %3968 = vmatpush1.bf16.msra.mxu0 %v12258_v19  ;;  %4140 = vmatpush1.bf16.msra.mxu1 %v12260_v20  ;;  %v12286_v19 = vcombine.low %v2458_v6, %v2460_v7  ;;  %v12288_v20 = vcombine.low %v2459_v8, %v2461_v9  ;;  %v2486_v6 = vld [vmem:[#allocation5 + $0xf10] sm:$0xff]  ;;  %v2487_v8 = vld [vmem:[#allocation5 + $0xf18] sm:$0xff] }
 0x1e2   : > { %3969 = vmatprep.subr.bf16.mxu0 %v12263_v21  ;;  %4141 = vmatprep.subr.bf16.mxu1 %v12265_v26  ;;  %v12291_v21 = vcombine.high %v2462_v14, %v2464_v16  ;;  %v2467_v26 = vld [vmem:[#allocation5 + $0xc98] sm:$0xff]  ;;  %v2488_v7 = vld [vmem:[#allocation5 + $0xf50] sm:$0xff] }
 0x1e3   : > { %3999 = vmatprep.mubr.bf16.mxu0 %v15040_v25  ;;  %4171 = vmatprep.mubr.bf16.mxu1 %v15040_v25  ;;  %v12297_v32 = vcombine.high %v2467_v26, %v2469_v27  ;;  %v2489_v9 = vld [vmem:[#allocation5 + $0xf58] sm:$0xff] }
 0x1e5   : > { %3970 = vmatpush1.bf16.msra.mxu0 %v12262_v28  ;;  %4142 = vmatpush1.bf16.msra.mxu1 %v12264_v29  ;;  %v12290_v28 = vcombine.low %v2462_v14, %v2464_v16  ;;  %v12292_v29 = vcombine.low %v2463_v17, %v2465_v18  ;;  %v2490_v14 = vld [vmem:[#allocation5 + $0xf90] sm:$0xff]  ;;  %v2491_v17 = vld [vmem:[#allocation5 + $0xf98] sm:$0xff] }
 0x1e6   : > { %3971 = vmatprep.subr.bf16.mxu0 %v12267_v31  ;;  %4143 = vmatprep.subr.bf16.mxu1 %v12269_v35  ;;  %v12295_v31 = vcombine.high %v2466_v23, %v2468_v24  ;;  %v2471_v35 = vld [vmem:[#allocation5 + $0xd18] sm:$0xff]  ;;  %v2492_v16 = vld [vmem:[#allocation5 + $0xfd0] sm:$0xff] }
 0x1e7   : > { %v2493_v18 = vld [vmem:[#allocation5 + $0xfd8] sm:$0xff] }
 0x1e9   : > { %3972 = vmatpush1.bf16.msra.mxu0 %v12266_v37  ;;  %4144 = vmatpush1.bf16.msra.mxu1 %v12268_v38  ;;  %v12294_v37 = vcombine.low %v2466_v23, %v2468_v24  ;;  %v12296_v38 = vcombine.low %v2467_v26, %v2469_v27  ;;  %v2494_v23 = vld [vmem:[#allocation5 + $0x1010] sm:$0xff]  ;;  %v2495_v26 = vld [vmem:[#allocation5 + $0x1018] sm:$0xff] }
 0x1ea   : > { %3973 = vmatprep.subr.bf16.mxu0 %v12271_v40  ;;  %4145 = vmatprep.subr.bf16.mxu1 %v12273_v41  ;;  %v12299_v40 = vcombine.high %v2470_v33, %v2472_v34  ;;  %v12301_v41 = vcombine.high %v2471_v35, %v2473_v36  ;;  %v2496_v24 = vld [vmem:[#allocation5 + $0x1050] sm:$0xff]  ;;  %v2497_v27 = vld [vmem:[#allocation5 + $0x1058] sm:$0xff] }
 0x1ed   : > { %3974 = vmatpush1.bf16.msra.mxu0 %v12270_v47  ;;  %4146 = vmatpush1.bf16.msra.mxu1 %v12272_v48  ;;  %v12298_v47 = vcombine.low %v2470_v33, %v2472_v34  ;;  %v12300_v48 = vcombine.low %v2471_v35, %v2473_v36  ;;  %v2498_v33 = vld [vmem:[#allocation5 + $0x1090] sm:$0xff]  ;;  %v2499_v35 = vld [vmem:[#allocation5 + $0x1098] sm:$0xff] }
 0x1ee   : > { %3975 = vmatprep.subr.bf16.mxu0 %v12275_v49  ;;  %4147 = vmatprep.subr.bf16.mxu1 %v12277_v50  ;;  %v12303_v49 = vcombine.high %v2474_v42, %v2476_v43  ;;  %v12305_v50 = vcombine.high %v2475_v44, %v2477_v45  ;;  %v2500_v34 = vld [vmem:[#allocation5 + $0x10d0] sm:$0xff]  ;;  %v2501_v36 = vld [vmem:[#allocation5 + $0x10d8] sm:$0xff] }
 0x1f1   : > { %3976 = vmatpush1.bf16.msra.mxu0 %v12274_v56  ;;  %4148 = vmatpush1.bf16.msra.mxu1 %v12276_v57  ;;  %v12302_v56 = vcombine.low %v2474_v42, %v2476_v43  ;;  %v12304_v57 = vcombine.low %v2475_v44, %v2477_v45  ;;  %v2502_v42 = vld [vmem:[#allocation5 + $0x1110] sm:$0xff]  ;;  %v2503_v44 = vld [vmem:[#allocation5 + $0x1118] sm:$0xff] }
 0x1f2   : > { %3977 = vmatprep.subr.bf16.mxu0 %v12279_v59  ;;  %4149 = vmatprep.subr.bf16.mxu1 %v12281_v60  ;;  %v12307_v59 = vcombine.high %v2478_v51, %v2480_v52  ;;  %v12309_v60 = vcombine.high %v2479_v53, %v2481_v54  ;;  %v2504_v43 = vld [vmem:[#allocation5 + $0x1150] sm:$0xff]  ;;  %v2505_v45 = vld [vmem:[#allocation5 + $0x1158] sm:$0xff] }
 0x1f5   : > { %3978 = vmatpush1.bf16.msra.mxu0 %v12278_v2  ;;  %4150 = vmatpush1.bf16.msra.mxu1 %v12280_v3  ;;  %v12306_v2 = vcombine.low %v2478_v51, %v2480_v52  ;;  %v12308_v3 = vcombine.low %v2479_v53, %v2481_v54  ;;  %v2506_v51 = vld [vmem:[#allocation5 + $0x1190] sm:$0xff]  ;;  %v2507_v53 = vld [vmem:[#allocation5 + $0x1198] sm:$0xff] }
 0x1f6   : > { %3979 = vmatprep.subr.bf16.mxu0 %v12283_v4  ;;  %4151 = vmatprep.subr.bf16.mxu1 %v12285_v5  ;;  %v12311_v4 = vcombine.high %v2482_v61, %v2484_v62  ;;  %v12313_v5 = vcombine.high %v2483_v63, %v2485_v0  ;;  %v2508_v52 = vld [vmem:[#allocation5 + $0x11d0] sm:$0xff]  ;;  %v2509_v54 = vld [vmem:[#allocation5 + $0x11d8] sm:$0xff] }
 0x1f9   : > { %3980 = vmatpush1.bf16.msra.mxu0 %v12282_v10  ;;  %4152 = vmatpush1.bf16.msra.mxu1 %v12284_v11  ;;  %v12310_v10 = vcombine.low %v2482_v61, %v2484_v62  ;;  %v12312_v11 = vcombine.low %v2483_v63, %v2485_v0  ;;  %v2510_v61 = vld [vmem:[#allocation5 + $0x1210] sm:$0xff]  ;;  %v2511_v63 = vld [vmem:[#allocation5 + $0x1218] sm:$0xff] }
 0x1fa   : > { %3981 = vmatprep.subr.bf16.mxu0 %v12287_v12  ;;  %4153 = vmatprep.subr.bf16.mxu1 %v12289_v13  ;;  %v12315_v12 = vcombine.high %v2486_v6, %v2488_v7  ;;  %v12317_v13 = vcombine.high %v2487_v8, %v2489_v9  ;;  %v2512_v62 = vld [vmem:[#allocation5 + $0x1250] sm:$0xff]  ;;  %v2513_v0 = vld [vmem:[#allocation5 + $0x1258] sm:$0xff] }
 0x1fd   : > { %3982 = vmatpush1.bf16.msra.mxu0 %v12286_v19  ;;  %4154 = vmatpush1.bf16.msra.mxu1 %v12288_v20  ;;  %v12314_v19 = vcombine.low %v2486_v6, %v2488_v7  ;;  %v12316_v20 = vcombine.low %v2487_v8, %v2489_v9  ;;  %v2514_v6 = vld [vmem:[#allocation5 + $0x1290] sm:$0xff]  ;;  %v2515_v8 = vld [vmem:[#allocation5 + $0x1298] sm:$0xff] }
 0x1fe   : > { %3983 = vmatprep.subr.bf16.mxu0 %v12291_v21  ;;  %4155 = vmatprep.subr.bf16.mxu1 %v12293_v22  ;;  %v12319_v21 = vcombine.high %v2490_v14, %v2492_v16  ;;  %v12321_v22 = vcombine.high %v2491_v17, %v2493_v18  ;;  %v2516_v7 = vld [vmem:[#allocation5 + $0x12d0] sm:$0xff]  ;;  %v2517_v9 = vld [vmem:[#allocation5 + $0x12d8] sm:$0xff] }
 0x201   : > { %3984 = vmatpush1.bf16.msra.mxu0 %v12290_v28  ;;  %4156 = vmatpush1.bf16.msra.mxu1 %v12292_v29  ;;  %v12318_v28 = vcombine.low %v2490_v14, %v2492_v16  ;;  %v12320_v29 = vcombine.low %v2491_v17, %v2493_v18  ;;  %v2518_v14 = vld [vmem:[#allocation5 + $0x1310] sm:$0xff]  ;;  %v2519_v17 = vld [vmem:[#allocation5 + $0x1318] sm:$0xff] }
 0x202   : > { %3985 = vmatprep.subr.bf16.mxu0 %v12295_v31  ;;  %4157 = vmatprep.subr.bf16.mxu1 %v12297_v32  ;;  %v12323_v31 = vcombine.high %v2494_v23, %v2496_v24  ;;  %v12325_v32 = vcombine.high %v2495_v26, %v2497_v27  ;;  %v2520_v16 = vld [vmem:[#allocation5 + $0x1350] sm:$0xff]  ;;  %v2521_v18 = vld [vmem:[#allocation5 + $0x1358] sm:$0xff] }
 0x205   : > { %3986 = vmatpush1.bf16.msra.mxu0 %v12294_v37  ;;  %4158 = vmatpush1.bf16.msra.mxu1 %v12296_v38  ;;  %v12322_v37 = vcombine.low %v2494_v23, %v2496_v24  ;;  %v12324_v38 = vcombine.low %v2495_v26, %v2497_v27  ;;  %v2522_v23 = vld [vmem:[#allocation5 + $0x1390] sm:$0xff]  ;;  %v2523_v26 = vld [vmem:[#allocation5 + $0x1398] sm:$0xff] }
 0x206   : > { %3987 = vmatprep.subr.bf16.mxu0 %v12299_v40  ;;  %4159 = vmatprep.subr.bf16.mxu1 %v12301_v41  ;;  %v12327_v40 = vcombine.high %v2498_v33, %v2500_v34  ;;  %v12329_v41 = vcombine.high %v2499_v35, %v2501_v36  ;;  %v2524_v24 = vld [vmem:[#allocation5 + $0x13d0] sm:$0xff]  ;;  %v2525_v27 = vld [vmem:[#allocation5 + $0x13d8] sm:$0xff] }
 0x209   : > { %3988 = vmatpush1.bf16.msra.mxu0 %v12298_v47  ;;  %4160 = vmatpush1.bf16.msra.mxu1 %v12300_v48  ;;  %v12326_v47 = vcombine.low %v2498_v33, %v2500_v34  ;;  %v12328_v48 = vcombine.low %v2499_v35, %v2501_v36  ;;  %v2526_v33 = vld [vmem:[#allocation5 + $0x1410] sm:$0xff]  ;;  %v2527_v35 = vld [vmem:[#allocation5 + $0x1418] sm:$0xff] }
 0x20a   : > { %3989 = vmatprep.subr.bf16.mxu0 %v12303_v49  ;;  %4161 = vmatprep.subr.bf16.mxu1 %v12305_v50  ;;  %v12331_v49 = vcombine.high %v2502_v42, %v2504_v43  ;;  %v12333_v50 = vcombine.high %v2503_v44, %v2505_v45  ;;  %v2528_v34 = vld [vmem:[#allocation5 + $0x1450] sm:$0xff]  ;;  %v2529_v36 = vld [vmem:[#allocation5 + $0x1458] sm:$0xff] }
 0x20d   : > { %3990 = vmatpush1.bf16.msra.mxu0 %v12302_v56  ;;  %4162 = vmatpush1.bf16.msra.mxu1 %v12304_v57  ;;  %v12330_v56 = vcombine.low %v2502_v42, %v2504_v43  ;;  %v12332_v57 = vcombine.low %v2503_v44, %v2505_v45  ;;  %v2530_v42 = vld [vmem:[#allocation5 + $0x1490] sm:$0xff]  ;;  %v2531_v44 = vld [vmem:[#allocation5 + $0x1498] sm:$0xff] }
 0x20e   : > { %3991 = vmatprep.subr.bf16.mxu0 %v12307_v59  ;;  %4163 = vmatprep.subr.bf16.mxu1 %v12309_v60  ;;  %v12335_v59 = vcombine.high %v2506_v51, %v2508_v52  ;;  %v12337_v60 = vcombine.high %v2507_v53, %v2509_v54  ;;  %v2532_v43 = vld [vmem:[#allocation5 + $0x14d0] sm:$0xff]  ;;  %v2533_v45 = vld [vmem:[#allocation5 + $0x14d8] sm:$0xff] }
 0x211   : > { %3992 = vmatpush1.bf16.msra.mxu0 %v12306_v2  ;;  %4164 = vmatpush1.bf16.msra.mxu1 %v12308_v3  ;;  %v12334_v2 = vcombine.low %v2506_v51, %v2508_v52  ;;  %v12336_v3 = vcombine.low %v2507_v53, %v2509_v54  ;;  %v2534_v51 = vld [vmem:[#allocation5 + $0x1510] sm:$0xff]  ;;  %v2535_v53 = vld [vmem:[#allocation5 + $0x1518] sm:$0xff] }
 0x212   : > { %3993 = vmatprep.subr.bf16.mxu0 %v12311_v4  ;;  %4165 = vmatprep.subr.bf16.mxu1 %v12313_v5  ;;  %v12339_v4 = vcombine.high %v2510_v61, %v2512_v62  ;;  %v12341_v5 = vcombine.high %v2511_v63, %v2513_v0  ;;  %v2536_v52 = vld [vmem:[#allocation5 + $0x1550] sm:$0xff]  ;;  %v2537_v54 = vld [vmem:[#allocation5 + $0x1558] sm:$0xff] }
 0x215   : > { %3994 = vmatpush1.bf16.msra.mxu0 %v12310_v10  ;;  %4166 = vmatpush1.bf16.msra.mxu1 %v12312_v11  ;;  %v12338_v10 = vcombine.low %v2510_v61, %v2512_v62  ;;  %v12340_v11 = vcombine.low %v2511_v63, %v2513_v0  ;;  %v2538_v61 = vld [vmem:[#allocation5 + $0x1590] sm:$0xff]  ;;  %v2539_v63 = vld [vmem:[#allocation5 + $0x1598] sm:$0xff] }
 0x216   : > { %3995 = vmatprep.subr.bf16.mxu0 %v12315_v12  ;;  %4167 = vmatprep.subr.bf16.mxu1 %v12317_v13  ;;  %v12343_v12 = vcombine.high %v2514_v6, %v2516_v7  ;;  %v12345_v13 = vcombine.high %v2515_v8, %v2517_v9  ;;  %v2540_v62 = vld [vmem:[#allocation5 + $0x15d0] sm:$0xff]  ;;  %v2541_v0 = vld [vmem:[#allocation5 + $0x15d8] sm:$0xff] }
 0x219   : > { %3996 = vmatpush1.bf16.msra.mxu0 %v12314_v19  ;;  %4168 = vmatpush1.bf16.msra.mxu1 %v12316_v20  ;;  %v12342_v19 = vcombine.low %v2514_v6, %v2516_v7  ;;  %v12344_v20 = vcombine.low %v2515_v8, %v2517_v9  ;;  %v2542_v6 = vld [vmem:[#allocation5 + $0x1610] sm:$0xff]  ;;  %v2543_v8 = vld [vmem:[#allocation5 + $0x1618] sm:$0xff] }
 0x21a   : > { %3997 = vmatprep.subr.bf16.mxu0 %v12319_v21  ;;  %4169 = vmatprep.subr.bf16.mxu1 %v12321_v22  ;;  %v12347_v21 = vcombine.high %v2518_v14, %v2520_v16  ;;  %v12349_v22 = vcombine.high %v2519_v17, %v2521_v18  ;;  %v2544_v7 = vld [vmem:[#allocation5 + $0x1650] sm:$0xff]  ;;  %v2545_v9 = vld [vmem:[#allocation5 + $0x1658] sm:$0xff] }
 0x21d   : > { %3998 = vmatpush1.bf16.msra.mxu0 %v12318_v28  ;;  %4170 = vmatpush1.bf16.msra.mxu1 %v12320_v29  ;;  %v12346_v28 = vcombine.low %v2518_v14, %v2520_v16  ;;  %v12348_v29 = vcombine.low %v2519_v17, %v2521_v18  ;;  %v2546_v14 = vld [vmem:[#allocation5 + $0x1690] sm:$0xff]  ;;  %v2547_v17 = vld [vmem:[#allocation5 + $0x1698] sm:$0xff] }
 0x21e   : > { %4010 = vmatprep.subr.bf16.mxu0 %v12323_v31  ;;  %4182 = vmatprep.subr.bf16.mxu1 %v12325_v32  ;;  %v12351_v31 = vcombine.high %v2522_v23, %v2524_v24  ;;  %v12353_v32 = vcombine.high %v2523_v26, %v2525_v27  ;;  %v2548_v16 = vld [vmem:[#allocation5 + $0x16d0] sm:$0xff]  ;;  %v2549_v18 = vld [vmem:[#allocation5 + $0x16d8] sm:$0xff] }
 0x220   : > { %4000 = vmatmul.mubr.bf16.vlgmr.msra.gmra.mrb[4].mxu0 %v15050_v30  ;;  %4172 = vmatmul.mubr.bf16.vlgmr.msra.gmra.mrb[4].mxu1 %v15050_v30 }
 0x221   : > { %4011 = vmatpush1.bf16.msra.mxu0 %v12322_v37  ;;  %4183 = vmatpush1.bf16.msra.mxu1 %v12324_v38  ;;  %v12350_v37 = vcombine.low %v2522_v23, %v2524_v24  ;;  %v12352_v38 = vcombine.low %v2523_v26, %v2525_v27  ;;  %v2550_v23 = vld [vmem:[#allocation5 + $0x1710] sm:$0xff]  ;;  %v2551_v26 = vld [vmem:[#allocation5 + $0x1718] sm:$0xff] }
 0x222   : > { %4012 = vmatprep.subr.bf16.mxu0 %v12327_v40  ;;  %4184 = vmatprep.subr.bf16.mxu1 %v12329_v41  ;;  %v12355_v40 = vcombine.high %v2526_v33, %v2528_v34  ;;  %v12357_v41 = vcombine.high %v2527_v35, %v2529_v36  ;;  %v2552_v24 = vld [vmem:[#allocation5 + $0x1750] sm:$0xff]  ;;  %v2553_v27 = vld [vmem:[#allocation5 + $0x1758] sm:$0xff] }
 0x223   : > { %4042 = vmatprep.mubr.bf16.mxu0 %v15052_v39  ;;  %4214 = vmatprep.mubr.bf16.mxu1 %v15052_v39 }
 0x225   : > { %4013 = vmatpush1.bf16.msra.mxu0 %v12326_v47  ;;  %4185 = vmatpush1.bf16.msra.mxu1 %v12328_v48  ;;  %v12354_v47 = vcombine.low %v2526_v33, %v2528_v34  ;;  %v12356_v48 = vcombine.low %v2527_v35, %v2529_v36  ;;  %v2554_v33 = vld [vmem:[#allocation5 + $0x1790] sm:$0xff]  ;;  %v2555_v35 = vld [vmem:[#allocation5 + $0x1798] sm:$0xff] }
 0x226   : > { %4014 = vmatprep.subr.bf16.mxu0 %v12331_v49  ;;  %4186 = vmatprep.subr.bf16.mxu1 %v12333_v50  ;;  %v12359_v49 = vcombine.high %v2530_v42, %v2532_v43  ;;  %v12361_v50 = vcombine.high %v2531_v44, %v2533_v45  ;;  %v2556_v34 = vld [vmem:[#allocation5 + $0x17d0] sm:$0xff]  ;;  %v2557_v36 = vld [vmem:[#allocation5 + $0x17d8] sm:$0xff] }
 0x229   : > { %4015 = vmatpush1.bf16.msra.mxu0 %v12330_v56  ;;  %4187 = vmatpush1.bf16.msra.mxu1 %v12332_v57  ;;  %v12358_v56 = vcombine.low %v2530_v42, %v2532_v43  ;;  %v12360_v57 = vcombine.low %v2531_v44, %v2533_v45  ;;  %v2558_v42 = vld [vmem:[#allocation5 + $0x1810] sm:$0xff]  ;;  %v2559_v44 = vld [vmem:[#allocation5 + $0x1818] sm:$0xff] }
 0x22a   : > { %4016 = vmatprep.subr.bf16.mxu0 %v12335_v59  ;;  %4188 = vmatprep.subr.bf16.mxu1 %v12337_v60  ;;  %v12363_v59 = vcombine.high %v2534_v51, %v2536_v52  ;;  %v12365_v60 = vcombine.high %v2535_v53, %v2537_v54  ;;  %v2560_v43 = vld [vmem:[#allocation5 + $0x1850] sm:$0xff]  ;;  %v2561_v45 = vld [vmem:[#allocation5 + $0x1858] sm:$0xff] }
 0x22d   : > { %4017 = vmatpush1.bf16.msra.mxu0 %v12334_v2  ;;  %4189 = vmatpush1.bf16.msra.mxu1 %v12336_v3  ;;  %v12362_v2 = vcombine.low %v2534_v51, %v2536_v52  ;;  %v12364_v3 = vcombine.low %v2535_v53, %v2537_v54  ;;  %v2562_v51 = vld [vmem:[#allocation5 + $0x1890] sm:$0xff]  ;;  %v2563_v53 = vld [vmem:[#allocation5 + $0x1898] sm:$0xff] }
 0x22e   : > { %4018 = vmatprep.subr.bf16.mxu0 %v12339_v4  ;;  %4190 = vmatprep.subr.bf16.mxu1 %v12341_v5  ;;  %v12367_v4 = vcombine.high %v2538_v61, %v2540_v62  ;;  %v12369_v5 = vcombine.high %v2539_v63, %v2541_v0  ;;  %v2564_v52 = vld [vmem:[#allocation5 + $0x18d0] sm:$0xff]  ;;  %v2565_v54 = vld [vmem:[#allocation5 + $0x18d8] sm:$0xff] }
 0x231   : > { %4019 = vmatpush1.bf16.msra.mxu0 %v12338_v10  ;;  %4191 = vmatpush1.bf16.msra.mxu1 %v12340_v11  ;;  %v12366_v10 = vcombine.low %v2538_v61, %v2540_v62  ;;  %v12368_v11 = vcombine.low %v2539_v63, %v2541_v0  ;;  %v2566_v61 = vld [vmem:[#allocation5 + $0x1910] sm:$0xff]  ;;  %v2567_v63 = vld [vmem:[#allocation5 + $0x1918] sm:$0xff] }
 0x232   : > { %4020 = vmatprep.subr.bf16.mxu0 %v12343_v12  ;;  %4192 = vmatprep.subr.bf16.mxu1 %v12345_v13  ;;  %v12371_v12 = vcombine.high %v2542_v6, %v2544_v7  ;;  %v12373_v13 = vcombine.high %v2543_v8, %v2545_v9  ;;  %v2568_v62 = vld [vmem:[#allocation5 + $0x1950] sm:$0xff]  ;;  %v2569_v0 = vld [vmem:[#allocation5 + $0x1958] sm:$0xff] }
 0x235   : > { %4021 = vmatpush1.bf16.msra.mxu0 %v12342_v19  ;;  %4193 = vmatpush1.bf16.msra.mxu1 %v12344_v20  ;;  %v12370_v19 = vcombine.low %v2542_v6, %v2544_v7  ;;  %v12372_v20 = vcombine.low %v2543_v8, %v2545_v9  ;;  %v2570_v6 = vld [vmem:[#allocation5 + $0x1990] sm:$0xff]  ;;  %v2571_v8 = vld [vmem:[#allocation5 + $0x1998] sm:$0xff] }
 0x236   : > { %4022 = vmatprep.subr.bf16.mxu0 %v12347_v21  ;;  %4194 = vmatprep.subr.bf16.mxu1 %v12349_v22  ;;  %v12375_v21 = vcombine.high %v2546_v14, %v2548_v16  ;;  %v12377_v22 = vcombine.high %v2547_v17, %v2549_v18  ;;  %v2572_v7 = vld [vmem:[#allocation5 + $0x19d0] sm:$0xff]  ;;  %v2573_v9 = vld [vmem:[#allocation5 + $0x19d8] sm:$0xff] }
 0x239   : > { %4023 = vmatpush1.bf16.msra.mxu0 %v12346_v28  ;;  %4195 = vmatpush1.bf16.msra.mxu1 %v12348_v29  ;;  %v12374_v28 = vcombine.low %v2546_v14, %v2548_v16  ;;  %v12376_v29 = vcombine.low %v2547_v17, %v2549_v18  ;;  %v12401_v14 = vcombine.high %v2571_v8, %v2573_v9  ;;  %v2574_v16 = vld [vmem:[#allocation5 + $0x1a10] sm:$0xff]  ;;  %v2575_v18 = vld [vmem:[#allocation5 + $0x1a18] sm:$0xff] }
 0x23a   : > { %4024 = vmatprep.subr.bf16.mxu0 %v12351_v31  ;;  %4196 = vmatprep.subr.bf16.mxu1 %v12353_v32  ;;  %v12379_v31 = vcombine.high %v2550_v23, %v2552_v24  ;;  %v12381_v32 = vcombine.high %v2551_v26, %v2553_v27  ;;  %v2576_v17 = vld [vmem:[#allocation5 + $0x1a50] sm:$0xff] }
 0x23d   : > { %4025 = vmatpush1.bf16.msra.mxu0 %v12350_v37  ;;  %4197 = vmatpush1.bf16.msra.mxu1 %v12352_v38  ;;  %v12378_v37 = vcombine.low %v2550_v23, %v2552_v24  ;;  %v12380_v38 = vcombine.low %v2551_v26, %v2553_v27  ;;  %v12403_v23 = vcombine.high %v2574_v16, %v2576_v17  ;;  %v2578_v26 = vld [vmem:[#allocation5 + $0x1a90] sm:$0xff] }
 0x23e   : > { %4026 = vmatprep.subr.bf16.mxu0 %v12355_v40  ;;  %4198 = vmatprep.subr.bf16.mxu1 %v12357_v41  ;;  %v12383_v40 = vcombine.high %v2554_v33, %v2556_v34  ;;  %v12385_v41 = vcombine.high %v2555_v35, %v2557_v36  ;;  %v2580_v27 = vld [vmem:[#allocation5 + $0x1ad0] sm:$0xff] }
 0x241   : > { %4027 = vmatpush1.bf16.msra.mxu0 %v12354_v47  ;;  %4199 = vmatpush1.bf16.msra.mxu1 %v12356_v48  ;;  %v12382_v47 = vcombine.low %v2554_v33, %v2556_v34  ;;  %v12384_v48 = vcombine.low %v2555_v35, %v2557_v36  ;;  %v580_v33 = vld [vmem:[#allocation7] sm:$0xf] }
 0x242   : > { %4028 = vmatprep.subr.bf16.mxu0 %v12359_v49  ;;  %4200 = vmatprep.subr.bf16.mxu1 %v12361_v50  ;;  %v12387_v49 = vcombine.high %v2558_v42, %v2560_v43  ;;  %v12389_v50 = vcombine.high %v2559_v44, %v2561_v45 }
 0x245   : > { %4029 = vmatpush1.bf16.msra.mxu0 %v12358_v56  ;;  %4201 = vmatpush1.bf16.msra.mxu1 %v12360_v57  ;;  %v12386_v56 = vcombine.low %v2558_v42, %v2560_v43  ;;  %v12388_v57 = vcombine.low %v2559_v44, %v2561_v45  ;;  %v2584_v42 = vld [vmem:[#allocation5 + $0x1b50] sm:$0xff]  ;;  %v2583_v44 = vld [vmem:[#allocation5 + $0x1b18] sm:$0xff] }
 0x246   : > { %4030 = vmatprep.subr.bf16.mxu0 %v12363_v59  ;;  %4202 = vmatprep.subr.bf16.mxu1 %v12365_v60  ;;  %v12391_v59 = vcombine.high %v2562_v51, %v2564_v52  ;;  %v12393_v60 = vcombine.high %v2563_v53, %v2565_v54  ;;  %v2585_v45 = vld [vmem:[#allocation5 + $0x1b58] sm:$0xff] }
 0x249   : > { %4031 = vmatpush1.bf16.msra.mxu0 %v12362_v2  ;;  %4203 = vmatpush1.bf16.msra.mxu1 %v12364_v3  ;;  %v12390_v2 = vcombine.low %v2562_v51, %v2564_v52  ;;  %v12392_v3 = vcombine.low %v2563_v53, %v2565_v54  ;;  %v12413_v54 = vcombine.high %v2583_v44, %v2585_v45 }
 0x24a   : > { %4032 = vmatprep.subr.bf16.mxu0 %v12367_v4  ;;  %4204 = vmatprep.subr.bf16.mxu1 %v12369_v5  ;;  %v12395_v4 = vcombine.high %v2566_v61, %v2568_v62  ;;  %v12397_v5 = vcombine.high %v2567_v63, %v2569_v0 }
 0x24d   : > { %4033 = vmatpush1.bf16.msra.mxu0 %v12366_v10  ;;  %4205 = vmatpush1.bf16.msra.mxu1 %v12368_v11  ;;  %v582_v10 = vlaneseq  ;;  %v12394_v11 = vcombine.low %v2566_v61, %v2568_v62  ;;  %v2587_v62 = vld [vmem:[#allocation5 + $0x1b98] sm:$0xff] }
 0x24e   : > { %4034 = vmatprep.subr.bf16.mxu0 %v12371_v12  ;;  %4206 = vmatprep.subr.bf16.mxu1 %v12373_v13  ;;  %v12396_v12 = vcombine.low %v2567_v63, %v2569_v0  ;;  %v12399_v13 = vcombine.high %v2570_v6, %v2572_v7  ;;  %v2589_v63 = vld [vmem:[#allocation5 + $0x1bd8] sm:$0xff] }
 0x251   : > { %4035 = vmatpush1.bf16.msra.mxu0 %v12370_v19  ;;  %4207 = vmatpush1.bf16.msra.mxu1 %v12372_v20  ;;  %v2577_v19 = vld [vmem:[#allocation5 + $0x1a58] sm:$0xff]  ;;  %v583_v20 = vshrl.u32 %v582_v10, 7 }
 0x252   : > { %4036 = vmatprep.subr.bf16.mxu0 %v12375_v21  ;;  %4208 = vmatprep.subr.bf16.mxu1 %v12377_v22  ;;  %v12398_v21 = vcombine.low %v2570_v6, %v2572_v7  ;;  %v12400_v22 = vcombine.low %v2571_v8, %v2573_v9  ;;  %v12405_v24 = vcombine.high %v2575_v18, %v2577_v19 }
 0x253   : > { %v15092_v34 = vsub.s32 2, %v583_v20  ;;  %v15094_v35 = vsub.s32 1, %v583_v20  ;;  %v12404_v36 = vcombine.low %v2575_v18, %v2577_v19  ;;  %v12412_v6 = vcombine.low %v2583_v44, %v2585_v45  ;;  %v2590_v18 = vld [vmem:[#allocation5 + $0x1c10] sm:$0xff] }
 0x254   : > { %v2592_v19 = vld [vmem:[#allocation5 + $0x1c50] sm:$0xff] }
 0x255   : > { %4037 = vmatpush1.bf16.msra.mxu0 %v12374_v28  ;;  %4209 = vmatpush1.bf16.msra.mxu1 %v12376_v29  ;;  %v15090_v28 = vsub.s32 0, %v583_v20  ;;  %v2579_v29 = vld [vmem:[#allocation5 + $0x1a98] sm:$0xff]  ;;  %v2594_v44 = vld [vmem:[#allocation5 + $0x1c90] sm:$0xff] }
 0x256   : > { %4038 = vmatprep.subr.bf16.mxu0 %v12379_v31  ;;  %4210 = vmatprep.subr.bf16.mxu1 %v12381_v32  ;;  %v2581_v31 = vld [vmem:[#allocation5 + $0x1ad8] sm:$0xff]  ;;  %v12402_v32 = vcombine.low %v2574_v16, %v2576_v17  ;;  %v12417_v17 = vcombine.high %v2587_v62, %v2589_v63  ;;  %v2596_v45 = vld [vmem:[#allocation5 + $0x1cd0] sm:$0xff] }
 0x257   : > { %v585_v43 = vrot.slane %v580_v33, %v15090_v28  ;;  %v12408_v51 = vcombine.low %v2579_v29, %v2581_v31 }
 0x259   : > { %4039 = vmatpush1.bf16.msra.mxu0 %v12378_v37  ;;  %4211 = vmatpush1.bf16.msra.mxu1 %v12380_v38  ;;  %v15096_v37 = vsub.s32 3, %v583_v20  ;;  %v12407_v38 = vcombine.high %v2578_v26, %v2580_v27 }
 0x25a   : > { %4040 = vmatprep.subr.bf16.mxu0 %v12383_v40  ;;  %4212 = vmatprep.subr.bf16.mxu1 %v12385_v41  ;;  %v12409_v40 = vcombine.high %v2579_v29, %v2581_v31  ;;  %v2582_v41 = vld [vmem:[#allocation5 + $0x1b10] sm:$0xff] }
 0x25b   : > { %v12411_v52 = vcombine.high %v2582_v41, %v2584_v42 }
 0x25d   : > { %4041 = vmatpush1.bf16.msra.mxu0 %v12382_v47  ;;  %4213 = vmatpush1.bf16.msra.mxu1 %v12384_v48  ;;  %v593_v47 = vrot.slane %v580_v33, %v15092_v34  ;;  %v589_v48 = vrot.slane %v580_v33, %v15094_v35 }
 0x25e   : > { %4053 = vmatprep.subr.bf16.mxu0 %v12387_v49  ;;  %4225 = vmatprep.subr.bf16.mxu1 %v12389_v50  ;;  %v12406_v49 = vcombine.low %v2578_v26, %v2580_v27  ;;  %v597_v50 = vrot.slane %v580_v33, %v15096_v37  ;;  %v2593_v26 = vld [vmem:[#allocation5 + $0x1c58] sm:$0xff] }
 0x260   : > { %4043 = vmatmul.mubr.bf16.vlgmr.msra.gmra.mrb[4].mxu0 %v15062_v46  ;;  %4215 = vmatmul.mubr.bf16.vlgmr.msra.gmra.mrb[4].mxu1 %v15062_v46 }
 0x261   : > { %4054 = vmatpush1.bf16.msra.mxu0 %v12386_v56  ;;  %4226 = vmatpush1.bf16.msra.mxu1 %v12388_v57  ;;  %v2586_v56 = vld [vmem:[#allocation5 + $0x1b90] sm:$0xff] }
 0x262   : > { %4055 = vmatprep.subr.bf16.mxu0 %v12391_v59  ;;  %4227 = vmatprep.subr.bf16.mxu1 %v12393_v60  ;;  %v2588_v57 = vld [vmem:[#allocation5 + $0x1bd0] sm:$0xff] }
 0x263   : > { %4085 = vmatprep.mubr.bf16.mxu0 %v15064_v55  ;;  %4257 = vmatprep.mubr.bf16.mxu1 %v15064_v55  ;;  %v12414_v16 = vcombine.low %v2586_v56, %v2588_v57 }
 0x265   : > { %4056 = vmatpush1.bf16.msra.mxu0 %v12390_v2  ;;  %4228 = vmatpush1.bf16.msra.mxu1 %v12392_v3 }
 0x266   : > { %4057 = vmatprep.subr.bf16.mxu0 %v12395_v4  ;;  %4229 = vmatprep.subr.bf16.mxu1 %v12397_v5  ;;  %v12410_v5 = vcombine.low %v2582_v41, %v2584_v42 }
 0x269   : > { %4058 = vmatpush1.bf16.msra.mxu0 %v12394_v11  ;;  %4230 = vmatpush1.bf16.msra.mxu1 %v12396_v12  ;;  %v12415_v11 = vcombine.high %v2586_v56, %v2588_v57  ;;  %v2600_v56 = vld [vmem:[#allocation5 + $0x1d50] sm:$0xff]  ;;  %v2599_v57 = vld [vmem:[#allocation5 + $0x1d18] sm:$0xff] }
 0x26a   : > { %4059 = vmatprep.subr.bf16.mxu0 %v12399_v13  ;;  %4231 = vmatprep.subr.bf16.mxu1 %v12401_v14 }
 0x26d   : > { %4060 = vmatpush1.bf16.msra.mxu0 %v12398_v21  ;;  %4232 = vmatpush1.bf16.msra.mxu1 %v12400_v22 }
 0x26e   : > { %4061 = vmatprep.subr.bf16.mxu0 %v12403_v23  ;;  %4233 = vmatprep.subr.bf16.mxu1 %v12405_v24  ;;  %v12416_v23 = vcombine.low %v2587_v62, %v2589_v63  ;;  %v2591_v24 = vld [vmem:[#allocation5 + $0x1c18] sm:$0xff] }
 0x271   : > { %4062 = vmatpush1.bf16.msra.mxu0 %v12402_v32  ;;  %4234 = vmatpush1.bf16.msra.mxu1 %v12404_v36 }
 0x272   : > { %4063 = vmatprep.subr.bf16.mxu0 %v12407_v38  ;;  %4235 = vmatprep.subr.bf16.mxu1 %v12409_v40  ;;  %v12419_v40 = vcombine.high %v2590_v18, %v2592_v19 }
 0x273   : > { %v2045_v53 = vpop.f32.mrb[0].mxu0  ;;  %v2217_v60 = vpop.f32.mrb[0].mxu1 }
 0x274   : > { %v13484_v59 = vadd.f32 %v2045_v53, %v585_v43  ;;  %v2047_v61 = vpop.f32.mrb[1].mxu0  ;;  %v13488_v0 = vadd.f32 %v2217_v60, %v593_v47  ;;  %v2219_v3 = vpop.f32.mrb[1].mxu1  ;;  %v12422_v60 = vcombine.low %v2594_v44, %v2596_v45 }
 0x275   : > { %v13485_v2 = vadd.f32 %v2047_v61, %v589_v48  ;;  %v2049_v4 = vpop.f32.mrb[2].mxu0  ;;  %4064 = vmatpush1.bf16.msra.mxu0 %v12406_v49  ;;  %v13489_v7 = vadd.f32 %v2219_v3, %v597_v50  ;;  %v2221_v9 = vpop.f32.mrb[2].mxu1  ;;  %4236 = vmatpush1.bf16.msra.mxu1 %v12408_v51  ;;  %v2597_v49 = vld [vmem:[#allocation5 + $0x1cd8] sm:$0xff]  ;;  %v12420_v51 = vcombine.low %v2591_v24, %v2593_v26 }
 0x276   : > { %v13486_v8 = vadd.f32 %v2049_v4, %v585_v43  ;;  %v2051_v10 = vpop.f32.mrb[3].mxu0  ;;  %4065 = vmatprep.subr.bf16.mxu0 %v12411_v52  ;;  %v13490_v12 = vadd.f32 %v2221_v9, %v593_v47  ;;  %v2223_v14 = vpop.f32.mrb[3].mxu1  ;;  %4237 = vmatprep.subr.bf16.mxu1 %v12413_v54  ;;  %v2226_v20 = vmax.f32 %v13484_v59, 0.0  ;;  %v2228_v27 = vmax.f32 %v13488_v0, 0.0  ;;  %v2598_v54 = vld [vmem:[#allocation5 + $0x1d10] sm:$0xff]  ;;  %v2601_v59 = vld [vmem:[#allocation5 + $0x1d58] sm:$0xff] }
 0x277   : > { %v13487_v13 = vadd.f32 %v2051_v10, %v589_v48  ;;  %v13491_v22 = vadd.f32 %v2223_v14, %v597_v50  ;;  %v2227_v29 = vmax.f32 %v13485_v2, 0.0  ;;  %v2229_v33 = vmax.f32 %v13489_v7, 0.0  ;;  %v2595_v48 = vld [vmem:[#allocation5 + $0x1c98] sm:$0xff]  ;;  %v2602_v0 = vld [vmem:[#allocation5 + $0x1d90] sm:$0xff] }
 0x278   : > { %v2230_v21 = vmax.f32 %v13486_v8, 0.0  ;;  %v2232_v31 = vmax.f32 %v13490_v12, 0.0  ;;  %v12421_v43 = vcombine.high %v2591_v24, %v2593_v26  ;;  %v12418_v50 = vcombine.low %v2590_v18, %v2592_v19  ;;  %v2604_v2 = vld [vmem:[#allocation5 + $0x1dd0] sm:$0xff]  ;;  %v2603_v3 = vld [vmem:[#allocation5 + $0x1d98] sm:$0xff] }
 0x279   : > { %v2231_v32 = vmax.f32 %v13487_v13, 0.0  ;;  %4066 = vmatpush1.bf16.msra.mxu0 %v12410_v5  ;;  %v2233_v38 = vmax.f32 %v13491_v22, 0.0  ;;  %4238 = vmatpush1.bf16.msra.mxu1 %v12412_v6  ;;  %v12423_v52 = vcombine.high %v2594_v44, %v2596_v45  ;;  %v12425_v53 = vcombine.high %v2595_v48, %v2597_v49  ;;  %v2605_v4 = vld [vmem:[#allocation5 + $0x1dd8] sm:$0xff]  ;;  %v2606_v9 = vld [vmem:[#allocation5 + $0x1e10] sm:$0xff] }
 0x27a   : > { %v15102_v36 = vpack.c.bf16 %v2230_v21, %v2226_v20  ;;  %4067 = vmatprep.subr.bf16.mxu0 %v12415_v11  ;;  %v15104_v41 = vpack.c.bf16 %v2232_v31, %v2228_v27  ;;  %4239 = vmatprep.subr.bf16.mxu1 %v12417_v17  ;;  %v12424_v61 = vcombine.low %v2595_v48, %v2597_v49  ;;  %v2608_v10 = vld [vmem:[#allocation5 + $0x1e50] sm:$0xff]  ;;  %v2607_v11 = vld [vmem:[#allocation5 + $0x1e18] sm:$0xff] }
 0x27b   : > { %v15106_v42 = vpack.c.bf16 %v2231_v32, %v2227_v29  ;;  %v15108_v47 = vpack.c.bf16 %v2233_v38, %v2229_v33  ;;  %v12427_v62 = vcombine.high %v2598_v54, %v2600_v56  ;;  %v12429_v63 = vcombine.high %v2599_v57, %v2601_v59  ;;  %v2609_v12 = vld [vmem:[#allocation5 + $0x1e58] sm:$0xff]  ;;  %v2610_v18 = vld [vmem:[#allocation5 + $0x1e90] sm:$0xff] }
 0x27c   : > { %v12426_v5 = vcombine.low %v2598_v54, %v2600_v56  ;;  %v12428_v6 = vcombine.low %v2599_v57, %v2601_v59  ;;  %v12431_v7 = vcombine.high %v2602_v0, %v2604_v2  ;;  %v12433_v8 = vcombine.high %v2603_v3, %v2605_v4  ;;  %v2612_v19 = vld [vmem:[#allocation5 + $0x1ed0] sm:$0xff]  ;;  %v2611_v20 = vld [vmem:[#allocation5 + $0x1e98] sm:$0xff] }
 0x27d   : > { %4068 = vmatpush1.bf16.msra.mxu0 %v12414_v16  ;;  %4240 = vmatpush1.bf16.msra.mxu1 %v12416_v23  ;;  %v12430_v13 = vcombine.low %v2602_v0, %v2604_v2  ;;  %v12432_v14 = vcombine.low %v2603_v3, %v2605_v4  ;;  %v12435_v16 = vcombine.high %v2606_v9, %v2608_v10  ;;  %v2613_v21 = vld [vmem:[#allocation5 + $0x1ed8] sm:$0xff]  ;;  %v2614_v27 = vld [vmem:[#allocation5 + $0x1f10] sm:$0xff] }
 0x27e   : > { %4069 = vmatprep.subr.bf16.mxu0 %v12419_v40  ;;  %4241 = vmatprep.subr.bf16.mxu1 %v12421_v43  ;;  %v12437_v17 = vcombine.high %v2607_v11, %v2609_v12  ;;  %v12434_v22 = vcombine.low %v2606_v9, %v2608_v10  ;;  %v12436_v23 = vcombine.low %v2607_v11, %v2609_v12  ;;  %v2616_v29 = vld [vmem:[#allocation5 + $0x1f50] sm:$0xff]  ;;  %v2615_v31 = vld [vmem:[#allocation5 + $0x1f18] sm:$0xff] }
 0x27f   : > { %v12439_v24 = vcombine.high %v2610_v18, %v2612_v19  ;;  %v12441_v26 = vcombine.high %v2611_v20, %v2613_v21  ;;  %v2617_v32 = vld [vmem:[#allocation5 + $0x1f58] sm:$0xff]  ;;  %v12438_v33 = vcombine.low %v2610_v18, %v2612_v19  ;;  %v12440_v38 = vcombine.low %v2611_v20, %v2613_v21  ;;  %v2618_v44 = vld [vmem:[#allocation5 + $0x1f90] sm:$0xff] }
 0x280   : > { %v12443_v40 = vcombine.high %v2614_v27, %v2616_v29  ;;  %v12445_v43 = vcombine.high %v2615_v31, %v2617_v32  ;;  %v2620_v45 = vld [vmem:[#allocation5 + $0x1fd0] sm:$0xff]  ;;  %v2619_v48 = vld [vmem:[#allocation5 + $0x1f98] sm:$0xff] }
 0x281   : > { %4070 = vmatpush1.bf16.msra.mxu0 %v12418_v50  ;;  %4242 = vmatpush1.bf16.msra.mxu1 %v12420_v51  ;;  %v2621_v49 = vld [vmem:[#allocation5 + $0x1fd8] sm:$0xff]  ;;  %v12442_v50 = vcombine.low %v2614_v27, %v2616_v29  ;;  %v12444_v51 = vcombine.low %v2615_v31, %v2617_v32  ;;  %v12446_v54 = vcombine.low %v2618_v44, %v2620_v45  ;;  %v13763_v57 = vld [vmem:[#allocation8 + $0x404] ss:$16 sps:$4 sm:$0xff]   ;;  %v13767_v0 = vld [vmem:[#allocation8 + $0x420] ss:$16 sps:$4 sm:$0xff]  }
 0x282   : > { %4071 = vmatprep.subr.bf16.mxu0 %v12423_v52  ;;  %4243 = vmatprep.subr.bf16.mxu1 %v12425_v53  ;;  %v12447_v52 = vcombine.high %v2618_v44, %v2620_v45  ;;  %v12449_v53 = vcombine.high %v2619_v48, %v2621_v49  ;;  %v12448_v56 = vcombine.low %v2619_v48, %v2621_v49  ;;  %v13766_v59 = vld [vmem:[#allocation8 + $0x40c] ss:$16 sps:$4 sm:$0xff]   ;;  %v13770_v2 = vld [vmem:[#allocation8 + $0x428] ss:$16 sps:$4 sm:$0xff]   ;;  %v13775_v3 = vld [vmem:[#allocation8 + $0x444] ss:$16 sps:$4 sm:$0xff]  }
 0x283   : > { %v13778_v4 = vld [vmem:[#allocation8 + $0x44c] ss:$16 sps:$4 sm:$0xff]   ;;  %v13779_v9 = vld [vmem:[#allocation8 + $0x460] ss:$16 sps:$4 sm:$0xff]   ;;  %v13782_v10 = vld [vmem:[#allocation8 + $0x468] ss:$16 sps:$4 sm:$0xff]  }
 0x284   : > { %v13787_v11 = vld [vmem:[#allocation8 + $0x484] ss:$16 sps:$4 sm:$0xff]   ;;  %v13790_v12 = vld [vmem:[#allocation8 + $0x48c] ss:$16 sps:$4 sm:$0xff]   ;;  %v13791_v18 = vld [vmem:[#allocation8 + $0x4a0] ss:$16 sps:$4 sm:$0xff]  }
 0x285   : > { %4072 = vmatpush1.bf16.msra.mxu0 %v12422_v60  ;;  %4244 = vmatpush1.bf16.msra.mxu1 %v12424_v61  ;;  %v13761_v60 = vld [vmem:[#allocation8 + $0x400] ss:$16 sps:$4 sm:$0xff]   ;;  %v13764_v61 = vld [vmem:[#allocation8 + $0x408] ss:$16 sps:$4 sm:$0xff]   ;;  %v13799_v20 = vld [vmem:[#allocation8 + $0x4c4] ss:$16 sps:$4 sm:$0xff]  }
 0x286   : > { %4073 = vmatprep.subr.bf16.mxu0 %v12427_v62  ;;  %4245 = vmatprep.subr.bf16.mxu1 %v12429_v63  ;;  %v13769_v62 = vld [vmem:[#allocation8 + $0x424] ss:$16 sps:$4 sm:$0xff]   ;;  %v13772_v63 = vld [vmem:[#allocation8 + $0x42c] ss:$16 sps:$4 sm:$0xff]   ;;  %v13794_v19 = vld [vmem:[#allocation8 + $0x4a8] ss:$16 sps:$4 sm:$0xff]  }
 0x287   : > { %v13802_v21 = vld [vmem:[#allocation8 + $0x4cc] ss:$16 sps:$4 sm:$0xff]   ;;  %v13803_v27 = vld [vmem:[#allocation8 + $0x4e0] ss:$16 sps:$4 sm:$0xff]   ;;  %v13806_v29 = vld [vmem:[#allocation8 + $0x4e8] ss:$16 sps:$4 sm:$0xff]  }
 0x288   : > { %v13811_v31 = vld [vmem:[#allocation8 + $0x504] ss:$16 sps:$4 sm:$0xff]   ;;  %v13814_v32 = vld [vmem:[#allocation8 + $0x50c] ss:$16 sps:$4 sm:$0xff]   ;;  %v13815_v44 = vld [vmem:[#allocation8 + $0x520] ss:$16 sps:$4 sm:$0xff]  }
 0x289   : > { %4074 = vmatpush1.bf16.msra.mxu0 %v12426_v5  ;;  %4246 = vmatpush1.bf16.msra.mxu1 %v12428_v6  ;;  %v13773_v5 = vld [vmem:[#allocation8 + $0x440] ss:$16 sps:$4 sm:$0xff]   ;;  %v13776_v6 = vld [vmem:[#allocation8 + $0x448] ss:$16 sps:$4 sm:$0xff]   ;;  %v13823_v48 = vld [vmem:[#allocation8 + $0x544] ss:$16 sps:$4 sm:$0xff]  }
 0x28a   : > { %4075 = vmatprep.subr.bf16.mxu0 %v12431_v7  ;;  %4247 = vmatprep.subr.bf16.mxu1 %v12433_v8  ;;  %v13781_v7 = vld [vmem:[#allocation8 + $0x464] ss:$16 sps:$4 sm:$0xff]   ;;  %v13784_v8 = vld [vmem:[#allocation8 + $0x46c] ss:$16 sps:$4 sm:$0xff]   ;;  %v13818_v45 = vld [vmem:[#allocation8 + $0x528] ss:$16 sps:$4 sm:$0xff]  }
 0x28b   : > { %v13826_v49 = vld [vmem:[#allocation8 + $0x54c] ss:$16 sps:$4 sm:$0xff]  }
 0x28d   : > { %4076 = vmatpush1.bf16.msra.mxu0 %v12430_v13  ;;  %4248 = vmatpush1.bf16.msra.mxu1 %v12432_v14  ;;  %v13785_v13 = vld [vmem:[#allocation8 + $0x480] ss:$16 sps:$4 sm:$0xff]   ;;  %v13788_v14 = vld [vmem:[#allocation8 + $0x488] ss:$16 sps:$4 sm:$0xff]  }
 0x28e   : > { %4077 = vmatprep.subr.bf16.mxu0 %v12435_v16  ;;  %4249 = vmatprep.subr.bf16.mxu1 %v12437_v17  ;;  %v13793_v16 = vld [vmem:[#allocation8 + $0x4a4] ss:$16 sps:$4 sm:$0xff]   ;;  %v13796_v17 = vld [vmem:[#allocation8 + $0x4ac] ss:$16 sps:$4 sm:$0xff]  }
 0x291   : > { %4078 = vmatpush1.bf16.msra.mxu0 %v12434_v22  ;;  %4250 = vmatpush1.bf16.msra.mxu1 %v12436_v23  ;;  %v13797_v22 = vld [vmem:[#allocation8 + $0x4c0] ss:$16 sps:$4 sm:$0xff]   ;;  %v13800_v23 = vld [vmem:[#allocation8 + $0x4c8] ss:$16 sps:$4 sm:$0xff]  }
 0x292   : > { %4079 = vmatprep.subr.bf16.mxu0 %v12439_v24  ;;  %4251 = vmatprep.subr.bf16.mxu1 %v12441_v26  ;;  %v13805_v24 = vld [vmem:[#allocation8 + $0x4e4] ss:$16 sps:$4 sm:$0xff]   ;;  %v13808_v26 = vld [vmem:[#allocation8 + $0x4ec] ss:$16 sps:$4 sm:$0xff]  }
 0x295   : > { %4080 = vmatpush1.bf16.msra.mxu0 %v12438_v33  ;;  %4252 = vmatpush1.bf16.msra.mxu1 %v12440_v38  ;;  %v13809_v33 = vld [vmem:[#allocation8 + $0x500] ss:$16 sps:$4 sm:$0xff]   ;;  %v13812_v38 = vld [vmem:[#allocation8 + $0x508] ss:$16 sps:$4 sm:$0xff]  }
 0x296   : > { %4081 = vmatprep.subr.bf16.mxu0 %v12443_v40  ;;  %4253 = vmatprep.subr.bf16.mxu1 %v12445_v43  ;;  %v13817_v40 = vld [vmem:[#allocation8 + $0x524] ss:$16 sps:$4 sm:$0xff]   ;;  %v13820_v43 = vld [vmem:[#allocation8 + $0x52c] ss:$16 sps:$4 sm:$0xff]  }
 0x299   : > { %4082 = vmatpush1.bf16.msra.mxu0 %v12442_v50  ;;  %4254 = vmatpush1.bf16.msra.mxu1 %v12444_v51  ;;  %v13821_v50 = vld [vmem:[#allocation8 + $0x540] ss:$16 sps:$4 sm:$0xff]   ;;  %v13824_v51 = vld [vmem:[#allocation8 + $0x548] ss:$16 sps:$4 sm:$0xff]  }
 0x29a   : > { %4083 = vmatprep.subr.bf16.mxu0 %v12447_v52  ;;  %4255 = vmatprep.subr.bf16.mxu1 %v12449_v53  ;;  %v13829_v52 = vld [vmem:[#allocation8 + $0x564] ss:$16 sps:$4 sm:$0xff]   ;;  %v13832_v53 = vld [vmem:[#allocation8 + $0x56c] ss:$16 sps:$4 sm:$0xff]  }
 0x29d   : > { %4084 = vmatpush1.bf16.msra.mxu0 %v12446_v54  ;;  %4256 = vmatpush1.bf16.msra.mxu1 %v12448_v56  ;;  %v13827_v54 = vld [vmem:[#allocation8 + $0x560] ss:$16 sps:$4 sm:$0xff]   ;;  %v13830_v56 = vld [vmem:[#allocation8 + $0x568] ss:$16 sps:$4 sm:$0xff]  }
 0x29e   : > { %5048 = vmatprep.subr.bf16.mxu0 %v13763_v57  ;;  %5134 = vmatprep.subr.bf16.mxu1 %v13766_v59  ;;  %v13835_v57 = vld [vmem:[#allocation8 + $0x584] ss:$16 sps:$4 sm:$0xff]   ;;  %v13838_v59 = vld [vmem:[#allocation8 + $0x58c] ss:$16 sps:$4 sm:$0xff]  }
 0x2a0   : > { %4086 = vmatmul.mubr.bf16.vlgmr.msra.gmra.mrb[4].mxu0 %v15072_v1  ;;  %4258 = vmatmul.mubr.bf16.vlgmr.msra.gmra.mrb[4].mxu1 %v15072_v1 }
 0x2a1   : > { %5049 = vmatpush1.bf16.msra.mxu0 %v13761_v60  ;;  %5135 = vmatpush1.bf16.msra.mxu1 %v13764_v61  ;;  %v13833_v60 = vld [vmem:[#allocation8 + $0x580] ss:$16 sps:$4 sm:$0xff]   ;;  %v13836_v61 = vld [vmem:[#allocation8 + $0x588] ss:$16 sps:$4 sm:$0xff]  }
 0x2a2   : > { %5050 = vmatprep.subr.bf16.mxu0 %v13769_v62  ;;  %5136 = vmatprep.subr.bf16.mxu1 %v13772_v63  ;;  %v13841_v62 = vld [vmem:[#allocation8 + $0x5a4] ss:$16 sps:$4 sm:$0xff]   ;;  %v13844_v63 = vld [vmem:[#allocation8 + $0x5ac] ss:$16 sps:$4 sm:$0xff]  }
 0x2a5   : > { %5051 = vmatpush1.bf16.msra.mxu0 %v13767_v0  ;;  %5137 = vmatpush1.bf16.msra.mxu1 %v13770_v2  ;;  %v13839_v0 = vld [vmem:[#allocation8 + $0x5a0] ss:$16 sps:$4 sm:$0xff]   ;;  %v13842_v2 = vld [vmem:[#allocation8 + $0x5a8] ss:$16 sps:$4 sm:$0xff]  }
 0x2a6   : > { %5052 = vmatprep.subr.bf16.mxu0 %v13775_v3  ;;  %5138 = vmatprep.subr.bf16.mxu1 %v13778_v4  ;;  %v13847_v3 = vld [vmem:[#allocation8 + $0x5c4] ss:$16 sps:$4 sm:$0xff]   ;;  %v13850_v4 = vld [vmem:[#allocation8 + $0x5cc] ss:$16 sps:$4 sm:$0xff]  }
 0x2a9   : > { %5053 = vmatpush1.bf16.msra.mxu0 %v13773_v5  ;;  %5139 = vmatpush1.bf16.msra.mxu1 %v13776_v6  ;;  %v13845_v5 = vld [vmem:[#allocation8 + $0x5c0] ss:$16 sps:$4 sm:$0xff]   ;;  %v13848_v6 = vld [vmem:[#allocation8 + $0x5c8] ss:$16 sps:$4 sm:$0xff]  }
 0x2aa   : > { %5054 = vmatprep.subr.bf16.mxu0 %v13781_v7  ;;  %5140 = vmatprep.subr.bf16.mxu1 %v13784_v8  ;;  %v13853_v7 = vld [vmem:[#allocation8 + $0x5e4] ss:$16 sps:$4 sm:$0xff]   ;;  %v13856_v8 = vld [vmem:[#allocation8 + $0x5ec] ss:$16 sps:$4 sm:$0xff]  }
 0x2ad   : > { %5055 = vmatpush1.bf16.msra.mxu0 %v13779_v9  ;;  %5141 = vmatpush1.bf16.msra.mxu1 %v13782_v10  ;;  %v13851_v9 = vld [vmem:[#allocation8 + $0x5e0] ss:$16 sps:$4 sm:$0xff]   ;;  %v13854_v10 = vld [vmem:[#allocation8 + $0x5e8] ss:$16 sps:$4 sm:$0xff]  }
 0x2ae   : > { %5056 = vmatprep.subr.bf16.mxu0 %v13787_v11  ;;  %5142 = vmatprep.subr.bf16.mxu1 %v13790_v12  ;;  %v13859_v11 = vld [vmem:[#allocation8 + $0x604] ss:$16 sps:$4 sm:$0xff]   ;;  %v13862_v12 = vld [vmem:[#allocation8 + $0x60c] ss:$16 sps:$4 sm:$0xff]  }
 0x2b1   : > { %5057 = vmatpush1.bf16.msra.mxu0 %v13785_v13  ;;  %5143 = vmatpush1.bf16.msra.mxu1 %v13788_v14  ;;  %v2622_v13 = vld [vmem:[#allocation7 + $0x4] sm:$0xf] }
 0x2b2   : > { %5058 = vmatprep.subr.bf16.mxu0 %v13793_v16  ;;  %5144 = vmatprep.subr.bf16.mxu1 %v13796_v17  ;;  %v2627_v14 = vrot.slane %v2622_v13, %v15090_v28  ;;  %v2635_v16 = vrot.slane %v2622_v13, %v15092_v34  ;;  %v2631_v17 = vrot.slane %v2622_v13, %v15094_v35 }
 0x2b5   : > { %5059 = vmatpush1.bf16.msra.mxu0 %v13791_v18  ;;  %5145 = vmatpush1.bf16.msra.mxu1 %v13794_v19  ;;  %v2639_v18 = vrot.slane %v2622_v13, %v15096_v37  ;;  %v13886_v13 = vld [vmem:[#allocation8 + $0x68c] ss:$16 sps:$4 sm:$0xff]  }
 0x2b6   : > { %5060 = vmatprep.subr.bf16.mxu0 %v13799_v20  ;;  %5146 = vmatprep.subr.bf16.mxu1 %v13802_v21 }
 0x2b9   : > { %5061 = vmatpush1.bf16.msra.mxu0 %v13797_v22  ;;  %5147 = vmatpush1.bf16.msra.mxu1 %v13800_v23 }
 0x2ba   : > { %5062 = vmatprep.subr.bf16.mxu0 %v13805_v24  ;;  %5148 = vmatprep.subr.bf16.mxu1 %v13808_v26 }
 0x2bd   : > { %5063 = vmatpush1.bf16.msra.mxu0 %v13803_v27  ;;  %5149 = vmatpush1.bf16.msra.mxu1 %v13806_v29 }
 0x2be   : > { %5064 = vmatprep.subr.bf16.mxu0 %v13811_v31  ;;  %5150 = vmatprep.subr.bf16.mxu1 %v13814_v32 }
 0x2c1   : > { %5065 = vmatpush1.bf16.msra.mxu0 %v13809_v33  ;;  %5151 = vmatpush1.bf16.msra.mxu1 %v13812_v38 }
 0x2c2   : > { %5066 = vmatprep.subr.bf16.mxu0 %v13817_v40  ;;  %5152 = vmatprep.subr.bf16.mxu1 %v13820_v43 }
 0x2c5   : > { %5067 = vmatpush1.bf16.msra.mxu0 %v13815_v44  ;;  %5153 = vmatpush1.bf16.msra.mxu1 %v13818_v45 }
 0x2c6   : > { %5068 = vmatprep.subr.bf16.mxu0 %v13823_v48  ;;  %5154 = vmatprep.subr.bf16.mxu1 %v13826_v49 }
 0x2c9   : > { %5069 = vmatpush1.bf16.msra.mxu0 %v13821_v50  ;;  %5155 = vmatpush1.bf16.msra.mxu1 %v13824_v51 }
 0x2ca   : > { %5070 = vmatprep.subr.bf16.mxu0 %v13829_v52  ;;  %5156 = vmatprep.subr.bf16.mxu1 %v13832_v53 }
 0x2cd   : > { %5071 = vmatpush1.bf16.msra.mxu0 %v13827_v54  ;;  %5157 = vmatpush1.bf16.msra.mxu1 %v13830_v56 }
 0x2ce   : > { %5072 = vmatprep.subr.bf16.mxu0 %v13835_v57  ;;  %5158 = vmatprep.subr.bf16.mxu1 %v13838_v59 }
 0x2d1   : > { %5073 = vmatpush1.bf16.msra.mxu0 %v13833_v60  ;;  %5159 = vmatpush1.bf16.msra.mxu1 %v13836_v61  ;;  %v13857_v60 = vld [vmem:[#allocation8 + $0x600] ss:$16 sps:$4 sm:$0xff]   ;;  %v13860_v61 = vld [vmem:[#allocation8 + $0x608] ss:$16 sps:$4 sm:$0xff]  }
 0x2d2   : > { %5074 = vmatprep.subr.bf16.mxu0 %v13841_v62  ;;  %5160 = vmatprep.subr.bf16.mxu1 %v13844_v63  ;;  %v13865_v63 = vld [vmem:[#allocation8 + $0x624] ss:$16 sps:$4 sm:$0xff]  }
 0x2d5   : > { %5075 = vmatpush1.bf16.msra.mxu0 %v13839_v0  ;;  %5161 = vmatpush1.bf16.msra.mxu1 %v13842_v2  ;;  %v13868_v0 = vld [vmem:[#allocation8 + $0x62c] ss:$16 sps:$4 sm:$0xff]   ;;  %v13863_v2 = vld [vmem:[#allocation8 + $0x620] ss:$16 sps:$4 sm:$0xff]  }
 0x2d6   : > { %5076 = vmatprep.subr.bf16.mxu0 %v13847_v3  ;;  %5162 = vmatprep.subr.bf16.mxu1 %v13850_v4  ;;  %v13866_v3 = vld [vmem:[#allocation8 + $0x628] ss:$16 sps:$4 sm:$0xff]   ;;  %v13871_v4 = vld [vmem:[#allocation8 + $0x644] ss:$16 sps:$4 sm:$0xff]  }
 0x2d9   : > { %5077 = vmatpush1.bf16.msra.mxu0 %v13845_v5  ;;  %5163 = vmatpush1.bf16.msra.mxu1 %v13848_v6  ;;  %v13874_v5 = vld [vmem:[#allocation8 + $0x64c] ss:$16 sps:$4 sm:$0xff]   ;;  %v13869_v6 = vld [vmem:[#allocation8 + $0x640] ss:$16 sps:$4 sm:$0xff]  }
 0x2da   : > { %5078 = vmatprep.subr.bf16.mxu0 %v13853_v7  ;;  %5164 = vmatprep.subr.bf16.mxu1 %v13856_v8  ;;  %v13872_v7 = vld [vmem:[#allocation8 + $0x648] ss:$16 sps:$4 sm:$0xff]   ;;  %v13877_v8 = vld [vmem:[#allocation8 + $0x664] ss:$16 sps:$4 sm:$0xff]  }
 0x2dd   : > { %5079 = vmatpush1.bf16.msra.mxu0 %v13851_v9  ;;  %5165 = vmatpush1.bf16.msra.mxu1 %v13854_v10  ;;  %v13880_v9 = vld [vmem:[#allocation8 + $0x66c] ss:$16 sps:$4 sm:$0xff]   ;;  %v13875_v10 = vld [vmem:[#allocation8 + $0x660] ss:$16 sps:$4 sm:$0xff]  }
 0x2de   : > { %5091 = vmatprep.subr.bf16.mxu0 %v13859_v11  ;;  %5177 = vmatprep.subr.bf16.mxu1 %v13862_v12  ;;  %v13878_v11 = vld [vmem:[#allocation8 + $0x668] ss:$16 sps:$4 sm:$0xff]   ;;  %v13883_v12 = vld [vmem:[#allocation8 + $0x684] ss:$16 sps:$4 sm:$0xff]  }
 0x373   : > { %v4087_v19 = vpop.f32.mrb[4].mxu0  ;;  %v4259_v21 = vpop.f32.mrb[4].mxu1 }
 0x374   : > { %v13492_v20 = vadd.f32 %v4087_v19, %v2627_v14  ;;  %v4089_v22 = vpop.f32.mrb[5].mxu0  ;;  %v13496_v23 = vadd.f32 %v4259_v21, %v2635_v16  ;;  %v4261_v26 = vpop.f32.mrb[5].mxu1  ;;  %v13887_v19 = vld [vmem:[#allocation8 + $0x6a0] ss:$16 sps:$4 sm:$0xff]   ;;  %v13895_v21 = vld [vmem:[#allocation8 + $0x6c4] ss:$16 sps:$4 sm:$0xff]  }
 0x375   : > { %v13493_v24 = vadd.f32 %v4089_v22, %v2631_v17  ;;  %v4091_v27 = vpop.f32.mrb[6].mxu0  ;;  %v13497_v29 = vadd.f32 %v4261_v26, %v2639_v18  ;;  %v4263_v32 = vpop.f32.mrb[6].mxu1  ;;  %v13898_v22 = vld [vmem:[#allocation8 + $0x6cc] ss:$16 sps:$4 sm:$0xff]   ;;  %v13901_v26 = vld [vmem:[#allocation8 + $0x6e4] ss:$16 sps:$4 sm:$0xff]  }
 0x376   : > { %v13494_v31 = vadd.f32 %v4091_v27, %v2627_v14  ;;  %v4093_v33 = vpop.f32.mrb[7].mxu0  ;;  %v13498_v38 = vadd.f32 %v4263_v32, %v2635_v16  ;;  %v4265_v43 = vpop.f32.mrb[7].mxu1  ;;  %v4268_v44 = vmax.f32 %v13492_v20, 0.0  ;;  %v4270_v49 = vmax.f32 %v13496_v23, 0.0  ;;  %v13881_v14 = vld [vmem:[#allocation8 + $0x680] ss:$16 sps:$4 sm:$0xff]  }
 0x377   : > { %v13495_v40 = vadd.f32 %v4093_v33, %v2631_v17  ;;  %v13499_v48 = vadd.f32 %v4265_v43, %v2639_v18  ;;  %v4269_v50 = vmax.f32 %v13493_v24, 0.0  ;;  %v4271_v53 = vmax.f32 %v13497_v29, 0.0  ;;  %v13884_v16 = vld [vmem:[#allocation8 + $0x688] ss:$16 sps:$4 sm:$0xff]   ;;  %v13889_v17 = vld [vmem:[#allocation8 + $0x6a4] ss:$16 sps:$4 sm:$0xff]  }
 0x378   : > { %v4272_v45 = vmax.f32 %v13494_v31, 0.0  ;;  %v4274_v51 = vmax.f32 %v13498_v38, 0.0  ;;  %v13892_v18 = vld [vmem:[#allocation8 + $0x6ac] ss:$16 sps:$4 sm:$0xff]   ;;  %v13890_v20 = vld [vmem:[#allocation8 + $0x6a8] ss:$16 sps:$4 sm:$0xff]  }
 0x379   : > { %v4273_v52 = vmax.f32 %v13495_v40, 0.0  ;;  %v4275_v56 = vmax.f32 %v13499_v48, 0.0  ;;  %v13893_v23 = vld [vmem:[#allocation8 + $0x6c0] ss:$16 sps:$4 sm:$0xff]   ;;  %v13896_v24 = vld [vmem:[#allocation8 + $0x6c8] ss:$16 sps:$4 sm:$0xff]  }
 0x37a   : > { %v4276_v54 = vpack.c.bf16 %v4272_v45, %v4268_v44  ;;  %v15116_v57 = vpack.c.bf16 %v4274_v51, %v4270_v49  ;;  %v13904_v27 = vld [vmem:[#allocation8 + $0x6ec] ss:$16 sps:$4 sm:$0xff]   ;;  %v13899_v29 = vld [vmem:[#allocation8 + $0x6e0] ss:$16 sps:$4 sm:$0xff]   ;;  %v13902_v31 = vld [vmem:[#allocation8 + $0x6e8] ss:$16 sps:$4 sm:$0xff]  }
 0x37b   : > { %v4277_v59 = vpack.c.bf16 %v4273_v52, %v4269_v50  ;;  %v4279_v62 = vpack.c.bf16 %v4275_v56, %v4271_v53  ;;  %v13907_v32 = vld [vmem:[#allocation8 + $0x704] ss:$16 sps:$4 sm:$0xff]   ;;  %v13910_v33 = vld [vmem:[#allocation8 + $0x70c] ss:$16 sps:$4 sm:$0xff]   ;;  %v13905_v38 = vld [vmem:[#allocation8 + $0x700] ss:$16 sps:$4 sm:$0xff]  }
 0x37c   : > { %v13908_v40 = vld [vmem:[#allocation8 + $0x708] ss:$16 sps:$4 sm:$0xff]   ;;  %v13913_v43 = vld [vmem:[#allocation8 + $0x724] ss:$16 sps:$4 sm:$0xff]   ;;  %v13916_v44 = vld [vmem:[#allocation8 + $0x72c] ss:$16 sps:$4 sm:$0xff]  }
 0x37d   : > { %5080 = vmatprep.mubr.bf16.mxu0 %v4277_v59  ;;  %5166 = vmatprep.mubr.bf16.mxu1 %v4277_v59  ;;  %v13911_v45 = vld [vmem:[#allocation8 + $0x720] ss:$16 sps:$4 sm:$0xff]   ;;  %v13914_v48 = vld [vmem:[#allocation8 + $0x728] ss:$16 sps:$4 sm:$0xff]   ;;  %v13919_v49 = vld [vmem:[#allocation8 + $0x744] ss:$16 sps:$4 sm:$0xff]  }
 0x37e   : > { %5081 = vmatmul.mubr.bf16.vlgmr.msra.gmra.mrb[8].mxu0 %v4276_v54  ;;  %5167 = vmatmul.mubr.bf16.vlgmr.msra.gmra.mrb[8].mxu1 %v4276_v54  ;;  %v13922_v50 = vld [vmem:[#allocation8 + $0x74c] ss:$16 sps:$4 sm:$0xff]   ;;  %v13917_v51 = vld [vmem:[#allocation8 + $0x740] ss:$16 sps:$4 sm:$0xff]   ;;  %v13920_v52 = vld [vmem:[#allocation8 + $0x748] ss:$16 sps:$4 sm:$0xff]  }
 0x37f   : > { %5092 = vmatpush1.bf16.msra.mxu0 %v13857_v60  ;;  %5178 = vmatpush1.bf16.msra.mxu1 %v13860_v61  ;;  %v13925_v53 = vld [vmem:[#allocation8 + $0x764] ss:$16 sps:$4 sm:$0xff]   ;;  %v13928_v54 = vld [vmem:[#allocation8 + $0x76c] ss:$16 sps:$4 sm:$0xff]   ;;  %v13923_v56 = vld [vmem:[#allocation8 + $0x760] ss:$16 sps:$4 sm:$0xff]  }
 0x380   : > { %5123 = vmatprep.mubr.bf16.mxu0 %v4279_v62  ;;  %5209 = vmatprep.mubr.bf16.mxu1 %v4279_v62  ;;  %v13926_v59 = vld [vmem:[#allocation8 + $0x768] ss:$16 sps:$4 sm:$0xff]   ;;  %v13931_v60 = vld [vmem:[#allocation8 + $0x784] ss:$16 sps:$4 sm:$0xff]   ;;  %v13934_v61 = vld [vmem:[#allocation8 + $0x78c] ss:$16 sps:$4 sm:$0xff]  }
 0x381   : > { %5093 = vmatprep.subr.bf16.mxu0 %v13865_v63  ;;  %5179 = vmatprep.subr.bf16.mxu1 %v13868_v0  ;;  %v13929_v62 = vld [vmem:[#allocation8 + $0x780] ss:$16 sps:$4 sm:$0xff]   ;;  %v13932_v63 = vld [vmem:[#allocation8 + $0x788] ss:$16 sps:$4 sm:$0xff]   ;;  %v13937_v0 = vld [vmem:[#allocation8 + $0x7a4] ss:$16 sps:$4 sm:$0xff]  }
 0x383   : > { %5094 = vmatpush1.bf16.msra.mxu0 %v13863_v2  ;;  %5180 = vmatpush1.bf16.msra.mxu1 %v13866_v3  ;;  %v13940_v2 = vld [vmem:[#allocation8 + $0x7ac] ss:$16 sps:$4 sm:$0xff]   ;;  %v13935_v3 = vld [vmem:[#allocation8 + $0x7a0] ss:$16 sps:$4 sm:$0xff]  }
 0x384   : > { %5095 = vmatprep.subr.bf16.mxu0 %v13871_v4  ;;  %5181 = vmatprep.subr.bf16.mxu1 %v13874_v5  ;;  %v13938_v4 = vld [vmem:[#allocation8 + $0x7a8] ss:$16 sps:$4 sm:$0xff]   ;;  %v13943_v5 = vld [vmem:[#allocation8 + $0x7c4] ss:$16 sps:$4 sm:$0xff]  }
 0x387   : > { %5096 = vmatpush1.bf16.msra.mxu0 %v13869_v6  ;;  %5182 = vmatpush1.bf16.msra.mxu1 %v13872_v7  ;;  %v13946_v6 = vld [vmem:[#allocation8 + $0x7cc] ss:$16 sps:$4 sm:$0xff]   ;;  %v13941_v7 = vld [vmem:[#allocation8 + $0x7c0] ss:$16 sps:$4 sm:$0xff]  }
 0x388   : > { %5097 = vmatprep.subr.bf16.mxu0 %v13877_v8  ;;  %5183 = vmatprep.subr.bf16.mxu1 %v13880_v9  ;;  %v13944_v8 = vld [vmem:[#allocation8 + $0x7c8] ss:$16 sps:$4 sm:$0xff]   ;;  %v13949_v9 = vld [vmem:[#allocation8 + $0x7e4] ss:$16 sps:$4 sm:$0xff]  }
 0x38b   : > { %5098 = vmatpush1.bf16.msra.mxu0 %v13875_v10  ;;  %5184 = vmatpush1.bf16.msra.mxu1 %v13878_v11  ;;  %v13952_v10 = vld [vmem:[#allocation8 + $0x7ec] ss:$16 sps:$4 sm:$0xff]   ;;  %v13947_v11 = vld [vmem:[#allocation8 + $0x7e0] ss:$16 sps:$4 sm:$0xff]  }
 0x38c   : > { %5099 = vmatprep.subr.bf16.mxu0 %v13883_v12  ;;  %5185 = vmatprep.subr.bf16.mxu1 %v13886_v13  ;;  %v13950_v12 = vld [vmem:[#allocation8 + $0x7e8] ss:$16 sps:$4 sm:$0xff]   ;;  %v13955_v13 = vld [vmem:[#allocation8 + $0x4] ss:$16 sps:$4 sm:$0xff]  }
 0x38f   : > { %5100 = vmatpush1.bf16.msra.mxu0 %v13881_v14  ;;  %5186 = vmatpush1.bf16.msra.mxu1 %v13884_v16  ;;  %v13958_v14 = vld [vmem:[#allocation8 + $0xc] ss:$16 sps:$4 sm:$0xff]   ;;  %v13953_v16 = vld [vmem:[#allocation8] ss:$16 sps:$4 sm:$0xff]  }
 0x390   : > { %5101 = vmatprep.subr.bf16.mxu0 %v13889_v17  ;;  %5187 = vmatprep.subr.bf16.mxu1 %v13892_v18  ;;  %v13956_v17 = vld [vmem:[#allocation8 + $0x8] ss:$16 sps:$4 sm:$0xff]   ;;  %v13961_v18 = vld [vmem:[#allocation8 + $0x24] ss:$16 sps:$4 sm:$0xff]  }
 0x393   : > { %5102 = vmatpush1.bf16.msra.mxu0 %v13887_v19  ;;  %5188 = vmatpush1.bf16.msra.mxu1 %v13890_v20  ;;  %v13964_v19 = vld [vmem:[#allocation8 + $0x2c] ss:$16 sps:$4 sm:$0xff]   ;;  %v13959_v20 = vld [vmem:[#allocation8 + $0x20] ss:$16 sps:$4 sm:$0xff]  }
 0x394   : > { %5103 = vmatprep.subr.bf16.mxu0 %v13895_v21  ;;  %5189 = vmatprep.subr.bf16.mxu1 %v13898_v22  ;;  %v13962_v21 = vld [vmem:[#allocation8 + $0x28] ss:$16 sps:$4 sm:$0xff]   ;;  %v13967_v22 = vld [vmem:[#allocation8 + $0x44] ss:$16 sps:$4 sm:$0xff]  }
 0x397   : > { %5104 = vmatpush1.bf16.msra.mxu0 %v13893_v23  ;;  %5190 = vmatpush1.bf16.msra.mxu1 %v13896_v24  ;;  %v13970_v23 = vld [vmem:[#allocation8 + $0x4c] ss:$16 sps:$4 sm:$0xff]   ;;  %v13965_v24 = vld [vmem:[#allocation8 + $0x40] ss:$16 sps:$4 sm:$0xff]  }
 0x398   : > { %5105 = vmatprep.subr.bf16.mxu0 %v13901_v26  ;;  %5191 = vmatprep.subr.bf16.mxu1 %v13904_v27  ;;  %v13968_v26 = vld [vmem:[#allocation8 + $0x48] ss:$16 sps:$4 sm:$0xff]   ;;  %v13973_v27 = vld [vmem:[#allocation8 + $0x64] ss:$16 sps:$4 sm:$0xff]  }
 0x39b   : > { %5106 = vmatpush1.bf16.msra.mxu0 %v13899_v29  ;;  %5192 = vmatpush1.bf16.msra.mxu1 %v13902_v31  ;;  %v13971_v29 = vld [vmem:[#allocation8 + $0x60] ss:$16 sps:$4 sm:$0xff]   ;;  %v13974_v31 = vld [vmem:[#allocation8 + $0x68] ss:$16 sps:$4 sm:$0xff]  }
 0x39c   : > { %5107 = vmatprep.subr.bf16.mxu0 %v13907_v32  ;;  %5193 = vmatprep.subr.bf16.mxu1 %v13910_v33  ;;  %v13979_v32 = vld [vmem:[#allocation8 + $0x84] ss:$16 sps:$4 sm:$0xff]   ;;  %v13977_v33 = vld [vmem:[#allocation8 + $0x80] ss:$16 sps:$4 sm:$0xff]  }
 0x39f   : > { %5108 = vmatpush1.bf16.msra.mxu0 %v13905_v38  ;;  %5194 = vmatpush1.bf16.msra.mxu1 %v13908_v40  ;;  %v13980_v38 = vld [vmem:[#allocation8 + $0x88] ss:$16 sps:$4 sm:$0xff]   ;;  %v13985_v40 = vld [vmem:[#allocation8 + $0xa4] ss:$16 sps:$4 sm:$0xff]  }
 0x3a0   : > { %5109 = vmatprep.subr.bf16.mxu0 %v13913_v43  ;;  %5195 = vmatprep.subr.bf16.mxu1 %v13916_v44  ;;  %v13988_v43 = vld [vmem:[#allocation8 + $0xac] ss:$16 sps:$4 sm:$0xff]   ;;  %v13983_v44 = vld [vmem:[#allocation8 + $0xa0] ss:$16 sps:$4 sm:$0xff]  }
 0x3a3   : > { %5110 = vmatpush1.bf16.msra.mxu0 %v13911_v45  ;;  %5196 = vmatpush1.bf16.msra.mxu1 %v13914_v48  ;;  %v13986_v45 = vld [vmem:[#allocation8 + $0xa8] ss:$16 sps:$4 sm:$0xff]   ;;  %v13991_v48 = vld [vmem:[#allocation8 + $0xc4] ss:$16 sps:$4 sm:$0xff]  }
 0x3a4   : > { %5111 = vmatprep.subr.bf16.mxu0 %v13919_v49  ;;  %5197 = vmatprep.subr.bf16.mxu1 %v13922_v50  ;;  %v13994_v49 = vld [vmem:[#allocation8 + $0xcc] ss:$16 sps:$4 sm:$0xff]   ;;  %v13989_v50 = vld [vmem:[#allocation8 + $0xc0] ss:$16 sps:$4 sm:$0xff]  }
 0x3a7   : > { %5112 = vmatpush1.bf16.msra.mxu0 %v13917_v51  ;;  %5198 = vmatpush1.bf16.msra.mxu1 %v13920_v52  ;;  %v13992_v51 = vld [vmem:[#allocation8 + $0xc8] ss:$16 sps:$4 sm:$0xff]   ;;  %v13997_v52 = vld [vmem:[#allocation8 + $0xe4] ss:$16 sps:$4 sm:$0xff]  }
 0x3a8   : > { %5113 = vmatprep.subr.bf16.mxu0 %v13925_v53  ;;  %5199 = vmatprep.subr.bf16.mxu1 %v13928_v54  ;;  %v14000_v53 = vld [vmem:[#allocation8 + $0xec] ss:$16 sps:$4 sm:$0xff]   ;;  %v13995_v54 = vld [vmem:[#allocation8 + $0xe0] ss:$16 sps:$4 sm:$0xff]  }
 0x3ab   : > { %5114 = vmatpush1.bf16.msra.mxu0 %v13923_v56  ;;  %5200 = vmatpush1.bf16.msra.mxu1 %v13926_v59  ;;  %v13998_v56 = vld [vmem:[#allocation8 + $0xe8] ss:$16 sps:$4 sm:$0xff]   ;;  %v14003_v59 = vld [vmem:[#allocation8 + $0x104] ss:$16 sps:$4 sm:$0xff]  }
 0x3ac   : > { %5115 = vmatprep.subr.bf16.mxu0 %v13931_v60  ;;  %5201 = vmatprep.subr.bf16.mxu1 %v13934_v61  ;;  %v14006_v60 = vld [vmem:[#allocation8 + $0x10c] ss:$16 sps:$4 sm:$0xff]   ;;  %v14001_v61 = vld [vmem:[#allocation8 + $0x100] ss:$16 sps:$4 sm:$0xff]  }
 0x3af   : > { %5116 = vmatpush1.bf16.msra.mxu0 %v13929_v62  ;;  %5202 = vmatpush1.bf16.msra.mxu1 %v13932_v63  ;;  %v14004_v62 = vld [vmem:[#allocation8 + $0x108] ss:$16 sps:$4 sm:$0xff]   ;;  %v14009_v63 = vld [vmem:[#allocation8 + $0x124] ss:$16 sps:$4 sm:$0xff]  }
 0x3b0   : > { %5117 = vmatprep.subr.bf16.mxu0 %v13937_v0  ;;  %5203 = vmatprep.subr.bf16.mxu1 %v13940_v2  ;;  %v14012_v0 = vld [vmem:[#allocation8 + $0x12c] ss:$16 sps:$4 sm:$0xff]   ;;  %v14007_v2 = vld [vmem:[#allocation8 + $0x120] ss:$16 sps:$4 sm:$0xff]  }
 0x3b3   : > { %5118 = vmatpush1.bf16.msra.mxu0 %v13935_v3  ;;  %5204 = vmatpush1.bf16.msra.mxu1 %v13938_v4  ;;  %v14010_v3 = vld [vmem:[#allocation8 + $0x128] ss:$16 sps:$4 sm:$0xff]   ;;  %v14015_v4 = vld [vmem:[#allocation8 + $0x144] ss:$16 sps:$4 sm:$0xff]  }
 0x3b4   : > { %5119 = vmatprep.subr.bf16.mxu0 %v13943_v5  ;;  %5205 = vmatprep.subr.bf16.mxu1 %v13946_v6  ;;  %v14018_v5 = vld [vmem:[#allocation8 + $0x14c] ss:$16 sps:$4 sm:$0xff]   ;;  %v14013_v6 = vld [vmem:[#allocation8 + $0x140] ss:$16 sps:$4 sm:$0xff]  }
 0x3b7   : > { %5120 = vmatpush1.bf16.msra.mxu0 %v13941_v7  ;;  %5206 = vmatpush1.bf16.msra.mxu1 %v13944_v8  ;;  %v14016_v7 = vld [vmem:[#allocation8 + $0x148] ss:$16 sps:$4 sm:$0xff]   ;;  %v14021_v8 = vld [vmem:[#allocation8 + $0x164] ss:$16 sps:$4 sm:$0xff]  }
 0x3b8   : > { %5121 = vmatprep.subr.bf16.mxu0 %v13949_v9  ;;  %5207 = vmatprep.subr.bf16.mxu1 %v13952_v10  ;;  %v14024_v9 = vld [vmem:[#allocation8 + $0x16c] ss:$16 sps:$4 sm:$0xff]   ;;  %v14019_v10 = vld [vmem:[#allocation8 + $0x160] ss:$16 sps:$4 sm:$0xff]  }
 0x3bb   : > { %5122 = vmatpush1.bf16.msra.mxu0 %v13947_v11  ;;  %5208 = vmatpush1.bf16.msra.mxu1 %v13950_v12  ;;  %v14022_v11 = vld [vmem:[#allocation8 + $0x168] ss:$16 sps:$4 sm:$0xff]   ;;  %v14027_v12 = vld [vmem:[#allocation8 + $0x184] ss:$16 sps:$4 sm:$0xff]  }
 0x3bc   : > { %5860 = vmatprep.subr.bf16.mxu0 %v13955_v13  ;;  %5946 = vmatprep.subr.bf16.mxu1 %v13958_v14  ;;  %v14030_v13 = vld [vmem:[#allocation8 + $0x18c] ss:$16 sps:$4 sm:$0xff]   ;;  %v14025_v14 = vld [vmem:[#allocation8 + $0x180] ss:$16 sps:$4 sm:$0xff]  }
 0x3be   : > { %5124 = vmatmul.mubr.bf16.vlgmr.msra.gmra.mrb[8].mxu0 %v15116_v57  ;;  %5210 = vmatmul.mubr.bf16.vlgmr.msra.gmra.mrb[8].mxu1 %v15116_v57  ;;  %v13976_v57 = vld [vmem:[#allocation8 + $0x6c] ss:$16 sps:$4 sm:$0xff]  }
 0x3bf   : > { %5861 = vmatpush1.bf16.msra.mxu0 %v13953_v16  ;;  %5892 = vmatprep.mubr.bf16.mxu0 %v15106_v42  ;;  %v14028_v16 = vld [vmem:[#allocation8 + $0x188] ss:$16 sps:$4 sm:$0xff]  }
 0x3c0   : > { %5947 = vmatpush1.bf16.msra.mxu1 %v13956_v17  ;;  %5978 = vmatprep.mubr.bf16.mxu1 %v15106_v42  ;;  %v13982_v42 = vld [vmem:[#allocation8 + $0x8c] ss:$16 sps:$4 sm:$0xff]   ;;  %v14033_v17 = vld [vmem:[#allocation8 + $0x1a4] ss:$16 sps:$4 sm:$0xff]  }
 0x3c1   : > { %5862 = vmatprep.subr.bf16.mxu0 %v13961_v18  ;;  %5948 = vmatprep.subr.bf16.mxu1 %v13964_v19  ;;  %v14036_v18 = vld [vmem:[#allocation8 + $0x1ac] ss:$16 sps:$4 sm:$0xff]   ;;  %v14031_v19 = vld [vmem:[#allocation8 + $0x1a0] ss:$16 sps:$4 sm:$0xff]  }
 0x3c3   : > { %5863 = vmatpush1.bf16.msra.mxu0 %v13959_v20  ;;  %v14034_v20 = vld [vmem:[#allocation8 + $0x1a8] ss:$16 sps:$4 sm:$0xff]  }
 0x3c4   : > { %5949 = vmatpush1.bf16.msra.mxu1 %v13962_v21  ;;  %5864 = vmatprep.subr.bf16.mxu0 %v13967_v22  ;;  %v14039_v21 = vld [vmem:[#allocation8 + $0x1c4] ss:$16 sps:$4 sm:$0xff]   ;;  %v14042_v22 = vld [vmem:[#allocation8 + $0x1cc] ss:$16 sps:$4 sm:$0xff]  }
 0x3c5   : > { %5950 = vmatprep.subr.bf16.mxu1 %v13970_v23  ;;  %v14037_v23 = vld [vmem:[#allocation8 + $0x1c0] ss:$16 sps:$4 sm:$0xff]  }
 0x3c7   : > { %5865 = vmatpush1.bf16.msra.mxu0 %v13965_v24  ;;  %v14040_v24 = vld [vmem:[#allocation8 + $0x1c8] ss:$16 sps:$4 sm:$0xff]  }
 0x3c8   : > { %5951 = vmatpush1.bf16.msra.mxu1 %v13968_v26  ;;  %5866 = vmatprep.subr.bf16.mxu0 %v13973_v27  ;;  %v14045_v26 = vld [vmem:[#allocation8 + $0x1e4] ss:$16 sps:$4 sm:$0xff]   ;;  %v14048_v27 = vld [vmem:[#allocation8 + $0x1ec] ss:$16 sps:$4 sm:$0xff]  }
 0x3c9   : > { %5952 = vmatprep.subr.bf16.mxu1 %v13976_v57  ;;  %v14043_v57 = vld [vmem:[#allocation8 + $0x1e0] ss:$16 sps:$4 sm:$0xff]  }
 0x3cb   : > { %5867 = vmatpush1.bf16.msra.mxu0 %v13971_v29  ;;  %v14046_v29 = vld [vmem:[#allocation8 + $0x1e8] ss:$16 sps:$4 sm:$0xff]  }
 0x3cc   : > { %5953 = vmatpush1.bf16.msra.mxu1 %v13974_v31  ;;  %5868 = vmatprep.subr.bf16.mxu0 %v13979_v32  ;;  %v14051_v31 = vld [vmem:[#allocation8 + $0x204] ss:$16 sps:$4 sm:$0xff]   ;;  %v14054_v32 = vld [vmem:[#allocation8 + $0x20c] ss:$16 sps:$4 sm:$0xff]  }
 0x3cd   : > { %5954 = vmatprep.subr.bf16.mxu1 %v13982_v42  ;;  %v14049_v42 = vld [vmem:[#allocation8 + $0x200] ss:$16 sps:$4 sm:$0xff]  }
 0x3cf   : > { %5869 = vmatpush1.bf16.msra.mxu0 %v13977_v33  ;;  %v14052_v33 = vld [vmem:[#allocation8 + $0x208] ss:$16 sps:$4 sm:$0xff]  }
 0x3d0   : > { %5955 = vmatpush1.bf16.msra.mxu1 %v13980_v38  ;;  %5870 = vmatprep.subr.bf16.mxu0 %v13985_v40  ;;  %v14057_v38 = vld [vmem:[#allocation8 + $0x224] ss:$16 sps:$4 sm:$0xff]   ;;  %v14060_v40 = vld [vmem:[#allocation8 + $0x22c] ss:$16 sps:$4 sm:$0xff]  }
 0x3d1   : > { %5956 = vmatprep.subr.bf16.mxu1 %v13988_v43  ;;  %v14055_v43 = vld [vmem:[#allocation8 + $0x220] ss:$16 sps:$4 sm:$0xff]  }
 0x3d3   : > { %5871 = vmatpush1.bf16.msra.mxu0 %v13983_v44  ;;  %v14058_v44 = vld [vmem:[#allocation8 + $0x228] ss:$16 sps:$4 sm:$0xff]  }
 0x3d4   : > { %5957 = vmatpush1.bf16.msra.mxu1 %v13986_v45  ;;  %5872 = vmatprep.subr.bf16.mxu0 %v13991_v48  ;;  %v14063_v45 = vld [vmem:[#allocation8 + $0x244] ss:$16 sps:$4 sm:$0xff]   ;;  %v14066_v48 = vld [vmem:[#allocation8 + $0x24c] ss:$16 sps:$4 sm:$0xff]  }
 0x3d5   : > { %5958 = vmatprep.subr.bf16.mxu1 %v13994_v49  ;;  %v14061_v49 = vld [vmem:[#allocation8 + $0x240] ss:$16 sps:$4 sm:$0xff]  }
 0x3d7   : > { %5873 = vmatpush1.bf16.msra.mxu0 %v13989_v50  ;;  %v14064_v50 = vld [vmem:[#allocation8 + $0x248] ss:$16 sps:$4 sm:$0xff]  }
 0x3d8   : > { %5959 = vmatpush1.bf16.msra.mxu1 %v13992_v51  ;;  %5874 = vmatprep.subr.bf16.mxu0 %v13997_v52  ;;  %v14069_v51 = vld [vmem:[#allocation8 + $0x264] ss:$16 sps:$4 sm:$0xff]   ;;  %v14067_v52 = vld [vmem:[#allocation8 + $0x260] ss:$16 sps:$4 sm:$0xff]  }
 0x3d9   : > { %5960 = vmatprep.subr.bf16.mxu1 %v14000_v53  ;;  %v14070_v53 = vld [vmem:[#allocation8 + $0x268] ss:$16 sps:$4 sm:$0xff]  }
 0x3db   : > { %5875 = vmatpush1.bf16.msra.mxu0 %v13995_v54  ;;  %v14075_v54 = vld [vmem:[#allocation8 + $0x284] ss:$16 sps:$4 sm:$0xff]  }
 0x3dc   : > { %5961 = vmatpush1.bf16.msra.mxu1 %v13998_v56  ;;  %5876 = vmatprep.subr.bf16.mxu0 %v14003_v59  ;;  %v14078_v56 = vld [vmem:[#allocation8 + $0x28c] ss:$16 sps:$4 sm:$0xff]   ;;  %v14076_v59 = vld [vmem:[#allocation8 + $0x288] ss:$16 sps:$4 sm:$0xff]  }
 0x3dd   : > { %5962 = vmatprep.subr.bf16.mxu1 %v14006_v60  ;;  %v14081_v60 = vld [vmem:[#allocation8 + $0x2a4] ss:$16 sps:$4 sm:$0xff]  }
 0x3df   : > { %5877 = vmatpush1.bf16.msra.mxu0 %v14001_v61  ;;  %v14084_v61 = vld [vmem:[#allocation8 + $0x2ac] ss:$16 sps:$4 sm:$0xff]  }
 0x3e0   : > { %5963 = vmatpush1.bf16.msra.mxu1 %v14004_v62  ;;  %5878 = vmatprep.subr.bf16.mxu0 %v14009_v63  ;;  %v14079_v62 = vld [vmem:[#allocation8 + $0x2a0] ss:$16 sps:$4 sm:$0xff]   ;;  %v14082_v63 = vld [vmem:[#allocation8 + $0x2a8] ss:$16 sps:$4 sm:$0xff]  }
 0x3e1   : > { %5964 = vmatprep.subr.bf16.mxu1 %v14012_v0  ;;  %v14087_v0 = vld [vmem:[#allocation8 + $0x2c4] ss:$16 sps:$4 sm:$0xff]  }
 0x3e3   : > { %5879 = vmatpush1.bf16.msra.mxu0 %v14007_v2  ;;  %v14090_v2 = vld [vmem:[#allocation8 + $0x2cc] ss:$16 sps:$4 sm:$0xff]  }
 0x3e4   : > { %5965 = vmatpush1.bf16.msra.mxu1 %v14010_v3  ;;  %5880 = vmatprep.subr.bf16.mxu0 %v14015_v4  ;;  %v14085_v3 = vld [vmem:[#allocation8 + $0x2c0] ss:$16 sps:$4 sm:$0xff]   ;;  %v14088_v4 = vld [vmem:[#allocation8 + $0x2c8] ss:$16 sps:$4 sm:$0xff]  }
 0x3e5   : > { %5966 = vmatprep.subr.bf16.mxu1 %v14018_v5  ;;  %v14093_v5 = vld [vmem:[#allocation8 + $0x2e4] ss:$16 sps:$4 sm:$0xff]  }
 0x3e7   : > { %5881 = vmatpush1.bf16.msra.mxu0 %v14013_v6  ;;  %v14096_v6 = vld [vmem:[#allocation8 + $0x2ec] ss:$16 sps:$4 sm:$0xff]  }
 0x3e8   : > { %5967 = vmatpush1.bf16.msra.mxu1 %v14016_v7  ;;  %5882 = vmatprep.subr.bf16.mxu0 %v14021_v8  ;;  %v14091_v7 = vld [vmem:[#allocation8 + $0x2e0] ss:$16 sps:$4 sm:$0xff]   ;;  %v14094_v8 = vld [vmem:[#allocation8 + $0x2e8] ss:$16 sps:$4 sm:$0xff]  }
 0x3e9   : > { %5968 = vmatprep.subr.bf16.mxu1 %v14024_v9  ;;  %v14099_v9 = vld [vmem:[#allocation8 + $0x304] ss:$16 sps:$4 sm:$0xff]  }
 0x3eb   : > { %5883 = vmatpush1.bf16.msra.mxu0 %v14019_v10  ;;  %v14102_v10 = vld [vmem:[#allocation8 + $0x30c] ss:$16 sps:$4 sm:$0xff]  }
 0x3ec   : > { %5969 = vmatpush1.bf16.msra.mxu1 %v14022_v11  ;;  %5884 = vmatprep.subr.bf16.mxu0 %v14027_v12  ;;  %v14097_v11 = vld [vmem:[#allocation8 + $0x300] ss:$16 sps:$4 sm:$0xff]   ;;  %v14100_v12 = vld [vmem:[#allocation8 + $0x308] ss:$16 sps:$4 sm:$0xff]  }
 0x3ed   : > { %5970 = vmatprep.subr.bf16.mxu1 %v14030_v13  ;;  %v14105_v13 = vld [vmem:[#allocation8 + $0x324] ss:$16 sps:$4 sm:$0xff]  }
 0x3ef   : > { %5885 = vmatpush1.bf16.msra.mxu0 %v14025_v14  ;;  %v14108_v14 = vld [vmem:[#allocation8 + $0x32c] ss:$16 sps:$4 sm:$0xff]  }
 0x3f0   : > { %5971 = vmatpush1.bf16.msra.mxu1 %v14028_v16  ;;  %5886 = vmatprep.subr.bf16.mxu0 %v14033_v17  ;;  %v14103_v16 = vld [vmem:[#allocation8 + $0x320] ss:$16 sps:$4 sm:$0xff]   ;;  %v14106_v17 = vld [vmem:[#allocation8 + $0x328] ss:$16 sps:$4 sm:$0xff]  }
 0x3f1   : > { %5972 = vmatprep.subr.bf16.mxu1 %v14036_v18  ;;  %v14111_v18 = vld [vmem:[#allocation8 + $0x344] ss:$16 sps:$4 sm:$0xff]  }
 0x3f3   : > { %5887 = vmatpush1.bf16.msra.mxu0 %v14031_v19  ;;  %v14114_v19 = vld [vmem:[#allocation8 + $0x34c] ss:$16 sps:$4 sm:$0xff]  }
 0x3f4   : > { %5973 = vmatpush1.bf16.msra.mxu1 %v14034_v20  ;;  %5888 = vmatprep.subr.bf16.mxu0 %v14039_v21  ;;  %v14109_v20 = vld [vmem:[#allocation8 + $0x340] ss:$16 sps:$4 sm:$0xff]   ;;  %v14112_v21 = vld [vmem:[#allocation8 + $0x348] ss:$16 sps:$4 sm:$0xff]  }
 0x3f5   : > { %5974 = vmatprep.subr.bf16.mxu1 %v14042_v22  ;;  %v14117_v22 = vld [vmem:[#allocation8 + $0x364] ss:$16 sps:$4 sm:$0xff]  }
 0x3f7   : > { %5889 = vmatpush1.bf16.msra.mxu0 %v14037_v23  ;;  %v14120_v23 = vld [vmem:[#allocation8 + $0x36c] ss:$16 sps:$4 sm:$0xff]  }
 0x3f8   : > { %5975 = vmatpush1.bf16.msra.mxu1 %v14040_v24  ;;  %5890 = vmatprep.subr.bf16.mxu0 %v14045_v26  ;;  %v14115_v24 = vld [vmem:[#allocation8 + $0x360] ss:$16 sps:$4 sm:$0xff]   ;;  %v14118_v26 = vld [vmem:[#allocation8 + $0x368] ss:$16 sps:$4 sm:$0xff]  }
 0x3f9   : > { %5976 = vmatprep.subr.bf16.mxu1 %v14048_v27  ;;  %v14123_v27 = vld [vmem:[#allocation8 + $0x384] ss:$16 sps:$4 sm:$0xff]  }
 0x3fb   : > { %5891 = vmatpush1.bf16.msra.mxu0 %v14043_v57  ;;  %v14126_v57 = vld [vmem:[#allocation8 + $0x38c] ss:$16 sps:$4 sm:$0xff]  }
 0x3fc   : > { %5977 = vmatpush1.bf16.msra.mxu1 %v14046_v29  ;;  %5903 = vmatprep.subr.bf16.mxu0 %v14051_v31  ;;  %v14121_v29 = vld [vmem:[#allocation8 + $0x380] ss:$16 sps:$4 sm:$0xff]   ;;  %v14124_v31 = vld [vmem:[#allocation8 + $0x388] ss:$16 sps:$4 sm:$0xff]  }
 0x3fd   : > { %5989 = vmatprep.subr.bf16.mxu1 %v14054_v32  ;;  %v14129_v32 = vld [vmem:[#allocation8 + $0x3a4] ss:$16 sps:$4 sm:$0xff]  }
 0x3fe   : > { %5893 = vmatmul.mubr.bf16.vlgmr.msra.gmra.mrb[8].mxu0 %v15102_v36 }
 0x3ff   : > { %5979 = vmatmul.mubr.bf16.vlgmr.msra.gmra.mrb[8].mxu1 %v15102_v36  ;;  %5904 = vmatpush1.bf16.msra.mxu0 %v14049_v42  ;;  %v14072_v36 = vld [vmem:[#allocation8 + $0x26c] ss:$16 sps:$4 sm:$0xff]  }
 0x400   : > { %5935 = vmatprep.mubr.bf16.mxu0 %v15108_v47  ;;  %5990 = vmatpush1.bf16.msra.mxu1 %v14052_v33  ;;  %v14132_v42 = vld [vmem:[#allocation8 + $0x3ac] ss:$16 sps:$4 sm:$0xff]   ;;  %v14127_v33 = vld [vmem:[#allocation8 + $0x3a0] ss:$16 sps:$4 sm:$0xff]  }
 0x401   : > { %6021 = vmatprep.mubr.bf16.mxu1 %v15108_v47  ;;  %5905 = vmatprep.subr.bf16.mxu0 %v14057_v38  ;;  %v14073_v47 = vld [vmem:[#allocation8 + $0x280] ss:$16 sps:$4 sm:$0xff]   ;;  %v14130_v38 = vld [vmem:[#allocation8 + $0x3a8] ss:$16 sps:$4 sm:$0xff]  }
 0x402   : > { %5991 = vmatprep.subr.bf16.mxu1 %v14060_v40  ;;  %v14135_v40 = vld [vmem:[#allocation8 + $0x3c4] ss:$16 sps:$4 sm:$0xff]  }
 0x403   : > { %5906 = vmatpush1.bf16.msra.mxu0 %v14055_v43  ;;  %v14138_v43 = vld [vmem:[#allocation8 + $0x3cc] ss:$16 sps:$4 sm:$0xff]  }
 0x404   : > { %5992 = vmatpush1.bf16.msra.mxu1 %v14058_v44  ;;  %5907 = vmatprep.subr.bf16.mxu0 %v14063_v45  ;;  %v14133_v44 = vld [vmem:[#allocation8 + $0x3c0] ss:$16 sps:$4 sm:$0xff]   ;;  %v14136_v45 = vld [vmem:[#allocation8 + $0x3c8] ss:$16 sps:$4 sm:$0xff]  }
 0x405   : > { %5993 = vmatprep.subr.bf16.mxu1 %v14066_v48  ;;  %v14141_v48 = vld [vmem:[#allocation8 + $0x3e4] ss:$16 sps:$4 sm:$0xff]  }
 0x407   : > { %5908 = vmatpush1.bf16.msra.mxu0 %v14061_v49  ;;  %v14144_v49 = vld [vmem:[#allocation8 + $0x3ec] ss:$16 sps:$4 sm:$0xff]  }
 0x408   : > { %5994 = vmatpush1.bf16.msra.mxu1 %v14064_v50  ;;  %5909 = vmatprep.subr.bf16.mxu0 %v14069_v51  ;;  %v6032_v50 = vld [vmem:[#allocation5 + $0x20] sm:$0xff] }
 0x409   : > { %5995 = vmatprep.subr.bf16.mxu1 %v14072_v36  ;;  %v6034_v51 = vld [vmem:[#allocation5 + $0x60] sm:$0xff]  ;;  %v6033_v36 = vld [vmem:[#allocation5 + $0x28] sm:$0xff] }
 0x40b   : > { %5910 = vmatpush1.bf16.msra.mxu0 %v14067_v52  ;;  %v6035_v52 = vld [vmem:[#allocation5 + $0x68] sm:$0xff] }
 0x40c   : > { %5996 = vmatpush1.bf16.msra.mxu1 %v14070_v53  ;;  %5911 = vmatprep.subr.bf16.mxu0 %v14075_v54  ;;  %v14139_v53 = vld [vmem:[#allocation8 + $0x3e0] ss:$16 sps:$4 sm:$0xff]   ;;  %v14142_v54 = vld [vmem:[#allocation8 + $0x3e8] ss:$16 sps:$4 sm:$0xff]  }
 0x40d   : > { %5997 = vmatprep.subr.bf16.mxu1 %v14078_v56  ;;  %v12707_v56 = vcombine.high %v6032_v50, %v6034_v51 }
 0x40f   : > { %5912 = vmatpush1.bf16.msra.mxu0 %v14073_v47  ;;  %v12709_v47 = vcombine.high %v6033_v36, %v6035_v52 }
 0x410   : > { %5998 = vmatpush1.bf16.msra.mxu1 %v14076_v59  ;;  %5913 = vmatprep.subr.bf16.mxu0 %v14081_v60  ;;  %v6036_v59 = vld [vmem:[#allocation5 + $0xa0] sm:$0xff] }
 0x411   : > { %5999 = vmatprep.subr.bf16.mxu1 %v14084_v61  ;;  %v6038_v60 = vld [vmem:[#allocation5 + $0xe0] sm:$0xff]  ;;  %v6037_v61 = vld [vmem:[#allocation5 + $0xa8] sm:$0xff] }
 0x413   : > { %5914 = vmatpush1.bf16.msra.mxu0 %v14079_v62  ;;  %v6039_v62 = vld [vmem:[#allocation5 + $0xe8] sm:$0xff] }
 0x414   : > { %6000 = vmatpush1.bf16.msra.mxu1 %v14082_v63  ;;  %5915 = vmatprep.subr.bf16.mxu0 %v14087_v0  ;;  %v12706_v63 = vcombine.low %v6032_v50, %v6034_v51  ;;  %v12708_v0 = vcombine.low %v6033_v36, %v6035_v52 }
 0x415   : > { %6001 = vmatprep.subr.bf16.mxu1 %v14090_v2  ;;  %v12711_v2 = vcombine.high %v6036_v59, %v6038_v60 }
 0x417   : > { %5916 = vmatpush1.bf16.msra.mxu0 %v14085_v3  ;;  %v12713_v3 = vcombine.high %v6037_v61, %v6039_v62 }
 0x418   : > { %6002 = vmatpush1.bf16.msra.mxu1 %v14088_v4  ;;  %5917 = vmatprep.subr.bf16.mxu0 %v14093_v5  ;;  %v6040_v4 = vld [vmem:[#allocation5 + $0x120] sm:$0xff] }
 0x419   : > { %6003 = vmatprep.subr.bf16.mxu1 %v14096_v6  ;;  %v6042_v5 = vld [vmem:[#allocation5 + $0x160] sm:$0xff]  ;;  %v6041_v6 = vld [vmem:[#allocation5 + $0x128] sm:$0xff] }
 0x41b   : > { %5918 = vmatpush1.bf16.msra.mxu0 %v14091_v7  ;;  %v6043_v7 = vld [vmem:[#allocation5 + $0x168] sm:$0xff] }
 0x41c   : > { %6004 = vmatpush1.bf16.msra.mxu1 %v14094_v8  ;;  %5919 = vmatprep.subr.bf16.mxu0 %v14099_v9  ;;  %v12710_v8 = vcombine.low %v6036_v59, %v6038_v60  ;;  %v12712_v9 = vcombine.low %v6037_v61, %v6039_v62 }
 0x41d   : > { %6005 = vmatprep.subr.bf16.mxu1 %v14102_v10  ;;  %v12715_v10 = vcombine.high %v6040_v4, %v6042_v5 }
 0x41f   : > { %5920 = vmatpush1.bf16.msra.mxu0 %v14097_v11  ;;  %v12717_v11 = vcombine.high %v6041_v6, %v6043_v7 }
 0x420   : > { %6006 = vmatpush1.bf16.msra.mxu1 %v14100_v12  ;;  %5921 = vmatprep.subr.bf16.mxu0 %v14105_v13  ;;  %v6044_v12 = vld [vmem:[#allocation5 + $0x1a0] sm:$0xff] }
 0x421   : > { %6007 = vmatprep.subr.bf16.mxu1 %v14108_v14  ;;  %v6046_v13 = vld [vmem:[#allocation5 + $0x1e0] sm:$0xff]  ;;  %v6045_v14 = vld [vmem:[#allocation5 + $0x1a8] sm:$0xff] }
 0x423   : > { %5922 = vmatpush1.bf16.msra.mxu0 %v14103_v16  ;;  %v6047_v16 = vld [vmem:[#allocation5 + $0x1e8] sm:$0xff] }
 0x424   : > { %6008 = vmatpush1.bf16.msra.mxu1 %v14106_v17  ;;  %5923 = vmatprep.subr.bf16.mxu0 %v14111_v18  ;;  %v12714_v17 = vcombine.low %v6040_v4, %v6042_v5  ;;  %v12719_v18 = vcombine.high %v6044_v12, %v6046_v13 }
 0x425   : > { %6009 = vmatprep.subr.bf16.mxu1 %v14114_v19  ;;  %v12721_v19 = vcombine.high %v6045_v14, %v6047_v16 }
 0x427   : > { %5924 = vmatpush1.bf16.msra.mxu0 %v14109_v20  ;;  %v6048_v20 = vld [vmem:[#allocation5 + $0x220] sm:$0xff] }
 0x428   : > { %6010 = vmatpush1.bf16.msra.mxu1 %v14112_v21  ;;  %5925 = vmatprep.subr.bf16.mxu0 %v14117_v22  ;;  %v6050_v21 = vld [vmem:[#allocation5 + $0x260] sm:$0xff]  ;;  %v6049_v22 = vld [vmem:[#allocation5 + $0x228] sm:$0xff] }
 0x429   : > { %6011 = vmatprep.subr.bf16.mxu1 %v14120_v23  ;;  %v6051_v23 = vld [vmem:[#allocation5 + $0x268] sm:$0xff] }
 0x42b   : > { %5926 = vmatpush1.bf16.msra.mxu0 %v14115_v24  ;;  %v12718_v24 = vcombine.low %v6044_v12, %v6046_v13 }
 0x42c   : > { %6012 = vmatpush1.bf16.msra.mxu1 %v14118_v26  ;;  %5927 = vmatprep.subr.bf16.mxu0 %v14123_v27  ;;  %v12720_v26 = vcombine.low %v6045_v14, %v6047_v16  ;;  %v12723_v27 = vcombine.high %v6048_v20, %v6050_v21 }
 0x42d   : > { %6013 = vmatprep.subr.bf16.mxu1 %v14126_v57  ;;  %v12725_v57 = vcombine.high %v6049_v22, %v6051_v23 }
 0x42f   : > { %5928 = vmatpush1.bf16.msra.mxu0 %v14121_v29  ;;  %v6052_v29 = vld [vmem:[#allocation5 + $0x2a0] sm:$0xff] }
 0x430   : > { %6014 = vmatpush1.bf16.msra.mxu1 %v14124_v31  ;;  %5929 = vmatprep.subr.bf16.mxu0 %v14129_v32  ;;  %v6054_v31 = vld [vmem:[#allocation5 + $0x2e0] sm:$0xff]  ;;  %v6053_v32 = vld [vmem:[#allocation5 + $0x2a8] sm:$0xff] }
 0x431   : > { %6015 = vmatprep.subr.bf16.mxu1 %v14132_v42  ;;  %v6055_v42 = vld [vmem:[#allocation5 + $0x2e8] sm:$0xff]  ;;  %v12726_v50 = vcombine.low %v6052_v29, %v6054_v31 }
 0x432   : > { %v12728_v51 = vcombine.low %v6053_v32, %v6055_v42 }
 0x433   : > { %5930 = vmatpush1.bf16.msra.mxu0 %v14127_v33  ;;  %v12722_v33 = vcombine.low %v6048_v20, %v6050_v21 }
 0x434   : > { %6016 = vmatpush1.bf16.msra.mxu1 %v14130_v38  ;;  %5931 = vmatprep.subr.bf16.mxu0 %v14135_v40  ;;  %v12724_v38 = vcombine.low %v6049_v22, %v6051_v23  ;;  %v12727_v40 = vcombine.high %v6052_v29, %v6054_v31 }
 0x435   : > { %6017 = vmatprep.subr.bf16.mxu1 %v14138_v43  ;;  %v12729_v43 = vcombine.high %v6053_v32, %v6055_v42 }
 0x437   : > { %5932 = vmatpush1.bf16.msra.mxu0 %v14133_v44  ;;  %v6056_v44 = vld [vmem:[#allocation5 + $0x320] sm:$0xff] }
 0x438   : > { %6018 = vmatpush1.bf16.msra.mxu1 %v14136_v45  ;;  %5933 = vmatprep.subr.bf16.mxu0 %v14141_v48  ;;  %v6058_v45 = vld [vmem:[#allocation5 + $0x360] sm:$0xff]  ;;  %v6057_v48 = vld [vmem:[#allocation5 + $0x328] sm:$0xff] }
 0x439   : > { %6019 = vmatprep.subr.bf16.mxu1 %v14144_v49  ;;  %v6059_v49 = vld [vmem:[#allocation5 + $0x368] sm:$0xff]  ;;  %v12731_v36 = vcombine.high %v6056_v44, %v6058_v45  ;;  %v12730_v59 = vcombine.low %v6056_v44, %v6058_v45 }
 0x43a   : > { %v12733_v52 = vcombine.high %v6057_v48, %v6059_v49  ;;  %v12732_v60 = vcombine.low %v6057_v48, %v6059_v49 }
 0x43b   : > { %5934 = vmatpush1.bf16.msra.mxu0 %v14139_v53  ;;  %v6060_v53 = vld [vmem:[#allocation5 + $0x3a0] sm:$0xff] }
 0x43c   : > { %6020 = vmatpush1.bf16.msra.mxu1 %v14142_v54  ;;  %7590 = vmatprep.subr.bf16.mxu0 %v12707_v56  ;;  %v6062_v54 = vld [vmem:[#allocation5 + $0x3e0] sm:$0xff]  ;;  %v6061_v56 = vld [vmem:[#allocation5 + $0x3a8] sm:$0xff] }
 0x43d   : > { %7762 = vmatprep.subr.bf16.mxu1 %v12709_v47  ;;  %v6063_v47 = vld [vmem:[#allocation5 + $0x3e8] sm:$0xff]  ;;  %v12735_v61 = vcombine.high %v6060_v53, %v6062_v54  ;;  %v12734_v4 = vcombine.low %v6060_v53, %v6062_v54 }
 0x43e   : > { %5936 = vmatmul.mubr.bf16.vlgmr.msra.gmra.mrb[8].mxu0 %v15104_v41  ;;  %v12737_v62 = vcombine.high %v6061_v56, %v6063_v47  ;;  %v12736_v5 = vcombine.low %v6061_v56, %v6063_v47 }
 0x43f   : > { %6022 = vmatmul.mubr.bf16.vlgmr.msra.gmra.mrb[8].mxu1 %v15104_v41  ;;  %7591 = vmatpush1.bf16.msra.mxu0 %v12706_v63  ;;  %v12716_v41 = vcombine.low %v6041_v6, %v6043_v7  ;;  %v6064_v63 = vld [vmem:[#allocation5 + $0x420] sm:$0xff] }
 0x440   : > { %7763 = vmatpush1.bf16.msra.mxu1 %v12708_v0  ;;  %7592 = vmatprep.subr.bf16.mxu0 %v12711_v2  ;;  %v6066_v0 = vld [vmem:[#allocation5 + $0x460] sm:$0xff]  ;;  %v6065_v2 = vld [vmem:[#allocation5 + $0x428] sm:$0xff] }
 0x441   : > { %7764 = vmatprep.subr.bf16.mxu1 %v12713_v3  ;;  %7622 = vmatprep.mubr.bf16.mxu0 %v15030_v58  ;;  %v6067_v3 = vld [vmem:[#allocation5 + $0x468] sm:$0xff]  ;;  %v12739_v6 = vcombine.high %v6064_v63, %v6066_v0  ;;  %v12738_v12 = vcombine.low %v6064_v63, %v6066_v0 }
 0x442   : > { %7794 = vmatprep.mubr.bf16.mxu1 %v15030_v58  ;;  %v12741_v7 = vcombine.high %v6065_v2, %v6067_v3  ;;  %v12740_v13 = vcombine.low %v6065_v2, %v6067_v3 }
 0x443   : > { %7593 = vmatpush1.bf16.msra.mxu0 %v12710_v8  ;;  %v6068_v8 = vld [vmem:[#allocation5 + $0x4a0] sm:$0xff] }
 0x444   : > { %7765 = vmatpush1.bf16.msra.mxu1 %v12712_v9  ;;  %7594 = vmatprep.subr.bf16.mxu0 %v12715_v10  ;;  %v6070_v9 = vld [vmem:[#allocation5 + $0x4e0] sm:$0xff]  ;;  %v6069_v10 = vld [vmem:[#allocation5 + $0x4a8] sm:$0xff] }
 0x445   : > { %7766 = vmatprep.subr.bf16.mxu1 %v12717_v11  ;;  %v6071_v11 = vld [vmem:[#allocation5 + $0x4e8] sm:$0xff]  ;;  %v12743_v14 = vcombine.high %v6068_v8, %v6070_v9  ;;  %v12742_v20 = vcombine.low %v6068_v8, %v6070_v9 }
 0x446   : > { %v12745_v16 = vcombine.high %v6069_v10, %v6071_v11  ;;  %v12744_v21 = vcombine.low %v6069_v10, %v6071_v11 }
 0x447   : > { %7595 = vmatpush1.bf16.msra.mxu0 %v12714_v17  ;;  %v6072_v17 = vld [vmem:[#allocation5 + $0x520] sm:$0xff] }
 0x448   : > { %7767 = vmatpush1.bf16.msra.mxu1 %v12716_v41  ;;  %7596 = vmatprep.subr.bf16.mxu0 %v12719_v18  ;;  %v6074_v41 = vld [vmem:[#allocation5 + $0x560] sm:$0xff]  ;;  %v6073_v18 = vld [vmem:[#allocation5 + $0x528] sm:$0xff] }
 0x449   : > { %7768 = vmatprep.subr.bf16.mxu1 %v12721_v19  ;;  %v6075_v19 = vld [vmem:[#allocation5 + $0x568] sm:$0xff]  ;;  %v12747_v22 = vcombine.high %v6072_v17, %v6074_v41  ;;  %v12746_v29 = vcombine.low %v6072_v17, %v6074_v41 }
 0x44a   : > { %v12749_v23 = vcombine.high %v6073_v18, %v6075_v19  ;;  %v12748_v31 = vcombine.low %v6073_v18, %v6075_v19 }
 0x44b   : > { %7597 = vmatpush1.bf16.msra.mxu0 %v12718_v24  ;;  %v6076_v24 = vld [vmem:[#allocation5 + $0x5a0] sm:$0xff] }
 0x44c   : > { %7769 = vmatpush1.bf16.msra.mxu1 %v12720_v26  ;;  %7598 = vmatprep.subr.bf16.mxu0 %v12723_v27  ;;  %v6078_v26 = vld [vmem:[#allocation5 + $0x5e0] sm:$0xff]  ;;  %v6077_v27 = vld [vmem:[#allocation5 + $0x5a8] sm:$0xff] }
 0x44d   : > { %7770 = vmatprep.subr.bf16.mxu1 %v12725_v57  ;;  %v6079_v57 = vld [vmem:[#allocation5 + $0x5e8] sm:$0xff]  ;;  %v12751_v32 = vcombine.high %v6076_v24, %v6078_v26  ;;  %v12750_v44 = vcombine.low %v6076_v24, %v6078_v26 }
 0x44e   : > { %v12753_v42 = vcombine.high %v6077_v27, %v6079_v57  ;;  %v12752_v45 = vcombine.low %v6077_v27, %v6079_v57 }
 0x44f   : > { %7599 = vmatpush1.bf16.msra.mxu0 %v12722_v33  ;;  %v6080_v33 = vld [vmem:[#allocation5 + $0x620] sm:$0xff] }
 0x450   : > { %7771 = vmatpush1.bf16.msra.mxu1 %v12724_v38  ;;  %7600 = vmatprep.subr.bf16.mxu0 %v12727_v40  ;;  %v6082_v38 = vld [vmem:[#allocation5 + $0x660] sm:$0xff]  ;;  %v6081_v40 = vld [vmem:[#allocation5 + $0x628] sm:$0xff] }
 0x451   : > { %7772 = vmatprep.subr.bf16.mxu1 %v12729_v43  ;;  %v6083_v43 = vld [vmem:[#allocation5 + $0x668] sm:$0xff]  ;;  %v12755_v48 = vcombine.high %v6080_v33, %v6082_v38  ;;  %v12754_v53 = vcombine.low %v6080_v33, %v6082_v38 }
 0x452   : > { %v12757_v49 = vcombine.high %v6081_v40, %v6083_v43  ;;  %v12756_v54 = vcombine.low %v6081_v40, %v6083_v43 }
 0x453   : > { %7601 = vmatpush1.bf16.msra.mxu0 %v12726_v50  ;;  %v6084_v50 = vld [vmem:[#allocation5 + $0x6a0] sm:$0xff] }
 0x454   : > { %7773 = vmatpush1.bf16.msra.mxu1 %v12728_v51  ;;  %7602 = vmatprep.subr.bf16.mxu0 %v12731_v36  ;;  %v6086_v51 = vld [vmem:[#allocation5 + $0x6e0] sm:$0xff]  ;;  %v6085_v36 = vld [vmem:[#allocation5 + $0x6a8] sm:$0xff] }
 0x455   : > { %7774 = vmatprep.subr.bf16.mxu1 %v12733_v52  ;;  %v6087_v52 = vld [vmem:[#allocation5 + $0x6e8] sm:$0xff]  ;;  %v12759_v56 = vcombine.high %v6084_v50, %v6086_v51  ;;  %v12758_v63 = vcombine.low %v6084_v50, %v6086_v51 }
 0x456   : > { %v12761_v47 = vcombine.high %v6085_v36, %v6087_v52  ;;  %v12760_v0 = vcombine.low %v6085_v36, %v6087_v52 }
 0x457   : > { %7603 = vmatpush1.bf16.msra.mxu0 %v12730_v59  ;;  %v6088_v59 = vld [vmem:[#allocation5 + $0x720] sm:$0xff] }
 0x458   : > { %7775 = vmatpush1.bf16.msra.mxu1 %v12732_v60  ;;  %7604 = vmatprep.subr.bf16.mxu0 %v12735_v61  ;;  %v6090_v60 = vld [vmem:[#allocation5 + $0x760] sm:$0xff]  ;;  %v6089_v61 = vld [vmem:[#allocation5 + $0x728] sm:$0xff] }
 0x459   : > { %7776 = vmatprep.subr.bf16.mxu1 %v12737_v62  ;;  %v6091_v62 = vld [vmem:[#allocation5 + $0x768] sm:$0xff]  ;;  %v12763_v2 = vcombine.high %v6088_v59, %v6090_v60  ;;  %v12762_v8 = vcombine.low %v6088_v59, %v6090_v60 }
 0x45a   : > { %v12765_v3 = vcombine.high %v6089_v61, %v6091_v62  ;;  %v12764_v9 = vcombine.low %v6089_v61, %v6091_v62 }
 0x45b   : > { %7605 = vmatpush1.bf16.msra.mxu0 %v12734_v4  ;;  %v6092_v4 = vld [vmem:[#allocation5 + $0x7a0] sm:$0xff] }
 0x45c   : > { %7777 = vmatpush1.bf16.msra.mxu1 %v12736_v5  ;;  %7606 = vmatprep.subr.bf16.mxu0 %v12739_v6  ;;  %v6094_v5 = vld [vmem:[#allocation5 + $0x7e0] sm:$0xff]  ;;  %v6093_v6 = vld [vmem:[#allocation5 + $0x7a8] sm:$0xff] }
 0x45d   : > { %7778 = vmatprep.subr.bf16.mxu1 %v12741_v7  ;;  %v6095_v7 = vld [vmem:[#allocation5 + $0x7e8] sm:$0xff]  ;;  %v12767_v10 = vcombine.high %v6092_v4, %v6094_v5  ;;  %v12766_v17 = vcombine.low %v6092_v4, %v6094_v5 }
 0x45e   : > { %v12769_v11 = vcombine.high %v6093_v6, %v6095_v7  ;;  %v12768_v41 = vcombine.low %v6093_v6, %v6095_v7 }
 0x45f   : > { %7607 = vmatpush1.bf16.msra.mxu0 %v12738_v12  ;;  %v6096_v12 = vld [vmem:[#allocation5 + $0x820] sm:$0xff] }
 0x460   : > { %7779 = vmatpush1.bf16.msra.mxu1 %v12740_v13  ;;  %7608 = vmatprep.subr.bf16.mxu0 %v12743_v14  ;;  %v6098_v13 = vld [vmem:[#allocation5 + $0x860] sm:$0xff]  ;;  %v6097_v14 = vld [vmem:[#allocation5 + $0x828] sm:$0xff] }
 0x461   : > { %7780 = vmatprep.subr.bf16.mxu1 %v12745_v16  ;;  %v6099_v16 = vld [vmem:[#allocation5 + $0x868] sm:$0xff]  ;;  %v12771_v18 = vcombine.high %v6096_v12, %v6098_v13  ;;  %v12770_v24 = vcombine.low %v6096_v12, %v6098_v13 }
 0x462   : > { %v12773_v19 = vcombine.high %v6097_v14, %v6099_v16  ;;  %v12772_v26 = vcombine.low %v6097_v14, %v6099_v16 }
 0x463   : > { %7609 = vmatpush1.bf16.msra.mxu0 %v12742_v20  ;;  %v6100_v20 = vld [vmem:[#allocation5 + $0x8a0] sm:$0xff] }
 0x464   : > { %7781 = vmatpush1.bf16.msra.mxu1 %v12744_v21  ;;  %7610 = vmatprep.subr.bf16.mxu0 %v12747_v22  ;;  %v6102_v21 = vld [vmem:[#allocation5 + $0x8e0] sm:$0xff]  ;;  %v6101_v22 = vld [vmem:[#allocation5 + $0x8a8] sm:$0xff] }
 0x465   : > { %7782 = vmatprep.subr.bf16.mxu1 %v12749_v23  ;;  %v6103_v23 = vld [vmem:[#allocation5 + $0x8e8] sm:$0xff]  ;;  %v12775_v27 = vcombine.high %v6100_v20, %v6102_v21  ;;  %v12774_v33 = vcombine.low %v6100_v20, %v6102_v21 }
 0x466   : > { %v12777_v57 = vcombine.high %v6101_v22, %v6103_v23  ;;  %v12776_v38 = vcombine.low %v6101_v22, %v6103_v23 }
 0x467   : > { %7611 = vmatpush1.bf16.msra.mxu0 %v12746_v29  ;;  %v6104_v29 = vld [vmem:[#allocation5 + $0x920] sm:$0xff] }
 0x468   : > { %7783 = vmatpush1.bf16.msra.mxu1 %v12748_v31  ;;  %7612 = vmatprep.subr.bf16.mxu0 %v12751_v32  ;;  %v6106_v31 = vld [vmem:[#allocation5 + $0x960] sm:$0xff]  ;;  %v6105_v32 = vld [vmem:[#allocation5 + $0x928] sm:$0xff] }
 0x469   : > { %7784 = vmatprep.subr.bf16.mxu1 %v12753_v42  ;;  %v6107_v42 = vld [vmem:[#allocation5 + $0x968] sm:$0xff]  ;;  %v12779_v40 = vcombine.high %v6104_v29, %v6106_v31  ;;  %v12778_v50 = vcombine.low %v6104_v29, %v6106_v31 }
 0x46a   : > { %v12781_v43 = vcombine.high %v6105_v32, %v6107_v42  ;;  %v12780_v51 = vcombine.low %v6105_v32, %v6107_v42 }
 0x46b   : > { %7613 = vmatpush1.bf16.msra.mxu0 %v12750_v44  ;;  %v6108_v44 = vld [vmem:[#allocation5 + $0x9a0] sm:$0xff] }
 0x46c   : > { %7785 = vmatpush1.bf16.msra.mxu1 %v12752_v45  ;;  %7614 = vmatprep.subr.bf16.mxu0 %v12755_v48  ;;  %v6110_v45 = vld [vmem:[#allocation5 + $0x9e0] sm:$0xff]  ;;  %v6109_v48 = vld [vmem:[#allocation5 + $0x9a8] sm:$0xff] }
 0x46d   : > { %7786 = vmatprep.subr.bf16.mxu1 %v12757_v49  ;;  %v6111_v49 = vld [vmem:[#allocation5 + $0x9e8] sm:$0xff]  ;;  %v12783_v36 = vcombine.high %v6108_v44, %v6110_v45  ;;  %v12782_v59 = vcombine.low %v6108_v44, %v6110_v45 }
 0x46e   : > { %v12785_v52 = vcombine.high %v6109_v48, %v6111_v49  ;;  %v12784_v60 = vcombine.low %v6109_v48, %v6111_v49 }
 0x46f   : > { %7615 = vmatpush1.bf16.msra.mxu0 %v12754_v53  ;;  %v6112_v53 = vld [vmem:[#allocation5 + $0xa20] sm:$0xff] }
 0x470   : > { %7787 = vmatpush1.bf16.msra.mxu1 %v12756_v54  ;;  %7616 = vmatprep.subr.bf16.mxu0 %v12759_v56  ;;  %v6114_v54 = vld [vmem:[#allocation5 + $0xa60] sm:$0xff]  ;;  %v6113_v56 = vld [vmem:[#allocation5 + $0xa28] sm:$0xff] }
 0x471   : > { %7788 = vmatprep.subr.bf16.mxu1 %v12761_v47  ;;  %v6115_v47 = vld [vmem:[#allocation5 + $0xa68] sm:$0xff]  ;;  %v12787_v61 = vcombine.high %v6112_v53, %v6114_v54  ;;  %v12786_v4 = vcombine.low %v6112_v53, %v6114_v54 }
 0x472   : > { %v12789_v62 = vcombine.high %v6113_v56, %v6115_v47  ;;  %v12788_v5 = vcombine.low %v6113_v56, %v6115_v47 }
 0x473   : > { %7617 = vmatpush1.bf16.msra.mxu0 %v12758_v63  ;;  %v6116_v63 = vld [vmem:[#allocation5 + $0xaa0] sm:$0xff] }
 0x474   : > { %7789 = vmatpush1.bf16.msra.mxu1 %v12760_v0  ;;  %7618 = vmatprep.subr.bf16.mxu0 %v12763_v2  ;;  %v6118_v0 = vld [vmem:[#allocation5 + $0xae0] sm:$0xff]  ;;  %v6117_v2 = vld [vmem:[#allocation5 + $0xaa8] sm:$0xff] }
 0x475   : > { %7790 = vmatprep.subr.bf16.mxu1 %v12765_v3  ;;  %v6119_v3 = vld [vmem:[#allocation5 + $0xae8] sm:$0xff]  ;;  %v12791_v6 = vcombine.high %v6116_v63, %v6118_v0  ;;  %v12790_v12 = vcombine.low %v6116_v63, %v6118_v0 }
 0x476   : > { %v12793_v7 = vcombine.high %v6117_v2, %v6119_v3  ;;  %v12792_v13 = vcombine.low %v6117_v2, %v6119_v3 }
 0x477   : > { %7619 = vmatpush1.bf16.msra.mxu0 %v12762_v8  ;;  %v6120_v8 = vld [vmem:[#allocation5 + $0xb20] sm:$0xff] }
 0x478   : > { %7791 = vmatpush1.bf16.msra.mxu1 %v12764_v9  ;;  %7620 = vmatprep.subr.bf16.mxu0 %v12767_v10  ;;  %v6122_v9 = vld [vmem:[#allocation5 + $0xb60] sm:$0xff]  ;;  %v6121_v10 = vld [vmem:[#allocation5 + $0xb28] sm:$0xff] }
 0x479   : > { %7792 = vmatprep.subr.bf16.mxu1 %v12769_v11  ;;  %v6123_v11 = vld [vmem:[#allocation5 + $0xb68] sm:$0xff]  ;;  %v12795_v14 = vcombine.high %v6120_v8, %v6122_v9  ;;  %v12794_v20 = vcombine.low %v6120_v8, %v6122_v9 }
 0x47a   : > { %v12797_v16 = vcombine.high %v6121_v10, %v6123_v11  ;;  %v12796_v21 = vcombine.low %v6121_v10, %v6123_v11 }
 0x47b   : > { %7621 = vmatpush1.bf16.msra.mxu0 %v12766_v17  ;;  %v6124_v17 = vld [vmem:[#allocation5 + $0xba0] sm:$0xff] }
 0x47c   : > { %7793 = vmatpush1.bf16.msra.mxu1 %v12768_v41  ;;  %7633 = vmatprep.subr.bf16.mxu0 %v12771_v18  ;;  %v6126_v41 = vld [vmem:[#allocation5 + $0xbe0] sm:$0xff]  ;;  %v6125_v18 = vld [vmem:[#allocation5 + $0xba8] sm:$0xff] }
 0x47d   : > { %7805 = vmatprep.subr.bf16.mxu1 %v12773_v19  ;;  %v6127_v19 = vld [vmem:[#allocation5 + $0xbe8] sm:$0xff]  ;;  %v12799_v22 = vcombine.high %v6124_v17, %v6126_v41  ;;  %v12798_v29 = vcombine.low %v6124_v17, %v6126_v41 }
 0x47e   : > { %7623 = vmatmul.mubr.bf16.vlgmr.msra.gmra.mrb[12].mxu0 %v15036_v15  ;;  %v12801_v23 = vcombine.high %v6125_v18, %v6127_v19  ;;  %v12800_v31 = vcombine.low %v6125_v18, %v6127_v19 }
 0x47f   : > { %7634 = vmatpush1.bf16.msra.mxu0 %v12770_v24  ;;  %7795 = vmatmul.mubr.bf16.vlgmr.msra.gmra.mrb[12].mxu1 %v15036_v15  ;;  %v6128_v24 = vld [vmem:[#allocation5 + $0xc20] sm:$0xff] }
 0x480   : > { %7806 = vmatpush1.bf16.msra.mxu1 %v12772_v26  ;;  %7635 = vmatprep.subr.bf16.mxu0 %v12775_v27  ;;  %v6130_v26 = vld [vmem:[#allocation5 + $0xc60] sm:$0xff]  ;;  %v6129_v27 = vld [vmem:[#allocation5 + $0xc28] sm:$0xff] }
 0x481   : > { %7807 = vmatprep.subr.bf16.mxu1 %v12777_v57  ;;  %7665 = vmatprep.mubr.bf16.mxu0 %v15040_v25  ;;  %v6131_v57 = vld [vmem:[#allocation5 + $0xc68] sm:$0xff]  ;;  %v12803_v32 = vcombine.high %v6128_v24, %v6130_v26  ;;  %v12802_v44 = vcombine.low %v6128_v24, %v6130_v26 }
 0x482   : > { %7837 = vmatprep.mubr.bf16.mxu1 %v15040_v25  ;;  %v12805_v42 = vcombine.high %v6129_v27, %v6131_v57  ;;  %v12804_v45 = vcombine.low %v6129_v27, %v6131_v57 }
 0x483   : > { %7636 = vmatpush1.bf16.msra.mxu0 %v12774_v33  ;;  %v6132_v33 = vld [vmem:[#allocation5 + $0xca0] sm:$0xff] }
 0x484   : > { %7808 = vmatpush1.bf16.msra.mxu1 %v12776_v38  ;;  %7637 = vmatprep.subr.bf16.mxu0 %v12779_v40  ;;  %v6134_v38 = vld [vmem:[#allocation5 + $0xce0] sm:$0xff]  ;;  %v6133_v40 = vld [vmem:[#allocation5 + $0xca8] sm:$0xff] }
 0x485   : > { %7809 = vmatprep.subr.bf16.mxu1 %v12781_v43  ;;  %v6135_v43 = vld [vmem:[#allocation5 + $0xce8] sm:$0xff]  ;;  %v12807_v48 = vcombine.high %v6132_v33, %v6134_v38  ;;  %v12806_v53 = vcombine.low %v6132_v33, %v6134_v38 }
 0x486   : > { %v12809_v49 = vcombine.high %v6133_v40, %v6135_v43  ;;  %v12808_v54 = vcombine.low %v6133_v40, %v6135_v43 }
 0x487   : > { %7638 = vmatpush1.bf16.msra.mxu0 %v12778_v50  ;;  %v6136_v50 = vld [vmem:[#allocation5 + $0xd20] sm:$0xff] }
 0x488   : > { %7810 = vmatpush1.bf16.msra.mxu1 %v12780_v51  ;;  %7639 = vmatprep.subr.bf16.mxu0 %v12783_v36  ;;  %v6138_v51 = vld [vmem:[#allocation5 + $0xd60] sm:$0xff]  ;;  %v6137_v36 = vld [vmem:[#allocation5 + $0xd28] sm:$0xff] }
 0x489   : > { %7811 = vmatprep.subr.bf16.mxu1 %v12785_v52  ;;  %v6139_v52 = vld [vmem:[#allocation5 + $0xd68] sm:$0xff]  ;;  %v12811_v56 = vcombine.high %v6136_v50, %v6138_v51  ;;  %v12810_v63 = vcombine.low %v6136_v50, %v6138_v51 }
 0x48a   : > { %v12813_v47 = vcombine.high %v6137_v36, %v6139_v52  ;;  %v12812_v0 = vcombine.low %v6137_v36, %v6139_v52 }
 0x48b   : > { %7640 = vmatpush1.bf16.msra.mxu0 %v12782_v59  ;;  %v6140_v59 = vld [vmem:[#allocation5 + $0xda0] sm:$0xff] }
 0x48c   : > { %7812 = vmatpush1.bf16.msra.mxu1 %v12784_v60  ;;  %7641 = vmatprep.subr.bf16.mxu0 %v12787_v61  ;;  %v6142_v60 = vld [vmem:[#allocation5 + $0xde0] sm:$0xff]  ;;  %v6141_v61 = vld [vmem:[#allocation5 + $0xda8] sm:$0xff] }
 0x48d   : > { %7813 = vmatprep.subr.bf16.mxu1 %v12789_v62  ;;  %v6143_v62 = vld [vmem:[#allocation5 + $0xde8] sm:$0xff]  ;;  %v12815_v2 = vcombine.high %v6140_v59, %v6142_v60  ;;  %v12814_v8 = vcombine.low %v6140_v59, %v6142_v60 }
 0x48e   : > { %v12817_v3 = vcombine.high %v6141_v61, %v6143_v62  ;;  %v12816_v9 = vcombine.low %v6141_v61, %v6143_v62 }
 0x48f   : > { %7642 = vmatpush1.bf16.msra.mxu0 %v12786_v4  ;;  %v6144_v4 = vld [vmem:[#allocation5 + $0xe20] sm:$0xff] }
 0x490   : > { %7814 = vmatpush1.bf16.msra.mxu1 %v12788_v5  ;;  %7643 = vmatprep.subr.bf16.mxu0 %v12791_v6  ;;  %v6146_v5 = vld [vmem:[#allocation5 + $0xe60] sm:$0xff]  ;;  %v6145_v6 = vld [vmem:[#allocation5 + $0xe28] sm:$0xff] }
 0x491   : > { %7815 = vmatprep.subr.bf16.mxu1 %v12793_v7  ;;  %v6147_v7 = vld [vmem:[#allocation5 + $0xe68] sm:$0xff]  ;;  %v12819_v10 = vcombine.high %v6144_v4, %v6146_v5  ;;  %v12818_v17 = vcombine.low %v6144_v4, %v6146_v5 }
 0x492   : > { %v12821_v11 = vcombine.high %v6145_v6, %v6147_v7  ;;  %v12820_v41 = vcombine.low %v6145_v6, %v6147_v7 }
 0x493   : > { %7644 = vmatpush1.bf16.msra.mxu0 %v12790_v12  ;;  %v6148_v12 = vld [vmem:[#allocation5 + $0xea0] sm:$0xff] }
 0x494   : > { %7816 = vmatpush1.bf16.msra.mxu1 %v12792_v13  ;;  %7645 = vmatprep.subr.bf16.mxu0 %v12795_v14  ;;  %v6150_v13 = vld [vmem:[#allocation5 + $0xee0] sm:$0xff]  ;;  %v6149_v14 = vld [vmem:[#allocation5 + $0xea8] sm:$0xff] }
 0x495   : > { %7817 = vmatprep.subr.bf16.mxu1 %v12797_v16  ;;  %v6151_v16 = vld [vmem:[#allocation5 + $0xee8] sm:$0xff]  ;;  %v12823_v18 = vcombine.high %v6148_v12, %v6150_v13  ;;  %v12822_v24 = vcombine.low %v6148_v12, %v6150_v13 }
 0x496   : > { %v12825_v19 = vcombine.high %v6149_v14, %v6151_v16  ;;  %v12824_v26 = vcombine.low %v6149_v14, %v6151_v16 }
 0x497   : > { %7646 = vmatpush1.bf16.msra.mxu0 %v12794_v20  ;;  %v6152_v20 = vld [vmem:[#allocation5 + $0xf20] sm:$0xff] }
 0x498   : > { %7818 = vmatpush1.bf16.msra.mxu1 %v12796_v21  ;;  %7647 = vmatprep.subr.bf16.mxu0 %v12799_v22  ;;  %v6154_v21 = vld [vmem:[#allocation5 + $0xf60] sm:$0xff]  ;;  %v6153_v22 = vld [vmem:[#allocation5 + $0xf28] sm:$0xff] }
 0x499   : > { %7819 = vmatprep.subr.bf16.mxu1 %v12801_v23  ;;  %v6155_v23 = vld [vmem:[#allocation5 + $0xf68] sm:$0xff]  ;;  %v12827_v27 = vcombine.high %v6152_v20, %v6154_v21  ;;  %v12826_v33 = vcombine.low %v6152_v20, %v6154_v21 }
 0x49a   : > { %v12829_v57 = vcombine.high %v6153_v22, %v6155_v23  ;;  %v12828_v38 = vcombine.low %v6153_v22, %v6155_v23 }
 0x49b   : > { %7648 = vmatpush1.bf16.msra.mxu0 %v12798_v29  ;;  %v6156_v29 = vld [vmem:[#allocation5 + $0xfa0] sm:$0xff] }
 0x49c   : > { %7820 = vmatpush1.bf16.msra.mxu1 %v12800_v31  ;;  %7649 = vmatprep.subr.bf16.mxu0 %v12803_v32  ;;  %v6158_v31 = vld [vmem:[#allocation5 + $0xfe0] sm:$0xff]  ;;  %v6157_v32 = vld [vmem:[#allocation5 + $0xfa8] sm:$0xff] }
 0x49d   : > { %7821 = vmatprep.subr.bf16.mxu1 %v12805_v42  ;;  %v6159_v42 = vld [vmem:[#allocation5 + $0xfe8] sm:$0xff]  ;;  %v12831_v40 = vcombine.high %v6156_v29, %v6158_v31  ;;  %v12830_v50 = vcombine.low %v6156_v29, %v6158_v31 }
 0x49e   : > { %v12833_v43 = vcombine.high %v6157_v32, %v6159_v42  ;;  %v12832_v51 = vcombine.low %v6157_v32, %v6159_v42 }
 0x49f   : > { %7650 = vmatpush1.bf16.msra.mxu0 %v12802_v44  ;;  %v6160_v44 = vld [vmem:[#allocation5 + $0x1020] sm:$0xff] }
 0x4a0   : > { %7822 = vmatpush1.bf16.msra.mxu1 %v12804_v45  ;;  %7651 = vmatprep.subr.bf16.mxu0 %v12807_v48  ;;  %v6162_v45 = vld [vmem:[#allocation5 + $0x1060] sm:$0xff]  ;;  %v6161_v48 = vld [vmem:[#allocation5 + $0x1028] sm:$0xff] }
 0x4a1   : > { %7823 = vmatprep.subr.bf16.mxu1 %v12809_v49  ;;  %v6163_v49 = vld [vmem:[#allocation5 + $0x1068] sm:$0xff]  ;;  %v12835_v36 = vcombine.high %v6160_v44, %v6162_v45  ;;  %v12834_v59 = vcombine.low %v6160_v44, %v6162_v45 }
 0x4a2   : > { %v12837_v52 = vcombine.high %v6161_v48, %v6163_v49  ;;  %v12836_v60 = vcombine.low %v6161_v48, %v6163_v49 }
 0x4a3   : > { %7652 = vmatpush1.bf16.msra.mxu0 %v12806_v53  ;;  %v6164_v53 = vld [vmem:[#allocation5 + $0x10a0] sm:$0xff] }
 0x4a4   : > { %7824 = vmatpush1.bf16.msra.mxu1 %v12808_v54  ;;  %7653 = vmatprep.subr.bf16.mxu0 %v12811_v56  ;;  %v6166_v54 = vld [vmem:[#allocation5 + $0x10e0] sm:$0xff]  ;;  %v6165_v56 = vld [vmem:[#allocation5 + $0x10a8] sm:$0xff] }
 0x4a5   : > { %7825 = vmatprep.subr.bf16.mxu1 %v12813_v47  ;;  %v6167_v47 = vld [vmem:[#allocation5 + $0x10e8] sm:$0xff]  ;;  %v12839_v61 = vcombine.high %v6164_v53, %v6166_v54  ;;  %v12838_v4 = vcombine.low %v6164_v53, %v6166_v54 }
 0x4a6   : > { %v12841_v62 = vcombine.high %v6165_v56, %v6167_v47  ;;  %v12840_v5 = vcombine.low %v6165_v56, %v6167_v47 }
 0x4a7   : > { %7654 = vmatpush1.bf16.msra.mxu0 %v12810_v63  ;;  %v6168_v63 = vld [vmem:[#allocation5 + $0x1120] sm:$0xff] }
 0x4a8   : > { %7826 = vmatpush1.bf16.msra.mxu1 %v12812_v0  ;;  %7655 = vmatprep.subr.bf16.mxu0 %v12815_v2  ;;  %v6170_v0 = vld [vmem:[#allocation5 + $0x1160] sm:$0xff]  ;;  %v6169_v2 = vld [vmem:[#allocation5 + $0x1128] sm:$0xff] }
 0x4a9   : > { %7827 = vmatprep.subr.bf16.mxu1 %v12817_v3  ;;  %v6171_v3 = vld [vmem:[#allocation5 + $0x1168] sm:$0xff]  ;;  %v12843_v6 = vcombine.high %v6168_v63, %v6170_v0  ;;  %v12842_v12 = vcombine.low %v6168_v63, %v6170_v0 }
 0x4aa   : > { %v12845_v7 = vcombine.high %v6169_v2, %v6171_v3  ;;  %v12844_v13 = vcombine.low %v6169_v2, %v6171_v3 }
 0x4ab   : > { %7656 = vmatpush1.bf16.msra.mxu0 %v12814_v8  ;;  %v6172_v8 = vld [vmem:[#allocation5 + $0x11a0] sm:$0xff] }
 0x4ac   : > { %7828 = vmatpush1.bf16.msra.mxu1 %v12816_v9  ;;  %7657 = vmatprep.subr.bf16.mxu0 %v12819_v10  ;;  %v6174_v9 = vld [vmem:[#allocation5 + $0x11e0] sm:$0xff]  ;;  %v6173_v10 = vld [vmem:[#allocation5 + $0x11a8] sm:$0xff] }
 0x4ad   : > { %7829 = vmatprep.subr.bf16.mxu1 %v12821_v11  ;;  %v6175_v11 = vld [vmem:[#allocation5 + $0x11e8] sm:$0xff]  ;;  %v12847_v14 = vcombine.high %v6172_v8, %v6174_v9  ;;  %v12846_v20 = vcombine.low %v6172_v8, %v6174_v9 }
 0x4ae   : > { %v12849_v16 = vcombine.high %v6173_v10, %v6175_v11  ;;  %v12848_v21 = vcombine.low %v6173_v10, %v6175_v11 }
 0x4af   : > { %7658 = vmatpush1.bf16.msra.mxu0 %v12818_v17  ;;  %v6176_v17 = vld [vmem:[#allocation5 + $0x1220] sm:$0xff] }
 0x4b0   : > { %7830 = vmatpush1.bf16.msra.mxu1 %v12820_v41  ;;  %7659 = vmatprep.subr.bf16.mxu0 %v12823_v18  ;;  %v6178_v41 = vld [vmem:[#allocation5 + $0x1260] sm:$0xff]  ;;  %v6177_v18 = vld [vmem:[#allocation5 + $0x1228] sm:$0xff] }
 0x4b1   : > { %7831 = vmatprep.subr.bf16.mxu1 %v12825_v19  ;;  %v6179_v19 = vld [vmem:[#allocation5 + $0x1268] sm:$0xff]  ;;  %v12851_v22 = vcombine.high %v6176_v17, %v6178_v41  ;;  %v12850_v29 = vcombine.low %v6176_v17, %v6178_v41 }
 0x4b2   : > { %v12853_v23 = vcombine.high %v6177_v18, %v6179_v19  ;;  %v12852_v31 = vcombine.low %v6177_v18, %v6179_v19 }
 0x4b3   : > { %7660 = vmatpush1.bf16.msra.mxu0 %v12822_v24  ;;  %v6180_v24 = vld [vmem:[#allocation5 + $0x12a0] sm:$0xff] }
 0x4b4   : > { %7832 = vmatpush1.bf16.msra.mxu1 %v12824_v26  ;;  %7661 = vmatprep.subr.bf16.mxu0 %v12827_v27  ;;  %v6182_v26 = vld [vmem:[#allocation5 + $0x12e0] sm:$0xff]  ;;  %v6181_v27 = vld [vmem:[#allocation5 + $0x12a8] sm:$0xff] }
 0x4b5   : > { %7833 = vmatprep.subr.bf16.mxu1 %v12829_v57  ;;  %v6183_v57 = vld [vmem:[#allocation5 + $0x12e8] sm:$0xff]  ;;  %v12855_v32 = vcombine.high %v6180_v24, %v6182_v26  ;;  %v12854_v44 = vcombine.low %v6180_v24, %v6182_v26 }
 0x4b6   : > { %v12857_v42 = vcombine.high %v6181_v27, %v6183_v57  ;;  %v12856_v45 = vcombine.low %v6181_v27, %v6183_v57 }
 0x4b7   : > { %7662 = vmatpush1.bf16.msra.mxu0 %v12826_v33  ;;  %v6184_v33 = vld [vmem:[#allocation5 + $0x1320] sm:$0xff] }
 0x4b8   : > { %7834 = vmatpush1.bf16.msra.mxu1 %v12828_v38  ;;  %7663 = vmatprep.subr.bf16.mxu0 %v12831_v40  ;;  %v6186_v38 = vld [vmem:[#allocation5 + $0x1360] sm:$0xff]  ;;  %v6185_v40 = vld [vmem:[#allocation5 + $0x1328] sm:$0xff] }
 0x4b9   : > { %7835 = vmatprep.subr.bf16.mxu1 %v12833_v43  ;;  %v6187_v43 = vld [vmem:[#allocation5 + $0x1368] sm:$0xff]  ;;  %v12859_v48 = vcombine.high %v6184_v33, %v6186_v38  ;;  %v12858_v53 = vcombine.low %v6184_v33, %v6186_v38 }
 0x4ba   : > { %v12861_v49 = vcombine.high %v6185_v40, %v6187_v43  ;;  %v12860_v54 = vcombine.low %v6185_v40, %v6187_v43 }
 0x4bb   : > { %7664 = vmatpush1.bf16.msra.mxu0 %v12830_v50  ;;  %v6188_v50 = vld [vmem:[#allocation5 + $0x13a0] sm:$0xff] }
 0x4bc   : > { %7836 = vmatpush1.bf16.msra.mxu1 %v12832_v51  ;;  %7676 = vmatprep.subr.bf16.mxu0 %v12835_v36  ;;  %v6190_v51 = vld [vmem:[#allocation5 + $0x13e0] sm:$0xff]  ;;  %v6189_v36 = vld [vmem:[#allocation5 + $0x13a8] sm:$0xff] }
 0x4bd   : > { %7848 = vmatprep.subr.bf16.mxu1 %v12837_v52  ;;  %v6191_v52 = vld [vmem:[#allocation5 + $0x13e8] sm:$0xff]  ;;  %v12863_v56 = vcombine.high %v6188_v50, %v6190_v51  ;;  %v12862_v63 = vcombine.low %v6188_v50, %v6190_v51 }
 0x4be   : > { %7666 = vmatmul.mubr.bf16.vlgmr.msra.gmra.mrb[12].mxu0 %v15050_v30  ;;  %v12865_v47 = vcombine.high %v6189_v36, %v6191_v52  ;;  %v12864_v0 = vcombine.low %v6189_v36, %v6191_v52 }
 0x4bf   : > { %7677 = vmatpush1.bf16.msra.mxu0 %v12834_v59  ;;  %7838 = vmatmul.mubr.bf16.vlgmr.msra.gmra.mrb[12].mxu1 %v15050_v30  ;;  %v6192_v59 = vld [vmem:[#allocation5 + $0x1420] sm:$0xff] }
 0x4c0   : > { %7849 = vmatpush1.bf16.msra.mxu1 %v12836_v60  ;;  %7678 = vmatprep.subr.bf16.mxu0 %v12839_v61  ;;  %v6194_v60 = vld [vmem:[#allocation5 + $0x1460] sm:$0xff]  ;;  %v6193_v61 = vld [vmem:[#allocation5 + $0x1428] sm:$0xff] }
 0x4c1   : > { %7850 = vmatprep.subr.bf16.mxu1 %v12841_v62  ;;  %7708 = vmatprep.mubr.bf16.mxu0 %v15052_v39  ;;  %v6195_v62 = vld [vmem:[#allocation5 + $0x1468] sm:$0xff]  ;;  %v12867_v2 = vcombine.high %v6192_v59, %v6194_v60  ;;  %v12866_v8 = vcombine.low %v6192_v59, %v6194_v60 }
 0x4c2   : > { %7880 = vmatprep.mubr.bf16.mxu1 %v15052_v39  ;;  %v12869_v3 = vcombine.high %v6193_v61, %v6195_v62  ;;  %v12868_v9 = vcombine.low %v6193_v61, %v6195_v62 }
 0x4c3   : > { %7679 = vmatpush1.bf16.msra.mxu0 %v12838_v4  ;;  %v6196_v4 = vld [vmem:[#allocation5 + $0x14a0] sm:$0xff] }
 0x4c4   : > { %7851 = vmatpush1.bf16.msra.mxu1 %v12840_v5  ;;  %7680 = vmatprep.subr.bf16.mxu0 %v12843_v6  ;;  %v6198_v5 = vld [vmem:[#allocation5 + $0x14e0] sm:$0xff]  ;;  %v6197_v6 = vld [vmem:[#allocation5 + $0x14a8] sm:$0xff] }
 0x4c5   : > { %7852 = vmatprep.subr.bf16.mxu1 %v12845_v7  ;;  %v6199_v7 = vld [vmem:[#allocation5 + $0x14e8] sm:$0xff]  ;;  %v12871_v10 = vcombine.high %v6196_v4, %v6198_v5  ;;  %v12870_v17 = vcombine.low %v6196_v4, %v6198_v5 }
 0x4c6   : > { %v12873_v11 = vcombine.high %v6197_v6, %v6199_v7  ;;  %v12872_v41 = vcombine.low %v6197_v6, %v6199_v7 }
 0x4c7   : > { %7681 = vmatpush1.bf16.msra.mxu0 %v12842_v12  ;;  %v6200_v12 = vld [vmem:[#allocation5 + $0x1520] sm:$0xff] }
 0x4c8   : > { %7853 = vmatpush1.bf16.msra.mxu1 %v12844_v13  ;;  %7682 = vmatprep.subr.bf16.mxu0 %v12847_v14  ;;  %v6202_v13 = vld [vmem:[#allocation5 + $0x1560] sm:$0xff]  ;;  %v6201_v14 = vld [vmem:[#allocation5 + $0x1528] sm:$0xff] }
 0x4c9   : > { %7854 = vmatprep.subr.bf16.mxu1 %v12849_v16  ;;  %v6203_v16 = vld [vmem:[#allocation5 + $0x1568] sm:$0xff]  ;;  %v12875_v18 = vcombine.high %v6200_v12, %v6202_v13  ;;  %v12874_v24 = vcombine.low %v6200_v12, %v6202_v13 }
 0x4ca   : > { %v12877_v19 = vcombine.high %v6201_v14, %v6203_v16  ;;  %v12876_v26 = vcombine.low %v6201_v14, %v6203_v16 }
 0x4cb   : > { %7683 = vmatpush1.bf16.msra.mxu0 %v12846_v20  ;;  %v6204_v20 = vld [vmem:[#allocation5 + $0x15a0] sm:$0xff] }
 0x4cc   : > { %7855 = vmatpush1.bf16.msra.mxu1 %v12848_v21  ;;  %7684 = vmatprep.subr.bf16.mxu0 %v12851_v22  ;;  %v6206_v21 = vld [vmem:[#allocation5 + $0x15e0] sm:$0xff]  ;;  %v6205_v22 = vld [vmem:[#allocation5 + $0x15a8] sm:$0xff] }
 0x4cd   : > { %7856 = vmatprep.subr.bf16.mxu1 %v12853_v23  ;;  %v6207_v23 = vld [vmem:[#allocation5 + $0x15e8] sm:$0xff]  ;;  %v12879_v27 = vcombine.high %v6204_v20, %v6206_v21  ;;  %v12878_v33 = vcombine.low %v6204_v20, %v6206_v21 }
 0x4ce   : > { %v12881_v57 = vcombine.high %v6205_v22, %v6207_v23  ;;  %v12880_v38 = vcombine.low %v6205_v22, %v6207_v23 }
 0x4cf   : > { %7685 = vmatpush1.bf16.msra.mxu0 %v12850_v29  ;;  %v6208_v29 = vld [vmem:[#allocation5 + $0x1620] sm:$0xff] }
 0x4d0   : > { %7857 = vmatpush1.bf16.msra.mxu1 %v12852_v31  ;;  %7686 = vmatprep.subr.bf16.mxu0 %v12855_v32  ;;  %v6210_v31 = vld [vmem:[#allocation5 + $0x1660] sm:$0xff]  ;;  %v6209_v32 = vld [vmem:[#allocation5 + $0x1628] sm:$0xff] }
 0x4d1   : > { %7858 = vmatprep.subr.bf16.mxu1 %v12857_v42  ;;  %v6211_v42 = vld [vmem:[#allocation5 + $0x1668] sm:$0xff]  ;;  %v12883_v40 = vcombine.high %v6208_v29, %v6210_v31  ;;  %v12882_v50 = vcombine.low %v6208_v29, %v6210_v31 }
 0x4d2   : > { %v12885_v43 = vcombine.high %v6209_v32, %v6211_v42  ;;  %v12884_v51 = vcombine.low %v6209_v32, %v6211_v42 }
 0x4d3   : > { %7687 = vmatpush1.bf16.msra.mxu0 %v12854_v44  ;;  %v6212_v44 = vld [vmem:[#allocation5 + $0x16a0] sm:$0xff] }
 0x4d4   : > { %7859 = vmatpush1.bf16.msra.mxu1 %v12856_v45  ;;  %7688 = vmatprep.subr.bf16.mxu0 %v12859_v48  ;;  %v6214_v45 = vld [vmem:[#allocation5 + $0x16e0] sm:$0xff]  ;;  %v6213_v48 = vld [vmem:[#allocation5 + $0x16a8] sm:$0xff] }
 0x4d5   : > { %7860 = vmatprep.subr.bf16.mxu1 %v12861_v49  ;;  %v6215_v49 = vld [vmem:[#allocation5 + $0x16e8] sm:$0xff]  ;;  %v12887_v36 = vcombine.high %v6212_v44, %v6214_v45  ;;  %v12886_v59 = vcombine.low %v6212_v44, %v6214_v45 }
 0x4d6   : > { %v12889_v52 = vcombine.high %v6213_v48, %v6215_v49  ;;  %v12888_v60 = vcombine.low %v6213_v48, %v6215_v49 }
 0x4d7   : > { %7689 = vmatpush1.bf16.msra.mxu0 %v12858_v53  ;;  %v6216_v53 = vld [vmem:[#allocation5 + $0x1720] sm:$0xff] }
 0x4d8   : > { %7861 = vmatpush1.bf16.msra.mxu1 %v12860_v54  ;;  %7690 = vmatprep.subr.bf16.mxu0 %v12863_v56  ;;  %v6218_v54 = vld [vmem:[#allocation5 + $0x1760] sm:$0xff]  ;;  %v6217_v56 = vld [vmem:[#allocation5 + $0x1728] sm:$0xff] }
 0x4d9   : > { %7862 = vmatprep.subr.bf16.mxu1 %v12865_v47  ;;  %v6219_v47 = vld [vmem:[#allocation5 + $0x1768] sm:$0xff]  ;;  %v12891_v61 = vcombine.high %v6216_v53, %v6218_v54  ;;  %v12890_v4 = vcombine.low %v6216_v53, %v6218_v54 }
 0x4da   : > { %v12893_v62 = vcombine.high %v6217_v56, %v6219_v47  ;;  %v12892_v5 = vcombine.low %v6217_v56, %v6219_v47 }
 0x4db   : > { %7691 = vmatpush1.bf16.msra.mxu0 %v12862_v63  ;;  %v6220_v63 = vld [vmem:[#allocation5 + $0x17a0] sm:$0xff] }
 0x4dc   : > { %7863 = vmatpush1.bf16.msra.mxu1 %v12864_v0  ;;  %7692 = vmatprep.subr.bf16.mxu0 %v12867_v2  ;;  %v6222_v0 = vld [vmem:[#allocation5 + $0x17e0] sm:$0xff]  ;;  %v6221_v2 = vld [vmem:[#allocation5 + $0x17a8] sm:$0xff] }
 0x4dd   : > { %7864 = vmatprep.subr.bf16.mxu1 %v12869_v3  ;;  %v6223_v3 = vld [vmem:[#allocation5 + $0x17e8] sm:$0xff]  ;;  %v12895_v6 = vcombine.high %v6220_v63, %v6222_v0  ;;  %v12894_v12 = vcombine.low %v6220_v63, %v6222_v0 }
 0x4de   : > { %v12897_v7 = vcombine.high %v6221_v2, %v6223_v3  ;;  %v12896_v13 = vcombine.low %v6221_v2, %v6223_v3 }
 0x4df   : > { %7693 = vmatpush1.bf16.msra.mxu0 %v12866_v8  ;;  %v6224_v8 = vld [vmem:[#allocation5 + $0x1820] sm:$0xff] }
 0x4e0   : > { %7865 = vmatpush1.bf16.msra.mxu1 %v12868_v9  ;;  %7694 = vmatprep.subr.bf16.mxu0 %v12871_v10  ;;  %v6226_v9 = vld [vmem:[#allocation5 + $0x1860] sm:$0xff]  ;;  %v6225_v10 = vld [vmem:[#allocation5 + $0x1828] sm:$0xff] }
 0x4e1   : > { %7866 = vmatprep.subr.bf16.mxu1 %v12873_v11  ;;  %v6227_v11 = vld [vmem:[#allocation5 + $0x1868] sm:$0xff]  ;;  %v12899_v14 = vcombine.high %v6224_v8, %v6226_v9  ;;  %v12898_v20 = vcombine.low %v6224_v8, %v6226_v9 }
 0x4e2   : > { %v12901_v16 = vcombine.high %v6225_v10, %v6227_v11  ;;  %v12900_v21 = vcombine.low %v6225_v10, %v6227_v11 }
 0x4e3   : > { %7695 = vmatpush1.bf16.msra.mxu0 %v12870_v17  ;;  %v6228_v17 = vld [vmem:[#allocation5 + $0x18a0] sm:$0xff] }
 0x4e4   : > { %7867 = vmatpush1.bf16.msra.mxu1 %v12872_v41  ;;  %7696 = vmatprep.subr.bf16.mxu0 %v12875_v18  ;;  %v6230_v41 = vld [vmem:[#allocation5 + $0x18e0] sm:$0xff]  ;;  %v6229_v18 = vld [vmem:[#allocation5 + $0x18a8] sm:$0xff] }
 0x4e5   : > { %7868 = vmatprep.subr.bf16.mxu1 %v12877_v19  ;;  %v6231_v19 = vld [vmem:[#allocation5 + $0x18e8] sm:$0xff]  ;;  %v12903_v22 = vcombine.high %v6228_v17, %v6230_v41  ;;  %v12902_v29 = vcombine.low %v6228_v17, %v6230_v41 }
 0x4e6   : > { %v12905_v23 = vcombine.high %v6229_v18, %v6231_v19  ;;  %v12904_v31 = vcombine.low %v6229_v18, %v6231_v19 }
 0x4e7   : > { %7697 = vmatpush1.bf16.msra.mxu0 %v12874_v24  ;;  %v6232_v24 = vld [vmem:[#allocation5 + $0x1920] sm:$0xff] }
 0x4e8   : > { %7869 = vmatpush1.bf16.msra.mxu1 %v12876_v26  ;;  %7698 = vmatprep.subr.bf16.mxu0 %v12879_v27  ;;  %v6234_v26 = vld [vmem:[#allocation5 + $0x1960] sm:$0xff]  ;;  %v6233_v27 = vld [vmem:[#allocation5 + $0x1928] sm:$0xff] }
 0x4e9   : > { %7870 = vmatprep.subr.bf16.mxu1 %v12881_v57  ;;  %v6235_v57 = vld [vmem:[#allocation5 + $0x1968] sm:$0xff]  ;;  %v12907_v32 = vcombine.high %v6232_v24, %v6234_v26  ;;  %v12906_v44 = vcombine.low %v6232_v24, %v6234_v26 }
 0x4ea   : > { %v12909_v42 = vcombine.high %v6233_v27, %v6235_v57  ;;  %v12908_v45 = vcombine.low %v6233_v27, %v6235_v57 }
 0x4eb   : > { %7699 = vmatpush1.bf16.msra.mxu0 %v12878_v33  ;;  %v6236_v33 = vld [vmem:[#allocation5 + $0x19a0] sm:$0xff] }
 0x4ec   : > { %7871 = vmatpush1.bf16.msra.mxu1 %v12880_v38  ;;  %7700 = vmatprep.subr.bf16.mxu0 %v12883_v40  ;;  %v6238_v38 = vld [vmem:[#allocation5 + $0x19e0] sm:$0xff]  ;;  %v6237_v40 = vld [vmem:[#allocation5 + $0x19a8] sm:$0xff] }
 0x4ed   : > { %7872 = vmatprep.subr.bf16.mxu1 %v12885_v43  ;;  %v6239_v43 = vld [vmem:[#allocation5 + $0x19e8] sm:$0xff]  ;;  %v12911_v48 = vcombine.high %v6236_v33, %v6238_v38  ;;  %v12910_v53 = vcombine.low %v6236_v33, %v6238_v38 }
 0x4ee   : > { %v12913_v49 = vcombine.high %v6237_v40, %v6239_v43  ;;  %v12912_v54 = vcombine.low %v6237_v40, %v6239_v43 }
 0x4ef   : > { %7701 = vmatpush1.bf16.msra.mxu0 %v12882_v50  ;;  %v6240_v50 = vld [vmem:[#allocation5 + $0x1a20] sm:$0xff] }
 0x4f0   : > { %7873 = vmatpush1.bf16.msra.mxu1 %v12884_v51  ;;  %7702 = vmatprep.subr.bf16.mxu0 %v12887_v36  ;;  %v6242_v51 = vld [vmem:[#allocation5 + $0x1a60] sm:$0xff]  ;;  %v6241_v36 = vld [vmem:[#allocation5 + $0x1a28] sm:$0xff] }
 0x4f1   : > { %7874 = vmatprep.subr.bf16.mxu1 %v12889_v52  ;;  %v6243_v52 = vld [vmem:[#allocation5 + $0x1a68] sm:$0xff]  ;;  %v12915_v56 = vcombine.high %v6240_v50, %v6242_v51  ;;  %v12914_v63 = vcombine.low %v6240_v50, %v6242_v51 }
 0x4f2   : > { %v12917_v47 = vcombine.high %v6241_v36, %v6243_v52  ;;  %v12916_v0 = vcombine.low %v6241_v36, %v6243_v52 }
 0x4f3   : > { %7703 = vmatpush1.bf16.msra.mxu0 %v12886_v59  ;;  %v6244_v59 = vld [vmem:[#allocation5 + $0x1aa0] sm:$0xff] }
 0x4f4   : > { %7875 = vmatpush1.bf16.msra.mxu1 %v12888_v60  ;;  %7704 = vmatprep.subr.bf16.mxu0 %v12891_v61  ;;  %v6246_v60 = vld [vmem:[#allocation5 + $0x1ae0] sm:$0xff]  ;;  %v6245_v61 = vld [vmem:[#allocation5 + $0x1aa8] sm:$0xff] }
 0x4f5   : > { %7876 = vmatprep.subr.bf16.mxu1 %v12893_v62  ;;  %v6247_v62 = vld [vmem:[#allocation5 + $0x1ae8] sm:$0xff]  ;;  %v12919_v2 = vcombine.high %v6244_v59, %v6246_v60  ;;  %v12918_v8 = vcombine.low %v6244_v59, %v6246_v60 }
 0x4f6   : > { %v12921_v3 = vcombine.high %v6245_v61, %v6247_v62  ;;  %v12920_v9 = vcombine.low %v6245_v61, %v6247_v62 }
 0x4f7   : > { %7705 = vmatpush1.bf16.msra.mxu0 %v12890_v4  ;;  %v6248_v4 = vld [vmem:[#allocation5 + $0x1b20] sm:$0xff] }
 0x4f8   : > { %7877 = vmatpush1.bf16.msra.mxu1 %v12892_v5  ;;  %7706 = vmatprep.subr.bf16.mxu0 %v12895_v6  ;;  %v6250_v5 = vld [vmem:[#allocation5 + $0x1b60] sm:$0xff]  ;;  %v6249_v6 = vld [vmem:[#allocation5 + $0x1b28] sm:$0xff] }
 0x4f9   : > { %7878 = vmatprep.subr.bf16.mxu1 %v12897_v7  ;;  %v6251_v7 = vld [vmem:[#allocation5 + $0x1b68] sm:$0xff]  ;;  %v12923_v10 = vcombine.high %v6248_v4, %v6250_v5  ;;  %v12922_v17 = vcombine.low %v6248_v4, %v6250_v5 }
 0x4fa   : > { %v12925_v11 = vcombine.high %v6249_v6, %v6251_v7  ;;  %v12924_v41 = vcombine.low %v6249_v6, %v6251_v7 }
 0x4fb   : > { %7707 = vmatpush1.bf16.msra.mxu0 %v12894_v12  ;;  %v6252_v12 = vld [vmem:[#allocation5 + $0x1ba0] sm:$0xff] }
 0x4fc   : > { %7879 = vmatpush1.bf16.msra.mxu1 %v12896_v13  ;;  %7719 = vmatprep.subr.bf16.mxu0 %v12899_v14  ;;  %v6254_v13 = vld [vmem:[#allocation5 + $0x1be0] sm:$0xff]  ;;  %v6253_v14 = vld [vmem:[#allocation5 + $0x1ba8] sm:$0xff] }
 0x4fd   : > { %7891 = vmatprep.subr.bf16.mxu1 %v12901_v16  ;;  %v6255_v16 = vld [vmem:[#allocation5 + $0x1be8] sm:$0xff]  ;;  %v12927_v18 = vcombine.high %v6252_v12, %v6254_v13  ;;  %v12926_v24 = vcombine.low %v6252_v12, %v6254_v13 }
 0x4fe   : > { %7709 = vmatmul.mubr.bf16.vlgmr.msra.gmra.mrb[12].mxu0 %v15062_v46  ;;  %v12929_v19 = vcombine.high %v6253_v14, %v6255_v16  ;;  %v12928_v26 = vcombine.low %v6253_v14, %v6255_v16 }
 0x4ff   : > { %7720 = vmatpush1.bf16.msra.mxu0 %v12898_v20  ;;  %7881 = vmatmul.mubr.bf16.vlgmr.msra.gmra.mrb[12].mxu1 %v15062_v46  ;;  %v6256_v20 = vld [vmem:[#allocation5 + $0x1c20] sm:$0xff] }
 0x500   : > { %7892 = vmatpush1.bf16.msra.mxu1 %v12900_v21  ;;  %7721 = vmatprep.subr.bf16.mxu0 %v12903_v22  ;;  %v6258_v21 = vld [vmem:[#allocation5 + $0x1c60] sm:$0xff]  ;;  %v6257_v22 = vld [vmem:[#allocation5 + $0x1c28] sm:$0xff] }
 0x501   : > { %7893 = vmatprep.subr.bf16.mxu1 %v12905_v23  ;;  %7751 = vmatprep.mubr.bf16.mxu0 %v15064_v55  ;;  %v6259_v23 = vld [vmem:[#allocation5 + $0x1c68] sm:$0xff]  ;;  %v12931_v27 = vcombine.high %v6256_v20, %v6258_v21  ;;  %v12930_v33 = vcombine.low %v6256_v20, %v6258_v21 }
 0x502   : > { %7923 = vmatprep.mubr.bf16.mxu1 %v15064_v55  ;;  %v12933_v57 = vcombine.high %v6257_v22, %v6259_v23  ;;  %v12932_v38 = vcombine.low %v6257_v22, %v6259_v23 }
 0x503   : > { %7722 = vmatpush1.bf16.msra.mxu0 %v12902_v29  ;;  %v6260_v29 = vld [vmem:[#allocation5 + $0x1ca0] sm:$0xff] }
 0x504   : > { %7894 = vmatpush1.bf16.msra.mxu1 %v12904_v31  ;;  %7723 = vmatprep.subr.bf16.mxu0 %v12907_v32  ;;  %v6262_v31 = vld [vmem:[#allocation5 + $0x1ce0] sm:$0xff]  ;;  %v6261_v32 = vld [vmem:[#allocation5 + $0x1ca8] sm:$0xff] }
 0x505   : > { %7895 = vmatprep.subr.bf16.mxu1 %v12909_v42  ;;  %v6263_v42 = vld [vmem:[#allocation5 + $0x1ce8] sm:$0xff]  ;;  %v12935_v40 = vcombine.high %v6260_v29, %v6262_v31  ;;  %v12934_v50 = vcombine.low %v6260_v29, %v6262_v31 }
 0x506   : > { %v12937_v43 = vcombine.high %v6261_v32, %v6263_v42  ;;  %v12936_v51 = vcombine.low %v6261_v32, %v6263_v42 }
 0x507   : > { %7724 = vmatpush1.bf16.msra.mxu0 %v12906_v44  ;;  %v6264_v44 = vld [vmem:[#allocation5 + $0x1d20] sm:$0xff] }
 0x508   : > { %7896 = vmatpush1.bf16.msra.mxu1 %v12908_v45  ;;  %7725 = vmatprep.subr.bf16.mxu0 %v12911_v48  ;;  %v6266_v45 = vld [vmem:[#allocation5 + $0x1d60] sm:$0xff]  ;;  %v6265_v48 = vld [vmem:[#allocation5 + $0x1d28] sm:$0xff] }
 0x509   : > { %7897 = vmatprep.subr.bf16.mxu1 %v12913_v49  ;;  %v6267_v49 = vld [vmem:[#allocation5 + $0x1d68] sm:$0xff]  ;;  %v12939_v36 = vcombine.high %v6264_v44, %v6266_v45  ;;  %v12938_v59 = vcombine.low %v6264_v44, %v6266_v45  ;;  %v14145_v44 = vld [vmem:[#allocation8 + $0x800] ss:$16 sps:$4 sm:$0xff]  }
 0x50a   : > { %v12941_v52 = vcombine.high %v6265_v48, %v6267_v49  ;;  %v12940_v60 = vcombine.low %v6265_v48, %v6267_v49  ;;  %v14148_v45 = vld [vmem:[#allocation8 + $0x808] ss:$16 sps:$4 sm:$0xff]   ;;  %v14153_v48 = vld [vmem:[#allocation8 + $0x824] ss:$16 sps:$4 sm:$0xff]   ;;  %v14156_v49 = vld [vmem:[#allocation8 + $0x82c] ss:$16 sps:$4 sm:$0xff]  }
 0x50b   : > { %7726 = vmatpush1.bf16.msra.mxu0 %v12910_v53  ;;  %v6268_v53 = vld [vmem:[#allocation5 + $0x1da0] sm:$0xff] }
 0x50c   : > { %7898 = vmatpush1.bf16.msra.mxu1 %v12912_v54  ;;  %7727 = vmatprep.subr.bf16.mxu0 %v12915_v56  ;;  %v6270_v54 = vld [vmem:[#allocation5 + $0x1de0] sm:$0xff]  ;;  %v6269_v56 = vld [vmem:[#allocation5 + $0x1da8] sm:$0xff] }
 0x50d   : > { %7899 = vmatprep.subr.bf16.mxu1 %v12917_v47  ;;  %v6271_v47 = vld [vmem:[#allocation5 + $0x1de8] sm:$0xff]  ;;  %v12943_v61 = vcombine.high %v6268_v53, %v6270_v54  ;;  %v12942_v4 = vcombine.low %v6268_v53, %v6270_v54  ;;  %v14157_v53 = vld [vmem:[#allocation8 + $0x840] ss:$16 sps:$4 sm:$0xff]  }
 0x50e   : > { %v12945_v62 = vcombine.high %v6269_v56, %v6271_v47  ;;  %v12944_v5 = vcombine.low %v6269_v56, %v6271_v47  ;;  %v14160_v54 = vld [vmem:[#allocation8 + $0x848] ss:$16 sps:$4 sm:$0xff]   ;;  %v14165_v56 = vld [vmem:[#allocation8 + $0x864] ss:$16 sps:$4 sm:$0xff]   ;;  %v14168_v47 = vld [vmem:[#allocation8 + $0x86c] ss:$16 sps:$4 sm:$0xff]  }
 0x50f   : > { %7728 = vmatpush1.bf16.msra.mxu0 %v12914_v63  ;;  %v6272_v63 = vld [vmem:[#allocation5 + $0x1e20] sm:$0xff] }
 0x510   : > { %7900 = vmatpush1.bf16.msra.mxu1 %v12916_v0  ;;  %7729 = vmatprep.subr.bf16.mxu0 %v12919_v2  ;;  %v6274_v0 = vld [vmem:[#allocation5 + $0x1e60] sm:$0xff]  ;;  %v6273_v2 = vld [vmem:[#allocation5 + $0x1e28] sm:$0xff] }
 0x511   : > { %7901 = vmatprep.subr.bf16.mxu1 %v12921_v3  ;;  %v6275_v3 = vld [vmem:[#allocation5 + $0x1e68] sm:$0xff]  ;;  %v12947_v6 = vcombine.high %v6272_v63, %v6274_v0  ;;  %v12946_v12 = vcombine.low %v6272_v63, %v6274_v0  ;;  %v14169_v63 = vld [vmem:[#allocation8 + $0x880] ss:$16 sps:$4 sm:$0xff]  }
 0x512   : > { %v12949_v7 = vcombine.high %v6273_v2, %v6275_v3  ;;  %v12948_v13 = vcombine.low %v6273_v2, %v6275_v3  ;;  %v14172_v0 = vld [vmem:[#allocation8 + $0x888] ss:$16 sps:$4 sm:$0xff]   ;;  %v14177_v2 = vld [vmem:[#allocation8 + $0x8a4] ss:$16 sps:$4 sm:$0xff]   ;;  %v14180_v3 = vld [vmem:[#allocation8 + $0x8ac] ss:$16 sps:$4 sm:$0xff]  }
 0x513   : > { %7730 = vmatpush1.bf16.msra.mxu0 %v12918_v8  ;;  %v6276_v8 = vld [vmem:[#allocation5 + $0x1ea0] sm:$0xff] }
 0x514   : > { %7902 = vmatpush1.bf16.msra.mxu1 %v12920_v9  ;;  %7731 = vmatprep.subr.bf16.mxu0 %v12923_v10  ;;  %v6278_v9 = vld [vmem:[#allocation5 + $0x1ee0] sm:$0xff]  ;;  %v6277_v10 = vld [vmem:[#allocation5 + $0x1ea8] sm:$0xff] }
 0x515   : > { %7903 = vmatprep.subr.bf16.mxu1 %v12925_v11  ;;  %v6279_v11 = vld [vmem:[#allocation5 + $0x1ee8] sm:$0xff]  ;;  %v12951_v14 = vcombine.high %v6276_v8, %v6278_v9  ;;  %v12950_v20 = vcombine.low %v6276_v8, %v6278_v9  ;;  %v14181_v8 = vld [vmem:[#allocation8 + $0x8c0] ss:$16 sps:$4 sm:$0xff]  }
 0x516   : > { %v12953_v16 = vcombine.high %v6277_v10, %v6279_v11  ;;  %v12952_v21 = vcombine.low %v6277_v10, %v6279_v11  ;;  %v14184_v9 = vld [vmem:[#allocation8 + $0x8c8] ss:$16 sps:$4 sm:$0xff]   ;;  %v14189_v10 = vld [vmem:[#allocation8 + $0x8e4] ss:$16 sps:$4 sm:$0xff]   ;;  %v14192_v11 = vld [vmem:[#allocation8 + $0x8ec] ss:$16 sps:$4 sm:$0xff]  }
 0x517   : > { %7732 = vmatpush1.bf16.msra.mxu0 %v12922_v17  ;;  %v6280_v17 = vld [vmem:[#allocation5 + $0x1f20] sm:$0xff] }
 0x518   : > { %7904 = vmatpush1.bf16.msra.mxu1 %v12924_v41  ;;  %7733 = vmatprep.subr.bf16.mxu0 %v12927_v18  ;;  %v6282_v41 = vld [vmem:[#allocation5 + $0x1f60] sm:$0xff]  ;;  %v6281_v18 = vld [vmem:[#allocation5 + $0x1f28] sm:$0xff] }
 0x519   : > { %7905 = vmatprep.subr.bf16.mxu1 %v12929_v19  ;;  %v6283_v19 = vld [vmem:[#allocation5 + $0x1f68] sm:$0xff]  ;;  %v12955_v22 = vcombine.high %v6280_v17, %v6282_v41  ;;  %v12954_v29 = vcombine.low %v6280_v17, %v6282_v41  ;;  %v14193_v17 = vld [vmem:[#allocation8 + $0x900] ss:$16 sps:$4 sm:$0xff]  }
 0x51a   : > { %v12957_v23 = vcombine.high %v6281_v18, %v6283_v19  ;;  %v12956_v31 = vcombine.low %v6281_v18, %v6283_v19  ;;  %v14196_v41 = vld [vmem:[#allocation8 + $0x908] ss:$16 sps:$4 sm:$0xff]   ;;  %v14201_v18 = vld [vmem:[#allocation8 + $0x924] ss:$16 sps:$4 sm:$0xff]   ;;  %v14204_v19 = vld [vmem:[#allocation8 + $0x92c] ss:$16 sps:$4 sm:$0xff]  }
 0x51b   : > { %7734 = vmatpush1.bf16.msra.mxu0 %v12926_v24  ;;  %v6284_v24 = vld [vmem:[#allocation5 + $0x1fa0] sm:$0xff] }
 0x51c   : > { %7906 = vmatpush1.bf16.msra.mxu1 %v12928_v26  ;;  %7735 = vmatprep.subr.bf16.mxu0 %v12931_v27  ;;  %v6286_v26 = vld [vmem:[#allocation5 + $0x1fe0] sm:$0xff]  ;;  %v6285_v27 = vld [vmem:[#allocation5 + $0x1fa8] sm:$0xff] }
 0x51d   : > { %7907 = vmatprep.subr.bf16.mxu1 %v12933_v57  ;;  %v6287_v57 = vld [vmem:[#allocation5 + $0x1fe8] sm:$0xff]  ;;  %v12959_v32 = vcombine.high %v6284_v24, %v6286_v26 }
 0x51e   : > { %v12961_v42 = vcombine.high %v6285_v27, %v6287_v57 }
 0x51f   : > { %7736 = vmatpush1.bf16.msra.mxu0 %v12930_v33  ;;  %v12958_v33 = vcombine.low %v6284_v24, %v6286_v26  ;;  %v14205_v24 = vld [vmem:[#allocation8 + $0x940] ss:$16 sps:$4 sm:$0xff]   ;;  %v14208_v26 = vld [vmem:[#allocation8 + $0x948] ss:$16 sps:$4 sm:$0xff]  }
 0x520   : > { %7908 = vmatpush1.bf16.msra.mxu1 %v12932_v38  ;;  %7737 = vmatprep.subr.bf16.mxu0 %v12935_v40  ;;  %v12960_v38 = vcombine.low %v6285_v27, %v6287_v57  ;;  %v14147_v40 = vld [vmem:[#allocation8 + $0x804] ss:$16 sps:$4 sm:$0xff]   ;;  %v14216_v57 = vld [vmem:[#allocation8 + $0x96c] ss:$16 sps:$4 sm:$0xff]  }
 0x521   : > { %7909 = vmatprep.subr.bf16.mxu1 %v12937_v43  ;;  %v14150_v43 = vld [vmem:[#allocation8 + $0x80c] ss:$16 sps:$4 sm:$0xff]   ;;  %v14213_v27 = vld [vmem:[#allocation8 + $0x964] ss:$16 sps:$4 sm:$0xff]  }
 0x523   : > { %7738 = vmatpush1.bf16.msra.mxu0 %v12934_v50  ;;  %v14151_v50 = vld [vmem:[#allocation8 + $0x820] ss:$16 sps:$4 sm:$0xff]  }
 0x524   : > { %7910 = vmatpush1.bf16.msra.mxu1 %v12936_v51  ;;  %7739 = vmatprep.subr.bf16.mxu0 %v12939_v36  ;;  %v14154_v51 = vld [vmem:[#allocation8 + $0x828] ss:$16 sps:$4 sm:$0xff]   ;;  %v14159_v36 = vld [vmem:[#allocation8 + $0x844] ss:$16 sps:$4 sm:$0xff]  }
 0x525   : > { %7911 = vmatprep.subr.bf16.mxu1 %v12941_v52  ;;  %v14162_v52 = vld [vmem:[#allocation8 + $0x84c] ss:$16 sps:$4 sm:$0xff]  }
 0x527   : > { %7740 = vmatpush1.bf16.msra.mxu0 %v12938_v59  ;;  %v14163_v59 = vld [vmem:[#allocation8 + $0x860] ss:$16 sps:$4 sm:$0xff]  }
 0x528   : > { %7912 = vmatpush1.bf16.msra.mxu1 %v12940_v60  ;;  %7741 = vmatprep.subr.bf16.mxu0 %v12943_v61  ;;  %v14166_v60 = vld [vmem:[#allocation8 + $0x868] ss:$16 sps:$4 sm:$0xff]   ;;  %v14171_v61 = vld [vmem:[#allocation8 + $0x884] ss:$16 sps:$4 sm:$0xff]  }
 0x529   : > { %7913 = vmatprep.subr.bf16.mxu1 %v12945_v62  ;;  %v14174_v62 = vld [vmem:[#allocation8 + $0x88c] ss:$16 sps:$4 sm:$0xff]  }
 0x52b   : > { %7742 = vmatpush1.bf16.msra.mxu0 %v12942_v4  ;;  %v14175_v4 = vld [vmem:[#allocation8 + $0x8a0] ss:$16 sps:$4 sm:$0xff]  }
 0x52c   : > { %7914 = vmatpush1.bf16.msra.mxu1 %v12944_v5  ;;  %7743 = vmatprep.subr.bf16.mxu0 %v12947_v6  ;;  %v14178_v5 = vld [vmem:[#allocation8 + $0x8a8] ss:$16 sps:$4 sm:$0xff]   ;;  %v14183_v6 = vld [vmem:[#allocation8 + $0x8c4] ss:$16 sps:$4 sm:$0xff]  }
 0x52d   : > { %7915 = vmatprep.subr.bf16.mxu1 %v12949_v7  ;;  %v14186_v7 = vld [vmem:[#allocation8 + $0x8cc] ss:$16 sps:$4 sm:$0xff]  }
 0x52f   : > { %7744 = vmatpush1.bf16.msra.mxu0 %v12946_v12  ;;  %v14187_v12 = vld [vmem:[#allocation8 + $0x8e0] ss:$16 sps:$4 sm:$0xff]  }
 0x530   : > { %7916 = vmatpush1.bf16.msra.mxu1 %v12948_v13  ;;  %7745 = vmatprep.subr.bf16.mxu0 %v12951_v14  ;;  %v14190_v13 = vld [vmem:[#allocation8 + $0x8e8] ss:$16 sps:$4 sm:$0xff]   ;;  %v14195_v14 = vld [vmem:[#allocation8 + $0x904] ss:$16 sps:$4 sm:$0xff]  }
 0x531   : > { %7917 = vmatprep.subr.bf16.mxu1 %v12953_v16  ;;  %v14198_v16 = vld [vmem:[#allocation8 + $0x90c] ss:$16 sps:$4 sm:$0xff]  }
 0x533   : > { %7746 = vmatpush1.bf16.msra.mxu0 %v12950_v20  ;;  %v14199_v20 = vld [vmem:[#allocation8 + $0x920] ss:$16 sps:$4 sm:$0xff]  }
 0x534   : > { %7918 = vmatpush1.bf16.msra.mxu1 %v12952_v21  ;;  %7747 = vmatprep.subr.bf16.mxu0 %v12955_v22  ;;  %v14202_v21 = vld [vmem:[#allocation8 + $0x928] ss:$16 sps:$4 sm:$0xff]   ;;  %v14207_v22 = vld [vmem:[#allocation8 + $0x944] ss:$16 sps:$4 sm:$0xff]  }
 0x535   : > { %7919 = vmatprep.subr.bf16.mxu1 %v12957_v23  ;;  %v14210_v23 = vld [vmem:[#allocation8 + $0x94c] ss:$16 sps:$4 sm:$0xff]  }
 0x537   : > { %7748 = vmatpush1.bf16.msra.mxu0 %v12954_v29  ;;  %v14211_v29 = vld [vmem:[#allocation8 + $0x960] ss:$16 sps:$4 sm:$0xff]  }
 0x538   : > { %7920 = vmatpush1.bf16.msra.mxu1 %v12956_v31  ;;  %7749 = vmatprep.subr.bf16.mxu0 %v12959_v32  ;;  %v14214_v31 = vld [vmem:[#allocation8 + $0x968] ss:$16 sps:$4 sm:$0xff]   ;;  %v14219_v32 = vld [vmem:[#allocation8 + $0x984] ss:$16 sps:$4 sm:$0xff]  }
 0x539   : > { %7921 = vmatprep.subr.bf16.mxu1 %v12961_v42  ;;  %v14222_v42 = vld [vmem:[#allocation8 + $0x98c] ss:$16 sps:$4 sm:$0xff]  }
 0x53b   : > { %7750 = vmatpush1.bf16.msra.mxu0 %v12958_v33  ;;  %v14217_v33 = vld [vmem:[#allocation8 + $0x980] ss:$16 sps:$4 sm:$0xff]  }
 0x53c   : > { %7922 = vmatpush1.bf16.msra.mxu1 %v12960_v38  ;;  %8714 = vmatprep.subr.bf16.mxu0 %v14147_v40  ;;  %v14220_v38 = vld [vmem:[#allocation8 + $0x988] ss:$16 sps:$4 sm:$0xff]   ;;  %v14225_v40 = vld [vmem:[#allocation8 + $0x9a4] ss:$16 sps:$4 sm:$0xff]  }
 0x53d   : > { %8800 = vmatprep.subr.bf16.mxu1 %v14150_v43  ;;  %v14228_v43 = vld [vmem:[#allocation8 + $0x9ac] ss:$16 sps:$4 sm:$0xff]  }
 0x53e   : > { %7752 = vmatmul.mubr.bf16.vlgmr.msra.gmra.mrb[12].mxu0 %v15072_v1 }
 0x53f   : > { %7924 = vmatmul.mubr.bf16.vlgmr.msra.gmra.mrb[12].mxu1 %v15072_v1  ;;  %8715 = vmatpush1.bf16.msra.mxu0 %v14145_v44  ;;  %v14223_v44 = vld [vmem:[#allocation8 + $0x9a0] ss:$16 sps:$4 sm:$0xff]  }
 0x540   : > { %8801 = vmatpush1.bf16.msra.mxu1 %v14148_v45  ;;  %8716 = vmatprep.subr.bf16.mxu0 %v14153_v48  ;;  %v14226_v45 = vld [vmem:[#allocation8 + $0x9a8] ss:$16 sps:$4 sm:$0xff]   ;;  %v14231_v48 = vld [vmem:[#allocation8 + $0x9c4] ss:$16 sps:$4 sm:$0xff]  }
 0x541   : > { %8802 = vmatprep.subr.bf16.mxu1 %v14156_v49  ;;  %v14234_v49 = vld [vmem:[#allocation8 + $0x9cc] ss:$16 sps:$4 sm:$0xff]  }
 0x543   : > { %8717 = vmatpush1.bf16.msra.mxu0 %v14151_v50  ;;  %v14229_v50 = vld [vmem:[#allocation8 + $0x9c0] ss:$16 sps:$4 sm:$0xff]  }
 0x544   : > { %8803 = vmatpush1.bf16.msra.mxu1 %v14154_v51  ;;  %8718 = vmatprep.subr.bf16.mxu0 %v14159_v36  ;;  %v14232_v51 = vld [vmem:[#allocation8 + $0x9c8] ss:$16 sps:$4 sm:$0xff]   ;;  %v14237_v36 = vld [vmem:[#allocation8 + $0x9e4] ss:$16 sps:$4 sm:$0xff]  }
 0x545   : > { %8804 = vmatprep.subr.bf16.mxu1 %v14162_v52  ;;  %v14240_v52 = vld [vmem:[#allocation8 + $0x9ec] ss:$16 sps:$4 sm:$0xff]  }
 0x547   : > { %8719 = vmatpush1.bf16.msra.mxu0 %v14157_v53  ;;  %v14235_v53 = vld [vmem:[#allocation8 + $0x9e0] ss:$16 sps:$4 sm:$0xff]  }
 0x548   : > { %8805 = vmatpush1.bf16.msra.mxu1 %v14160_v54  ;;  %8720 = vmatprep.subr.bf16.mxu0 %v14165_v56  ;;  %v14238_v54 = vld [vmem:[#allocation8 + $0x9e8] ss:$16 sps:$4 sm:$0xff]   ;;  %v14243_v56 = vld [vmem:[#allocation8 + $0xa04] ss:$16 sps:$4 sm:$0xff]  }
 0x549   : > { %8806 = vmatprep.subr.bf16.mxu1 %v14168_v47  ;;  %v14246_v47 = vld [vmem:[#allocation8 + $0xa0c] ss:$16 sps:$4 sm:$0xff]  }
 0x54b   : > { %8721 = vmatpush1.bf16.msra.mxu0 %v14163_v59  ;;  %v6288_v59 = vld [vmem:[#allocation7 + $0x8] sm:$0xf] }
 0x54c   : > { %8807 = vmatpush1.bf16.msra.mxu1 %v14166_v60  ;;  %8722 = vmatprep.subr.bf16.mxu0 %v14171_v61  ;;  %v6293_v60 = vrot.slane %v6288_v59, %v15090_v28  ;;  %v6301_v61 = vrot.slane %v6288_v59, %v15092_v34 }
 0x54d   : > { %8808 = vmatprep.subr.bf16.mxu1 %v14174_v62  ;;  %v6297_v62 = vrot.slane %v6288_v59, %v15094_v35 }
 0x54f   : > { %8723 = vmatpush1.bf16.msra.mxu0 %v14169_v63  ;;  %v6305_v63 = vrot.slane %v6288_v59, %v15096_v37  ;;  %v14276_v59 = vld [vmem:[#allocation8 + $0xaac] ss:$16 sps:$4 sm:$0xff]  }
 0x550   : > { %8809 = vmatpush1.bf16.msra.mxu1 %v14172_v0  ;;  %8724 = vmatprep.subr.bf16.mxu0 %v14177_v2 }
 0x551   : > { %8810 = vmatprep.subr.bf16.mxu1 %v14180_v3 }
 0x553   : > { %8725 = vmatpush1.bf16.msra.mxu0 %v14175_v4 }
 0x554   : > { %8811 = vmatpush1.bf16.msra.mxu1 %v14178_v5  ;;  %8726 = vmatprep.subr.bf16.mxu0 %v14183_v6 }
 0x555   : > { %8812 = vmatprep.subr.bf16.mxu1 %v14186_v7 }
 0x557   : > { %8727 = vmatpush1.bf16.msra.mxu0 %v14181_v8 }
 0x558   : > { %8813 = vmatpush1.bf16.msra.mxu1 %v14184_v9  ;;  %8728 = vmatprep.subr.bf16.mxu0 %v14189_v10 }
 0x559   : > { %8814 = vmatprep.subr.bf16.mxu1 %v14192_v11 }
 0x55b   : > { %8729 = vmatpush1.bf16.msra.mxu0 %v14187_v12 }
 0x55c   : > { %8815 = vmatpush1.bf16.msra.mxu1 %v14190_v13  ;;  %8730 = vmatprep.subr.bf16.mxu0 %v14195_v14 }
 0x55d   : > { %8816 = vmatprep.subr.bf16.mxu1 %v14198_v16 }
 0x55f   : > { %8731 = vmatpush1.bf16.msra.mxu0 %v14193_v17 }
 0x560   : > { %8817 = vmatpush1.bf16.msra.mxu1 %v14196_v41  ;;  %8732 = vmatprep.subr.bf16.mxu0 %v14201_v18 }
 0x561   : > { %8818 = vmatprep.subr.bf16.mxu1 %v14204_v19 }
 0x563   : > { %8733 = vmatpush1.bf16.msra.mxu0 %v14199_v20 }
 0x564   : > { %8819 = vmatpush1.bf16.msra.mxu1 %v14202_v21  ;;  %8734 = vmatprep.subr.bf16.mxu0 %v14207_v22 }
 0x565   : > { %8820 = vmatprep.subr.bf16.mxu1 %v14210_v23 }
 0x567   : > { %8735 = vmatpush1.bf16.msra.mxu0 %v14205_v24 }
 0x568   : > { %8821 = vmatpush1.bf16.msra.mxu1 %v14208_v26  ;;  %8736 = vmatprep.subr.bf16.mxu0 %v14213_v27 }
 0x569   : > { %8822 = vmatprep.subr.bf16.mxu1 %v14216_v57 }
 0x56b   : > { %8737 = vmatpush1.bf16.msra.mxu0 %v14211_v29  ;;  %v14241_v29 = vld [vmem:[#allocation8 + $0xa00] ss:$16 sps:$4 sm:$0xff]  }
 0x56c   : > { %8823 = vmatpush1.bf16.msra.mxu1 %v14214_v31  ;;  %8738 = vmatprep.subr.bf16.mxu0 %v14219_v32  ;;  %v14244_v31 = vld [vmem:[#allocation8 + $0xa08] ss:$16 sps:$4 sm:$0xff]  }
 0x56d   : > { %8824 = vmatprep.subr.bf16.mxu1 %v14222_v42  ;;  %v14249_v42 = vld [vmem:[#allocation8 + $0xa24] ss:$16 sps:$4 sm:$0xff]  }
 0x56f   : > { %8739 = vmatpush1.bf16.msra.mxu0 %v14217_v33  ;;  %v14252_v33 = vld [vmem:[#allocation8 + $0xa2c] ss:$16 sps:$4 sm:$0xff]  }
 0x570   : > { %8825 = vmatpush1.bf16.msra.mxu1 %v14220_v38  ;;  %8740 = vmatprep.subr.bf16.mxu0 %v14225_v40  ;;  %v14247_v38 = vld [vmem:[#allocation8 + $0xa20] ss:$16 sps:$4 sm:$0xff]   ;;  %v14250_v40 = vld [vmem:[#allocation8 + $0xa28] ss:$16 sps:$4 sm:$0xff]  }
 0x571   : > { %8826 = vmatprep.subr.bf16.mxu1 %v14228_v43  ;;  %v14255_v43 = vld [vmem:[#allocation8 + $0xa44] ss:$16 sps:$4 sm:$0xff]  }
 0x573   : > { %8741 = vmatpush1.bf16.msra.mxu0 %v14223_v44  ;;  %v14258_v44 = vld [vmem:[#allocation8 + $0xa4c] ss:$16 sps:$4 sm:$0xff]  }
 0x574   : > { %8827 = vmatpush1.bf16.msra.mxu1 %v14226_v45  ;;  %8742 = vmatprep.subr.bf16.mxu0 %v14231_v48  ;;  %v14253_v45 = vld [vmem:[#allocation8 + $0xa40] ss:$16 sps:$4 sm:$0xff]   ;;  %v14256_v48 = vld [vmem:[#allocation8 + $0xa48] ss:$16 sps:$4 sm:$0xff]  }
 0x575   : > { %8828 = vmatprep.subr.bf16.mxu1 %v14234_v49  ;;  %v14261_v49 = vld [vmem:[#allocation8 + $0xa64] ss:$16 sps:$4 sm:$0xff]  }
 0x577   : > { %8743 = vmatpush1.bf16.msra.mxu0 %v14229_v50  ;;  %v14264_v50 = vld [vmem:[#allocation8 + $0xa6c] ss:$16 sps:$4 sm:$0xff]  }
 0x578   : > { %8829 = vmatpush1.bf16.msra.mxu1 %v14232_v51  ;;  %8744 = vmatprep.subr.bf16.mxu0 %v14237_v36  ;;  %v14259_v51 = vld [vmem:[#allocation8 + $0xa60] ss:$16 sps:$4 sm:$0xff]   ;;  %v14262_v36 = vld [vmem:[#allocation8 + $0xa68] ss:$16 sps:$4 sm:$0xff]  }
 0x579   : > { %8830 = vmatprep.subr.bf16.mxu1 %v14240_v52  ;;  %v14267_v52 = vld [vmem:[#allocation8 + $0xa84] ss:$16 sps:$4 sm:$0xff]  }
 0x57b   : > { %8745 = vmatpush1.bf16.msra.mxu0 %v14235_v53  ;;  %v14270_v53 = vld [vmem:[#allocation8 + $0xa8c] ss:$16 sps:$4 sm:$0xff]  }
 0x57c   : > { %8831 = vmatpush1.bf16.msra.mxu1 %v14238_v54  ;;  %8757 = vmatprep.subr.bf16.mxu0 %v14243_v56  ;;  %v14265_v54 = vld [vmem:[#allocation8 + $0xa80] ss:$16 sps:$4 sm:$0xff]   ;;  %v14268_v56 = vld [vmem:[#allocation8 + $0xa88] ss:$16 sps:$4 sm:$0xff]  }
 0x57d   : > { %8843 = vmatprep.subr.bf16.mxu1 %v14246_v47  ;;  %v14273_v47 = vld [vmem:[#allocation8 + $0xaa4] ss:$16 sps:$4 sm:$0xff]  }
 0x611   : > { %v7753_v0 = vpop.f32.mrb[12].mxu0 }
 0x612   : > { %v13500_v2 = vadd.f32 %v7753_v0, %v6293_v60  ;;  %v7925_v3 = vpop.f32.mrb[12].mxu1  ;;  %v7755_v4 = vpop.f32.mrb[13].mxu0  ;;  %v14277_v0 = vld [vmem:[#allocation8 + $0xac0] ss:$16 sps:$4 sm:$0xff]  }
 0x613   : > { %v13504_v5 = vadd.f32 %v7925_v3, %v6301_v61  ;;  %v13501_v6 = vadd.f32 %v7755_v4, %v6297_v62  ;;  %v7927_v7 = vpop.f32.mrb[13].mxu1  ;;  %v7757_v8 = vpop.f32.mrb[14].mxu0  ;;  %v14285_v3 = vld [vmem:[#allocation8 + $0xae4] ss:$16 sps:$4 sm:$0xff]   ;;  %v14288_v4 = vld [vmem:[#allocation8 + $0xaec] ss:$16 sps:$4 sm:$0xff]  }
 0x614   : > { %v13505_v9 = vadd.f32 %v7927_v7, %v6305_v63  ;;  %v13502_v10 = vadd.f32 %v7757_v8, %v6293_v60  ;;  %v7929_v11 = vpop.f32.mrb[14].mxu1  ;;  %v7759_v12 = vpop.f32.mrb[15].mxu0  ;;  %v7934_v17 = vmax.f32 %v13500_v2, 0.0  ;;  %v14271_v60 = vld [vmem:[#allocation8 + $0xaa0] ss:$16 sps:$4 sm:$0xff]  }
 0x615   : > { %v13506_v13 = vadd.f32 %v7929_v11, %v6301_v61  ;;  %v13503_v14 = vadd.f32 %v7759_v12, %v6297_v62  ;;  %v7931_v16 = vpop.f32.mrb[15].mxu1  ;;  %v7936_v19 = vmax.f32 %v13504_v5, 0.0  ;;  %v7935_v20 = vmax.f32 %v13501_v6, 0.0  ;;  %v14274_v61 = vld [vmem:[#allocation8 + $0xaa8] ss:$16 sps:$4 sm:$0xff]  }
 0x616   : > { %v7938_v41 = vmax.f32 %v13502_v10, 0.0  ;;  %v13507_v18 = vadd.f32 %v7931_v16, %v6305_v63  ;;  %v7937_v23 = vmax.f32 %v13505_v9, 0.0  ;;  %v14279_v62 = vld [vmem:[#allocation8 + $0xac4] ss:$16 sps:$4 sm:$0xff]   ;;  %v14282_v63 = vld [vmem:[#allocation8 + $0xacc] ss:$16 sps:$4 sm:$0xff]  }
 0x617   : > { %v7940_v21 = vmax.f32 %v13506_v13, 0.0  ;;  %v7939_v22 = vmax.f32 %v13503_v14, 0.0  ;;  %v14280_v2 = vld [vmem:[#allocation8 + $0xac8] ss:$16 sps:$4 sm:$0xff]   ;;  %v14283_v5 = vld [vmem:[#allocation8 + $0xae0] ss:$16 sps:$4 sm:$0xff]  }
 0x618   : > { %v7942_v24 = vpack.c.bf16 %v7938_v41, %v7934_v17  ;;  %v7941_v26 = vmax.f32 %v13507_v18, 0.0  ;;  %v14286_v6 = vld [vmem:[#allocation8 + $0xae8] ss:$16 sps:$4 sm:$0xff]   ;;  %v14291_v7 = vld [vmem:[#allocation8 + $0xb04] ss:$16 sps:$4 sm:$0xff]  }
 0x619   : > { %v15148_v27 = vpack.c.bf16 %v7940_v21, %v7936_v19  ;;  %v7943_v57 = vpack.c.bf16 %v7939_v22, %v7935_v20  ;;  %v14294_v8 = vld [vmem:[#allocation8 + $0xb0c] ss:$16 sps:$4 sm:$0xff]   ;;  %v14289_v9 = vld [vmem:[#allocation8 + $0xb00] ss:$16 sps:$4 sm:$0xff]   ;;  %v14292_v10 = vld [vmem:[#allocation8 + $0xb08] ss:$16 sps:$4 sm:$0xff]  }
 0x61a   : > { %v7945_v32 = vpack.c.bf16 %v7941_v26, %v7937_v23  ;;  %v14297_v11 = vld [vmem:[#allocation8 + $0xb24] ss:$16 sps:$4 sm:$0xff]   ;;  %v14300_v12 = vld [vmem:[#allocation8 + $0xb2c] ss:$16 sps:$4 sm:$0xff]   ;;  %v14295_v13 = vld [vmem:[#allocation8 + $0xb20] ss:$16 sps:$4 sm:$0xff]  }
 0x61b   : > { %8746 = vmatprep.mubr.bf16.mxu0 %v7943_v57  ;;  %8832 = vmatprep.mubr.bf16.mxu1 %v7943_v57  ;;  %v14298_v14 = vld [vmem:[#allocation8 + $0xb28] ss:$16 sps:$4 sm:$0xff]   ;;  %v14303_v16 = vld [vmem:[#allocation8 + $0xb44] ss:$16 sps:$4 sm:$0xff]   ;;  %v14306_v17 = vld [vmem:[#allocation8 + $0xb4c] ss:$16 sps:$4 sm:$0xff]  }
 0x61c   : > { %8747 = vmatmul.mubr.bf16.vlgmr.msra.gmra.mrb[8].mxu0 %v7942_v24  ;;  %8833 = vmatmul.mubr.bf16.vlgmr.msra.gmra.mrb[8].mxu1 %v7942_v24  ;;  %v14301_v41 = vld [vmem:[#allocation8 + $0xb40] ss:$16 sps:$4 sm:$0xff]   ;;  %v14304_v18 = vld [vmem:[#allocation8 + $0xb48] ss:$16 sps:$4 sm:$0xff]   ;;  %v14309_v19 = vld [vmem:[#allocation8 + $0xb64] ss:$16 sps:$4 sm:$0xff]  }
 0x61d   : > { %8758 = vmatpush1.bf16.msra.mxu0 %v14241_v29  ;;  %8844 = vmatpush1.bf16.msra.mxu1 %v14244_v31  ;;  %v14312_v20 = vld [vmem:[#allocation8 + $0xb6c] ss:$16 sps:$4 sm:$0xff]   ;;  %v14307_v21 = vld [vmem:[#allocation8 + $0xb60] ss:$16 sps:$4 sm:$0xff]   ;;  %v14310_v22 = vld [vmem:[#allocation8 + $0xb68] ss:$16 sps:$4 sm:$0xff]  }
 0x61e   : > { %8789 = vmatprep.mubr.bf16.mxu0 %v7945_v32  ;;  %8875 = vmatprep.mubr.bf16.mxu1 %v7945_v32  ;;  %v14315_v23 = vld [vmem:[#allocation8 + $0xb84] ss:$16 sps:$4 sm:$0xff]   ;;  %v14318_v24 = vld [vmem:[#allocation8 + $0xb8c] ss:$16 sps:$4 sm:$0xff]   ;;  %v14313_v26 = vld [vmem:[#allocation8 + $0xb80] ss:$16 sps:$4 sm:$0xff]  }
 0x61f   : > { %8759 = vmatprep.subr.bf16.mxu0 %v14249_v42  ;;  %8845 = vmatprep.subr.bf16.mxu1 %v14252_v33  ;;  %v14316_v57 = vld [vmem:[#allocation8 + $0xb88] ss:$16 sps:$4 sm:$0xff]   ;;  %v14321_v29 = vld [vmem:[#allocation8 + $0xba4] ss:$16 sps:$4 sm:$0xff]   ;;  %v14324_v31 = vld [vmem:[#allocation8 + $0xbac] ss:$16 sps:$4 sm:$0xff]  }
 0x620   : > { %v14319_v32 = vld [vmem:[#allocation8 + $0xba0] ss:$16 sps:$4 sm:$0xff]   ;;  %v14322_v42 = vld [vmem:[#allocation8 + $0xba8] ss:$16 sps:$4 sm:$0xff]   ;;  %v14327_v33 = vld [vmem:[#allocation8 + $0xbc4] ss:$16 sps:$4 sm:$0xff]  }
 0x621   : > { %8760 = vmatpush1.bf16.msra.mxu0 %v14247_v38  ;;  %8846 = vmatpush1.bf16.msra.mxu1 %v14250_v40  ;;  %v14330_v38 = vld [vmem:[#allocation8 + $0xbcc] ss:$16 sps:$4 sm:$0xff]   ;;  %v14325_v40 = vld [vmem:[#allocation8 + $0xbc0] ss:$16 sps:$4 sm:$0xff]  }
 0x622   : > { %8761 = vmatprep.subr.bf16.mxu0 %v14255_v43  ;;  %8847 = vmatprep.subr.bf16.mxu1 %v14258_v44  ;;  %v14328_v43 = vld [vmem:[#allocation8 + $0xbc8] ss:$16 sps:$4 sm:$0xff]   ;;  %v14333_v44 = vld [vmem:[#allocation8 + $0xbe4] ss:$16 sps:$4 sm:$0xff]  }
 0x625   : > { %8762 = vmatpush1.bf16.msra.mxu0 %v14253_v45  ;;  %8848 = vmatpush1.bf16.msra.mxu1 %v14256_v48  ;;  %v14336_v45 = vld [vmem:[#allocation8 + $0xbec] ss:$16 sps:$4 sm:$0xff]   ;;  %v8894_v48 = vld [vmem:[#allocation5 + $0x30] sm:$0xff] }
 0x626   : > { %8763 = vmatprep.subr.bf16.mxu0 %v14261_v49  ;;  %8849 = vmatprep.subr.bf16.mxu1 %v14264_v50  ;;  %v8896_v49 = vld [vmem:[#allocation5 + $0x70] sm:$0xff]  ;;  %v8895_v50 = vld [vmem:[#allocation5 + $0x38] sm:$0xff] }
 0x629   : > { %8764 = vmatpush1.bf16.msra.mxu0 %v14259_v51  ;;  %8850 = vmatpush1.bf16.msra.mxu1 %v14262_v36  ;;  %v8897_v51 = vld [vmem:[#allocation5 + $0x78] sm:$0xff]  ;;  %v14331_v36 = vld [vmem:[#allocation8 + $0xbe0] ss:$16 sps:$4 sm:$0xff]  }
 0x62a   : > { %8765 = vmatprep.subr.bf16.mxu0 %v14267_v52  ;;  %8851 = vmatprep.subr.bf16.mxu1 %v14270_v53  ;;  %v14334_v52 = vld [vmem:[#allocation8 + $0xbe8] ss:$16 sps:$4 sm:$0xff]   ;;  %v13091_v53 = vcombine.high %v8894_v48, %v8896_v49 }
 0x62d   : > { %8766 = vmatpush1.bf16.msra.mxu0 %v14265_v54  ;;  %8852 = vmatpush1.bf16.msra.mxu1 %v14268_v56  ;;  %v13093_v54 = vcombine.high %v8895_v50, %v8897_v51  ;;  %v8898_v56 = vld [vmem:[#allocation5 + $0xb0] sm:$0xff] }
 0x62e   : > { %8767 = vmatprep.subr.bf16.mxu0 %v14273_v47  ;;  %8853 = vmatprep.subr.bf16.mxu1 %v14276_v59  ;;  %v8900_v47 = vld [vmem:[#allocation5 + $0xf0] sm:$0xff]  ;;  %v8899_v59 = vld [vmem:[#allocation5 + $0xb8] sm:$0xff] }
 0x631   : > { %8768 = vmatpush1.bf16.msra.mxu0 %v14271_v60  ;;  %8854 = vmatpush1.bf16.msra.mxu1 %v14274_v61  ;;  %v8901_v60 = vld [vmem:[#allocation5 + $0xf8] sm:$0xff]  ;;  %v13090_v61 = vcombine.low %v8894_v48, %v8896_v49 }
 0x632   : > { %8769 = vmatprep.subr.bf16.mxu0 %v14279_v62  ;;  %8855 = vmatprep.subr.bf16.mxu1 %v14282_v63  ;;  %v13092_v62 = vcombine.low %v8895_v50, %v8897_v51  ;;  %v13095_v63 = vcombine.high %v8898_v56, %v8900_v47  ;;  %v8922_v51 = vld [vmem:[#allocation5 + $0x3b0] sm:$0xff] }
 0x635   : > { %8770 = vmatpush1.bf16.msra.mxu0 %v14277_v0  ;;  %8856 = vmatpush1.bf16.msra.mxu1 %v14280_v2  ;;  %v13097_v0 = vcombine.high %v8899_v59, %v8901_v60  ;;  %v8902_v2 = vld [vmem:[#allocation5 + $0x130] sm:$0xff] }
 0x636   : > { %8771 = vmatprep.subr.bf16.mxu0 %v14285_v3  ;;  %8857 = vmatprep.subr.bf16.mxu1 %v14288_v4  ;;  %v8904_v3 = vld [vmem:[#allocation5 + $0x170] sm:$0xff]  ;;  %v8903_v4 = vld [vmem:[#allocation5 + $0x138] sm:$0xff] }
 0x639   : > { %8772 = vmatpush1.bf16.msra.mxu0 %v14283_v5  ;;  %8858 = vmatpush1.bf16.msra.mxu1 %v14286_v6  ;;  %v8905_v5 = vld [vmem:[#allocation5 + $0x178] sm:$0xff]  ;;  %v13094_v6 = vcombine.low %v8898_v56, %v8900_v47 }
 0x63a   : > { %8773 = vmatprep.subr.bf16.mxu0 %v14291_v7  ;;  %8859 = vmatprep.subr.bf16.mxu1 %v14294_v8  ;;  %v13096_v7 = vcombine.low %v8899_v59, %v8901_v60  ;;  %v13099_v8 = vcombine.high %v8902_v2, %v8904_v3  ;;  %v8926_v60 = vld [vmem:[#allocation5 + $0x430] sm:$0xff] }
 0x63d   : > { %8774 = vmatpush1.bf16.msra.mxu0 %v14289_v9  ;;  %8860 = vmatpush1.bf16.msra.mxu1 %v14292_v10  ;;  %v13101_v9 = vcombine.high %v8903_v4, %v8905_v5  ;;  %v8906_v10 = vld [vmem:[#allocation5 + $0x1b0] sm:$0xff] }
 0x63e   : > { %8775 = vmatprep.subr.bf16.mxu0 %v14297_v11  ;;  %8861 = vmatprep.subr.bf16.mxu1 %v14300_v12  ;;  %v8908_v11 = vld [vmem:[#allocation5 + $0x1f0] sm:$0xff]  ;;  %v8907_v12 = vld [vmem:[#allocation5 + $0x1b8] sm:$0xff] }
 0x641   : > { %8776 = vmatpush1.bf16.msra.mxu0 %v14295_v13  ;;  %8862 = vmatpush1.bf16.msra.mxu1 %v14298_v14  ;;  %v8909_v13 = vld [vmem:[#allocation5 + $0x1f8] sm:$0xff]  ;;  %v13098_v14 = vcombine.low %v8902_v2, %v8904_v3 }
 0x642   : > { %8777 = vmatprep.subr.bf16.mxu0 %v14303_v16  ;;  %8863 = vmatprep.subr.bf16.mxu1 %v14306_v17  ;;  %v13103_v16 = vcombine.high %v8906_v10, %v8908_v11  ;;  %v13105_v17 = vcombine.high %v8907_v12, %v8909_v13 }
 0x645   : > { %8778 = vmatpush1.bf16.msra.mxu0 %v14301_v41  ;;  %8864 = vmatpush1.bf16.msra.mxu1 %v14304_v18  ;;  %v8910_v41 = vld [vmem:[#allocation5 + $0x230] sm:$0xff] }
 0x646   : > { %8779 = vmatprep.subr.bf16.mxu0 %v14309_v19  ;;  %8865 = vmatprep.subr.bf16.mxu1 %v14312_v20  ;;  %v8912_v18 = vld [vmem:[#allocation5 + $0x270] sm:$0xff]  ;;  %v8911_v19 = vld [vmem:[#allocation5 + $0x238] sm:$0xff] }
 0x647   : > { %v8913_v20 = vld [vmem:[#allocation5 + $0x278] sm:$0xff] }
 0x649   : > { %8780 = vmatpush1.bf16.msra.mxu0 %v14307_v21  ;;  %8866 = vmatpush1.bf16.msra.mxu1 %v14310_v22  ;;  %v13102_v21 = vcombine.low %v8906_v10, %v8908_v11  ;;  %v13104_v22 = vcombine.low %v8907_v12, %v8909_v13  ;;  %v8934_v13 = vld [vmem:[#allocation5 + $0x530] sm:$0xff] }
 0x64a   : > { %8781 = vmatprep.subr.bf16.mxu0 %v14315_v23  ;;  %8867 = vmatprep.subr.bf16.mxu1 %v14318_v24  ;;  %v13107_v23 = vcombine.high %v8910_v41, %v8912_v18  ;;  %v8914_v24 = vld [vmem:[#allocation5 + $0x2b0] sm:$0xff] }
 0x64d   : > { %8782 = vmatpush1.bf16.msra.mxu0 %v14313_v26  ;;  %8868 = vmatpush1.bf16.msra.mxu1 %v14316_v57  ;;  %v8916_v26 = vld [vmem:[#allocation5 + $0x2f0] sm:$0xff]  ;;  %v8915_v57 = vld [vmem:[#allocation5 + $0x2b8] sm:$0xff] }
 0x64e   : > { %8783 = vmatprep.subr.bf16.mxu0 %v14321_v29  ;;  %8869 = vmatprep.subr.bf16.mxu1 %v14324_v31  ;;  %v8917_v29 = vld [vmem:[#allocation5 + $0x2f8] sm:$0xff]  ;;  %v13106_v31 = vcombine.low %v8910_v41, %v8912_v18 }
 0x64f   : > { %v13112_v48 = vcombine.low %v8915_v57, %v8917_v29 }
 0x651   : > { %8784 = vmatpush1.bf16.msra.mxu0 %v14319_v32  ;;  %8870 = vmatpush1.bf16.msra.mxu1 %v14322_v42  ;;  %v13108_v32 = vcombine.low %v8911_v19, %v8913_v20  ;;  %v13111_v42 = vcombine.high %v8914_v24, %v8916_v26 }
 0x652   : > { %8785 = vmatprep.subr.bf16.mxu0 %v14327_v33  ;;  %8871 = vmatprep.subr.bf16.mxu1 %v14330_v38  ;;  %v13113_v33 = vcombine.high %v8915_v57, %v8917_v29  ;;  %v8918_v38 = vld [vmem:[#allocation5 + $0x330] sm:$0xff] }
 0x653   : > { %v8942_v29 = vld [vmem:[#allocation5 + $0x630] sm:$0xff] }
 0x655   : > { %8786 = vmatpush1.bf16.msra.mxu0 %v14325_v40  ;;  %8872 = vmatpush1.bf16.msra.mxu1 %v14328_v43  ;;  %v8920_v40 = vld [vmem:[#allocation5 + $0x370] sm:$0xff]  ;;  %v8919_v43 = vld [vmem:[#allocation5 + $0x338] sm:$0xff] }
 0x656   : > { %8787 = vmatprep.subr.bf16.mxu0 %v14333_v44  ;;  %8873 = vmatprep.subr.bf16.mxu1 %v14336_v45  ;;  %v8921_v44 = vld [vmem:[#allocation5 + $0x378] sm:$0xff]  ;;  %v13110_v45 = vcombine.low %v8914_v24, %v8916_v26  ;;  %v13115_v49 = vcombine.high %v8918_v38, %v8920_v40 }
 0x657   : > { %v13117_v50 = vcombine.high %v8919_v43, %v8921_v44  ;;  %v13116_v56 = vcombine.low %v8919_v43, %v8921_v44  ;;  %v8946_v44 = vld [vmem:[#allocation5 + $0x6b0] sm:$0xff] }
 0x659   : > { %8788 = vmatpush1.bf16.msra.mxu0 %v14331_v36  ;;  %8874 = vmatpush1.bf16.msra.mxu1 %v14334_v52  ;;  %v8924_v36 = vld [vmem:[#allocation5 + $0x3f0] sm:$0xff]  ;;  %v8923_v52 = vld [vmem:[#allocation5 + $0x3b8] sm:$0xff] }
 0x65a   : > { %10452 = vmatprep.subr.bf16.mxu0 %v13091_v53  ;;  %10624 = vmatprep.subr.bf16.mxu1 %v13093_v54  ;;  %v8925_v53 = vld [vmem:[#allocation5 + $0x3f8] sm:$0xff]  ;;  %v13114_v54 = vcombine.low %v8918_v38, %v8920_v40  ;;  %v13119_v47 = vcombine.high %v8922_v51, %v8924_v36 }
 0x65b   : > { %v13121_v59 = vcombine.high %v8923_v52, %v8925_v53  ;;  %v13120_v2 = vcombine.low %v8923_v52, %v8925_v53  ;;  %v8950_v53 = vld [vmem:[#allocation5 + $0x730] sm:$0xff] }
 0x65c   : > { %8790 = vmatmul.mubr.bf16.vlgmr.msra.gmra.mrb[8].mxu0 %v15148_v27  ;;  %8876 = vmatmul.mubr.bf16.vlgmr.msra.gmra.mrb[8].mxu1 %v15148_v27  ;;  %v13100_v27 = vcombine.low %v8903_v4, %v8905_v5  ;;  %v8930_v5 = vld [vmem:[#allocation5 + $0x4b0] sm:$0xff] }
 0x65d   : > { %10453 = vmatpush1.bf16.msra.mxu0 %v13090_v61  ;;  %10625 = vmatpush1.bf16.msra.mxu1 %v13092_v62  ;;  %v8928_v61 = vld [vmem:[#allocation5 + $0x470] sm:$0xff]  ;;  %v8927_v62 = vld [vmem:[#allocation5 + $0x438] sm:$0xff] }
 0x65e   : > { %10454 = vmatprep.subr.bf16.mxu0 %v13095_v63  ;;  %10626 = vmatprep.subr.bf16.mxu1 %v13097_v0  ;;  %v8929_v63 = vld [vmem:[#allocation5 + $0x478] sm:$0xff]  ;;  %v13118_v0 = vcombine.low %v8922_v51, %v8924_v36  ;;  %v13123_v3 = vcombine.high %v8926_v60, %v8928_v61 }
 0x65f   : > { %10484 = vmatprep.mubr.bf16.mxu0 %v15030_v58  ;;  %10656 = vmatprep.mubr.bf16.mxu1 %v15030_v58  ;;  %v13109_v58 = vcombine.high %v8911_v19, %v8913_v20  ;;  %v13125_v4 = vcombine.high %v8927_v62, %v8929_v63  ;;  %v13124_v10 = vcombine.low %v8927_v62, %v8929_v63  ;;  %v8938_v20 = vld [vmem:[#allocation5 + $0x5b0] sm:$0xff] }
 0x660   : > { %v8954_v63 = vld [vmem:[#allocation5 + $0x7b0] sm:$0xff] }
 0x661   : > { %10455 = vmatpush1.bf16.msra.mxu0 %v13094_v6  ;;  %10627 = vmatpush1.bf16.msra.mxu1 %v13096_v7  ;;  %v8932_v6 = vld [vmem:[#allocation5 + $0x4f0] sm:$0xff]  ;;  %v8931_v7 = vld [vmem:[#allocation5 + $0x4b8] sm:$0xff] }
 0x662   : > { %10456 = vmatprep.subr.bf16.mxu0 %v13099_v8  ;;  %10628 = vmatprep.subr.bf16.mxu1 %v13101_v9  ;;  %v8933_v8 = vld [vmem:[#allocation5 + $0x4f8] sm:$0xff]  ;;  %v13122_v9 = vcombine.low %v8926_v60, %v8928_v61  ;;  %v13127_v11 = vcombine.high %v8930_v5, %v8932_v6 }
 0x663   : > { %v13129_v12 = vcombine.high %v8931_v7, %v8933_v8  ;;  %v13128_v41 = vcombine.low %v8931_v7, %v8933_v8  ;;  %v8958_v8 = vld [vmem:[#allocation5 + $0x830] sm:$0xff] }
 0x665   : > { %10457 = vmatpush1.bf16.msra.mxu0 %v13098_v14  ;;  %10629 = vmatpush1.bf16.msra.mxu1 %v13100_v27  ;;  %v8936_v14 = vld [vmem:[#allocation5 + $0x570] sm:$0xff]  ;;  %v8935_v27 = vld [vmem:[#allocation5 + $0x538] sm:$0xff] }
 0x666   : > { %10458 = vmatprep.subr.bf16.mxu0 %v13103_v16  ;;  %10630 = vmatprep.subr.bf16.mxu1 %v13105_v17  ;;  %v8937_v16 = vld [vmem:[#allocation5 + $0x578] sm:$0xff]  ;;  %v13126_v17 = vcombine.low %v8930_v5, %v8932_v6  ;;  %v13131_v18 = vcombine.high %v8934_v13, %v8936_v14 }
 0x667   : > { %v13133_v19 = vcombine.high %v8935_v27, %v8937_v16  ;;  %v13132_v24 = vcombine.low %v8935_v27, %v8937_v16  ;;  %v8962_v16 = vld [vmem:[#allocation5 + $0x8b0] sm:$0xff] }
 0x669   : > { %10459 = vmatpush1.bf16.msra.mxu0 %v13102_v21  ;;  %10631 = vmatpush1.bf16.msra.mxu1 %v13104_v22  ;;  %v8940_v21 = vld [vmem:[#allocation5 + $0x5f0] sm:$0xff]  ;;  %v8939_v22 = vld [vmem:[#allocation5 + $0x5b8] sm:$0xff] }
 0x66a   : > { %10460 = vmatprep.subr.bf16.mxu0 %v13107_v23  ;;  %10632 = vmatprep.subr.bf16.mxu1 %v13109_v58  ;;  %v8941_v23 = vld [vmem:[#allocation5 + $0x5f8] sm:$0xff]  ;;  %v13130_v58 = vcombine.low %v8934_v13, %v8936_v14  ;;  %v13135_v26 = vcombine.high %v8938_v20, %v8940_v21 }
 0x66b   : > { %v13137_v57 = vcombine.high %v8939_v22, %v8941_v23  ;;  %v13136_v38 = vcombine.low %v8939_v22, %v8941_v23  ;;  %v8966_v23 = vld [vmem:[#allocation5 + $0x930] sm:$0xff] }
 0x66d   : > { %10461 = vmatpush1.bf16.msra.mxu0 %v13106_v31  ;;  %10633 = vmatpush1.bf16.msra.mxu1 %v13108_v32  ;;  %v8944_v31 = vld [vmem:[#allocation5 + $0x670] sm:$0xff]  ;;  %v8943_v32 = vld [vmem:[#allocation5 + $0x638] sm:$0xff] }
 0x66e   : > { %10462 = vmatprep.subr.bf16.mxu0 %v13111_v42  ;;  %10634 = vmatprep.subr.bf16.mxu1 %v13113_v33  ;;  %v8945_v42 = vld [vmem:[#allocation5 + $0x678] sm:$0xff]  ;;  %v13134_v33 = vcombine.low %v8938_v20, %v8940_v21  ;;  %v13139_v40 = vcombine.high %v8942_v29, %v8944_v31 }
 0x66f   : > { %v13141_v43 = vcombine.high %v8943_v32, %v8945_v42  ;;  %v13140_v51 = vcombine.low %v8943_v32, %v8945_v42  ;;  %v8970_v42 = vld [vmem:[#allocation5 + $0x9b0] sm:$0xff] }
 0x671   : > { %10463 = vmatpush1.bf16.msra.mxu0 %v13110_v45  ;;  %10635 = vmatpush1.bf16.msra.mxu1 %v13112_v48  ;;  %v8948_v45 = vld [vmem:[#allocation5 + $0x6f0] sm:$0xff]  ;;  %v8947_v48 = vld [vmem:[#allocation5 + $0x6b8] sm:$0xff] }
 0x672   : > { %10464 = vmatprep.subr.bf16.mxu0 %v13115_v49  ;;  %10636 = vmatprep.subr.bf16.mxu1 %v13117_v50  ;;  %v8949_v49 = vld [vmem:[#allocation5 + $0x6f8] sm:$0xff]  ;;  %v13138_v50 = vcombine.low %v8942_v29, %v8944_v31  ;;  %v13143_v36 = vcombine.high %v8946_v44, %v8948_v45 }
 0x673   : > { %v13145_v52 = vcombine.high %v8947_v48, %v8949_v49  ;;  %v13144_v60 = vcombine.low %v8947_v48, %v8949_v49  ;;  %v8974_v48 = vld [vmem:[#allocation5 + $0xa30] sm:$0xff] }
 0x674   : > { %v8976_v49 = vld [vmem:[#allocation5 + $0xa70] sm:$0xff] }
 0x675   : > { %10465 = vmatpush1.bf16.msra.mxu0 %v13114_v54  ;;  %10637 = vmatpush1.bf16.msra.mxu1 %v13116_v56  ;;  %v8952_v54 = vld [vmem:[#allocation5 + $0x770] sm:$0xff]  ;;  %v8951_v56 = vld [vmem:[#allocation5 + $0x738] sm:$0xff] }
 0x676   : > { %10466 = vmatprep.subr.bf16.mxu0 %v13119_v47  ;;  %10638 = vmatprep.subr.bf16.mxu1 %v13121_v59  ;;  %v8953_v47 = vld [vmem:[#allocation5 + $0x778] sm:$0xff]  ;;  %v13142_v59 = vcombine.low %v8946_v44, %v8948_v45  ;;  %v13147_v61 = vcombine.high %v8950_v53, %v8952_v54 }
 0x677   : > { %v13149_v62 = vcombine.high %v8951_v56, %v8953_v47  ;;  %v13148_v5 = vcombine.low %v8951_v56, %v8953_v47  ;;  %v8980_v56 = vld [vmem:[#allocation5 + $0xaf0] sm:$0xff]  ;;  %v8979_v47 = vld [vmem:[#allocation5 + $0xab8] sm:$0xff] }
 0x679   : > { %10467 = vmatpush1.bf16.msra.mxu0 %v13118_v0  ;;  %10639 = vmatpush1.bf16.msra.mxu1 %v13120_v2  ;;  %v8956_v0 = vld [vmem:[#allocation5 + $0x7f0] sm:$0xff]  ;;  %v8955_v2 = vld [vmem:[#allocation5 + $0x7b8] sm:$0xff] }
 0x67a   : > { %10468 = vmatprep.subr.bf16.mxu0 %v13123_v3  ;;  %10640 = vmatprep.subr.bf16.mxu1 %v13125_v4  ;;  %v8957_v3 = vld [vmem:[#allocation5 + $0x7f8] sm:$0xff]  ;;  %v13146_v4 = vcombine.low %v8950_v53, %v8952_v54  ;;  %v13151_v6 = vcombine.high %v8954_v63, %v8956_v0  ;;  %v13171_v53 = vcombine.high %v8974_v48, %v8976_v49  ;;  %v8978_v54 = vld [vmem:[#allocation5 + $0xab0] sm:$0xff] }
 0x67b   : > { %v13153_v7 = vcombine.high %v8955_v2, %v8957_v3  ;;  %v13152_v13 = vcombine.low %v8955_v2, %v8957_v3  ;;  %v8984_v2 = vld [vmem:[#allocation5 + $0xb70] sm:$0xff]  ;;  %v8983_v3 = vld [vmem:[#allocation5 + $0xb38] sm:$0xff] }
 0x67d   : > { %10469 = vmatpush1.bf16.msra.mxu0 %v13122_v9  ;;  %10641 = vmatpush1.bf16.msra.mxu1 %v13124_v10  ;;  %v8960_v9 = vld [vmem:[#allocation5 + $0x870] sm:$0xff]  ;;  %v8959_v10 = vld [vmem:[#allocation5 + $0x838] sm:$0xff] }
 0x67e   : > { %10470 = vmatprep.subr.bf16.mxu0 %v13127_v11  ;;  %10642 = vmatprep.subr.bf16.mxu1 %v13129_v12  ;;  %v8961_v11 = vld [vmem:[#allocation5 + $0x878] sm:$0xff]  ;;  %v13150_v12 = vcombine.low %v8954_v63, %v8956_v0  ;;  %v13155_v14 = vcombine.high %v8958_v8, %v8960_v9  ;;  %v8982_v0 = vld [vmem:[#allocation5 + $0xb30] sm:$0xff] }
 0x67f   : > { %v13157_v27 = vcombine.high %v8959_v10, %v8961_v11  ;;  %v13156_v20 = vcombine.low %v8959_v10, %v8961_v11  ;;  %v8988_v10 = vld [vmem:[#allocation5 + $0xbf0] sm:$0xff]  ;;  %v8987_v11 = vld [vmem:[#allocation5 + $0xbb8] sm:$0xff] }
 0x681   : > { %10471 = vmatpush1.bf16.msra.mxu0 %v13126_v17  ;;  %10643 = vmatpush1.bf16.msra.mxu1 %v13128_v41  ;;  %v8964_v17 = vld [vmem:[#allocation5 + $0x8f0] sm:$0xff]  ;;  %v8963_v41 = vld [vmem:[#allocation5 + $0x8b8] sm:$0xff] }
 0x682   : > { %10472 = vmatprep.subr.bf16.mxu0 %v13131_v18  ;;  %10644 = vmatprep.subr.bf16.mxu1 %v13133_v19  ;;  %v8965_v18 = vld [vmem:[#allocation5 + $0x8f8] sm:$0xff]  ;;  %v13154_v19 = vcombine.low %v8958_v8, %v8960_v9  ;;  %v13159_v21 = vcombine.high %v8962_v16, %v8964_v17  ;;  %v8986_v9 = vld [vmem:[#allocation5 + $0xbb0] sm:$0xff] }
 0x683   : > { %v13161_v22 = vcombine.high %v8963_v41, %v8965_v18  ;;  %v13160_v29 = vcombine.low %v8963_v41, %v8965_v18  ;;  %v8992_v41 = vld [vmem:[#allocation5 + $0xc70] sm:$0xff]  ;;  %v8991_v18 = vld [vmem:[#allocation5 + $0xc38] sm:$0xff] }
 0x685   : > { %10473 = vmatpush1.bf16.msra.mxu0 %v13130_v58  ;;  %10645 = vmatpush1.bf16.msra.mxu1 %v13132_v24  ;;  %v8968_v58 = vld [vmem:[#allocation5 + $0x970] sm:$0xff]  ;;  %v8967_v24 = vld [vmem:[#allocation5 + $0x938] sm:$0xff] }
 0x686   : > { %10474 = vmatprep.subr.bf16.mxu0 %v13135_v26  ;;  %10646 = vmatprep.subr.bf16.mxu1 %v13137_v57  ;;  %v8969_v26 = vld [vmem:[#allocation5 + $0x978] sm:$0xff]  ;;  %v13158_v57 = vcombine.low %v8962_v16, %v8964_v17  ;;  %v13163_v31 = vcombine.high %v8966_v23, %v8968_v58  ;;  %v8990_v17 = vld [vmem:[#allocation5 + $0xc30] sm:$0xff] }
 0x687   : > { %v13165_v32 = vcombine.high %v8967_v24, %v8969_v26 }
 0x689   : > { %10475 = vmatpush1.bf16.msra.mxu0 %v13134_v33  ;;  %10647 = vmatpush1.bf16.msra.mxu1 %v13136_v38  ;;  %v8972_v33 = vld [vmem:[#allocation5 + $0x9f0] sm:$0xff]  ;;  %v8971_v38 = vld [vmem:[#allocation5 + $0x9b8] sm:$0xff] }
 0x68a   : > { %10476 = vmatprep.subr.bf16.mxu0 %v13139_v40  ;;  %10648 = vmatprep.subr.bf16.mxu1 %v13141_v43  ;;  %v8973_v40 = vld [vmem:[#allocation5 + $0x9f8] sm:$0xff]  ;;  %v13162_v43 = vcombine.low %v8966_v23, %v8968_v58  ;;  %v13167_v44 = vcombine.high %v8970_v42, %v8972_v33  ;;  %v8994_v58 = vld [vmem:[#allocation5 + $0xcb0] sm:$0xff] }
 0x68b   : > { %v13169_v45 = vcombine.high %v8971_v38, %v8973_v40 }
 0x68d   : > { %10477 = vmatpush1.bf16.msra.mxu0 %v13138_v50  ;;  %10649 = vmatpush1.bf16.msra.mxu1 %v13140_v51  ;;  %v8975_v50 = vld [vmem:[#allocation5 + $0xa38] sm:$0xff] }
 0x68e   : > { %10478 = vmatprep.subr.bf16.mxu0 %v13143_v36  ;;  %10650 = vmatprep.subr.bf16.mxu1 %v13145_v52  ;;  %v8977_v51 = vld [vmem:[#allocation5 + $0xa78] sm:$0xff]  ;;  %v13166_v36 = vcombine.low %v8970_v42, %v8972_v33  ;;  %v13168_v52 = vcombine.low %v8971_v38, %v8973_v40  ;;  %v8998_v33 = vld [vmem:[#allocation5 + $0xd30] sm:$0xff] }
 0x68f   : > { %v9000_v38 = vld [vmem:[#allocation5 + $0xd70] sm:$0xff]  ;;  %v8999_v40 = vld [vmem:[#allocation5 + $0xd38] sm:$0xff] }
 0x691   : > { %10479 = vmatpush1.bf16.msra.mxu0 %v13142_v59  ;;  %10651 = vmatpush1.bf16.msra.mxu1 %v13144_v60  ;;  %v8981_v59 = vld [vmem:[#allocation5 + $0xaf8] sm:$0xff]  ;;  %v13170_v60 = vcombine.low %v8974_v48, %v8976_v49  ;;  %v9002_v49 = vld [vmem:[#allocation5 + $0xdb0] sm:$0xff] }
 0x692   : > { %10480 = vmatprep.subr.bf16.mxu0 %v13147_v61  ;;  %10652 = vmatprep.subr.bf16.mxu1 %v13149_v62  ;;  %v13172_v61 = vcombine.low %v8975_v50, %v8977_v51  ;;  %v13175_v62 = vcombine.high %v8978_v54, %v8980_v56  ;;  %v13177_v63 = vcombine.high %v8979_v47, %v8981_v59 }
 0x695   : > { %10481 = vmatpush1.bf16.msra.mxu0 %v13146_v4  ;;  %10653 = vmatpush1.bf16.msra.mxu1 %v13148_v5  ;;  %v8985_v4 = vld [vmem:[#allocation5 + $0xb78] sm:$0xff]  ;;  %v13174_v5 = vcombine.low %v8978_v54, %v8980_v56  ;;  %v9006_v56 = vld [vmem:[#allocation5 + $0xe30] sm:$0xff] }
 0x696   : > { %10482 = vmatprep.subr.bf16.mxu0 %v13151_v6  ;;  %10654 = vmatprep.subr.bf16.mxu1 %v13153_v7  ;;  %v13176_v6 = vcombine.low %v8979_v47, %v8981_v59  ;;  %v13179_v7 = vcombine.high %v8982_v0, %v8984_v2  ;;  %v13181_v8 = vcombine.high %v8983_v3, %v8985_v4  ;;  %v9008_v47 = vld [vmem:[#allocation5 + $0xe70] sm:$0xff]  ;;  %v9007_v59 = vld [vmem:[#allocation5 + $0xe38] sm:$0xff] }
 0x699   : > { %10483 = vmatpush1.bf16.msra.mxu0 %v13150_v12  ;;  %10655 = vmatpush1.bf16.msra.mxu1 %v13152_v13  ;;  %v8989_v12 = vld [vmem:[#allocation5 + $0xbf8] sm:$0xff]  ;;  %v13178_v13 = vcombine.low %v8982_v0, %v8984_v2  ;;  %v9010_v2 = vld [vmem:[#allocation5 + $0xeb0] sm:$0xff] }
 0x69a   : > { %10495 = vmatprep.subr.bf16.mxu0 %v13155_v14  ;;  %10667 = vmatprep.subr.bf16.mxu1 %v13157_v27  ;;  %v13180_v14 = vcombine.low %v8983_v3, %v8985_v4  ;;  %v13183_v27 = vcombine.high %v8986_v9, %v8988_v10  ;;  %v13185_v16 = vcombine.high %v8987_v11, %v8989_v12  ;;  %v9012_v3 = vld [vmem:[#allocation5 + $0xef0] sm:$0xff]  ;;  %v9011_v4 = vld [vmem:[#allocation5 + $0xeb8] sm:$0xff] }
 0x69c   : > { %10485 = vmatmul.mubr.bf16.vlgmr.msra.gmra.mrb[16].mxu0 %v15036_v15  ;;  %10657 = vmatmul.mubr.bf16.vlgmr.msra.gmra.mrb[16].mxu1 %v15036_v15  ;;  %v13164_v15 = vcombine.low %v8967_v24, %v8969_v26  ;;  %v8996_v24 = vld [vmem:[#allocation5 + $0xcf0] sm:$0xff]  ;;  %v8995_v26 = vld [vmem:[#allocation5 + $0xcb8] sm:$0xff] }
 0x69d   : > { %10496 = vmatpush1.bf16.msra.mxu0 %v13154_v19  ;;  %10668 = vmatpush1.bf16.msra.mxu1 %v13156_v20  ;;  %v8993_v19 = vld [vmem:[#allocation5 + $0xc78] sm:$0xff]  ;;  %v13182_v20 = vcombine.low %v8986_v9, %v8988_v10  ;;  %v9014_v10 = vld [vmem:[#allocation5 + $0xf30] sm:$0xff] }
 0x69e   : > { %10497 = vmatprep.subr.bf16.mxu0 %v13159_v21  ;;  %10669 = vmatprep.subr.bf16.mxu1 %v13161_v22  ;;  %v13184_v21 = vcombine.low %v8987_v11, %v8989_v12  ;;  %v13187_v22 = vcombine.high %v8990_v17, %v8992_v41  ;;  %v13189_v23 = vcombine.high %v8991_v18, %v8993_v19  ;;  %v9016_v11 = vld [vmem:[#allocation5 + $0xf70] sm:$0xff]  ;;  %v9015_v12 = vld [vmem:[#allocation5 + $0xf38] sm:$0xff] }
 0x69f   : > { %10527 = vmatprep.mubr.bf16.mxu0 %v15040_v25  ;;  %10699 = vmatprep.mubr.bf16.mxu1 %v15040_v25  ;;  %v13173_v25 = vcombine.high %v8975_v50, %v8977_v51  ;;  %v9004_v50 = vld [vmem:[#allocation5 + $0xdf0] sm:$0xff]  ;;  %v9003_v51 = vld [vmem:[#allocation5 + $0xdb8] sm:$0xff] }
 0x6a1   : > { %10498 = vmatpush1.bf16.msra.mxu0 %v13158_v57  ;;  %10670 = vmatpush1.bf16.msra.mxu1 %v13160_v29  ;;  %v8997_v57 = vld [vmem:[#allocation5 + $0xcf8] sm:$0xff]  ;;  %v13186_v29 = vcombine.low %v8990_v17, %v8992_v41  ;;  %v9018_v41 = vld [vmem:[#allocation5 + $0xfb0] sm:$0xff] }
 0x6a2   : > { %10499 = vmatprep.subr.bf16.mxu0 %v13163_v31  ;;  %10671 = vmatprep.subr.bf16.mxu1 %v13165_v32  ;;  %v13188_v31 = vcombine.low %v8991_v18, %v8993_v19  ;;  %v13191_v32 = vcombine.high %v8994_v58, %v8996_v24  ;;  %v13193_v42 = vcombine.high %v8995_v26, %v8997_v57  ;;  %v9020_v18 = vld [vmem:[#allocation5 + $0xff0] sm:$0xff]  ;;  %v9019_v19 = vld [vmem:[#allocation5 + $0xfb8] sm:$0xff] }
 0x6a5   : > { %10500 = vmatpush1.bf16.msra.mxu0 %v13162_v43  ;;  %10672 = vmatpush1.bf16.msra.mxu1 %v13164_v15  ;;  %v9001_v43 = vld [vmem:[#allocation5 + $0xd78] sm:$0xff]  ;;  %v13190_v15 = vcombine.low %v8994_v58, %v8996_v24  ;;  %v9022_v24 = vld [vmem:[#allocation5 + $0x1030] sm:$0xff] }
 0x6a6   : > { %10501 = vmatprep.subr.bf16.mxu0 %v13167_v44  ;;  %10673 = vmatprep.subr.bf16.mxu1 %v13169_v45  ;;  %v13192_v44 = vcombine.low %v8995_v26, %v8997_v57  ;;  %v13195_v45 = vcombine.high %v8998_v33, %v9000_v38  ;;  %v13197_v48 = vcombine.high %v8999_v40, %v9001_v43  ;;  %v9024_v26 = vld [vmem:[#allocation5 + $0x1070] sm:$0xff]  ;;  %v9023_v57 = vld [vmem:[#allocation5 + $0x1038] sm:$0xff] }
 0x6a9   : > { %10502 = vmatpush1.bf16.msra.mxu0 %v13166_v36  ;;  %10674 = vmatpush1.bf16.msra.mxu1 %v13168_v52  ;;  %v9005_v36 = vld [vmem:[#allocation5 + $0xdf8] sm:$0xff]  ;;  %v13194_v52 = vcombine.low %v8998_v33, %v9000_v38  ;;  %v9026_v38 = vld [vmem:[#allocation5 + $0x10b0] sm:$0xff] }
 0x6aa   : > { %10503 = vmatprep.subr.bf16.mxu0 %v13171_v53  ;;  %10675 = vmatprep.subr.bf16.mxu1 %v13173_v25  ;;  %v13196_v53 = vcombine.low %v8999_v40, %v9001_v43  ;;  %v13199_v25 = vcombine.high %v9002_v49, %v9004_v50  ;;  %v13201_v54 = vcombine.high %v9003_v51, %v9005_v36  ;;  %v9028_v40 = vld [vmem:[#allocation5 + $0x10f0] sm:$0xff]  ;;  %v9027_v43 = vld [vmem:[#allocation5 + $0x10b8] sm:$0xff] }
 0x6ad   : > { %10504 = vmatpush1.bf16.msra.mxu0 %v13170_v60  ;;  %10676 = vmatpush1.bf16.msra.mxu1 %v13172_v61  ;;  %v9009_v60 = vld [vmem:[#allocation5 + $0xe78] sm:$0xff]  ;;  %v13198_v61 = vcombine.low %v9002_v49, %v9004_v50  ;;  %v9030_v50 = vld [vmem:[#allocation5 + $0x1130] sm:$0xff] }
 0x6ae   : > { %10505 = vmatprep.subr.bf16.mxu0 %v13175_v62  ;;  %10677 = vmatprep.subr.bf16.mxu1 %v13177_v63  ;;  %v13200_v62 = vcombine.low %v9003_v51, %v9005_v36  ;;  %v13203_v63 = vcombine.high %v9006_v56, %v9008_v47  ;;  %v13205_v0 = vcombine.high %v9007_v59, %v9009_v60  ;;  %v9032_v51 = vld [vmem:[#allocation5 + $0x1170] sm:$0xff]  ;;  %v9031_v36 = vld [vmem:[#allocation5 + $0x1138] sm:$0xff] }
 0x6b1   : > { %10506 = vmatpush1.bf16.msra.mxu0 %v13174_v5  ;;  %10678 = vmatpush1.bf16.msra.mxu1 %v13176_v6  ;;  %v9013_v5 = vld [vmem:[#allocation5 + $0xef8] sm:$0xff]  ;;  %v13202_v6 = vcombine.low %v9006_v56, %v9008_v47  ;;  %v9034_v47 = vld [vmem:[#allocation5 + $0x11b0] sm:$0xff] }
 0x6b2   : > { %10507 = vmatprep.subr.bf16.mxu0 %v13179_v7  ;;  %10679 = vmatprep.subr.bf16.mxu1 %v13181_v8  ;;  %v13204_v7 = vcombine.low %v9007_v59, %v9009_v60  ;;  %v13207_v8 = vcombine.high %v9010_v2, %v9012_v3  ;;  %v13209_v9 = vcombine.high %v9011_v4, %v9013_v5  ;;  %v9036_v59 = vld [vmem:[#allocation5 + $0x11f0] sm:$0xff]  ;;  %v9035_v60 = vld [vmem:[#allocation5 + $0x11b8] sm:$0xff] }
 0x6b5   : > { %10508 = vmatpush1.bf16.msra.mxu0 %v13178_v13  ;;  %10680 = vmatpush1.bf16.msra.mxu1 %v13180_v14  ;;  %v9017_v13 = vld [vmem:[#allocation5 + $0xf78] sm:$0xff]  ;;  %v13206_v14 = vcombine.low %v9010_v2, %v9012_v3  ;;  %v9038_v2 = vld [vmem:[#allocation5 + $0x1230] sm:$0xff] }
 0x6b6   : > { %10509 = vmatprep.subr.bf16.mxu0 %v13183_v27  ;;  %10681 = vmatprep.subr.bf16.mxu1 %v13185_v16  ;;  %v13208_v27 = vcombine.low %v9011_v4, %v9013_v5  ;;  %v13211_v16 = vcombine.high %v9014_v10, %v9016_v11  ;;  %v13213_v17 = vcombine.high %v9015_v12, %v9017_v13  ;;  %v9040_v3 = vld [vmem:[#allocation5 + $0x1270] sm:$0xff]  ;;  %v9039_v4 = vld [vmem:[#allocation5 + $0x1238] sm:$0xff] }
 0x6b7   : > { %v9041_v5 = vld [vmem:[#allocation5 + $0x1278] sm:$0xff] }
 0x6b9   : > { %10510 = vmatpush1.bf16.msra.mxu0 %v13182_v20  ;;  %10682 = vmatpush1.bf16.msra.mxu1 %v13184_v21  ;;  %v9021_v20 = vld [vmem:[#allocation5 + $0xff8] sm:$0xff]  ;;  %v13210_v21 = vcombine.low %v9014_v10, %v9016_v11  ;;  %v9044_v10 = vld [vmem:[#allocation5 + $0x12f0] sm:$0xff] }
 0x6ba   : > { %10511 = vmatprep.subr.bf16.mxu0 %v13187_v22  ;;  %10683 = vmatprep.subr.bf16.mxu1 %v13189_v23  ;;  %v13212_v22 = vcombine.low %v9015_v12, %v9017_v13  ;;  %v13215_v23 = vcombine.high %v9018_v41, %v9020_v18  ;;  %v13217_v58 = vcombine.high %v9019_v19, %v9021_v20  ;;  %v9043_v11 = vld [vmem:[#allocation5 + $0x12b8] sm:$0xff] }
 0x6bb   : > { %v9045_v12 = vld [vmem:[#allocation5 + $0x12f8] sm:$0xff]  ;;  %v13234_v13 = vcombine.low %v9038_v2, %v9040_v3 }
 0x6bd   : > { %10512 = vmatpush1.bf16.msra.mxu0 %v13186_v29  ;;  %10684 = vmatpush1.bf16.msra.mxu1 %v13188_v31  ;;  %v9025_v29 = vld [vmem:[#allocation5 + $0x1078] sm:$0xff]  ;;  %v13214_v31 = vcombine.low %v9018_v41, %v9020_v18  ;;  %v9048_v41 = vld [vmem:[#allocation5 + $0x1370] sm:$0xff] }
 0x6be   : > { %10513 = vmatprep.subr.bf16.mxu0 %v13191_v32  ;;  %10685 = vmatprep.subr.bf16.mxu1 %v13193_v42  ;;  %v13216_v32 = vcombine.low %v9019_v19, %v9021_v20  ;;  %v13219_v42 = vcombine.high %v9022_v24, %v9024_v26  ;;  %v13221_v33 = vcombine.high %v9023_v57, %v9025_v29  ;;  %v9047_v18 = vld [vmem:[#allocation5 + $0x1338] sm:$0xff] }
 0x6bf   : > { %v9049_v19 = vld [vmem:[#allocation5 + $0x1378] sm:$0xff] }
 0x6c1   : > { %10514 = vmatpush1.bf16.msra.mxu0 %v13190_v15  ;;  %10686 = vmatpush1.bf16.msra.mxu1 %v13192_v44  ;;  %v9029_v15 = vld [vmem:[#allocation5 + $0x10f8] sm:$0xff]  ;;  %v13218_v44 = vcombine.low %v9022_v24, %v9024_v26  ;;  %v9052_v24 = vld [vmem:[#allocation5 + $0x13f0] sm:$0xff] }
 0x6c2   : > { %10515 = vmatprep.subr.bf16.mxu0 %v13195_v45  ;;  %10687 = vmatprep.subr.bf16.mxu1 %v13197_v48  ;;  %v13220_v45 = vcombine.low %v9023_v57, %v9025_v29  ;;  %v13223_v48 = vcombine.high %v9026_v38, %v9028_v40  ;;  %v13225_v49 = vcombine.high %v9027_v43, %v9029_v15  ;;  %v9051_v26 = vld [vmem:[#allocation5 + $0x13b8] sm:$0xff] }
 0x6c3   : > { %v9053_v57 = vld [vmem:[#allocation5 + $0x13f8] sm:$0xff] }
 0x6c5   : > { %10516 = vmatpush1.bf16.msra.mxu0 %v13194_v52  ;;  %10688 = vmatpush1.bf16.msra.mxu1 %v13196_v53  ;;  %v9033_v52 = vld [vmem:[#allocation5 + $0x1178] sm:$0xff]  ;;  %v13222_v53 = vcombine.low %v9026_v38, %v9028_v40  ;;  %v9056_v38 = vld [vmem:[#allocation5 + $0x1470] sm:$0xff] }
 0x6c6   : > { %10517 = vmatprep.subr.bf16.mxu0 %v13199_v25  ;;  %10689 = vmatprep.subr.bf16.mxu1 %v13201_v54  ;;  %v13224_v25 = vcombine.low %v9027_v43, %v9029_v15  ;;  %v13227_v54 = vcombine.high %v9030_v50, %v9032_v51  ;;  %v13229_v56 = vcombine.high %v9031_v36, %v9033_v52  ;;  %v9055_v40 = vld [vmem:[#allocation5 + $0x1438] sm:$0xff] }
 0x6c7   : > { %v9057_v43 = vld [vmem:[#allocation5 + $0x1478] sm:$0xff] }
 0x6c9   : > { %10518 = vmatpush1.bf16.msra.mxu0 %v13198_v61  ;;  %10690 = vmatpush1.bf16.msra.mxu1 %v13200_v62  ;;  %v9037_v61 = vld [vmem:[#allocation5 + $0x11f8] sm:$0xff]  ;;  %v13226_v62 = vcombine.low %v9030_v50, %v9032_v51  ;;  %v9060_v50 = vld [vmem:[#allocation5 + $0x14f0] sm:$0xff] }
 0x6ca   : > { %10519 = vmatprep.subr.bf16.mxu0 %v13203_v63  ;;  %10691 = vmatprep.subr.bf16.mxu1 %v13205_v0  ;;  %v13231_v63 = vcombine.high %v9034_v47, %v9036_v59  ;;  %v13233_v0 = vcombine.high %v9035_v60, %v9037_v61  ;;  %v9059_v51 = vld [vmem:[#allocation5 + $0x14b8] sm:$0xff] }
 0x6cd   : > { %10520 = vmatpush1.bf16.msra.mxu0 %v13202_v6  ;;  %10692 = vmatpush1.bf16.msra.mxu1 %v13204_v7  ;;  %v13230_v6 = vcombine.low %v9034_v47, %v9036_v59  ;;  %v13232_v7 = vcombine.low %v9035_v60, %v9037_v61  ;;  %v9064_v47 = vld [vmem:[#allocation5 + $0x1570] sm:$0xff]  ;;  %v9063_v59 = vld [vmem:[#allocation5 + $0x1538] sm:$0xff] }
 0x6ce   : > { %10521 = vmatprep.subr.bf16.mxu0 %v13207_v8  ;;  %10693 = vmatprep.subr.bf16.mxu1 %v13209_v9  ;;  %v13235_v8 = vcombine.high %v9038_v2, %v9040_v3  ;;  %v9042_v9 = vld [vmem:[#allocation5 + $0x12b0] sm:$0xff]  ;;  %v9065_v60 = vld [vmem:[#allocation5 + $0x1578] sm:$0xff] }
 0x6cf   : > { %v13238_v20 = vcombine.low %v9042_v9, %v9044_v10  ;;  %v9068_v2 = vld [vmem:[#allocation5 + $0x15f0] sm:$0xff]  ;;  %v9067_v3 = vld [vmem:[#allocation5 + $0x15b8] sm:$0xff] }
 0x6d1   : > { %10522 = vmatpush1.bf16.msra.mxu0 %v13206_v14  ;;  %10694 = vmatpush1.bf16.msra.mxu1 %v13208_v27  ;;  %v13236_v14 = vcombine.low %v9039_v4, %v9041_v5  ;;  %v13239_v27 = vcombine.high %v9042_v9, %v9044_v10  ;;  %v9072_v9 = vld [vmem:[#allocation5 + $0x1670] sm:$0xff]  ;;  %v9071_v10 = vld [vmem:[#allocation5 + $0x1638] sm:$0xff] }
 0x6d2   : > { %10523 = vmatprep.subr.bf16.mxu0 %v13211_v16  ;;  %10695 = vmatprep.subr.bf16.mxu1 %v13213_v17  ;;  %v13241_v16 = vcombine.high %v9043_v11, %v9045_v12  ;;  %v9046_v17 = vld [vmem:[#allocation5 + $0x1330] sm:$0xff] }
 0x6d3   : > { %v13242_v29 = vcombine.low %v9046_v17, %v9048_v41 }
 0x6d5   : > { %10524 = vmatpush1.bf16.msra.mxu0 %v13210_v21  ;;  %10696 = vmatpush1.bf16.msra.mxu1 %v13212_v22  ;;  %v13240_v21 = vcombine.low %v9043_v11, %v9045_v12  ;;  %v13243_v22 = vcombine.high %v9046_v17, %v9048_v41  ;;  %v9073_v11 = vld [vmem:[#allocation5 + $0x1678] sm:$0xff]  ;;  %v9076_v17 = vld [vmem:[#allocation5 + $0x16f0] sm:$0xff] }
 0x6d6   : > { %10525 = vmatprep.subr.bf16.mxu0 %v13215_v23  ;;  %10697 = vmatprep.subr.bf16.mxu1 %v13217_v58  ;;  %v13245_v23 = vcombine.high %v9047_v18, %v9049_v19  ;;  %v9050_v58 = vld [vmem:[#allocation5 + $0x13b0] sm:$0xff]  ;;  %v9075_v41 = vld [vmem:[#allocation5 + $0x16b8] sm:$0xff] }
 0x6d7   : > { %v13246_v15 = vcombine.low %v9050_v58, %v9052_v24 }
 0x6d9   : > { %10526 = vmatpush1.bf16.msra.mxu0 %v13214_v31  ;;  %10698 = vmatpush1.bf16.msra.mxu1 %v13216_v32  ;;  %v13244_v31 = vcombine.low %v9047_v18, %v9049_v19  ;;  %v13247_v32 = vcombine.high %v9050_v58, %v9052_v24  ;;  %v9077_v18 = vld [vmem:[#allocation5 + $0x16f8] sm:$0xff]  ;;  %v9080_v58 = vld [vmem:[#allocation5 + $0x1770] sm:$0xff] }
 0x6da   : > { %10538 = vmatprep.subr.bf16.mxu0 %v13219_v42  ;;  %10710 = vmatprep.subr.bf16.mxu1 %v13221_v33  ;;  %v13249_v42 = vcombine.high %v9051_v26, %v9053_v57  ;;  %v9054_v33 = vld [vmem:[#allocation5 + $0x1430] sm:$0xff]  ;;  %v9079_v24 = vld [vmem:[#allocation5 + $0x1738] sm:$0xff] }
 0x6dc   : > { %10528 = vmatmul.mubr.bf16.vlgmr.msra.gmra.mrb[16].mxu0 %v15050_v30  ;;  %10700 = vmatmul.mubr.bf16.vlgmr.msra.gmra.mrb[16].mxu1 %v15050_v30  ;;  %v13228_v30 = vcombine.low %v9031_v36, %v9033_v52  ;;  %v9061_v36 = vld [vmem:[#allocation5 + $0x14f8] sm:$0xff]  ;;  %v13250_v52 = vcombine.low %v9054_v33, %v9056_v38 }
 0x6dd   : > { %10539 = vmatpush1.bf16.msra.mxu0 %v13218_v44  ;;  %10711 = vmatpush1.bf16.msra.mxu1 %v13220_v45  ;;  %v13248_v44 = vcombine.low %v9051_v26, %v9053_v57  ;;  %v13251_v45 = vcombine.high %v9054_v33, %v9056_v38  ;;  %v9081_v26 = vld [vmem:[#allocation5 + $0x1778] sm:$0xff]  ;;  %v9084_v33 = vld [vmem:[#allocation5 + $0x17f0] sm:$0xff] }
 0x6de   : > { %10540 = vmatprep.subr.bf16.mxu0 %v13223_v48  ;;  %10712 = vmatprep.subr.bf16.mxu1 %v13225_v49  ;;  %v13253_v48 = vcombine.high %v9055_v40, %v9057_v43  ;;  %v9058_v49 = vld [vmem:[#allocation5 + $0x14b0] sm:$0xff]  ;;  %v9083_v38 = vld [vmem:[#allocation5 + $0x17b8] sm:$0xff] }
 0x6df   : > { %10570 = vmatprep.mubr.bf16.mxu0 %v15052_v39  ;;  %10742 = vmatprep.mubr.bf16.mxu1 %v15052_v39  ;;  %v13237_v39 = vcombine.high %v9039_v4, %v9041_v5  ;;  %v13254_v61 = vcombine.low %v9058_v49, %v9060_v50  ;;  %v9069_v4 = vld [vmem:[#allocation5 + $0x15f8] sm:$0xff] }
 0x6e1   : > { %10541 = vmatpush1.bf16.msra.mxu0 %v13222_v53  ;;  %10713 = vmatpush1.bf16.msra.mxu1 %v13224_v25  ;;  %v13252_v53 = vcombine.low %v9055_v40, %v9057_v43  ;;  %v13255_v25 = vcombine.high %v9058_v49, %v9060_v50  ;;  %v9085_v40 = vld [vmem:[#allocation5 + $0x17f8] sm:$0xff]  ;;  %v9088_v49 = vld [vmem:[#allocation5 + $0x1870] sm:$0xff] }
 0x6e2   : > { %10542 = vmatprep.subr.bf16.mxu0 %v13227_v54  ;;  %10714 = vmatprep.subr.bf16.mxu1 %v13229_v56  ;;  %v13257_v54 = vcombine.high %v9059_v51, %v9061_v36  ;;  %v9062_v56 = vld [vmem:[#allocation5 + $0x1530] sm:$0xff]  ;;  %v9087_v50 = vld [vmem:[#allocation5 + $0x1838] sm:$0xff] }
 0x6e3   : > { %v13258_v5 = vcombine.low %v9062_v56, %v9064_v47 }
 0x6e5   : > { %10543 = vmatpush1.bf16.msra.mxu0 %v13226_v62  ;;  %10715 = vmatpush1.bf16.msra.mxu1 %v13228_v30  ;;  %v13256_v62 = vcombine.low %v9059_v51, %v9061_v36  ;;  %v13259_v30 = vcombine.high %v9062_v56, %v9064_v47  ;;  %v9089_v51 = vld [vmem:[#allocation5 + $0x1878] sm:$0xff]  ;;  %v9092_v56 = vld [vmem:[#allocation5 + $0x18f0] sm:$0xff] }
 0x6e6   : > { %10544 = vmatprep.subr.bf16.mxu0 %v13231_v63  ;;  %10716 = vmatprep.subr.bf16.mxu1 %v13233_v0  ;;  %v13261_v63 = vcombine.high %v9063_v59, %v9065_v60  ;;  %v9066_v0 = vld [vmem:[#allocation5 + $0x15b0] sm:$0xff]  ;;  %v9091_v47 = vld [vmem:[#allocation5 + $0x18b8] sm:$0xff] }
 0x6e7   : > { %v13262_v12 = vcombine.low %v9066_v0, %v9068_v2 }
 0x6e9   : > { %10545 = vmatpush1.bf16.msra.mxu0 %v13230_v6  ;;  %10717 = vmatpush1.bf16.msra.mxu1 %v13232_v7  ;;  %v13260_v6 = vcombine.low %v9063_v59, %v9065_v60  ;;  %v13263_v7 = vcombine.high %v9066_v0, %v9068_v2  ;;  %v9093_v59 = vld [vmem:[#allocation5 + $0x18f8] sm:$0xff]  ;;  %v9096_v0 = vld [vmem:[#allocation5 + $0x1970] sm:$0xff] }
 0x6ea   : > { %10546 = vmatprep.subr.bf16.mxu0 %v13235_v8  ;;  %10718 = vmatprep.subr.bf16.mxu1 %v13237_v39  ;;  %v13265_v8 = vcombine.high %v9067_v3, %v9069_v4  ;;  %v9070_v39 = vld [vmem:[#allocation5 + $0x1630] sm:$0xff]  ;;  %v9095_v2 = vld [vmem:[#allocation5 + $0x1938] sm:$0xff] }
 0x6eb   : > { %v13266_v19 = vcombine.low %v9070_v39, %v9072_v9 }
 0x6ed   : > { %10547 = vmatpush1.bf16.msra.mxu0 %v13234_v13  ;;  %10719 = vmatpush1.bf16.msra.mxu1 %v13236_v14  ;;  %v13264_v13 = vcombine.low %v9067_v3, %v9069_v4  ;;  %v13267_v14 = vcombine.high %v9070_v39, %v9072_v9  ;;  %v9097_v3 = vld [vmem:[#allocation5 + $0x1978] sm:$0xff]  ;;  %v9100_v39 = vld [vmem:[#allocation5 + $0x19f0] sm:$0xff] }
 0x6ee   : > { %10548 = vmatprep.subr.bf16.mxu0 %v13239_v27  ;;  %10720 = vmatprep.subr.bf16.mxu1 %v13241_v16  ;;  %v13269_v27 = vcombine.high %v9071_v10, %v9073_v11  ;;  %v9074_v16 = vld [vmem:[#allocation5 + $0x16b0] sm:$0xff]  ;;  %v9099_v9 = vld [vmem:[#allocation5 + $0x19b8] sm:$0xff] }
 0x6ef   : > { %v13270_v57 = vcombine.low %v9074_v16, %v9076_v17 }
 0x6f1   : > { %10549 = vmatpush1.bf16.msra.mxu0 %v13238_v20  ;;  %10721 = vmatpush1.bf16.msra.mxu1 %v13240_v21  ;;  %v13268_v20 = vcombine.low %v9071_v10, %v9073_v11  ;;  %v13271_v21 = vcombine.high %v9074_v16, %v9076_v17  ;;  %v9101_v10 = vld [vmem:[#allocation5 + $0x19f8] sm:$0xff] }
 0x6f2   : > { %10550 = vmatprep.subr.bf16.mxu0 %v13243_v22  ;;  %10722 = vmatprep.subr.bf16.mxu1 %v13245_v23  ;;  %v13273_v22 = vcombine.high %v9075_v41, %v9077_v18  ;;  %v9078_v23 = vld [vmem:[#allocation5 + $0x1730] sm:$0xff]  ;;  %v9103_v16 = vld [vmem:[#allocation5 + $0x1a38] sm:$0xff] }
 0x6f3   : > { %v13274_v43 = vcombine.low %v9078_v23, %v9080_v58  ;;  %v9105_v17 = vld [vmem:[#allocation5 + $0x1a78] sm:$0xff] }
 0x6f5   : > { %10551 = vmatpush1.bf16.msra.mxu0 %v13242_v29  ;;  %10723 = vmatpush1.bf16.msra.mxu1 %v13244_v31  ;;  %v13272_v29 = vcombine.low %v9075_v41, %v9077_v18  ;;  %v13275_v31 = vcombine.high %v9078_v23, %v9080_v58  ;;  %v13296_v18 = vcombine.low %v9099_v9, %v9101_v10  ;;  %v9109_v23 = vld [vmem:[#allocation5 + $0x1af8] sm:$0xff] }
 0x6f6   : > { %10552 = vmatprep.subr.bf16.mxu0 %v13247_v32  ;;  %10724 = vmatprep.subr.bf16.mxu1 %v13249_v42  ;;  %v13277_v32 = vcombine.high %v9079_v24, %v9081_v26  ;;  %v9082_v42 = vld [vmem:[#allocation5 + $0x17b0] sm:$0xff] }
 0x6f7   : > { %v13278_v36 = vcombine.low %v9082_v42, %v9084_v33 }
 0x6f9   : > { %10553 = vmatpush1.bf16.msra.mxu0 %v13246_v15  ;;  %10725 = vmatpush1.bf16.msra.mxu1 %v13248_v44  ;;  %v13276_v15 = vcombine.low %v9079_v24, %v9081_v26  ;;  %v13279_v44 = vcombine.high %v9082_v42, %v9084_v33  ;;  %v13300_v24 = vcombine.low %v9103_v16, %v9105_v17  ;;  %v9113_v42 = vld [vmem:[#allocation5 + $0x1b78] sm:$0xff] }
 0x6fa   : > { %10554 = vmatprep.subr.bf16.mxu0 %v13251_v45  ;;  %10726 = vmatprep.subr.bf16.mxu1 %v13253_v48  ;;  %v13281_v45 = vcombine.high %v9083_v38, %v9085_v40  ;;  %v9086_v48 = vld [vmem:[#allocation5 + $0x1830] sm:$0xff] }
 0x6fb   : > { %v13282_v60 = vcombine.low %v9086_v48, %v9088_v49 }
 0x6fd   : > { %10555 = vmatpush1.bf16.msra.mxu0 %v13250_v52  ;;  %10727 = vmatpush1.bf16.msra.mxu1 %v13252_v53  ;;  %v13280_v52 = vcombine.low %v9083_v38, %v9085_v40  ;;  %v13283_v53 = vcombine.high %v9086_v48, %v9088_v49  ;;  %v9117_v48 = vld [vmem:[#allocation5 + $0x1bf8] sm:$0xff] }
 0x6fe   : > { %10556 = vmatprep.subr.bf16.mxu0 %v13255_v25  ;;  %10728 = vmatprep.subr.bf16.mxu1 %v13257_v54  ;;  %v13285_v25 = vcombine.high %v9087_v50, %v9089_v51  ;;  %v9090_v54 = vld [vmem:[#allocation5 + $0x18b0] sm:$0xff] }
 0x6ff   : > { %v13286_v4 = vcombine.low %v9090_v54, %v9092_v56 }
 0x701   : > { %10557 = vmatpush1.bf16.msra.mxu0 %v13254_v61  ;;  %10729 = vmatpush1.bf16.msra.mxu1 %v13256_v62  ;;  %v13284_v61 = vcombine.low %v9087_v50, %v9089_v51  ;;  %v13287_v62 = vcombine.high %v9090_v54, %v9092_v56  ;;  %v9121_v54 = vld [vmem:[#allocation5 + $0x1c78] sm:$0xff] }
 0x702   : > { %10558 = vmatprep.subr.bf16.mxu0 %v13259_v30  ;;  %10730 = vmatprep.subr.bf16.mxu1 %v13261_v63  ;;  %v13289_v30 = vcombine.high %v9091_v47, %v9093_v59  ;;  %v9094_v63 = vld [vmem:[#allocation5 + $0x1930] sm:$0xff] }
 0x703   : > { %v13290_v11 = vcombine.low %v9094_v63, %v9096_v0 }
 0x705   : > { %10559 = vmatpush1.bf16.msra.mxu0 %v13258_v5  ;;  %10731 = vmatpush1.bf16.msra.mxu1 %v13260_v6  ;;  %v13288_v5 = vcombine.low %v9091_v47, %v9093_v59  ;;  %v13291_v6 = vcombine.high %v9094_v63, %v9096_v0  ;;  %v9125_v63 = vld [vmem:[#allocation5 + $0x1cf8] sm:$0xff] }
 0x706   : > { %10560 = vmatprep.subr.bf16.mxu0 %v13263_v7  ;;  %10732 = vmatprep.subr.bf16.mxu1 %v13265_v8  ;;  %v13293_v7 = vcombine.high %v9095_v2, %v9097_v3  ;;  %v9098_v8 = vld [vmem:[#allocation5 + $0x19b0] sm:$0xff] }
 0x707   : > { %v13294_v41 = vcombine.low %v9098_v8, %v9100_v39 }
 0x709   : > { %10561 = vmatpush1.bf16.msra.mxu0 %v13262_v12  ;;  %10733 = vmatpush1.bf16.msra.mxu1 %v13264_v13  ;;  %v13295_v12 = vcombine.high %v9098_v8, %v9100_v39  ;;  %v13297_v13 = vcombine.high %v9099_v9, %v9101_v10  ;;  %v9129_v8 = vld [vmem:[#allocation5 + $0x1d78] sm:$0xff] }
 0x70a   : > { %10562 = vmatprep.subr.bf16.mxu0 %v13267_v14  ;;  %10734 = vmatprep.subr.bf16.mxu1 %v13269_v27  ;;  %v9102_v14 = vld [vmem:[#allocation5 + $0x1a30] sm:$0xff] }
 0x70b   : > { %v9104_v27 = vld [vmem:[#allocation5 + $0x1a70] sm:$0xff] }
 0x70c   : > { %v13298_v58 = vcombine.low %v9102_v14, %v9104_v27 }
 0x70d   : > { %10563 = vmatpush1.bf16.msra.mxu0 %v13266_v19  ;;  %10735 = vmatpush1.bf16.msra.mxu1 %v13268_v20  ;;  %v13299_v19 = vcombine.high %v9102_v14, %v9104_v27  ;;  %v9106_v20 = vld [vmem:[#allocation5 + $0x1ab0] sm:$0xff]  ;;  %v9133_v14 = vld [vmem:[#allocation5 + $0x1df8] sm:$0xff] }
 0x70e   : > { %10564 = vmatprep.subr.bf16.mxu0 %v13271_v21  ;;  %10736 = vmatprep.subr.bf16.mxu1 %v13273_v22  ;;  %v9108_v21 = vld [vmem:[#allocation5 + $0x1af0] sm:$0xff]  ;;  %v9107_v22 = vld [vmem:[#allocation5 + $0x1ab8] sm:$0xff] }
 0x70f   : > { %v13303_v26 = vcombine.high %v9106_v20, %v9108_v21  ;;  %v13302_v33 = vcombine.low %v9106_v20, %v9108_v21  ;;  %v13304_v38 = vcombine.low %v9107_v22, %v9109_v23  ;;  %v9137_v20 = vld [vmem:[#allocation5 + $0x1e78] sm:$0xff] }
 0x711   : > { %10565 = vmatpush1.bf16.msra.mxu0 %v13270_v57  ;;  %10737 = vmatpush1.bf16.msra.mxu1 %v13272_v29  ;;  %v13305_v57 = vcombine.high %v9107_v22, %v9109_v23  ;;  %v9110_v29 = vld [vmem:[#allocation5 + $0x1b30] sm:$0xff] }
 0x712   : > { %10566 = vmatprep.subr.bf16.mxu0 %v13275_v31  ;;  %10738 = vmatprep.subr.bf16.mxu1 %v13277_v32  ;;  %v9112_v31 = vld [vmem:[#allocation5 + $0x1b70] sm:$0xff]  ;;  %v9111_v32 = vld [vmem:[#allocation5 + $0x1b38] sm:$0xff] }
 0x713   : > { %v13307_v40 = vcombine.high %v9110_v29, %v9112_v31  ;;  %v13306_v49 = vcombine.low %v9110_v29, %v9112_v31  ;;  %v13308_v50 = vcombine.low %v9111_v32, %v9113_v42  ;;  %v9141_v29 = vld [vmem:[#allocation5 + $0x1ef8] sm:$0xff] }
 0x715   : > { %10567 = vmatpush1.bf16.msra.mxu0 %v13274_v43  ;;  %10739 = vmatpush1.bf16.msra.mxu1 %v13276_v15  ;;  %v13309_v43 = vcombine.high %v9111_v32, %v9113_v42  ;;  %v9114_v15 = vld [vmem:[#allocation5 + $0x1bb0] sm:$0xff] }
 0x716   : > { %10568 = vmatprep.subr.bf16.mxu0 %v13279_v44  ;;  %10740 = vmatprep.subr.bf16.mxu1 %v13281_v45  ;;  %v9116_v44 = vld [vmem:[#allocation5 + $0x1bf0] sm:$0xff]  ;;  %v9115_v45 = vld [vmem:[#allocation5 + $0x1bb8] sm:$0xff] }
 0x717   : > { %v13311_v51 = vcombine.high %v9114_v15, %v9116_v44  ;;  %v13310_v56 = vcombine.low %v9114_v15, %v9116_v44  ;;  %v13312_v47 = vcombine.low %v9115_v45, %v9117_v48  ;;  %v9145_v15 = vld [vmem:[#allocation5 + $0x1f78] sm:$0xff] }
 0x719   : > { %10569 = vmatpush1.bf16.msra.mxu0 %v13278_v36  ;;  %10741 = vmatpush1.bf16.msra.mxu1 %v13280_v52  ;;  %v13313_v36 = vcombine.high %v9115_v45, %v9117_v48  ;;  %v9118_v52 = vld [vmem:[#allocation5 + $0x1c30] sm:$0xff] }
 0x71a   : > { %10581 = vmatprep.subr.bf16.mxu0 %v13283_v53  ;;  %10753 = vmatprep.subr.bf16.mxu1 %v13285_v25  ;;  %v9120_v53 = vld [vmem:[#allocation5 + $0x1c70] sm:$0xff]  ;;  %v9119_v25 = vld [vmem:[#allocation5 + $0x1c38] sm:$0xff] }
 0x71b   : > { %v13315_v59 = vcombine.high %v9118_v52, %v9120_v53  ;;  %v13314_v0 = vcombine.low %v9118_v52, %v9120_v53  ;;  %v9149_v52 = vld [vmem:[#allocation5 + $0x1ff8] sm:$0xff] }
 0x71c   : > { %10571 = vmatmul.mubr.bf16.vlgmr.msra.gmra.mrb[16].mxu0 %v15062_v46  ;;  %10743 = vmatmul.mubr.bf16.vlgmr.msra.gmra.mrb[16].mxu1 %v15062_v46  ;;  %v13292_v46 = vcombine.low %v9095_v2, %v9097_v3  ;;  %v13316_v2 = vcombine.low %v9119_v25, %v9121_v54 }
 0x71d   : > { %10582 = vmatpush1.bf16.msra.mxu0 %v13282_v60  ;;  %10754 = vmatpush1.bf16.msra.mxu1 %v13284_v61  ;;  %v13317_v60 = vcombine.high %v9119_v25, %v9121_v54  ;;  %v9122_v61 = vld [vmem:[#allocation5 + $0x1cb0] sm:$0xff] }
 0x71e   : > { %10583 = vmatprep.subr.bf16.mxu0 %v13287_v62  ;;  %10755 = vmatprep.subr.bf16.mxu1 %v13289_v30  ;;  %v9124_v62 = vld [vmem:[#allocation5 + $0x1cf0] sm:$0xff]  ;;  %v9123_v30 = vld [vmem:[#allocation5 + $0x1cb8] sm:$0xff] }
 0x71f   : > { %10613 = vmatprep.mubr.bf16.mxu0 %v15064_v55  ;;  %10785 = vmatprep.mubr.bf16.mxu1 %v15064_v55  ;;  %v13301_v55 = vcombine.high %v9103_v16, %v9105_v17  ;;  %v13319_v3 = vcombine.high %v9122_v61, %v9124_v62  ;;  %v13318_v39 = vcombine.low %v9122_v61, %v9124_v62  ;;  %v14342_v61 = vld [vmem:[#allocation8 + $0xc0c] ss:$16 sps:$4 sm:$0xff]   ;;  %v14337_v62 = vld [vmem:[#allocation8 + $0xc00] ss:$16 sps:$4 sm:$0xff]  }
 0x720   : > { %v13320_v9 = vcombine.low %v9123_v30, %v9125_v63 }
 0x721   : > { %10584 = vmatpush1.bf16.msra.mxu0 %v13286_v4  ;;  %10756 = vmatpush1.bf16.msra.mxu1 %v13288_v5  ;;  %v13321_v4 = vcombine.high %v9123_v30, %v9125_v63  ;;  %v9126_v5 = vld [vmem:[#allocation5 + $0x1d30] sm:$0xff]  ;;  %v14340_v30 = vld [vmem:[#allocation8 + $0xc08] ss:$16 sps:$4 sm:$0xff]  }
 0x722   : > { %10585 = vmatprep.subr.bf16.mxu0 %v13291_v6  ;;  %10757 = vmatprep.subr.bf16.mxu1 %v13293_v7  ;;  %v9128_v6 = vld [vmem:[#allocation5 + $0x1d70] sm:$0xff]  ;;  %v9127_v7 = vld [vmem:[#allocation5 + $0x1d38] sm:$0xff] }
 0x723   : > { %v13323_v10 = vcombine.high %v9126_v5, %v9128_v6  ;;  %v13322_v27 = vcombine.low %v9126_v5, %v9128_v6  ;;  %v13324_v16 = vcombine.low %v9127_v7, %v9129_v8  ;;  %v14345_v63 = vld [vmem:[#allocation8 + $0xc24] ss:$16 sps:$4 sm:$0xff]   ;;  %v14354_v5 = vld [vmem:[#allocation8 + $0xc4c] ss:$16 sps:$4 sm:$0xff]   ;;  %v14349_v6 = vld [vmem:[#allocation8 + $0xc40] ss:$16 sps:$4 sm:$0xff]  }
 0x725   : > { %10586 = vmatpush1.bf16.msra.mxu0 %v13290_v11  ;;  %10758 = vmatpush1.bf16.msra.mxu1 %v13292_v46  ;;  %v13325_v11 = vcombine.high %v9127_v7, %v9129_v8  ;;  %v9130_v46 = vld [vmem:[#allocation5 + $0x1db0] sm:$0xff]  ;;  %v14352_v7 = vld [vmem:[#allocation8 + $0xc48] ss:$16 sps:$4 sm:$0xff]  }
 0x726   : > { %10587 = vmatprep.subr.bf16.mxu0 %v13295_v12  ;;  %10759 = vmatprep.subr.bf16.mxu1 %v13297_v13  ;;  %v9132_v12 = vld [vmem:[#allocation5 + $0x1df0] sm:$0xff]  ;;  %v9131_v13 = vld [vmem:[#allocation5 + $0x1db8] sm:$0xff] }
 0x727   : > { %v13327_v17 = vcombine.high %v9130_v46, %v9132_v12  ;;  %v13326_v21 = vcombine.low %v9130_v46, %v9132_v12  ;;  %v13328_v22 = vcombine.low %v9131_v13, %v9133_v14  ;;  %v14357_v8 = vld [vmem:[#allocation8 + $0xc64] ss:$16 sps:$4 sm:$0xff]   ;;  %v14361_v46 = vld [vmem:[#allocation8 + $0xc80] ss:$16 sps:$4 sm:$0xff]   ;;  %v14364_v12 = vld [vmem:[#allocation8 + $0xc88] ss:$16 sps:$4 sm:$0xff]  }
 0x729   : > { %10588 = vmatpush1.bf16.msra.mxu0 %v13294_v41  ;;  %10760 = vmatpush1.bf16.msra.mxu1 %v13296_v18  ;;  %v13329_v41 = vcombine.high %v9131_v13, %v9133_v14  ;;  %v9134_v18 = vld [vmem:[#allocation5 + $0x1e30] sm:$0xff]  ;;  %v14372_v14 = vld [vmem:[#allocation8 + $0xcac] ss:$16 sps:$4 sm:$0xff]  }
 0x72a   : > { %10589 = vmatprep.subr.bf16.mxu0 %v13299_v19  ;;  %10761 = vmatprep.subr.bf16.mxu1 %v13301_v55  ;;  %v9136_v19 = vld [vmem:[#allocation5 + $0x1e70] sm:$0xff]  ;;  %v9135_v55 = vld [vmem:[#allocation5 + $0x1e38] sm:$0xff] }
 0x72b   : > { %v13331_v23 = vcombine.high %v9134_v18, %v9136_v19  ;;  %v13330_v31 = vcombine.low %v9134_v18, %v9136_v19  ;;  %v13332_v32 = vcombine.low %v9135_v55, %v9137_v20  ;;  %v14369_v13 = vld [vmem:[#allocation8 + $0xca4] ss:$16 sps:$4 sm:$0xff]   ;;  %v14373_v18 = vld [vmem:[#allocation8 + $0xcc0] ss:$16 sps:$4 sm:$0xff]   ;;  %v14376_v19 = vld [vmem:[#allocation8 + $0xcc8] ss:$16 sps:$4 sm:$0xff]  }
 0x72d   : > { %10590 = vmatpush1.bf16.msra.mxu0 %v13298_v58  ;;  %10762 = vmatpush1.bf16.msra.mxu1 %v13300_v24  ;;  %v13333_v58 = vcombine.high %v9135_v55, %v9137_v20  ;;  %v9138_v24 = vld [vmem:[#allocation5 + $0x1eb0] sm:$0xff]  ;;  %v14384_v20 = vld [vmem:[#allocation8 + $0xcec] ss:$16 sps:$4 sm:$0xff]  }
 0x72e   : > { %10591 = vmatprep.subr.bf16.mxu0 %v13303_v26  ;;  %10763 = vmatprep.subr.bf16.mxu1 %v13305_v57  ;;  %v9140_v26 = vld [vmem:[#allocation5 + $0x1ef0] sm:$0xff]  ;;  %v9139_v57 = vld [vmem:[#allocation5 + $0x1eb8] sm:$0xff] }
 0x72f   : > { %v13335_v42 = vcombine.high %v9138_v24, %v9140_v26  ;;  %v13334_v44 = vcombine.low %v9138_v24, %v9140_v26  ;;  %v13336_v45 = vcombine.low %v9139_v57, %v9141_v29  ;;  %v14381_v55 = vld [vmem:[#allocation8 + $0xce4] ss:$16 sps:$4 sm:$0xff]   ;;  %v14385_v24 = vld [vmem:[#allocation8 + $0xd00] ss:$16 sps:$4 sm:$0xff]   ;;  %v14388_v26 = vld [vmem:[#allocation8 + $0xd08] ss:$16 sps:$4 sm:$0xff]  }
 0x731   : > { %10592 = vmatpush1.bf16.msra.mxu0 %v13302_v33  ;;  %10764 = vmatpush1.bf16.msra.mxu1 %v13304_v38  ;;  %v13337_v33 = vcombine.high %v9139_v57, %v9141_v29  ;;  %v9142_v38 = vld [vmem:[#allocation5 + $0x1f30] sm:$0xff]  ;;  %v14396_v29 = vld [vmem:[#allocation8 + $0xd2c] ss:$16 sps:$4 sm:$0xff]  }
 0x732   : > { %10593 = vmatprep.subr.bf16.mxu0 %v13307_v40  ;;  %10765 = vmatprep.subr.bf16.mxu1 %v13309_v43  ;;  %v9144_v40 = vld [vmem:[#allocation5 + $0x1f70] sm:$0xff]  ;;  %v9143_v43 = vld [vmem:[#allocation5 + $0x1f38] sm:$0xff] }
 0x733   : > { %v13339_v48 = vcombine.high %v9142_v38, %v9144_v40  ;;  %v13338_v53 = vcombine.low %v9142_v38, %v9144_v40  ;;  %v13340_v25 = vcombine.low %v9143_v43, %v9145_v15  ;;  %v14393_v57 = vld [vmem:[#allocation8 + $0xd24] ss:$16 sps:$4 sm:$0xff]   ;;  %v14397_v38 = vld [vmem:[#allocation8 + $0xd40] ss:$16 sps:$4 sm:$0xff]   ;;  %v14400_v40 = vld [vmem:[#allocation8 + $0xd48] ss:$16 sps:$4 sm:$0xff]  }
 0x735   : > { %10594 = vmatpush1.bf16.msra.mxu0 %v13306_v49  ;;  %10766 = vmatpush1.bf16.msra.mxu1 %v13308_v50  ;;  %v13341_v49 = vcombine.high %v9143_v43, %v9145_v15  ;;  %v9146_v50 = vld [vmem:[#allocation5 + $0x1fb0] sm:$0xff]  ;;  %v14408_v15 = vld [vmem:[#allocation8 + $0xd6c] ss:$16 sps:$4 sm:$0xff]  }
 0x736   : > { %10595 = vmatprep.subr.bf16.mxu0 %v13311_v51  ;;  %10767 = vmatprep.subr.bf16.mxu1 %v13313_v36  ;;  %v9148_v51 = vld [vmem:[#allocation5 + $0x1ff0] sm:$0xff]  ;;  %v9147_v36 = vld [vmem:[#allocation5 + $0x1fb8] sm:$0xff] }
 0x737   : > { %v13343_v54 = vcombine.high %v9146_v50, %v9148_v51  ;;  %v14405_v43 = vld [vmem:[#allocation8 + $0xd64] ss:$16 sps:$4 sm:$0xff]  }
 0x739   : > { %10596 = vmatpush1.bf16.msra.mxu0 %v13310_v56  ;;  %10768 = vmatpush1.bf16.msra.mxu1 %v13312_v47  ;;  %v13345_v56 = vcombine.high %v9147_v36, %v9149_v52  ;;  %v13342_v47 = vcombine.low %v9146_v50, %v9148_v51  ;;  %v14409_v50 = vld [vmem:[#allocation8 + $0xd80] ss:$16 sps:$4 sm:$0xff]   ;;  %v14412_v51 = vld [vmem:[#allocation8 + $0xd88] ss:$16 sps:$4 sm:$0xff]  }
 0x73a   : > { %10597 = vmatprep.subr.bf16.mxu0 %v13315_v59  ;;  %10769 = vmatprep.subr.bf16.mxu1 %v13317_v60  ;;  %v13344_v59 = vcombine.low %v9147_v36, %v9149_v52  ;;  %v14339_v60 = vld [vmem:[#allocation8 + $0xc04] ss:$16 sps:$4 sm:$0xff]   ;;  %v14420_v52 = vld [vmem:[#allocation8 + $0xdac] ss:$16 sps:$4 sm:$0xff]  }
 0x73b   : > { %v14417_v36 = vld [vmem:[#allocation8 + $0xda4] ss:$16 sps:$4 sm:$0xff]  }
 0x73d   : > { %10598 = vmatpush1.bf16.msra.mxu0 %v13314_v0  ;;  %10770 = vmatpush1.bf16.msra.mxu1 %v13316_v2  ;;  %v14348_v0 = vld [vmem:[#allocation8 + $0xc2c] ss:$16 sps:$4 sm:$0xff]   ;;  %v14343_v2 = vld [vmem:[#allocation8 + $0xc20] ss:$16 sps:$4 sm:$0xff]  }
 0x73e   : > { %10599 = vmatprep.subr.bf16.mxu0 %v13319_v3  ;;  %10771 = vmatprep.subr.bf16.mxu1 %v13321_v4  ;;  %v14346_v3 = vld [vmem:[#allocation8 + $0xc28] ss:$16 sps:$4 sm:$0xff]   ;;  %v14351_v4 = vld [vmem:[#allocation8 + $0xc44] ss:$16 sps:$4 sm:$0xff]  }
 0x741   : > { %10600 = vmatpush1.bf16.msra.mxu0 %v13318_v39  ;;  %10772 = vmatpush1.bf16.msra.mxu1 %v13320_v9  ;;  %v14360_v39 = vld [vmem:[#allocation8 + $0xc6c] ss:$16 sps:$4 sm:$0xff]   ;;  %v14355_v9 = vld [vmem:[#allocation8 + $0xc60] ss:$16 sps:$4 sm:$0xff]  }
 0x742   : > { %10601 = vmatprep.subr.bf16.mxu0 %v13323_v10  ;;  %10773 = vmatprep.subr.bf16.mxu1 %v13325_v11  ;;  %v14363_v10 = vld [vmem:[#allocation8 + $0xc84] ss:$16 sps:$4 sm:$0xff]   ;;  %v14366_v11 = vld [vmem:[#allocation8 + $0xc8c] ss:$16 sps:$4 sm:$0xff]  }
 0x745   : > { %10602 = vmatpush1.bf16.msra.mxu0 %v13322_v27  ;;  %10774 = vmatpush1.bf16.msra.mxu1 %v13324_v16  ;;  %v14367_v27 = vld [vmem:[#allocation8 + $0xca0] ss:$16 sps:$4 sm:$0xff]   ;;  %v14370_v16 = vld [vmem:[#allocation8 + $0xca8] ss:$16 sps:$4 sm:$0xff]  }
 0x746   : > { %10603 = vmatprep.subr.bf16.mxu0 %v13327_v17  ;;  %10775 = vmatprep.subr.bf16.mxu1 %v13329_v41  ;;  %v14375_v17 = vld [vmem:[#allocation8 + $0xcc4] ss:$16 sps:$4 sm:$0xff]   ;;  %v14378_v41 = vld [vmem:[#allocation8 + $0xccc] ss:$16 sps:$4 sm:$0xff]  }
 0x749   : > { %10604 = vmatpush1.bf16.msra.mxu0 %v13326_v21  ;;  %10776 = vmatpush1.bf16.msra.mxu1 %v13328_v22  ;;  %v14379_v21 = vld [vmem:[#allocation8 + $0xce0] ss:$16 sps:$4 sm:$0xff]   ;;  %v14382_v22 = vld [vmem:[#allocation8 + $0xce8] ss:$16 sps:$4 sm:$0xff]  }
 0x74a   : > { %10605 = vmatprep.subr.bf16.mxu0 %v13331_v23  ;;  %10777 = vmatprep.subr.bf16.mxu1 %v13333_v58  ;;  %v14387_v23 = vld [vmem:[#allocation8 + $0xd04] ss:$16 sps:$4 sm:$0xff]   ;;  %v14390_v58 = vld [vmem:[#allocation8 + $0xd0c] ss:$16 sps:$4 sm:$0xff]  }
 0x74d   : > { %10606 = vmatpush1.bf16.msra.mxu0 %v13330_v31  ;;  %10778 = vmatpush1.bf16.msra.mxu1 %v13332_v32  ;;  %v14391_v31 = vld [vmem:[#allocation8 + $0xd20] ss:$16 sps:$4 sm:$0xff]   ;;  %v14394_v32 = vld [vmem:[#allocation8 + $0xd28] ss:$16 sps:$4 sm:$0xff]  }
 0x74e   : > { %10607 = vmatprep.subr.bf16.mxu0 %v13335_v42  ;;  %10779 = vmatprep.subr.bf16.mxu1 %v13337_v33  ;;  %v14399_v42 = vld [vmem:[#allocation8 + $0xd44] ss:$16 sps:$4 sm:$0xff]   ;;  %v14402_v33 = vld [vmem:[#allocation8 + $0xd4c] ss:$16 sps:$4 sm:$0xff]  }
 0x751   : > { %10608 = vmatpush1.bf16.msra.mxu0 %v13334_v44  ;;  %10780 = vmatpush1.bf16.msra.mxu1 %v13336_v45  ;;  %v14403_v44 = vld [vmem:[#allocation8 + $0xd60] ss:$16 sps:$4 sm:$0xff]   ;;  %v14406_v45 = vld [vmem:[#allocation8 + $0xd68] ss:$16 sps:$4 sm:$0xff]  }
 0x752   : > { %10609 = vmatprep.subr.bf16.mxu0 %v13339_v48  ;;  %10781 = vmatprep.subr.bf16.mxu1 %v13341_v49  ;;  %v14411_v48 = vld [vmem:[#allocation8 + $0xd84] ss:$16 sps:$4 sm:$0xff]   ;;  %v14414_v49 = vld [vmem:[#allocation8 + $0xd8c] ss:$16 sps:$4 sm:$0xff]  }
 0x755   : > { %10610 = vmatpush1.bf16.msra.mxu0 %v13338_v53  ;;  %10782 = vmatpush1.bf16.msra.mxu1 %v13340_v25  ;;  %v14415_v53 = vld [vmem:[#allocation8 + $0xda0] ss:$16 sps:$4 sm:$0xff]   ;;  %v14418_v25 = vld [vmem:[#allocation8 + $0xda8] ss:$16 sps:$4 sm:$0xff]  }
 0x756   : > { %10611 = vmatprep.subr.bf16.mxu0 %v13343_v54  ;;  %10783 = vmatprep.subr.bf16.mxu1 %v13345_v56  ;;  %v14423_v54 = vld [vmem:[#allocation8 + $0xdc4] ss:$16 sps:$4 sm:$0xff]   ;;  %v14426_v56 = vld [vmem:[#allocation8 + $0xdcc] ss:$16 sps:$4 sm:$0xff]  }
 0x759   : > { %10612 = vmatpush1.bf16.msra.mxu0 %v13342_v47  ;;  %10784 = vmatpush1.bf16.msra.mxu1 %v13344_v59  ;;  %v14421_v47 = vld [vmem:[#allocation8 + $0xdc0] ss:$16 sps:$4 sm:$0xff]   ;;  %v14424_v59 = vld [vmem:[#allocation8 + $0xdc8] ss:$16 sps:$4 sm:$0xff]  }
 0x75a   : > { %11576 = vmatprep.subr.bf16.mxu0 %v14339_v60  ;;  %11662 = vmatprep.subr.bf16.mxu1 %v14342_v61  ;;  %v14429_v60 = vld [vmem:[#allocation8 + $0xde4] ss:$16 sps:$4 sm:$0xff]   ;;  %v14432_v61 = vld [vmem:[#allocation8 + $0xdec] ss:$16 sps:$4 sm:$0xff]  }
 0x75c   : > { %10614 = vmatmul.mubr.bf16.vlgmr.msra.gmra.mrb[16].mxu0 %v15072_v1  ;;  %10786 = vmatmul.mubr.bf16.vlgmr.msra.gmra.mrb[16].mxu1 %v15072_v1  ;;  %v14358_v1 = vld [vmem:[#allocation8 + $0xc68] ss:$16 sps:$4 sm:$0xff]  }
 0x75d   : > { %11577 = vmatpush1.bf16.msra.mxu0 %v14337_v62  ;;  %11663 = vmatpush1.bf16.msra.mxu1 %v14340_v30  ;;  %v14427_v62 = vld [vmem:[#allocation8 + $0xde0] ss:$16 sps:$4 sm:$0xff]   ;;  %v14430_v30 = vld [vmem:[#allocation8 + $0xde8] ss:$16 sps:$4 sm:$0xff]  }
 0x75e   : > { %11578 = vmatprep.subr.bf16.mxu0 %v14345_v63  ;;  %11664 = vmatprep.subr.bf16.mxu1 %v14348_v0  ;;  %v14435_v63 = vld [vmem:[#allocation8 + $0xe04] ss:$16 sps:$4 sm:$0xff]   ;;  %v14438_v0 = vld [vmem:[#allocation8 + $0xe0c] ss:$16 sps:$4 sm:$0xff]  }
 0x761   : > { %11579 = vmatpush1.bf16.msra.mxu0 %v14343_v2  ;;  %11665 = vmatpush1.bf16.msra.mxu1 %v14346_v3  ;;  %v9150_v2 = vld [vmem:[#allocation7 + $0xc] sm:$0xf] }
 0x762   : > { %11580 = vmatprep.subr.bf16.mxu0 %v14351_v4  ;;  %11666 = vmatprep.subr.bf16.mxu1 %v14354_v5  ;;  %v9155_v3 = vrot.slane %v9150_v2, %v15090_v28  ;;  %v9163_v4 = vrot.slane %v9150_v2, %v15092_v34  ;;  %v9159_v5 = vrot.slane %v9150_v2, %v15094_v35 }
 0x765   : > { %11581 = vmatpush1.bf16.msra.mxu0 %v14349_v6  ;;  %11667 = vmatpush1.bf16.msra.mxu1 %v14352_v7  ;;  %v9167_v6 = vrot.slane %v9150_v2, %v15096_v37  ;;  %v14480_v2 = vld [vmem:[#allocation8 + $0xeec] ss:$16 sps:$4 sm:$0xff]  }
 0x766   : > { %11582 = vmatprep.subr.bf16.mxu0 %v14357_v8  ;;  %11668 = vmatprep.subr.bf16.mxu1 %v14360_v39 }
 0x769   : > { %11583 = vmatpush1.bf16.msra.mxu0 %v14355_v9  ;;  %11669 = vmatpush1.bf16.msra.mxu1 %v14358_v1 }
 0x76a   : > { %11584 = vmatprep.subr.bf16.mxu0 %v14363_v10  ;;  %11670 = vmatprep.subr.bf16.mxu1 %v14366_v11 }
 0x76d   : > { %11585 = vmatpush1.bf16.msra.mxu0 %v14361_v46  ;;  %11671 = vmatpush1.bf16.msra.mxu1 %v14364_v12 }
 0x76e   : > { %11586 = vmatprep.subr.bf16.mxu0 %v14369_v13  ;;  %11672 = vmatprep.subr.bf16.mxu1 %v14372_v14 }
 0x771   : > { %11587 = vmatpush1.bf16.msra.mxu0 %v14367_v27  ;;  %11673 = vmatpush1.bf16.msra.mxu1 %v14370_v16 }
 0x772   : > { %11588 = vmatprep.subr.bf16.mxu0 %v14375_v17  ;;  %11674 = vmatprep.subr.bf16.mxu1 %v14378_v41 }
 0x775   : > { %11589 = vmatpush1.bf16.msra.mxu0 %v14373_v18  ;;  %11675 = vmatpush1.bf16.msra.mxu1 %v14376_v19 }
 0x776   : > { %11590 = vmatprep.subr.bf16.mxu0 %v14381_v55  ;;  %11676 = vmatprep.subr.bf16.mxu1 %v14384_v20 }
 0x779   : > { %11591 = vmatpush1.bf16.msra.mxu0 %v14379_v21  ;;  %11677 = vmatpush1.bf16.msra.mxu1 %v14382_v22 }
 0x77a   : > { %11592 = vmatprep.subr.bf16.mxu0 %v14387_v23  ;;  %11678 = vmatprep.subr.bf16.mxu1 %v14390_v58 }
 0x77d   : > { %11593 = vmatpush1.bf16.msra.mxu0 %v14385_v24  ;;  %11679 = vmatpush1.bf16.msra.mxu1 %v14388_v26 }
 0x77e   : > { %11594 = vmatprep.subr.bf16.mxu0 %v14393_v57  ;;  %11680 = vmatprep.subr.bf16.mxu1 %v14396_v29 }
 0x781   : > { %11595 = vmatpush1.bf16.msra.mxu0 %v14391_v31  ;;  %11681 = vmatpush1.bf16.msra.mxu1 %v14394_v32  ;;  %v14433_v32 = vld [vmem:[#allocation8 + $0xe00] ss:$16 sps:$4 sm:$0xff]  }
 0x782   : > { %11596 = vmatprep.subr.bf16.mxu0 %v14399_v42  ;;  %11682 = vmatprep.subr.bf16.mxu1 %v14402_v33  ;;  %v14436_v42 = vld [vmem:[#allocation8 + $0xe08] ss:$16 sps:$4 sm:$0xff]   ;;  %v14441_v33 = vld [vmem:[#allocation8 + $0xe24] ss:$16 sps:$4 sm:$0xff]  }
 0x785   : > { %11597 = vmatpush1.bf16.msra.mxu0 %v14397_v38  ;;  %11683 = vmatpush1.bf16.msra.mxu1 %v14400_v40  ;;  %v14444_v38 = vld [vmem:[#allocation8 + $0xe2c] ss:$16 sps:$4 sm:$0xff]   ;;  %v14439_v40 = vld [vmem:[#allocation8 + $0xe20] ss:$16 sps:$4 sm:$0xff]  }
 0x786   : > { %11598 = vmatprep.subr.bf16.mxu0 %v14405_v43  ;;  %11684 = vmatprep.subr.bf16.mxu1 %v14408_v15  ;;  %v14442_v43 = vld [vmem:[#allocation8 + $0xe28] ss:$16 sps:$4 sm:$0xff]   ;;  %v14447_v15 = vld [vmem:[#allocation8 + $0xe44] ss:$16 sps:$4 sm:$0xff]  }
 0x789   : > { %11599 = vmatpush1.bf16.msra.mxu0 %v14403_v44  ;;  %11685 = vmatpush1.bf16.msra.mxu1 %v14406_v45  ;;  %v14450_v44 = vld [vmem:[#allocation8 + $0xe4c] ss:$16 sps:$4 sm:$0xff]   ;;  %v14445_v45 = vld [vmem:[#allocation8 + $0xe40] ss:$16 sps:$4 sm:$0xff]  }
 0x78a   : > { %11600 = vmatprep.subr.bf16.mxu0 %v14411_v48  ;;  %11686 = vmatprep.subr.bf16.mxu1 %v14414_v49  ;;  %v14448_v48 = vld [vmem:[#allocation8 + $0xe48] ss:$16 sps:$4 sm:$0xff]   ;;  %v14453_v49 = vld [vmem:[#allocation8 + $0xe64] ss:$16 sps:$4 sm:$0xff]  }
 0x78d   : > { %11601 = vmatpush1.bf16.msra.mxu0 %v14409_v50  ;;  %11687 = vmatpush1.bf16.msra.mxu1 %v14412_v51  ;;  %v14456_v50 = vld [vmem:[#allocation8 + $0xe6c] ss:$16 sps:$4 sm:$0xff]   ;;  %v14451_v51 = vld [vmem:[#allocation8 + $0xe60] ss:$16 sps:$4 sm:$0xff]  }
 0x78e   : > { %11602 = vmatprep.subr.bf16.mxu0 %v14417_v36  ;;  %11688 = vmatprep.subr.bf16.mxu1 %v14420_v52  ;;  %v14454_v36 = vld [vmem:[#allocation8 + $0xe68] ss:$16 sps:$4 sm:$0xff]   ;;  %v14459_v52 = vld [vmem:[#allocation8 + $0xe84] ss:$16 sps:$4 sm:$0xff]  }
 0x791   : > { %11603 = vmatpush1.bf16.msra.mxu0 %v14415_v53  ;;  %11689 = vmatpush1.bf16.msra.mxu1 %v14418_v25  ;;  %v14462_v53 = vld [vmem:[#allocation8 + $0xe8c] ss:$16 sps:$4 sm:$0xff]   ;;  %v14457_v25 = vld [vmem:[#allocation8 + $0xe80] ss:$16 sps:$4 sm:$0xff]  }
 0x792   : > { %11604 = vmatprep.subr.bf16.mxu0 %v14423_v54  ;;  %11690 = vmatprep.subr.bf16.mxu1 %v14426_v56  ;;  %v14460_v54 = vld [vmem:[#allocation8 + $0xe88] ss:$16 sps:$4 sm:$0xff]   ;;  %v14465_v56 = vld [vmem:[#allocation8 + $0xea4] ss:$16 sps:$4 sm:$0xff]  }
 0x795   : > { %11605 = vmatpush1.bf16.msra.mxu0 %v14421_v47  ;;  %11691 = vmatpush1.bf16.msra.mxu1 %v14424_v59  ;;  %v14468_v47 = vld [vmem:[#allocation8 + $0xeac] ss:$16 sps:$4 sm:$0xff]   ;;  %v14463_v59 = vld [vmem:[#allocation8 + $0xea0] ss:$16 sps:$4 sm:$0xff]  }
 0x796   : > { %11606 = vmatprep.subr.bf16.mxu0 %v14429_v60  ;;  %11692 = vmatprep.subr.bf16.mxu1 %v14432_v61  ;;  %v14466_v60 = vld [vmem:[#allocation8 + $0xea8] ss:$16 sps:$4 sm:$0xff]   ;;  %v14471_v61 = vld [vmem:[#allocation8 + $0xec4] ss:$16 sps:$4 sm:$0xff]  }
 0x799   : > { %11607 = vmatpush1.bf16.msra.mxu0 %v14427_v62  ;;  %11693 = vmatpush1.bf16.msra.mxu1 %v14430_v30  ;;  %v14474_v62 = vld [vmem:[#allocation8 + $0xecc] ss:$16 sps:$4 sm:$0xff]   ;;  %v14469_v30 = vld [vmem:[#allocation8 + $0xec0] ss:$16 sps:$4 sm:$0xff]  }
 0x79a   : > { %11619 = vmatprep.subr.bf16.mxu0 %v14435_v63  ;;  %11705 = vmatprep.subr.bf16.mxu1 %v14438_v0  ;;  %v14472_v63 = vld [vmem:[#allocation8 + $0xec8] ss:$16 sps:$4 sm:$0xff]   ;;  %v14477_v0 = vld [vmem:[#allocation8 + $0xee4] ss:$16 sps:$4 sm:$0xff]  }
 0x82f   : > { %v10615_v7 = vpop.f32.mrb[16].mxu0  ;;  %v10787_v8 = vpop.f32.mrb[16].mxu1 }
 0x830   : > { %v13508_v39 = vadd.f32 %v10615_v7, %v9155_v3  ;;  %v13512_v9 = vadd.f32 %v10787_v8, %v9163_v4  ;;  %v10617_v1 = vpop.f32.mrb[17].mxu0  ;;  %v10789_v10 = vpop.f32.mrb[17].mxu1  ;;  %v14481_v7 = vld [vmem:[#allocation8 + $0xf00] ss:$16 sps:$4 sm:$0xff]   ;;  %v14484_v8 = vld [vmem:[#allocation8 + $0xf08] ss:$16 sps:$4 sm:$0xff]  }
 0x831   : > { %v13509_v11 = vadd.f32 %v10617_v1, %v9159_v5  ;;  %v13513_v46 = vadd.f32 %v10789_v10, %v9167_v6  ;;  %v10619_v12 = vpop.f32.mrb[18].mxu0  ;;  %v10791_v13 = vpop.f32.mrb[18].mxu1  ;;  %v14487_v1 = vld [vmem:[#allocation8 + $0xf20] ss:$16 sps:$4 sm:$0xff]   ;;  %v14490_v10 = vld [vmem:[#allocation8 + $0xf28] ss:$16 sps:$4 sm:$0xff]  }
 0x832   : > { %v13510_v14 = vadd.f32 %v10619_v12, %v9155_v3  ;;  %v13514_v27 = vadd.f32 %v10791_v13, %v9163_v4  ;;  %v10621_v16 = vpop.f32.mrb[19].mxu0  ;;  %v10793_v17 = vpop.f32.mrb[19].mxu1  ;;  %v10796_v19 = vmax.f32 %v13508_v39, 0.0  ;;  %v10798_v55 = vmax.f32 %v13512_v9, 0.0  ;;  %v14475_v3 = vld [vmem:[#allocation8 + $0xee0] ss:$16 sps:$4 sm:$0xff]  }
 0x833   : > { %v13511_v41 = vadd.f32 %v10621_v16, %v9159_v5  ;;  %v13515_v18 = vadd.f32 %v10793_v17, %v9167_v6  ;;  %v10797_v22 = vmax.f32 %v13509_v11, 0.0  ;;  %v10799_v23 = vmax.f32 %v13513_v46, 0.0  ;;  %v14478_v4 = vld [vmem:[#allocation8 + $0xee8] ss:$16 sps:$4 sm:$0xff]   ;;  %v14483_v5 = vld [vmem:[#allocation8 + $0xf04] ss:$16 sps:$4 sm:$0xff]  }
 0x834   : > { %v10800_v20 = vmax.f32 %v13510_v14, 0.0  ;;  %v10802_v21 = vmax.f32 %v13514_v27, 0.0  ;;  %v14486_v6 = vld [vmem:[#allocation8 + $0xf0c] ss:$16 sps:$4 sm:$0xff]   ;;  %v14489_v39 = vld [vmem:[#allocation8 + $0xf24] ss:$16 sps:$4 sm:$0xff]  }
 0x835   : > { %v10801_v58 = vmax.f32 %v13511_v41, 0.0  ;;  %v10803_v24 = vmax.f32 %v13515_v18, 0.0  ;;  %v14492_v9 = vld [vmem:[#allocation8 + $0xf2c] ss:$16 sps:$4 sm:$0xff]   ;;  %v14495_v11 = vld [vmem:[#allocation8 + $0xf44] ss:$16 sps:$4 sm:$0xff]  }
 0x836   : > { %v10804_v26 = vpack.c.bf16 %v10800_v20, %v10796_v19  ;;  %v15172_v57 = vpack.c.bf16 %v10802_v21, %v10798_v55  ;;  %v14498_v46 = vld [vmem:[#allocation8 + $0xf4c] ss:$16 sps:$4 sm:$0xff]   ;;  %v14493_v12 = vld [vmem:[#allocation8 + $0xf40] ss:$16 sps:$4 sm:$0xff]   ;;  %v14496_v13 = vld [vmem:[#allocation8 + $0xf48] ss:$16 sps:$4 sm:$0xff]  }
 0x837   : > { %v10805_v29 = vpack.c.bf16 %v10801_v58, %v10797_v22  ;;  %v10807_v31 = vpack.c.bf16 %v10803_v24, %v10799_v23  ;;  %v14501_v14 = vld [vmem:[#allocation8 + $0xf64] ss:$16 sps:$4 sm:$0xff]   ;;  %v14504_v27 = vld [vmem:[#allocation8 + $0xf6c] ss:$16 sps:$4 sm:$0xff]   ;;  %v14499_v16 = vld [vmem:[#allocation8 + $0xf60] ss:$16 sps:$4 sm:$0xff]  }
 0x838   : > { %v14502_v17 = vld [vmem:[#allocation8 + $0xf68] ss:$16 sps:$4 sm:$0xff]   ;;  %v14507_v41 = vld [vmem:[#allocation8 + $0xf84] ss:$16 sps:$4 sm:$0xff]   ;;  %v14510_v18 = vld [vmem:[#allocation8 + $0xf8c] ss:$16 sps:$4 sm:$0xff]  }
 0x839   : > { %11608 = vmatprep.mubr.bf16.mxu0 %v10805_v29  ;;  %11694 = vmatprep.mubr.bf16.mxu1 %v10805_v29  ;;  %v14505_v19 = vld [vmem:[#allocation8 + $0xf80] ss:$16 sps:$4 sm:$0xff]   ;;  %v14508_v55 = vld [vmem:[#allocation8 + $0xf88] ss:$16 sps:$4 sm:$0xff]   ;;  %v14513_v20 = vld [vmem:[#allocation8 + $0xfa4] ss:$16 sps:$4 sm:$0xff]  }
 0x83a   : > { %11609 = vmatmul.mubr.bf16.vlgmr.msra.gmra.mrb[8].mxu0 %v10804_v26  ;;  %11695 = vmatmul.mubr.bf16.vlgmr.msra.gmra.mrb[8].mxu1 %v10804_v26  ;;  %v14516_v21 = vld [vmem:[#allocation8 + $0xfac] ss:$16 sps:$4 sm:$0xff]   ;;  %v14511_v22 = vld [vmem:[#allocation8 + $0xfa0] ss:$16 sps:$4 sm:$0xff]   ;;  %v14514_v23 = vld [vmem:[#allocation8 + $0xfa8] ss:$16 sps:$4 sm:$0xff]  }
 0x83b   : > { %11620 = vmatpush1.bf16.msra.mxu0 %v14433_v32  ;;  %11706 = vmatpush1.bf16.msra.mxu1 %v14436_v42  ;;  %v14519_v58 = vld [vmem:[#allocation8 + $0xfc4] ss:$16 sps:$4 sm:$0xff]   ;;  %v14522_v24 = vld [vmem:[#allocation8 + $0xfcc] ss:$16 sps:$4 sm:$0xff]   ;;  %v14517_v26 = vld [vmem:[#allocation8 + $0xfc0] ss:$16 sps:$4 sm:$0xff]  }
 0x83c   : > { %11651 = vmatprep.mubr.bf16.mxu0 %v10807_v31  ;;  %11737 = vmatprep.mubr.bf16.mxu1 %v10807_v31  ;;  %v14520_v29 = vld [vmem:[#allocation8 + $0xfc8] ss:$16 sps:$4 sm:$0xff]   ;;  %v14525_v31 = vld [vmem:[#allocation8 + $0xfe4] ss:$16 sps:$4 sm:$0xff]   ;;  %v14528_v32 = vld [vmem:[#allocation8 + $0xfec] ss:$16 sps:$4 sm:$0xff]  }
 0x83d   : > { %11621 = vmatprep.subr.bf16.mxu0 %v14441_v33  ;;  %11707 = vmatprep.subr.bf16.mxu1 %v14444_v38  ;;  %v14523_v42 = vld [vmem:[#allocation8 + $0xfe0] ss:$16 sps:$4 sm:$0xff]   ;;  %v14526_v33 = vld [vmem:[#allocation8 + $0xfe8] ss:$16 sps:$4 sm:$0xff]  }
 0x83e   : > { %v11756_v38 = vld [vmem:[#allocation10] sm:$0xf] }
 0x83f   : > { %11622 = vmatpush1.bf16.msra.mxu0 %v14439_v40  ;;  %11708 = vmatpush1.bf16.msra.mxu1 %v14442_v43  ;;  %v11761_v40 = vrot.slane %v11756_v38, %v15090_v28  ;;  %v11769_v43 = vrot.slane %v11756_v38, %v15092_v34 }
 0x840   : > { %11623 = vmatprep.subr.bf16.mxu0 %v14447_v15  ;;  %11709 = vmatprep.subr.bf16.mxu1 %v14450_v44  ;;  %v11765_v15 = vrot.slane %v11756_v38, %v15094_v35  ;;  %v11773_v44 = vrot.slane %v11756_v38, %v15096_v37 }
 0x843   : > { %11624 = vmatpush1.bf16.msra.mxu0 %v14445_v45  ;;  %11710 = vmatpush1.bf16.msra.mxu1 %v14448_v48 }
 0x844   : > { %11625 = vmatprep.subr.bf16.mxu0 %v14453_v49  ;;  %11711 = vmatprep.subr.bf16.mxu1 %v14456_v50 }
 0x847   : > { %11626 = vmatpush1.bf16.msra.mxu0 %v14451_v51  ;;  %11712 = vmatpush1.bf16.msra.mxu1 %v14454_v36 }
 0x848   : > { %11627 = vmatprep.subr.bf16.mxu0 %v14459_v52  ;;  %11713 = vmatprep.subr.bf16.mxu1 %v14462_v53 }
 0x84b   : > { %11628 = vmatpush1.bf16.msra.mxu0 %v14457_v25  ;;  %11714 = vmatpush1.bf16.msra.mxu1 %v14460_v54 }
 0x84c   : > { %11629 = vmatprep.subr.bf16.mxu0 %v14465_v56  ;;  %11715 = vmatprep.subr.bf16.mxu1 %v14468_v47 }
 0x84f   : > { %11630 = vmatpush1.bf16.msra.mxu0 %v14463_v59  ;;  %11716 = vmatpush1.bf16.msra.mxu1 %v14466_v60 }
 0x850   : > { %11631 = vmatprep.subr.bf16.mxu0 %v14471_v61  ;;  %11717 = vmatprep.subr.bf16.mxu1 %v14474_v62 }
 0x853   : > { %11632 = vmatpush1.bf16.msra.mxu0 %v14469_v30  ;;  %11718 = vmatpush1.bf16.msra.mxu1 %v14472_v63 }
 0x854   : > { %11633 = vmatprep.subr.bf16.mxu0 %v14477_v0  ;;  %11719 = vmatprep.subr.bf16.mxu1 %v14480_v2 }
 0x857   : > { %11634 = vmatpush1.bf16.msra.mxu0 %v14475_v3  ;;  %11720 = vmatpush1.bf16.msra.mxu1 %v14478_v4 }
 0x858   : > { %11635 = vmatprep.subr.bf16.mxu0 %v14483_v5  ;;  %11721 = vmatprep.subr.bf16.mxu1 %v14486_v6 }
 0x85b   : > { %11636 = vmatpush1.bf16.msra.mxu0 %v14481_v7  ;;  %11722 = vmatpush1.bf16.msra.mxu1 %v14484_v8 }
 0x85c   : > { %11637 = vmatprep.subr.bf16.mxu0 %v14489_v39  ;;  %11723 = vmatprep.subr.bf16.mxu1 %v14492_v9 }
 0x85f   : > { %11638 = vmatpush1.bf16.msra.mxu0 %v14487_v1  ;;  %11724 = vmatpush1.bf16.msra.mxu1 %v14490_v10 }
 0x860   : > { %11639 = vmatprep.subr.bf16.mxu0 %v14495_v11  ;;  %11725 = vmatprep.subr.bf16.mxu1 %v14498_v46 }
 0x863   : > { %11640 = vmatpush1.bf16.msra.mxu0 %v14493_v12  ;;  %11726 = vmatpush1.bf16.msra.mxu1 %v14496_v13 }
 0x864   : > { %11641 = vmatprep.subr.bf16.mxu0 %v14501_v14  ;;  %11727 = vmatprep.subr.bf16.mxu1 %v14504_v27 }
 0x867   : > { %11642 = vmatpush1.bf16.msra.mxu0 %v14499_v16  ;;  %11728 = vmatpush1.bf16.msra.mxu1 %v14502_v17 }
 0x868   : > { %11643 = vmatprep.subr.bf16.mxu0 %v14507_v41  ;;  %11729 = vmatprep.subr.bf16.mxu1 %v14510_v18 }
 0x86b   : > { %11644 = vmatpush1.bf16.msra.mxu0 %v14505_v19  ;;  %11730 = vmatpush1.bf16.msra.mxu1 %v14508_v55 }
 0x86c   : > { %11645 = vmatprep.subr.bf16.mxu0 %v14513_v20  ;;  %11731 = vmatprep.subr.bf16.mxu1 %v14516_v21 }
 0x86f   : > { %11646 = vmatpush1.bf16.msra.mxu0 %v14511_v22  ;;  %11732 = vmatpush1.bf16.msra.mxu1 %v14514_v23 }
 0x870   : > { %11647 = vmatprep.subr.bf16.mxu0 %v14519_v58  ;;  %11733 = vmatprep.subr.bf16.mxu1 %v14522_v24 }
 0x873   : > { %11648 = vmatpush1.bf16.msra.mxu0 %v14517_v26  ;;  %11734 = vmatpush1.bf16.msra.mxu1 %v14520_v29 }
 0x874   : > { %11649 = vmatprep.subr.bf16.mxu0 %v14525_v31  ;;  %11735 = vmatprep.subr.bf16.mxu1 %v14528_v32 }
 0x877   : > { %11650 = vmatpush1.bf16.msra.mxu0 %v14523_v42  ;;  %11736 = vmatpush1.bf16.msra.mxu1 %v14526_v33 }
 0x87a   : > { %11652 = vmatmul.mubr.bf16.vlgmr.msra.gmra.mrb[8].mxu0 %v15172_v57  ;;  %11738 = vmatmul.mubr.bf16.vlgmr.msra.gmra.mrb[8].mxu1 %v15172_v57 }
 0x94d   : > { %v11653_v45 = vpop.f32.mrb[8].mxu0  ;;  %v11739_v48 = vpop.f32.mrb[8].mxu1 }
 0x94e   : > { %v11778_v49 = vadd.f32 %v11761_v40, %v11653_v45  ;;  %v11780_v50 = vadd.f32 %v11769_v43, %v11739_v48  ;;  %v11655_v51 = vpop.f32.mrb[9].mxu0  ;;  %v11741_v36 = vpop.f32.mrb[9].mxu1 }
 0x94f   : > { %v11779_v57 = vadd.f32 %v11765_v15, %v11655_v51  ;;  %v11781_v52 = vadd.f32 %v11773_v44, %v11741_v36  ;;  %v11657_v28 = vpop.f32.mrb[10].mxu0  ;;  %v11743_v53 = vpop.f32.mrb[10].mxu1 }
 0x950   : > { %11786 = vst [vmem:[%s297_s26] sm:$0xff] %v11778_v49  ;;  %11788 = vst [vmem:[%s297_s26 + $0x10] sm:$0xff] %v11780_v50  ;;  %v11782_v34 = vadd.f32 %v11761_v40, %v11657_v28  ;;  %v11784_v35 = vadd.f32 %v11769_v43, %v11743_v53  ;;  %v11659_v37 = vpop.f32.mrb[11].mxu0  ;;  %v11745_v25 = vpop.f32.mrb[11].mxu1 }
 0x951   : > { %11787 = vst [vmem:[%s297_s26 + $0x8] sm:$0xff] %v11779_v57  ;;  %11789 = vst [vmem:[%s297_s26 + $0x18] sm:$0xff] %v11781_v52  ;;  %v11783_v54 = vadd.f32 %v11765_v15, %v11659_v37  ;;  %v11785_v56 = vadd.f32 %v11773_v44, %v11745_v25 }
 0x952   : > { %11790 = vst [vmem:[%s297_s26 + $0x20] sm:$0xff] %v11782_v34  ;;  %11792 = vst [vmem:[%s297_s26 + $0x30] sm:$0xff] %v11784_v35 }
 0x953   : > { %11791 = vst [vmem:[%s297_s26 + $0x28] sm:$0xff] %v11783_v54  ;;  %11793 = vst [vmem:[%s297_s26 + $0x38] sm:$0xff] %v11785_v56 }
 0x954   : > { %14684 = shalt.err (!%p14681_p13)
}
 0x955   : > { %s14685_s6 = scalar_lea.hbm %s15187_s7, 1024  ;;  %s14689_s8 = scalar_lea.hbm %s15236_s5, 2048 }
 0x956   : > { %p14686_p9 = scmp.ne.s32.totalorder %s15187_s7, %s14685_s6  ;;  %p14690_p6 = scmp.lt.u32.totalorder %s15187_s7, %s15236_s5 }
 0x957   : > { %p14691_p10 = scmp.lt.u32.totalorder %s14689_s8, %s14685_s6  ;;  %p14693_p4 = scmp.lt.u32.totalorder %s14685_s6, %s15187_s7 }
 0x958   : > { %p14687_p0 = pnand %p14686_p9, %p14958_p8 }
 0x959   : > { %p14692_p3 = por %p14691_p10, %p14690_p6 }
 0x95a   : > { %p14688_p11 = pneg %p14687_p0 }
 0x95b   : > { %p14694_p5 = por %p14693_p4, %p14692_p3 }
 0x95d   : > { %p14695_p7 = pnand %p14694_p5, %p14688_p11 }
 0x95f   : > { %14698 = shalt.err (!%p14695_p7)
}
 0x960   : > { %s14757_s11 = smov 512   ;;  %s14758_s22 = smov 32  }
 0x961   : > { %13686 = dma.vmem_to_hbm [thread:$0]  (%p14958_p8), %s15182_s17, 1024, %s15187_s7, %s11795_s23, %s14757_s11, %s14757_s11, %s14758_s22  }
 0x962 PF: > { %s11824_s28 = sand.u32 1, %s14733_s18   ;;  %p15256_p12 = scmp.ne.s32.totalorder %s15242_s25, 0 }
 0x963   : > { %p15257_p1 = scmp.ge.s32.totalorder %s14745_s21, 2  ;;  %s11825_s27 = scalar_lea.sflag [#allocation4], %s11824_s28 }
 0x965   : > { %p13706_p2 = pnand %p15257_p1, %p15256_p12 }
 0x967   : > { %14728 = dma.done.wait (!%p13706_p2), %s11825_s27, 1024  }
 0x968   : > { %14730 = vsyncadd (!%p13706_p2), %s11825_s27, 4294966272  ;;  %p20_p13 = scmp.ge.s32.totalorder %s14945_s12, 4   ;;  %s15258_s18 = smov %s14737_s19 }
 0x969   : > { %s15259_s19 = smov %s14741_s20  ;;  %s15260_s20 = smov %s14954_s16 }
 0x96a   : > { %s15261_s21 = smov %s14945_s12  ;;  %22 = sbr.rel (!%p20_p13) target bundleno = 7 (0x7), region = 101 }
 0x971   :  { %11830 = vsyncpa [#allocation3], 1 }
 0x972   :  { %11832 = vsyncpa [#allocation3 + $0x1], 1 }
 0x973   :  { %11833 = vsyncpa [#allocation6], 1 }
 0x974   :  { %11834 = vsyncpa [#allocation9], 1 }
 0x975   :  { %11835 = vsyncpa [#allocation4], 1 }
 0x976   :  { %11837 = vsyncpa [#allocation4 + $0x1], 1 }

</bundles_post_ra>
